<compile_context>
chip_gen: v5e
topology: v5e:2x2
jax: 0.10.0
libtpu: 0.0.40
codegen_flags: <defaults>
</compile_context>

<pallas_src>
import functools
import math

import jax
import jax.numpy as jnp
from jax import lax
from jax.experimental import pallas as pl
from jax.experimental.pallas import tpu as pltpu


# ---------------------------------------------------------------------------
# Kernel 1: fused q/k/v projection with a single concatenated weight.
# One x-tile load, ONE wide MXU dot (bf16 operands, f32 accumulate), three
# bf16 outputs split by 128-aligned lane slices.  Grid tiles the M (=B*S) axis.
# ---------------------------------------------------------------------------
def _qkv_proj_kernel(x_ref, w_ref, q_ref, k_ref, v_ref, *, nq, nkv):
    x = x_ref[...].astype(jnp.bfloat16)
    out = jnp.dot(x, w_ref[...], preferred_element_type=jnp.float32)
    q_ref[...] = out[:, :nq].astype(q_ref.dtype)
    k_ref[...] = out[:, nq:nq + nkv].astype(k_ref.dtype)
    v_ref[...] = out[:, nq + nkv:].astype(v_ref.dtype)


def qkv_proj(x2d, wqkv_t, nq, nkv, tile_m):
    M, K = x2d.shape
    n_tot = wqkv_t.shape[1]
    tm = min(tile_m, M)
    assert M % tm == 0, "B*S must be divisible by the M tile"
    kernel = functools.partial(_qkv_proj_kernel, nq=nq, nkv=nkv)
    return pl.pallas_call(
        kernel,
        out_shape=(jax.ShapeDtypeStruct((M, nq), jnp.bfloat16),
                   jax.ShapeDtypeStruct((M, nkv), jnp.bfloat16),
                   jax.ShapeDtypeStruct((M, nkv), jnp.bfloat16)),
        grid=(M // tm,),
        in_specs=[pl.BlockSpec((tm, K), lambda i: (i, 0)),
                  pl.BlockSpec((K, n_tot), lambda i: (0, 0))],
        out_specs=(pl.BlockSpec((tm, nq), lambda i: (i, 0)),
                   pl.BlockSpec((tm, nkv), lambda i: (i, 0)),
                   pl.BlockSpec((tm, nkv), lambda i: (i, 0))),
        compiler_params=pltpu.CompilerParams(
            dimension_semantics=("parallel",)),
    )(x2d, wqkv_t)


# ---------------------------------------------------------------------------
# Kernel 2: RoPE + dense (block_mask=None) softmax attention for one batch
# element.  q/k/v stay in lane-dense (S, H*D) layout; kv heads and the GQA
# group are static loops so K/V are loaded and rotated once per kv head.
# ---------------------------------------------------------------------------
def _rope(x, cos, sin, half):
    # x: (S, D) f32; cos = [cos, cos]; sin = [-sin, sin] (sign folded in table)
    xr = jnp.concatenate([x[:, half:], x[:, :half]], axis=-1)   # rotate_half
    return x * cos + xr * sin


def _attn_kernel(cos_ref, sin_ref, q_ref, k_ref, v_ref, o_ref, *,
                 num_heads, gqa_num_heads, head_dim):
    D = head_dim
    half = D // 2
    group = num_heads // gqa_num_heads
    cos = cos_ref[...]                     # (S, D) f32
    sin = sin_ref[...]                     # (S, D) f32, = [-sin, sin]

    q_all = q_ref[0]                       # (S, Hq*D)  bf16, lane-dense
    k_all = k_ref[0]                       # (S, Hkv*D) bf16, lane-dense
    v_all = v_ref[0]                       # (S, Hkv*D) bf16, lane-dense

    outs = []
    for g in range(gqa_num_heads):         # static, small
        k = k_all[:, g * D:(g + 1) * D].astype(jnp.float32)
        v_b = v_all[:, g * D:(g + 1) * D]                       # keep bf16
        kr_b = _rope(k, cos, sin, half).astype(jnp.bfloat16)
        for h in range(group):             # static GQA group loop
            hq = g * group + h
            q_h = q_all[:, hq * D:(hq + 1) * D].astype(jnp.float32)
            qr_b = _rope(q_h, cos, sin, half).astype(jnp.bfloat16)
            # contract on dim 1 of both operands: no materialized K transpose
            s = lax.dot_general(qr_b, kr_b,
                                dimension_numbers=(((1,), (1,)), ((), ())),
                                preferred_element_type=jnp.float32)  # (S, S)
            m = jnp.max(s, axis=-1, keepdims=True)
            p = jnp.exp(s - m)
            l = jnp.sum(p, axis=-1, keepdims=True)
            o = jnp.dot(p.astype(jnp.bfloat16), v_b,
                        preferred_element_type=jnp.float32)          # (S, D)
            outs.append((o * pl.reciprocal(l, approx=True)).astype(o_ref.dtype))
    # single full-width (S, Hq*D) lane-dense store
    o_ref[0] = jnp.concatenate(outs, axis=-1)


def mha_attention(q3, k3, v3, cos, sin, *, num_heads, gqa_num_heads, head_dim):
    """q3: (B, S, Hq*D); k3, v3: (B, S, Hkv*D); cos/sin: (S, D)."""
    B, S, nq = q3.shape
    nkv = k3.shape[-1]
    kernel = functools.partial(_attn_kernel, num_heads=num_heads,
                               gqa_num_heads=gqa_num_heads, head_dim=head_dim)
    return pl.pallas_call(
        kernel,
        out_shape=jax.ShapeDtypeStruct((B, S, nq), jnp.bfloat16),
        grid=(B,),
        in_specs=[
            pl.BlockSpec((S, head_dim), lambda b: (0, 0)),
            pl.BlockSpec((S, head_dim), lambda b: (0, 0)),
            pl.BlockSpec((1, S, nq), lambda b: (b, 0, 0)),
            pl.BlockSpec((1, S, nkv), lambda b: (b, 0, 0)),
            pl.BlockSpec((1, S, nkv), lambda b: (b, 0, 0)),
        ],
        out_specs=pl.BlockSpec((1, S, nq), lambda b: (b, 0, 0)),
        compiler_params=pltpu.CompilerParams(
            dimension_semantics=("parallel",)),
    )(cos, sin, q3, k3, v3)


# ---------------------------------------------------------------------------
# Kernel 3: o_proj matmul fused with RMSNorm (affine) + residual add,
# tiled over M rows (RMSNorm is per-row, so row tiling is exact).
# ---------------------------------------------------------------------------
def _oproj_rmsnorm_kernel(a_ref, w_ref, g_ref, res_ref, o_ref, *, eps):
    out = jnp.dot(a_ref[...], w_ref[...],
                  preferred_element_type=jnp.float32)
    ms = jnp.mean(out * out, axis=-1, keepdims=True)
    out = out * lax.rsqrt(ms + eps) * g_ref[...]
    o_ref[...] = (res_ref[...] + out).astype(o_ref.dtype)


def oproj_rmsnorm_residual(attn2d, wo_t, gamma, res2d, eps, tile_m):
    M, K = attn2d.shape
    N = wo_t.shape[1]
    tm = min(tile_m, M)
    assert M % tm == 0
    kernel = functools.partial(_oproj_rmsnorm_kernel, eps=eps)
    return pl.pallas_call(
        kernel,
        out_shape=jax.ShapeDtypeStruct((M, N), jnp.float32),
        grid=(M // tm,),
        in_specs=[pl.BlockSpec((tm, K), lambda i: (i, 0)),
                  pl.BlockSpec((K, N), lambda i: (0, 0)),
                  pl.BlockSpec((1, N), lambda i: (0, 0)),
                  pl.BlockSpec((tm, N), lambda i: (i, 0))],
        out_specs=pl.BlockSpec((tm, N), lambda i: (i, 0)),
        compiler_params=pltpu.CompilerParams(
            dimension_semantics=("parallel",)),
    )(attn2d, wo_t, gamma, res2d)


# ---------------------------------------------------------------------------
# MHA forward (glue: reshapes only; no transposes of q/k/v or attn-out)
# ---------------------------------------------------------------------------
def mha_forward(x, params, *, num_heads, gqa_num_heads, head_dim,
                eps=1e-5, tile_m=512):
    B, S, hidden = x.shape
    M = B * S
    nq = num_heads * head_dim
    nkv = gqa_num_heads * head_dim
    x2 = x.reshape(M, hidden)

    q2, k2, v2 = qkv_proj(x2, params["wqkv_t"], nq, nkv, tile_m)

    q3 = q2.reshape(B, S, nq)      # lane-dense, bf16
    k3 = k2.reshape(B, S, nkv)     # lane-dense, bf16 (no transpose!)
    v3 = v2.reshape(B, S, nkv)

    attn = mha_attention(q3, k3, v3, params["cos"], params["sin"],
                         num_heads=num_heads, gqa_num_heads=gqa_num_heads,
                         head_dim=head_dim)                     # (B,S,Hq*D) bf16
    attn2 = attn.reshape(M, nq)

    out2 = oproj_rmsnorm_residual(attn2, params["wo_t"], params["gamma"],
                                  x2, eps, tile_m)
    return out2.reshape(B, S, hidden).astype(x.dtype)


# ---------------------------------------------------------------------------
# Deterministic parameter construction (matches module __init__ shapes/init).
# The rotary de-interleave permutation and the 1/sqrt(D) softmax scale are
# folded into the q/k weight columns here (must be re-applied if pretrained
# weights are ever loaded).
# ---------------------------------------------------------------------------
def init_params(key, hidden, num_heads, gqa_num_heads, head_dim, seq_len,
                rope_theta=10000.0):
    qk_dims = num_heads * head_dim
    v_dims = gqa_num_heads * head_dim
    keys = jax.random.split(key, 4)

    def trunc_linear(k, in_dim, out_dim):
        std = 1.0 / math.sqrt(out_dim)   # LinearProjection: fan_in = out_dim
        return jax.random.truncated_normal(
            k, -2.0, 2.0, (in_dim, out_dim), dtype=jnp.float32) * std

    wq_t = trunc_linear(keys[0], hidden, qk_dims)
    wk_t = trunc_linear(keys[1], hidden, v_dims)
    wv_t = trunc_linear(keys[2], hidden, v_dims)
    wo_t = trunc_linear(keys[3], qk_dims, hidden)

    # Fold de-interleave (even dims first, odd second) into wq/wk columns so
    # the kernel's rotate-half rotary equals the interleaved complex rotary.
    perm = jnp.concatenate([jnp.arange(0, head_dim, 2),
                            jnp.arange(1, head_dim, 2)])
    wq_t = wq_t.reshape(hidden, num_heads, head_dim)[:, :, perm] \
               .reshape(hidden, qk_dims)
    wk_t = wk_t.reshape(hidden, gqa_num_heads, head_dim)[:, :, perm] \
               .reshape(hidden, v_dims)

    # Fold the 1/sqrt(D) attention scale into the q weight (no in-kernel mul).
    wq_t = wq_t * (1.0 / math.sqrt(head_dim))

    # One concatenated projection weight -> one wide MXU dot in kernel 1.
    wqkv_t = jnp.concatenate([wq_t, wk_t, wv_t], axis=1)

    params = {
        # weights stored bf16 (MXU operands); accumulation stays f32
        "wqkv_t": wqkv_t.astype(jnp.bfloat16),
        "wo_t": wo_t.astype(jnp.bfloat16),
        "gamma": jnp.ones((1, hidden), jnp.float32),   # RMSNorm affine weight
    }

    # rotary tables, full head_dim width: cos -> [cos, cos], sin -> [-sin, sin]
    inv_freq = 1.0 / (rope_theta ** (jnp.arange(0, head_dim, 2,
                                                dtype=jnp.float32) / head_dim))
    t = jnp.arange(seq_len, dtype=jnp.float32)
    angles = jnp.outer(t, inv_freq)                    # (S, head_dim//2)
    cos = jnp.cos(angles)
    sin = jnp.sin(angles)
    params["cos"] = jnp.concatenate([cos, cos], axis=-1)    # (S, D)
    params["sin"] = jnp.concatenate([-sin, sin], axis=-1)   # (S, D), signed
    return params


if __name__ == "__main__":
    # Small config consistent with the module's constraints
    # (all projection dims divisible by 128).
    B, S = 2, 128
    hidden = 256
    num_heads = 4
    head_dim = 64
    gqa_num_heads = 2          # GQA: 4 query heads share 2 kv heads

    root = jax.random.PRNGKey(0)
    kx, kp = jax.random.split(root)
    x = jax.random.normal(kx, (B, S, hidden), dtype=jnp.float32)
    params = init_params(kp, hidden, num_heads, gqa_num_heads, head_dim, S)

    fwd = jax.jit(functools.partial(mha_forward,
                                    num_heads=num_heads,
                                    gqa_num_heads=gqa_num_heads,
                                    head_dim=head_dim,
                                    eps=1e-5))
    out = fwd(x, params)
    jax.block_until_ready(out)
    assert out.shape == (B, S, hidden) and out.dtype == jnp.float32
    assert bool(jnp.all(jnp.isfinite(out)))
    print("KERNEL_OK")
</pallas_src>

<mosaic_0001>
module attributes {stable_mosaic.version = 11 : i64} {
  func.func @_qkv_proj_kernel(%arg0: i32, %arg1: memref<256x256xf32, #tpu.memory_space<vmem>>, %arg2: memref<256x512xbf16, #tpu.memory_space<vmem>>, %arg3: memref<256x256xbf16, #tpu.memory_space<vmem>>, %arg4: memref<256x128xbf16, #tpu.memory_space<vmem>>, %arg5: memref<256x128xbf16, #tpu.memory_space<vmem>>) attributes {dimension_semantics = [#tpu.dimension_semantics<parallel>], iteration_bounds = array<i64: 1>, scalar_prefetch = 0 : i64, scratch_operands = 0 : i64, tpu.core_type = #tpu.core_type<tc>, window_params = [{transform_indices = @transform_0, window_bounds = array<i64: 256, 256>}, {pipeline_mode = #tpu.pipeline_mode<synchronous>, transform_indices = @transform_1, window_bounds = array<i64: 256, 512>}, {transform_indices = @transform_2, window_bounds = array<i64: 256, 256>}, {transform_indices = @transform_3, window_bounds = array<i64: 256, 128>}, {transform_indices = @transform_4, window_bounds = array<i64: 256, 128>}]} {
    %c0 = arith.constant 0 : index
    %c0_0 = arith.constant 0 : index
    %0 = vector.load %arg1[%c0, %c0_0] : memref<256x256xf32, #tpu.memory_space<vmem>>, vector<256x256xf32>
    %1 = arith.truncf %0 : vector<256x256xf32> to vector<256x256xbf16>
    %c0_1 = arith.constant 0 : index
    %c0_2 = arith.constant 0 : index
    %2 = vector.load %arg2[%c0_1, %c0_2] : memref<256x512xbf16, #tpu.memory_space<vmem>>, vector<256x512xbf16>
    %cst = arith.constant dense<0.000000e+00> : vector<256x512xf32>
    %3 = tpu.matmul %1, %2, %cst {dimension_numbers = #tpu.dot_dimension_numbers<[1], [0], [0], [1], [0, 0, 1, 1], [], []>} : vector<256x256xbf16>, vector<256x512xbf16>, vector<256x512xf32> -> vector<256x512xf32>
    %4 = vector.extract_strided_slice %3 {offsets = [0, 0], sizes = [256, 256], strides = [1, 1]} : vector<256x512xf32> to vector<256x256xf32>
    %5 = arith.truncf %4 : vector<256x256xf32> to vector<256x256xbf16>
    %c0_3 = arith.constant 0 : index
    %c0_4 = arith.constant 0 : index
    %6 = vector.load %arg3[%c0_3, %c0_4] : memref<256x256xbf16, #tpu.memory_space<vmem>>, vector<256x256xbf16>
    tpu.vector_store %arg3[%c0_3, %c0_4], %5 {strides = array<i32>} : memref<256x256xbf16, #tpu.memory_space<vmem>>, vector<256x256xbf16>,
    %7 = vector.extract_strided_slice %3 {offsets = [0, 256], sizes = [256, 128], strides = [1, 1]} : vector<256x512xf32> to vector<256x128xf32>
    %8 = arith.truncf %7 : vector<256x128xf32> to vector<256x128xbf16>
    %c0_5 = arith.constant 0 : index
    %c0_6 = arith.constant 0 : index
    %9 = vector.load %arg4[%c0_5, %c0_6] : memref<256x128xbf16, #tpu.memory_space<vmem>>, vector<256x128xbf16>
    tpu.vector_store %arg4[%c0_5, %c0_6], %8 {strides = array<i32>} : memref<256x128xbf16, #tpu.memory_space<vmem>>, vector<256x128xbf16>,
    %10 = vector.extract_strided_slice %3 {offsets = [0, 384], sizes = [256, 128], strides = [1, 1]} : vector<256x512xf32> to vector<256x128xf32>
    %11 = arith.truncf %10 : vector<256x128xf32> to vector<256x128xbf16>
    %c0_7 = arith.constant 0 : index
    %c0_8 = arith.constant 0 : index
    %12 = vector.load %arg5[%c0_7, %c0_8] : memref<256x128xbf16, #tpu.memory_space<vmem>>, vector<256x128xbf16>
    tpu.vector_store %arg5[%c0_7, %c0_8], %11 {strides = array<i32>} : memref<256x128xbf16, #tpu.memory_space<vmem>>, vector<256x128xbf16>,
    return
  }
  func.func @transform_0(%arg0: i32) -> (i32, i32) {
    %c0_i32 = arith.constant 0 : i32
    %c0_i32_0 = arith.constant 0 : i32
    return %arg0, %c0_i32 : i32, i32
  }
  func.func @transform_1(%arg0: i32) -> (i32, i32) {
    %c0_i32 = arith.constant 0 : i32
    %c0_i32_0 = arith.constant 0 : i32
    %c0_i32_1 = arith.constant 0 : i32
    return %c0_i32, %c0_i32_0 : i32, i32
  }
  func.func @transform_2(%arg0: i32) -> (i32, i32) {
    %c0_i32 = arith.constant 0 : i32
    %c0_i32_0 = arith.constant 0 : i32
    return %arg0, %c0_i32 : i32, i32
  }
  func.func @transform_3(%arg0: i32) -> (i32, i32) {
    %c0_i32 = arith.constant 0 : i32
    %c0_i32_0 = arith.constant 0 : i32
    return %arg0, %c0_i32 : i32, i32
  }
  func.func @transform_4(%arg0: i32) -> (i32, i32) {
    %c0_i32 = arith.constant 0 : i32
    %c0_i32_0 = arith.constant 0 : i32
    return %arg0, %c0_i32 : i32, i32
  }
}

module attributes {stable_mosaic.version = 11 : i64} {
  func.func @_attn_kernel(%arg0: i32, %arg1: memref<128x64xf32, #tpu.memory_space<vmem>>, %arg2: memref<128x64xf32, #tpu.memory_space<vmem>>, %arg3: memref<1x128x256xbf16, #tpu.memory_space<vmem>>, %arg4: memref<1x128x128xbf16, #tpu.memory_space<vmem>>, %arg5: memref<1x128x128xbf16, #tpu.memory_space<vmem>>, %arg6: memref<1x128x256xbf16, #tpu.memory_space<vmem>>) attributes {dimension_semantics = [#tpu.dimension_semantics<parallel>], iteration_bounds = array<i64: 2>, scalar_prefetch = 0 : i64, scratch_operands = 0 : i64, tpu.core_type = #tpu.core_type<tc>, window_params = [{pipeline_mode = #tpu.pipeline_mode<synchronous>, transform_indices = @transform_0, window_bounds = array<i64: 128, 64>}, {pipeline_mode = #tpu.pipeline_mode<synchronous>, transform_indices = @transform_1, window_bounds = array<i64: 128, 64>}, {transform_indices = @transform_2, window_bounds = array<i64: 1, 128, 256>}, {transform_indices = @transform_3, window_bounds = array<i64: 1, 128, 128>}, {transform_indices = @transform_4, window_bounds = array<i64: 1, 128, 128>}, {transform_indices = @transform_5, window_bounds = array<i64: 1, 128, 256>}]} {
    %c0 = arith.constant 0 : index
    %c0_0 = arith.constant 0 : index
    %0 = vector.load %arg1[%c0, %c0_0] : memref<128x64xf32, #tpu.memory_space<vmem>>, vector<128x64xf32>
    %c0_1 = arith.constant 0 : index
    %c0_2 = arith.constant 0 : index
    %1 = vector.load %arg2[%c0_1, %c0_2] : memref<128x64xf32, #tpu.memory_space<vmem>>, vector<128x64xf32>
    %c0_3 = arith.constant 0 : index
    %c0_4 = arith.constant 0 : index
    %c0_5 = arith.constant 0 : index
    %2 = vector.load %arg3[%c0_3, %c0_4, %c0_5] : memref<1x128x256xbf16, #tpu.memory_space<vmem>>, vector<1x128x256xbf16>
    %3 = vector.shape_cast %2 : vector<1x128x256xbf16> to vector<128x256xbf16>
    %c0_6 = arith.constant 0 : index
    %c0_7 = arith.constant 0 : index
    %c0_8 = arith.constant 0 : index
    %4 = vector.load %arg4[%c0_6, %c0_7, %c0_8] : memref<1x128x128xbf16, #tpu.memory_space<vmem>>, vector<1x128x128xbf16>
    %5 = vector.shape_cast %4 : vector<1x128x128xbf16> to vector<128x128xbf16>
    %c0_9 = arith.constant 0 : index
    %c0_10 = arith.constant 0 : index
    %c0_11 = arith.constant 0 : index
    %6 = vector.load %arg5[%c0_9, %c0_10, %c0_11] : memref<1x128x128xbf16, #tpu.memory_space<vmem>>, vector<1x128x128xbf16>
    %7 = vector.shape_cast %6 : vector<1x128x128xbf16> to vector<128x128xbf16>
    %8 = vector.extract_strided_slice %5 {offsets = [0, 0], sizes = [128, 64], strides = [1, 1]} : vector<128x128xbf16> to vector<128x64xbf16>
    %9 = arith.extf %8 : vector<128x64xbf16> to vector<128x64xf32>
    %10 = vector.extract_strided_slice %7 {offsets = [0, 0], sizes = [128, 64], strides = [1, 1]} : vector<128x128xbf16> to vector<128x64xbf16>
    %11 = vector.extract_strided_slice %9 {offsets = [0, 32], sizes = [128, 32], strides = [1, 1]} : vector<128x64xf32> to vector<128x32xf32>
    %12 = vector.extract_strided_slice %9 {offsets = [0, 0], sizes = [128, 32], strides = [1, 1]} : vector<128x64xf32> to vector<128x32xf32>
    %13 = tpu.concatenate %11, %12 in 1 : vector<128x32xf32>, vector<128x32xf32> -> vector<128x64xf32>
    %14 = arith.mulf %9, %0 : vector<128x64xf32>
    %15 = arith.mulf %13, %1 : vector<128x64xf32>
    %16 = arith.addf %14, %15 : vector<128x64xf32>
    %17 = arith.truncf %16 : vector<128x64xf32> to vector<128x64xbf16>
    %18 = vector.extract_strided_slice %3 {offsets = [0, 0], sizes = [128, 64], strides = [1, 1]} : vector<128x256xbf16> to vector<128x64xbf16>
    %19 = arith.extf %18 : vector<128x64xbf16> to vector<128x64xf32>
    %20 = vector.extract_strided_slice %19 {offsets = [0, 32], sizes = [128, 32], strides = [1, 1]} : vector<128x64xf32> to vector<128x32xf32>
    %21 = vector.extract_strided_slice %19 {offsets = [0, 0], sizes = [128, 32], strides = [1, 1]} : vector<128x64xf32> to vector<128x32xf32>
    %22 = tpu.concatenate %20, %21 in 1 : vector<128x32xf32>, vector<128x32xf32> -> vector<128x64xf32>
    %23 = arith.mulf %19, %0 : vector<128x64xf32>
    %24 = arith.mulf %22, %1 : vector<128x64xf32>
    %25 = arith.addf %23, %24 : vector<128x64xf32>
    %26 = arith.truncf %25 : vector<128x64xf32> to vector<128x64xbf16>
    %cst = arith.constant dense<0.000000e+00> : vector<128x128xf32>
    %27 = tpu.matmul %26, %17, %cst {dimension_numbers = #tpu.dot_dimension_numbers<[1], [1], [0], [0], [0, 0, 1, 0], [], []>} : vector<128x64xbf16>, vector<128x64xbf16>, vector<128x128xf32> -> vector<128x128xf32>
    %cst_12 = arith.constant dense<0xFF800000> : vector<128xf32>
    %28 = vector.multi_reduction <maximumf>, %27, %cst_12 [1] : vector<128x128xf32> to vector<128xf32>
    %29 = vector.shape_cast %28 : vector<128xf32> to vector<128x1xf32>
    %30 = vector.broadcast %29 : vector<128x1xf32> to vector<128x128xf32>
    %31 = arith.subf %27, %30 : vector<128x128xf32>
    %32 = math.exp %31 : vector<128x128xf32>
    %cst_13 = arith.constant dense<0.000000e+00> : vector<128xf32>
    %33 = vector.multi_reduction <add>, %32, %cst_13 [1] : vector<128x128xf32> to vector<128xf32>
    %34 = vector.shape_cast %33 : vector<128xf32> to vector<128x1xf32>
    %35 = arith.truncf %32 : vector<128x128xf32> to vector<128x128xbf16>
    %cst_14 = arith.constant dense<0.000000e+00> : vector<128x64xf32>
    %36 = tpu.matmul %35, %10, %cst_14 {dimension_numbers = #tpu.dot_dimension_numbers<[1], [0], [0], [1], [0, 0, 1, 1], [], []>} : vector<128x128xbf16>, vector<128x64xbf16>, vector<128x64xf32> -> vector<128x64xf32>
    %37 = tpu.reciprocal %34 {approx = true} : vector<128x1xf32> -> vector<128x1xf32>
    %38 = vector.broadcast %37 : vector<128x1xf32> to vector<128x64xf32>
    %39 = arith.mulf %36, %38 : vector<128x64xf32>
    %40 = arith.truncf %39 : vector<128x64xf32> to vector<128x64xbf16>
    %41 = vector.extract_strided_slice %3 {offsets = [0, 64], sizes = [128, 64], strides = [1, 1]} : vector<128x256xbf16> to vector<128x64xbf16>
    %42 = arith.extf %41 : vector<128x64xbf16> to vector<128x64xf32>
    %43 = vector.extract_strided_slice %42 {offsets = [0, 32], sizes = [128, 32], strides = [1, 1]} : vector<128x64xf32> to vector<128x32xf32>
    %44 = vector.extract_strided_slice %42 {offsets = [0, 0], sizes = [128, 32], strides = [1, 1]} : vector<128x64xf32> to vector<128x32xf32>
    %45 = tpu.concatenate %43, %44 in 1 : vector<128x32xf32>, vector<128x32xf32> -> vector<128x64xf32>
    %46 = arith.mulf %42, %0 : vector<128x64xf32>
    %47 = arith.mulf %45, %1 : vector<128x64xf32>
    %48 = arith.addf %46, %47 : vector<128x64xf32>
    %49 = arith.truncf %48 : vector<128x64xf32> to vector<128x64xbf16>
    %cst_15 = arith.constant dense<0.000000e+00> : vector<128x128xf32>
    %50 = tpu.matmul %49, %17, %cst_15 {dimension_numbers = #tpu.dot_dimension_numbers<[1], [1], [0], [0], [0, 0, 1, 0], [], []>} : vector<128x64xbf16>, vector<128x64xbf16>, vector<128x128xf32> -> vector<128x128xf32>
    %cst_16 = arith.constant dense<0xFF800000> : vector<128xf32>
    %51 = vector.multi_reduction <maximumf>, %50, %cst_16 [1] : vector<128x128xf32> to vector<128xf32>
    %52 = vector.shape_cast %51 : vector<128xf32> to vector<128x1xf32>
    %53 = vector.broadcast %52 : vector<128x1xf32> to vector<128x128xf32>
    %54 = arith.subf %50, %53 : vector<128x128xf32>
    %55 = math.exp %54 : vector<128x128xf32>
    %cst_17 = arith.constant dense<0.000000e+00> : vector<128xf32>
    %56 = vector.multi_reduction <add>, %55, %cst_17 [1] : vector<128x128xf32> to vector<128xf32>
    %57 = vector.shape_cast %56 : vector<128xf32> to vector<128x1xf32>
    %58 = arith.truncf %55 : vector<128x128xf32> to vector<128x128xbf16>
    %cst_18 = arith.constant dense<0.000000e+00> : vector<128x64xf32>
    %59 = tpu.matmul %58, %10, %cst_18 {dimension_numbers = #tpu.dot_dimension_numbers<[1], [0], [0], [1], [0, 0, 1, 1], [], []>} : vector<128x128xbf16>, vector<128x64xbf16>, vector<128x64xf32> -> vector<128x64xf32>
    %60 = tpu.reciprocal %57 {approx = true} : vector<128x1xf32> -> vector<128x1xf32>
    %61 = vector.broadcast %60 : vector<128x1xf32> to vector<128x64xf32>
    %62 = arith.mulf %59, %61 : vector<128x64xf32>
    %63 = arith.truncf %62 : vector<128x64xf32> to vector<128x64xbf16>
    %64 = vector.extract_strided_slice %5 {offsets = [0, 64], sizes = [128, 64], strides = [1, 1]} : vector<128x128xbf16> to vector<128x64xbf16>
    %65 = arith.extf %64 : vector<128x64xbf16> to vector<128x64xf32>
    %66 = vector.extract_strided_slice %7 {offsets = [0, 64], sizes = [128, 64], strides = [1, 1]} : vector<128x128xbf16> to vector<128x64xbf16>
    %67 = vector.extract_strided_slice %65 {offsets = [0, 32], sizes = [128, 32], strides = [1, 1]} : vector<128x64xf32> to vector<128x32xf32>
    %68 = vector.extract_strided_slice %65 {offsets = [0, 0], sizes = [128, 32], strides = [1, 1]} : vector<128x64xf32> to vector<128x32xf32>
    %69 = tpu.concatenate %67, %68 in 1 : vector<128x32xf32>, vector<128x32xf32> -> vector<128x64xf32>
    %70 = arith.mulf %65, %0 : vector<128x64xf32>
    %71 = arith.mulf %69, %1 : vector<128x64xf32>
    %72 = arith.addf %70, %71 : vector<128x64xf32>
    %73 = arith.truncf %72 : vector<128x64xf32> to vector<128x64xbf16>
    %74 = vector.extract_strided_slice %3 {offsets = [0, 128], sizes = [128, 64], strides = [1, 1]} : vector<128x256xbf16> to vector<128x64xbf16>
    %75 = arith.extf %74 : vector<128x64xbf16> to vector<128x64xf32>
    %76 = vector.extract_strided_slice %75 {offsets = [0, 32], sizes = [128, 32], strides = [1, 1]} : vector<128x64xf32> to vector<128x32xf32>
    %77 = vector.extract_strided_slice %75 {offsets = [0, 0], sizes = [128, 32], strides = [1, 1]} : vector<128x64xf32> to vector<128x32xf32>
    %78 = tpu.concatenate %76, %77 in 1 : vector<128x32xf32>, vector<128x32xf32> -> vector<128x64xf32>
    %79 = arith.mulf %75, %0 : vector<128x64xf32>
    %80 = arith.mulf %78, %1 : vector<128x64xf32>
    %81 = arith.addf %79, %80 : vector<128x64xf32>
    %82 = arith.truncf %81 : vector<128x64xf32> to vector<128x64xbf16>
    %cst_19 = arith.constant dense<0.000000e+00> : vector<128x128xf32>
    %83 = tpu.matmul %82, %73, %cst_19 {dimension_numbers = #tpu.dot_dimension_numbers<[1], [1], [0], [0], [0, 0, 1, 0], [], []>} : vector<128x64xbf16>, vector<128x64xbf16>, vector<128x128xf32> -> vector<128x128xf32>
    %cst_20 = arith.constant dense<0xFF800000> : vector<128xf32>
    %84 = vector.multi_reduction <maximumf>, %83, %cst_20 [1] : vector<128x128xf32> to vector<128xf32>
    %85 = vector.shape_cast %84 : vector<128xf32> to vector<128x1xf32>
    %86 = vector.broadcast %85 : vector<128x1xf32> to vector<128x128xf32>
    %87 = arith.subf %83, %86 : vector<128x128xf32>
    %88 = math.exp %87 : vector<128x128xf32>
    %cst_21 = arith.constant dense<0.000000e+00> : vector<128xf32>
    %89 = vector.multi_reduction <add>, %88, %cst_21 [1] : vector<128x128xf32> to vector<128xf32>
    %90 = vector.shape_cast %89 : vector<128xf32> to vector<128x1xf32>
    %91 = arith.truncf %88 : vector<128x128xf32> to vector<128x128xbf16>
    %cst_22 = arith.constant dense<0.000000e+00> : vector<128x64xf32>
    %92 = tpu.matmul %91, %66, %cst_22 {dimension_numbers = #tpu.dot_dimension_numbers<[1], [0], [0], [1], [0, 0, 1, 1], [], []>} : vector<128x128xbf16>, vector<128x64xbf16>, vector<128x64xf32> -> vector<128x64xf32>
    %93 = tpu.reciprocal %90 {approx = true} : vector<128x1xf32> -> vector<128x1xf32>
    %94 = vector.broadcast %93 : vector<128x1xf32> to vector<128x64xf32>
    %95 = arith.mulf %92, %94 : vector<128x64xf32>
    %96 = arith.truncf %95 : vector<128x64xf32> to vector<128x64xbf16>
    %97 = vector.extract_strided_slice %3 {offsets = [0, 192], sizes = [128, 64], strides = [1, 1]} : vector<128x256xbf16> to vector<128x64xbf16>
    %98 = arith.extf %97 : vector<128x64xbf16> to vector<128x64xf32>
    %99 = vector.extract_strided_slice %98 {offsets = [0, 32], sizes = [128, 32], strides = [1, 1]} : vector<128x64xf32> to vector<128x32xf32>
    %100 = vector.extract_strided_slice %98 {offsets = [0, 0], sizes = [128, 32], strides = [1, 1]} : vector<128x64xf32> to vector<128x32xf32>
    %101 = tpu.concatenate %99, %100 in 1 : vector<128x32xf32>, vector<128x32xf32> -> vector<128x64xf32>
    %102 = arith.mulf %98, %0 : vector<128x64xf32>
    %103 = arith.mulf %101, %1 : vector<128x64xf32>
    %104 = arith.addf %102, %103 : vector<128x64xf32>
    %105 = arith.truncf %104 : vector<128x64xf32> to vector<128x64xbf16>
    %cst_23 = arith.constant dense<0.000000e+00> : vector<128x128xf32>
    %106 = tpu.matmul %105, %73, %cst_23 {dimension_numbers = #tpu.dot_dimension_numbers<[1], [1], [0], [0], [0, 0, 1, 0], [], []>} : vector<128x64xbf16>, vector<128x64xbf16>, vector<128x128xf32> -> vector<128x128xf32>
    %cst_24 = arith.constant dense<0xFF800000> : vector<128xf32>
    %107 = vector.multi_reduction <maximumf>, %106, %cst_24 [1] : vector<128x128xf32> to vector<128xf32>
    %108 = vector.shape_cast %107 : vector<128xf32> to vector<128x1xf32>
    %109 = vector.broadcast %108 : vector<128x1xf32> to vector<128x128xf32>
    %110 = arith.subf %106, %109 : vector<128x128xf32>
    %111 = math.exp %110 : vector<128x128xf32>
    %cst_25 = arith.constant dense<0.000000e+00> : vector<128xf32>
    %112 = vector.multi_reduction <add>, %111, %cst_25 [1] : vector<128x128xf32> to vector<128xf32>
    %113 = vector.shape_cast %112 : vector<128xf32> to vector<128x1xf32>
    %114 = arith.truncf %111 : vector<128x128xf32> to vector<128x128xbf16>
    %cst_26 = arith.constant dense<0.000000e+00> : vector<128x64xf32>
    %115 = tpu.matmul %114, %66, %cst_26 {dimension_numbers = #tpu.dot_dimension_numbers<[1], [0], [0], [1], [0, 0, 1, 1], [], []>} : vector<128x128xbf16>, vector<128x64xbf16>, vector<128x64xf32> -> vector<128x64xf32>
    %116 = tpu.reciprocal %113 {approx = true} : vector<128x1xf32> -> vector<128x1xf32>
    %117 = vector.broadcast %116 : vector<128x1xf32> to vector<128x64xf32>
    %118 = arith.mulf %115, %117 : vector<128x64xf32>
    %119 = arith.truncf %118 : vector<128x64xf32> to vector<128x64xbf16>
    %120 = tpu.concatenate %40, %63, %96, %119 in 1 : vector<128x64xbf16>, vector<128x64xbf16>, vector<128x64xbf16>, vector<128x64xbf16> -> vector<128x256xbf16>
    %c0_27 = arith.constant 0 : index
    %c0_28 = arith.constant 0 : index
    %c0_29 = arith.constant 0 : index
    %121 = vector.load %arg6[%c0_27, %c0_28, %c0_29] : memref<1x128x256xbf16, #tpu.memory_space<vmem>>, vector<1x128x256xbf16>
    %122 = vector.shape_cast %121 : vector<1x128x256xbf16> to vector<128x256xbf16>
    %123 = vector.shape_cast %120 : vector<128x256xbf16> to vector<1x128x256xbf16>
    tpu.vector_store %arg6[%c0_27, %c0_28, %c0_29], %123 {strides = array<i32>} : memref<1x128x256xbf16, #tpu.memory_space<vmem>>, vector<1x128x256xbf16>,
    return
  }
  func.func @transform_0(%arg0: i32) -> (i32, i32) {
    %c0_i32 = arith.constant 0 : i32
    %c0_i32_0 = arith.constant 0 : i32
    %c0_i32_1 = arith.constant 0 : i32
    return %c0_i32, %c0_i32_0 : i32, i32
  }
  func.func @transform_1(%arg0: i32) -> (i32, i32) {
    %c0_i32 = arith.constant 0 : i32
    %c0_i32_0 = arith.constant 0 : i32
    %c0_i32_1 = arith.constant 0 : i32
    return %c0_i32, %c0_i32_0 : i32, i32
  }
  func.func @transform_2(%arg0: i32) -> (i32, i32, i32) {
    %c0_i32 = arith.constant 0 : i32
    %c0_i32_0 = arith.constant 0 : i32
    %c0_i32_1 = arith.constant 0 : i32
    return %arg0, %c0_i32, %c0_i32_0 : i32, i32, i32
  }
  func.func @transform_3(%arg0: i32) -> (i32, i32, i32) {
    %c0_i32 = arith.constant 0 : i32
    %c0_i32_0 = arith.constant 0 : i32
    %c0_i32_1 = arith.constant 0 : i32
    return %arg0, %c0_i32, %c0_i32_0 : i32, i32, i32
  }
  func.func @transform_4(%arg0: i32) -> (i32, i32, i32) {
    %c0_i32 = arith.constant 0 : i32
    %c0_i32_0 = arith.constant 0 : i32
    %c0_i32_1 = arith.constant 0 : i32
    return %arg0, %c0_i32, %c0_i32_0 : i32, i32, i32
  }
  func.func @transform_5(%arg0: i32) -> (i32, i32, i32) {
    %c0_i32 = arith.constant 0 : i32
    %c0_i32_0 = arith.constant 0 : i32
    %c0_i32_1 = arith.constant 0 : i32
    return %arg0, %c0_i32, %c0_i32_0 : i32, i32, i32
  }
}

module attributes {stable_mosaic.version = 11 : i64} {
  func.func @_oproj_rmsnorm_kernel(%arg0: i32, %arg1: memref<256x256xbf16, #tpu.memory_space<vmem>>, %arg2: memref<256x256xbf16, #tpu.memory_space<vmem>>, %arg3: memref<1x256xf32, #tpu.memory_space<vmem>>, %arg4: memref<256x256xf32, #tpu.memory_space<vmem>>, %arg5: memref<256x256xf32, #tpu.memory_space<vmem>>) attributes {dimension_semantics = [#tpu.dimension_semantics<parallel>], iteration_bounds = array<i64: 1>, scalar_prefetch = 0 : i64, scratch_operands = 0 : i64, tpu.core_type = #tpu.core_type<tc>, window_params = [{transform_indices = @transform_0, window_bounds = array<i64: 256, 256>}, {pipeline_mode = #tpu.pipeline_mode<synchronous>, transform_indices = @transform_1, window_bounds = array<i64: 256, 256>}, {pipeline_mode = #tpu.pipeline_mode<synchronous>, transform_indices = @transform_2, window_bounds = array<i64: 1, 256>}, {transform_indices = @transform_3, window_bounds = array<i64: 256, 256>}, {transform_indices = @transform_4, window_bounds = array<i64: 256, 256>}]} {
    %c0 = arith.constant 0 : index
    %c0_0 = arith.constant 0 : index
    %0 = vector.load %arg1[%c0, %c0_0] : memref<256x256xbf16, #tpu.memory_space<vmem>>, vector<256x256xbf16>
    %c0_1 = arith.constant 0 : index
    %c0_2 = arith.constant 0 : index
    %1 = vector.load %arg2[%c0_1, %c0_2] : memref<256x256xbf16, #tpu.memory_space<vmem>>, vector<256x256xbf16>
    %cst = arith.constant dense<0.000000e+00> : vector<256x256xf32>
    %2 = tpu.matmul %0, %1, %cst {dimension_numbers = #tpu.dot_dimension_numbers<[1], [0], [0], [1], [0, 0, 1, 1], [], []>} : vector<256x256xbf16>, vector<256x256xbf16>, vector<256x256xf32> -> vector<256x256xf32>
    %3 = arith.mulf %2, %2 : vector<256x256xf32>
    %cst_3 = arith.constant dense<0.000000e+00> : vector<256xf32>
    %4 = vector.multi_reduction <add>, %3, %cst_3 [1] : vector<256x256xf32> to vector<256xf32>
    %5 = vector.shape_cast %4 : vector<256xf32> to vector<256x1xf32>
    %cst_4 = arith.constant 2.560000e+02 : f32
    %6 = vector.broadcast %cst_4 : f32 to vector<256x1xf32>
    %7 = arith.divf %5, %6 : vector<256x1xf32>
    %cst_5 = arith.constant 9.99999974E-6 : f32
    %8 = vector.broadcast %cst_5 : f32 to vector<256x1xf32>
    %9 = arith.addf %7, %8 : vector<256x1xf32>
    %10 = math.rsqrt %9 : vector<256x1xf32>
    %11 = vector.broadcast %10 : vector<256x1xf32> to vector<256x256xf32>
    %12 = arith.mulf %2, %11 : vector<256x256xf32>
    %c0_6 = arith.constant 0 : index
    %c0_7 = arith.constant 0 : index
    %13 = vector.load %arg3[%c0_6, %c0_7] : memref<1x256xf32, #tpu.memory_space<vmem>>, vector<1x256xf32>
    %14 = vector.broadcast %13 : vector<1x256xf32> to vector<256x256xf32>
    %15 = arith.mulf %12, %14 : vector<256x256xf32>
    %c0_8 = arith.constant 0 : index
    %c0_9 = arith.constant 0 : index
    %16 = vector.load %arg4[%c0_8, %c0_9] : memref<256x256xf32, #tpu.memory_space<vmem>>, vector<256x256xf32>
    %17 = arith.addf %16, %15 : vector<256x256xf32>
    %c0_10 = arith.constant 0 : index
    %c0_11 = arith.constant 0 : index
    %18 = vector.load %arg5[%c0_10, %c0_11] : memref<256x256xf32, #tpu.memory_space<vmem>>, vector<256x256xf32>
    tpu.vector_store %arg5[%c0_10, %c0_11], %17 {strides = array<i32>} : memref<256x256xf32, #tpu.memory_space<vmem>>, vector<256x256xf32>,
    return
  }
  func.func @transform_0(%arg0: i32) -> (i32, i32) {
    %c0_i32 = arith.constant 0 : i32
    %c0_i32_0 = arith.constant 0 : i32
    return %arg0, %c0_i32 : i32, i32
  }
  func.func @transform_1(%arg0: i32) -> (i32, i32) {
    %c0_i32 = arith.constant 0 : i32
    %c0_i32_0 = arith.constant 0 : i32
    %c0_i32_1 = arith.constant 0 : i32
    return %c0_i32, %c0_i32_0 : i32, i32
  }
  func.func @transform_2(%arg0: i32) -> (i32, i32) {
    %c0_i32 = arith.constant 0 : i32
    %c0_i32_0 = arith.constant 0 : i32
    %c0_i32_1 = arith.constant 0 : i32
    return %c0_i32, %c0_i32_0 : i32, i32
  }
  func.func @transform_3(%arg0: i32) -> (i32, i32) {
    %c0_i32 = arith.constant 0 : i32
    %c0_i32_0 = arith.constant 0 : i32
    return %arg0, %c0_i32 : i32, i32
  }
  func.func @transform_4(%arg0: i32) -> (i32, i32) {
    %c0_i32 = arith.constant 0 : i32
    %c0_i32_0 = arith.constant 0 : i32
    return %arg0, %c0_i32 : i32, i32
  }
}

</mosaic_0001>

<bundles_post_ra>
// kernel: mha_forward.3
= control target key start
LH: loop header
LB: loop body
LE: loop exit
PB: predicated region body
PF: predicated region fallthrough
CT: control target
= control target key end

     0   :  { %10 = vsyncpa [#allocation3], 0  ;;  %s2429_s0 = inlined_call_operand.hbm [shape: f32[256,256], index: 0, kind: input, shape index: {}]   ;;  %s2430_s1 = inlined_call_operand.hbm [shape: bf16[256,512], index: 1, kind: input, shape index: {}]   ;;  %s2431_s2 = inlined_call_operand.vmem [shape: bf16[256,256], index: 2, kind: output, shape index: {0}]   ;;  %s2432_s3 = inlined_call_operand.vmem [shape: bf16[256,128], index: 3, kind: output, shape index: {1}]   ;;  %s2433_s4 = inlined_call_operand.vmem [shape: bf16[256,128], index: 4, kind: output, shape index: {2}]  }
   0x1   :  { %s16_s17 = sshll.u32 %s2429_s0, 4  ;;  %s17_s17 = int_to_ptr.hbm [resolvable:$true] %s16_s17 }
   0x2   :  { %11 = vsyncpa [#allocation5], 0  ;;  %s2010_s18 = smov [#allocation2]   ;;  %s29_s22 = sshll.u32 %s2430_s1, 4  ;;  %s30_s22 = int_to_ptr.hbm [resolvable:$true] %s29_s22 }
   0x3   :  { %s18_s19 = sshll.u32 %s2010_s18, 4  ;;  %s2011_s23 = smov 256   ;;  %s19_s19 = int_to_ptr.vmem [resolvable:$true] %s18_s19 }
   0x4   :  { %s2012_s24 = smov 16   ;;  %s2013_s25 = smov [#allocation4]  }
   0x5   :  { %24 = dma.hbm_to_vmem [thread:$0]  %s17_s17, 8192, %s19_s19, [#allocation3], %s2011_s23, %s2011_s23, %s2012_s24  }
   0x6   :  { %s31_s26 = sshll.u32 %s2013_s25, 4  ;;  %s32_s26 = int_to_ptr.vmem [resolvable:$true] %s31_s26 }
   0x7   :  { %37 = dma.hbm_to_vmem [thread:$0]  %s30_s22, 8192, %s32_s26, [#allocation5], %s2011_s23, %s2011_s23, %s2012_s24  }
   0x8   :  { %2006 = dma.done.wait [#allocation3], 8192  }
   0x9   :  { %2007 = vsyncadd [#allocation3], 4294959104 }
   0xa   :  { %2008 = dma.done.wait [#allocation5], 8192  }
   0xb   :  { %2009 = vsyncadd [#allocation5], 4294959104  ;;  %v1558_v0 = vld [vmem:[#allocation4 + $0xe0] sm:$0xf]  ;;  %v1730_v1 = vld [vmem:[#allocation4 + $0xec] sm:$0xf0] }
   0xc   :  { %v1686_v2 = vld [vmem:[#allocation4 + $0x1e0] sm:$0xf]  ;;  %v1559_v3 = vor.u32 %v1730_v1, %v1558_v0  ;;  %v1762_v4 = vld [vmem:[#allocation4 + $0x1ec] sm:$0xf0]  ;;  %v1728_v5 = vld [vmem:[#allocation4 + $0xe4] sm:$0xf] }
   0xd   :  { %v1560_v6 = vld [vmem:[#allocation4 + $0xf0] sm:$0xf0]  ;;  %v1687_v7 = vor.u32 %v1762_v4, %v1686_v2  ;;  %v1760_v9 = vld [vmem:[#allocation4 + $0x1e4] sm:$0xf]  ;;  %v1542_v11 = vld [vmem:[#allocation4 + $0xc0] sm:$0xf] }
   0xe   :  { %v1563_v8 = vor.u32 %v1728_v5, %v1560_v6  ;;  %v1688_v10 = vld [vmem:[#allocation4 + $0x1f0] sm:$0xf0]  ;;  %526 = vmatpush.bf16.msra.mxu0 %v1559_v3  ;;  %v1726_v13 = vld [vmem:[#allocation4 + $0xcc] sm:$0xf0]  ;;  %v1670_v14 = vld [vmem:[#allocation4 + $0x1c0] sm:$0xf] }
   0xf   :  { %v1691_v12 = vor.u32 %v1760_v9, %v1688_v10  ;;  %v1758_v15 = vld [vmem:[#allocation4 + $0x1cc] sm:$0xf0]  ;;  %615 = vmatpush.bf16.msra.mxu1 %v1687_v7  ;;  %v1543_v16 = vor.u32 %v1726_v13, %v1542_v11  ;;  %v1724_v18 = vld [vmem:[#allocation4 + $0xc4] sm:$0xf]  ;;  %v1544_v19 = vld [vmem:[#allocation4 + $0xd0] sm:$0xf0] }
  0x10   :  { %704 = vmatpush.bf16.msra.mxu2 %v1563_v8  ;;  %v1671_v17 = vor.u32 %v1758_v15, %v1670_v14  ;;  %v1756_v20 = vld [vmem:[#allocation4 + $0x1c4] sm:$0xf]  ;;  %v1547_v21 = vor.u32 %v1724_v18, %v1544_v19  ;;  %v1672_v22 = vld [vmem:[#allocation4 + $0x1d0] sm:$0xf0]  ;;  %v1526_v23 = vld [vmem:[#allocation4 + $0xa0] sm:$0xf] }
  0x11   :  { %793 = vmatpush.bf16.msra.mxu3 %v1691_v12  ;;  %v1722_v24 = vld [vmem:[#allocation4 + $0xac] sm:$0xf0]  ;;  %v1675_v25 = vor.u32 %v1756_v20, %v1672_v22  ;;  %v1654_v26 = vld [vmem:[#allocation4 + $0x1a0] sm:$0xf]  ;;  %v1720_v28 = vld [vmem:[#allocation4 + $0xa4] sm:$0xf] }
  0x12   :  { %v1754_v27 = vld [vmem:[#allocation4 + $0x1ac] sm:$0xf0]  ;;  %527 = vmatpush.bf16.msra.mxu0 %v1543_v16  ;;  %v1527_v29 = vor.u32 %v1722_v24, %v1526_v23  ;;  %v1528_v30 = vld [vmem:[#allocation4 + $0xb0] sm:$0xf0]  ;;  %v1752_v31 = vld [vmem:[#allocation4 + $0x1a4] sm:$0xf] }
  0x13   :  { %v1656_v32 = vld [vmem:[#allocation4 + $0x1b0] sm:$0xf0]  ;;  %616 = vmatpush.bf16.msra.mxu1 %v1671_v17  ;;  %v1655_v33 = vor.u32 %v1754_v27, %v1654_v26  ;;  %v1531_v34 = vor.u32 %v1720_v28, %v1528_v30  ;;  %v1510_v35 = vld [vmem:[#allocation4 + $0x80] sm:$0xf]  ;;  %v1718_v36 = vld [vmem:[#allocation4 + $0x8c] sm:$0xf0] }
  0x14   :  { %705 = vmatpush.bf16.msra.mxu2 %v1547_v21  ;;  %v1638_v37 = vld [vmem:[#allocation4 + $0x180] sm:$0xf]  ;;  %v1659_v38 = vor.u32 %v1752_v31, %v1656_v32  ;;  %v1750_v39 = vld [vmem:[#allocation4 + $0x18c] sm:$0xf0]  ;;  %v1716_v40 = vld [vmem:[#allocation4 + $0x84] sm:$0xf]  ;;  %v1511_v44 = vor.u32 %v1718_v36, %v1510_v35 }
  0x15   :  { %794 = vmatpush.bf16.msra.mxu3 %v1675_v25  ;;  %v1512_v41 = vld [vmem:[#allocation4 + $0x90] sm:$0xf0]  ;;  %v1748_v42 = vld [vmem:[#allocation4 + $0x184] sm:$0xf]  ;;  %v1639_v45 = vor.u32 %v1750_v39, %v1638_v37  ;;  %v1494_v47 = vld [vmem:[#allocation4 + $0x60] sm:$0xf] }
  0x16   :  { %v1640_v43 = vld [vmem:[#allocation4 + $0x190] sm:$0xf0]  ;;  %528 = vmatpush.bf16.msra.mxu0 %v1527_v29  ;;  %v1515_v46 = vor.u32 %v1716_v40, %v1512_v41  ;;  %v1714_v48 = vld [vmem:[#allocation4 + $0x6c] sm:$0xf0]  ;;  %v1622_v49 = vld [vmem:[#allocation4 + $0x160] sm:$0xf] }
  0x17   :  { %617 = vmatpush.bf16.msra.mxu1 %v1655_v33  ;;  %v1643_v50 = vor.u32 %v1748_v42, %v1640_v43  ;;  %v1746_v51 = vld [vmem:[#allocation4 + $0x16c] sm:$0xf0]  ;;  %v1712_v52 = vld [vmem:[#allocation4 + $0x64] sm:$0xf]  ;;  %v1496_v53 = vld [vmem:[#allocation4 + $0x70] sm:$0xf0]  ;;  %v1495_v56 = vor.u32 %v1714_v48, %v1494_v47 }
  0x18   :  { %706 = vmatpush.bf16.msra.mxu2 %v1531_v34  ;;  %v1744_v54 = vld [vmem:[#allocation4 + $0x164] sm:$0xf]  ;;  %v1624_v55 = vld [vmem:[#allocation4 + $0x170] sm:$0xf0]  ;;  %v1623_v57 = vor.u32 %v1746_v51, %v1622_v49  ;;  %v1499_v58 = vor.u32 %v1712_v52, %v1496_v53  ;;  %v1478_v59 = vld [vmem:[#allocation4 + $0x40] sm:$0xf] }
  0x19   :  { %795 = vmatpush.bf16.msra.mxu3 %v1659_v38  ;;  %v1710_v60 = vld [vmem:[#allocation4 + $0x4c] sm:$0xf0]  ;;  %v1606_v61 = vld [vmem:[#allocation4 + $0x140] sm:$0xf]  ;;  %v1627_v62 = vor.u32 %v1744_v54, %v1624_v55  ;;  %v1708_v0 = vld [vmem:[#allocation4 + $0x44] sm:$0xf] }
  0x1a   :  { %529 = vmatpush.bf16.msra.mxu0 %v1511_v44  ;;  %v1742_v63 = vld [vmem:[#allocation4 + $0x14c] sm:$0xf0]  ;;  %v1480_v1 = vld [vmem:[#allocation4 + $0x50] sm:$0xf0]  ;;  %v1740_v2 = vld [vmem:[#allocation4 + $0x144] sm:$0xf]  ;;  %v1479_v4 = vor.u32 %v1710_v60, %v1478_v59 }
  0x1b   :  { %618 = vmatpush.bf16.msra.mxu1 %v1639_v45  ;;  %v1608_v3 = vld [vmem:[#allocation4 + $0x150] sm:$0xf0]  ;;  %v1607_v5 = vor.u32 %v1742_v63, %v1606_v61  ;;  %v1483_v6 = vor.u32 %v1708_v0, %v1480_v1  ;;  %v1462_v7 = vld [vmem:[#allocation4 + $0x20] sm:$0xf]  ;;  %v1706_v8 = vld [vmem:[#allocation4 + $0x2c] sm:$0xf0] }
  0x1c   :  { %707 = vmatpush.bf16.msra.mxu2 %v1515_v46  ;;  %v1590_v9 = vld [vmem:[#allocation4 + $0x120] sm:$0xf]  ;;  %v1611_v10 = vor.u32 %v1740_v2, %v1608_v3  ;;  %v1738_v11 = vld [vmem:[#allocation4 + $0x12c] sm:$0xf0]  ;;  %v1704_v12 = vld [vmem:[#allocation4 + $0x24] sm:$0xf]  ;;  %v1463_v16 = vor.u32 %v1706_v8, %v1462_v7 }
  0x1d   :  { %796 = vmatpush.bf16.msra.mxu3 %v1643_v50  ;;  %v1464_v13 = vld [vmem:[#allocation4 + $0x30] sm:$0xf0]  ;;  %v1736_v14 = vld [vmem:[#allocation4 + $0x124] sm:$0xf]  ;;  %v1446_v17 = vld [vmem:[#allocation4] sm:$0xf]  ;;  %v1591_v19 = vor.u32 %v1738_v11, %v1590_v9 }
  0x1e   :  { %530 = vmatpush.bf16.msra.mxu0 %v1495_v56  ;;  %v1592_v15 = vld [vmem:[#allocation4 + $0x130] sm:$0xf0]  ;;  %v1702_v18 = vld [vmem:[#allocation4 + $0xc] sm:$0xf0]  ;;  %v1467_v20 = vor.u32 %v1704_v12, %v1464_v13  ;;  %v1574_v21 = vld [vmem:[#allocation4 + $0x100] sm:$0xf] }
  0x1f   :  { %619 = vmatpush.bf16.msra.mxu1 %v1623_v57  ;;  %v1734_v22 = vld [vmem:[#allocation4 + $0x10c] sm:$0xf0]  ;;  %v1700_v23 = vld [vmem:[#allocation4 + $0x4] sm:$0xf]  ;;  %v1595_v24 = vor.u32 %v1736_v14, %v1592_v15  ;;  %v1448_v25 = vld [vmem:[#allocation4 + $0x10] sm:$0xf0]  ;;  %v1447_v31 = vor.u32 %v1702_v18, %v1446_v17 }
  0x20   :  { %708 = vmatpush.bf16.msra.mxu2 %v1499_v58  ;;  %v1732_v26 = vld [vmem:[#allocation4 + $0x104] sm:$0xf]  ;;  %v1576_v27 = vld [vmem:[#allocation4 + $0x110] sm:$0xf0]  ;;  %v1729_v29 = vld [vmem:[#allocation4 + $0xec] sm:$0xf]  ;;  %v1575_v35 = vor.u32 %v1734_v22, %v1574_v21  ;;  %v1451_v36 = vor.u32 %v1700_v23, %v1448_v25 }
  0x21   :  { %797 = vmatpush.bf16.msra.mxu3 %v1627_v62  ;;  %v46_v28 = vld [vmem:[#allocation2] sm:$0xff]  ;;  %v1568_v30 = vld [vmem:[#allocation4 + $0xf8] sm:$0xf0]  ;;  %v48_v32 = vld [vmem:[#allocation2 + $0x10] sm:$0xff]  ;;  %v1579_v39 = vor.u32 %v1732_v26, %v1576_v27 }
  0x22   :  { %531 = vmatpush.bf16.msra.mxu0 %v1479_v4  ;;  %v1761_v33 = vld [vmem:[#allocation4 + $0x1ec] sm:$0xf]  ;;  %v1696_v34 = vld [vmem:[#allocation4 + $0x1f8] sm:$0xf0]  ;;  %v1571_v40 = vor.u32 %v1729_v29, %v1568_v30  ;;  %v1566_v41 = vld [vmem:[#allocation4 + $0xe8] sm:$0xf]  ;;  %v2045_v43 = vpack.c.bf16 %v48_v32, %v46_v28 }
  0x23   :  { %620 = vmatpush.bf16.msra.mxu1 %v1607_v5  ;;  %v47_v37 = vld [vmem:[#allocation2 + $0x8] sm:$0xff]  ;;  %v49_v38 = vld [vmem:[#allocation2 + $0x18] sm:$0xff]  ;;  %v1699_v44 = vor.u32 %v1761_v33, %v1696_v34  ;;  %v50_v62 = vld [vmem:[#allocation2 + $0x20] sm:$0xff] }
  0x24   :  { %709 = vmatpush.bf16.msra.mxu2 %v1483_v6  ;;  %v1731_v42 = vld [vmem:[#allocation4 + $0xf4] sm:$0xf0]  ;;  %v1694_v45 = vld [vmem:[#allocation4 + $0x1e8] sm:$0xf]  ;;  %v2047_v47 = vpack.c.bf16 %v49_v38, %v47_v37  ;;  %v1725_v50 = vld [vmem:[#allocation4 + $0xcc] sm:$0xf] }
  0x25   :  { %798 = vmatpush.bf16.msra.mxu3 %v1611_v10  ;;  %v1763_v46 = vld [vmem:[#allocation4 + $0x1f4] sm:$0xf0]  ;;  %v1567_v48 = vor.u32 %v1731_v42, %v1566_v41  ;;  %v1552_v51 = vld [vmem:[#allocation4 + $0xd8] sm:$0xf0]  ;;  %v1757_v52 = vld [vmem:[#allocation4 + $0x1cc] sm:$0xf] }
  0x26   :  { %532 = vmatpush.bf16.msra.mxu0 %v1463_v16  ;;  %v1695_v49 = vor.u32 %v1763_v46, %v1694_v45  ;;  %v1555_v53 = vor.u32 %v1725_v50, %v1552_v51  ;;  %v1680_v54 = vld [vmem:[#allocation4 + $0x1d8] sm:$0xf0]  ;;  %v1550_v55 = vld [vmem:[#allocation4 + $0xc8] sm:$0xf]  ;;  %v1727_v56 = vld [vmem:[#allocation4 + $0xd4] sm:$0xf0] }
  0x27   :  { %621 = vmatpush.bf16.msra.mxu1 %v1591_v19  ;;  %v1683_v57 = vor.u32 %v1757_v52, %v1680_v54  ;;  %v1551_v58 = vor.u32 %v1727_v56, %v1550_v55  ;;  %v1678_v59 = vld [vmem:[#allocation4 + $0x1c8] sm:$0xf]  ;;  %v1759_v60 = vld [vmem:[#allocation4 + $0x1d4] sm:$0xf0]  ;;  %v52_v63 = vld [vmem:[#allocation2 + $0x30] sm:$0xff] }
  0x28   :  { %710 = vmatpush.bf16.msra.mxu2 %v1467_v20  ;;  %v1679_v61 = vor.u32 %v1759_v60, %v1678_v59  ;;  %v51_v0 = vld [vmem:[#allocation2 + $0x28] sm:$0xff]  ;;  %v53_v1 = vld [vmem:[#allocation2 + $0x38] sm:$0xff]  ;;  %v2053_v2 = vpack.c.bf16 %v52_v63, %v50_v62  ;;  %v54_v4 = vld [vmem:[#allocation2 + $0x40] sm:$0xff] }
  0x29   :  { %799 = vmatpush.bf16.msra.mxu3 %v1595_v24  ;;  %v2055_v3 = vpack.c.bf16 %v53_v1, %v51_v0  ;;  %v56_v5 = vld [vmem:[#allocation2 + $0x50] sm:$0xff]  ;;  %v55_v6 = vld [vmem:[#allocation2 + $0x48] sm:$0xff]  ;;  %v57_v7 = vld [vmem:[#allocation2 + $0x58] sm:$0xff] }
  0x2a   :  { %533 = vmatpush.bf16.msra.mxu0 %v1447_v31  ;;  %v2061_v8 = vpack.c.bf16 %v56_v5, %v54_v4  ;;  %v2063_v9 = vpack.c.bf16 %v57_v7, %v55_v6  ;;  %v1721_v10 = vld [vmem:[#allocation4 + $0xac] sm:$0xf]  ;;  %v1536_v11 = vld [vmem:[#allocation4 + $0xb8] sm:$0xf0]  ;;  %v1534_v15 = vld [vmem:[#allocation4 + $0xa8] sm:$0xf] }
  0x2b   :  { %622 = vmatpush.bf16.msra.mxu1 %v1575_v35  ;;  %v1753_v12 = vld [vmem:[#allocation4 + $0x1ac] sm:$0xf]  ;;  %v1539_v13 = vor.u32 %v1721_v10, %v1536_v11  ;;  %v1664_v14 = vld [vmem:[#allocation4 + $0x1b8] sm:$0xf0]  ;;  %v1723_v16 = vld [vmem:[#allocation4 + $0xb4] sm:$0xf0] }
  0x2c   :  { %711 = vmatpush.bf16.msra.mxu2 %v1451_v36  ;;  %v1667_v17 = vor.u32 %v1753_v12, %v1664_v14  ;;  %v1535_v18 = vor.u32 %v1723_v16, %v1534_v15  ;;  %v1662_v19 = vld [vmem:[#allocation4 + $0x1a8] sm:$0xf]  ;;  %v1755_v20 = vld [vmem:[#allocation4 + $0x1b4] sm:$0xf0]  ;;  %v58_v22 = vld [vmem:[#allocation2 + $0x60] sm:$0xff] }
  0x2d   :  { %800 = vmatpush.bf16.msra.mxu3 %v1579_v39  ;;  %534 = vmatmul.bf16.vlgmr.msra.gmra.mxu0 %v2045_v43  ;;  %v1663_v21 = vor.u32 %v1755_v20, %v1662_v19  ;;  %v60_v23 = vld [vmem:[#allocation2 + $0x70] sm:$0xff]  ;;  %v59_v24 = vld [vmem:[#allocation2 + $0x68] sm:$0xff]  ;;  %v61_v25 = vld [vmem:[#allocation2 + $0x78] sm:$0xff] }
  0x2e   :  { %623 = vmatmul.bf16.vlgmr.msra.gmra.mxu1 %v2047_v47  ;;  %882 = vmatpush.bf16.msrb.mxu0 %v1567_v48  ;;  %v2069_v26 = vpack.c.bf16 %v60_v23, %v58_v22  ;;  %v2071_v27 = vpack.c.bf16 %v61_v25, %v59_v24  ;;  %v62_v28 = vld [vmem:[#allocation2 + $0x80] sm:$0xff]  ;;  %v64_v29 = vld [vmem:[#allocation2 + $0x90] sm:$0xff]  ;;  %v63_v30 = vld [vmem:[#allocation2 + $0x88] sm:$0xff] }
  0x2f   :  { %712 = vmatmul.bf16.vlgmr.msra.gmra.mxu2 %v2045_v43  ;;  %971 = vmatpush.bf16.msrb.mxu1 %v1695_v49  ;;  %v65_v31 = vld [vmem:[#allocation2 + $0x98] sm:$0xff]  ;;  %v2077_v32 = vpack.c.bf16 %v64_v29, %v62_v28  ;;  %v1717_v34 = vld [vmem:[#allocation4 + $0x8c] sm:$0xf]  ;;  %v1518_v39 = vld [vmem:[#allocation4 + $0x88] sm:$0xf] }
  0x30   :  { %1060 = vmatpush.bf16.msrb.mxu2 %v1571_v40  ;;  %801 = vmatmul.bf16.vlgmr.msra.gmra.mxu3 %v2047_v47  ;;  %v2079_v33 = vpack.c.bf16 %v65_v31, %v63_v30  ;;  %v1520_v35 = vld [vmem:[#allocation4 + $0x98] sm:$0xf0]  ;;  %v1749_v36 = vld [vmem:[#allocation4 + $0x18c] sm:$0xf]  ;;  %v1719_v40 = vld [vmem:[#allocation4 + $0x94] sm:$0xf0] }
  0x31   :  { %1149 = vmatpush.bf16.msrb.mxu3 %v1699_v44  ;;  %v1523_v37 = vor.u32 %v1717_v34, %v1520_v35  ;;  %v1648_v38 = vld [vmem:[#allocation4 + $0x198] sm:$0xf0]  ;;  %v1519_v42 = vor.u32 %v1719_v40, %v1518_v39  ;;  %v1646_v44 = vld [vmem:[#allocation4 + $0x188] sm:$0xf]  ;;  %v1751_v45 = vld [vmem:[#allocation4 + $0x194] sm:$0xf0] }
  0x32   :  { %883 = vmatpush.bf16.msrb.mxu0 %v1551_v58  ;;  %v1651_v41 = vor.u32 %v1749_v36, %v1648_v38  ;;  %v1647_v46 = vor.u32 %v1751_v45, %v1646_v44  ;;  %v66_v48 = vld [vmem:[#allocation2 + $0xa0] sm:$0xff]  ;;  %v68_v49 = vld [vmem:[#allocation2 + $0xb0] sm:$0xff]  ;;  %v67_v50 = vld [vmem:[#allocation2 + $0xa8] sm:$0xff] }
  0x33   :  { %972 = vmatpush.bf16.msrb.mxu1 %v1679_v61  ;;  %v69_v51 = vld [vmem:[#allocation2 + $0xb8] sm:$0xff]  ;;  %v2085_v52 = vpack.c.bf16 %v68_v49, %v66_v48  ;;  %v70_v54 = vld [vmem:[#allocation2 + $0xc0] sm:$0xff]  ;;  %v72_v55 = vld [vmem:[#allocation2 + $0xd0] sm:$0xff] }
  0x34   :  { %1061 = vmatpush.bf16.msrb.mxu2 %v1555_v53  ;;  %v2087_v53 = vpack.c.bf16 %v69_v51, %v67_v50  ;;  %v71_v56 = vld [vmem:[#allocation2 + $0xc8] sm:$0xff]  ;;  %v2093_v58 = vpack.c.bf16 %v72_v55, %v70_v54  ;;  %v1504_v61 = vld [vmem:[#allocation4 + $0x78] sm:$0xf0]  ;;  %v74_v4 = vld [vmem:[#allocation2 + $0xe0] sm:$0xff] }
  0x35   :  { %1150 = vmatpush.bf16.msrb.mxu3 %v1683_v57  ;;  %v73_v57 = vld [vmem:[#allocation2 + $0xd8] sm:$0xff]  ;;  %v1713_v60 = vld [vmem:[#allocation4 + $0x6c] sm:$0xf]  ;;  %v76_v5 = vld [vmem:[#allocation2 + $0xf0] sm:$0xff] }
  0x36   :  { %884 = vmatpush.bf16.msrb.mxu0 %v1535_v18  ;;  %v2095_v59 = vpack.c.bf16 %v73_v57, %v71_v56  ;;  %v1745_v62 = vld [vmem:[#allocation4 + $0x16c] sm:$0xf]  ;;  %v1507_v63 = vor.u32 %v1713_v60, %v1504_v61  ;;  %v1632_v0 = vld [vmem:[#allocation4 + $0x178] sm:$0xf0]  ;;  %v1502_v10 = vld [vmem:[#allocation4 + $0x68] sm:$0xf]  ;;  %v2101_v15 = vpack.c.bf16 %v76_v5, %v74_v4 }
  0x37   :  { %973 = vmatpush.bf16.msrb.mxu1 %v1663_v21  ;;  %v1635_v1 = vor.u32 %v1745_v62, %v1632_v0  ;;  %v75_v6 = vld [vmem:[#allocation2 + $0xe8] sm:$0xff]  ;;  %v77_v7 = vld [vmem:[#allocation2 + $0xf8] sm:$0xff]  ;;  %v78_v18 = vld [vmem:[#allocation2 + $0x100] sm:$0xff] }
  0x38   :  { %1062 = vmatpush.bf16.msrb.mxu2 %v1539_v13  ;;  %v1715_v11 = vld [vmem:[#allocation4 + $0x74] sm:$0xf0]  ;;  %v1630_v12 = vld [vmem:[#allocation4 + $0x168] sm:$0xf]  ;;  %v80_v19 = vld [vmem:[#allocation2 + $0x110] sm:$0xff] }
  0x39   :  { %1151 = vmatpush.bf16.msrb.mxu3 %v1667_v17  ;;  %v1503_v13 = vor.u32 %v1715_v11, %v1502_v10  ;;  %v1747_v14 = vld [vmem:[#allocation4 + $0x174] sm:$0xf0]  ;;  %v2103_v17 = vpack.c.bf16 %v77_v7, %v75_v6  ;;  %v79_v20 = vld [vmem:[#allocation2 + $0x108] sm:$0xff]  ;;  %v2109_v22 = vpack.c.bf16 %v80_v19, %v78_v18  ;;  %v1488_v29 = vld [vmem:[#allocation4 + $0x58] sm:$0xf0] }
  0x3a   :  { %885 = vmatpush.bf16.msrb.mxu0 %v1519_v42  ;;  %v1631_v16 = vor.u32 %v1747_v14, %v1630_v12  ;;  %v81_v21 = vld [vmem:[#allocation2 + $0x118] sm:$0xff]  ;;  %v1709_v28 = vld [vmem:[#allocation4 + $0x4c] sm:$0xf]  ;;  %v82_v44 = vld [vmem:[#allocation2 + $0x120] sm:$0xff] }
  0x3b   :  { %974 = vmatpush.bf16.msrb.mxu1 %v1647_v46  ;;  %v2111_v24 = vpack.c.bf16 %v81_v21, %v79_v20  ;;  %v1741_v30 = vld [vmem:[#allocation4 + $0x14c] sm:$0xf]  ;;  %v1491_v31 = vor.u32 %v1709_v28, %v1488_v29  ;;  %v1616_v34 = vld [vmem:[#allocation4 + $0x158] sm:$0xf0]  ;;  %v84_v45 = vld [vmem:[#allocation2 + $0x130] sm:$0xff] }
  0x3c   :  { %1063 = vmatpush.bf16.msrb.mxu2 %v1523_v37  ;;  %v1619_v37 = vor.u32 %v1741_v30, %v1616_v34  ;;  %v83_v46 = vld [vmem:[#allocation2 + $0x128] sm:$0xff]  ;;  %v85_v48 = vld [vmem:[#allocation2 + $0x138] sm:$0xff]  ;;  %v2120_v57 = vpack.c.bf16 %v84_v45, %v82_v44  ;;  %v88_v18 = vld [vmem:[#allocation2 + $0x150] sm:$0xff] }
  0x3d   :  { %539 = vmatmul.bf16.gmra.mxu0 %v2053_v2  ;;  %1152 = vmatpush.bf16.msrb.mxu3 %v1651_v41  ;;  %v1486_v49 = vld [vmem:[#allocation4 + $0x48] sm:$0xf]  ;;  %v1711_v50 = vld [vmem:[#allocation4 + $0x54] sm:$0xf0] }
  0x3e   :  { %628 = vmatmul.bf16.gmra.mxu1 %v2055_v3  ;;  %886 = vmatpush.bf16.msrb.mxu0 %v1503_v13  ;;  %v1614_v51 = vld [vmem:[#allocation4 + $0x148] sm:$0xf]  ;;  %v1487_v54 = vor.u32 %v1711_v50, %v1486_v49  ;;  %v1743_v55 = vld [vmem:[#allocation4 + $0x154] sm:$0xf0] }
  0x3f   :  { %717 = vmatmul.bf16.gmra.mxu2 %v2053_v2  ;;  %975 = vmatpush.bf16.msrb.mxu1 %v1631_v16  ;;  %v1615_v60 = vor.u32 %v1743_v55, %v1614_v51  ;;  %v86_v16 = vld [vmem:[#allocation2 + $0x140] sm:$0xff]  ;;  %v87_v19 = vld [vmem:[#allocation2 + $0x148] sm:$0xff]  ;;  %v89_v20 = vld [vmem:[#allocation2 + $0x158] sm:$0xff] }
  0x40   :  { %806 = vmatmul.bf16.gmra.mxu3 %v2055_v3  ;;  %1064 = vmatpush.bf16.msrb.mxu2 %v1507_v63  ;;  %v2122_v63 = vpack.c.bf16 %v85_v48, %v83_v46  ;;  %v2136_v29 = vpack.c.bf16 %v89_v20, %v87_v19  ;;  %v90_v51 = vld [vmem:[#allocation2 + $0x160] sm:$0xff]  ;;  %v91_v55 = vld [vmem:[#allocation2 + $0x168] sm:$0xff] }
  0x41   :  { %1153 = vmatpush.bf16.msrb.mxu3 %v1635_v1 }
  0x42   :  { %887 = vmatpush.bf16.msrb.mxu0 %v1487_v54  ;;  %v92_v54 = vld [vmem:[#allocation2 + $0x170] sm:$0xff] }
  0x43   :  { %976 = vmatpush.bf16.msrb.mxu1 %v1615_v60  ;;  %v1470_v60 = vld [vmem:[#allocation4 + $0x28] sm:$0xf] }
  0x44   :  { %1065 = vmatpush.bf16.msrb.mxu2 %v1491_v31 }
  0x45   :  { %1154 = vmatpush.bf16.msrb.mxu3 %v1619_v37  ;;  %v1472_v37 = vld [vmem:[#allocation4 + $0x38] sm:$0xf0] }
  0x4d   :  { %544 = vmatmul.bf16.gmra.mxu0 %v2061_v8 }
  0x4e   :  { %633 = vmatmul.bf16.gmra.mxu1 %v2063_v9 }
  0x4f   :  { %722 = vmatmul.bf16.gmra.mxu2 %v2061_v8 }
  0x50   :  { %811 = vmatmul.bf16.gmra.mxu3 %v2063_v9 }
  0x5d   :  { %549 = vmatmul.bf16.gmra.mxu0 %v2069_v26 }
  0x5e   :  { %638 = vmatmul.bf16.gmra.mxu1 %v2071_v27 }
  0x5f   :  { %727 = vmatmul.bf16.gmra.mxu2 %v2069_v26 }
  0x60   :  { %816 = vmatmul.bf16.gmra.mxu3 %v2071_v27 }
  0x6d   :  { %554 = vmatmul.bf16.gmra.mxu0 %v2077_v32 }
  0x6e   :  { %643 = vmatmul.bf16.gmra.mxu1 %v2079_v33 }
  0x6f   :  { %732 = vmatmul.bf16.gmra.mxu2 %v2077_v32 }
  0x70   :  { %821 = vmatmul.bf16.gmra.mxu3 %v2079_v33 }
  0x7d   :  { %559 = vmatmul.bf16.gmra.mxu0 %v2085_v52 }
  0x7e   :  { %648 = vmatmul.bf16.gmra.mxu1 %v2087_v53 }
  0x7f   :  { %737 = vmatmul.bf16.gmra.mxu2 %v2085_v52 }
  0x80   :  { %826 = vmatmul.bf16.gmra.mxu3 %v2087_v53 }
  0x8d   :  { %564 = vmatmul.bf16.gmra.mxu0 %v2093_v58 }
  0x8e   :  { %653 = vmatmul.bf16.gmra.mxu1 %v2095_v59 }
  0x8f   :  { %742 = vmatmul.bf16.gmra.mxu2 %v2093_v58 }
  0x90   :  { %831 = vmatmul.bf16.gmra.mxu3 %v2095_v59 }
  0x9d   :  { %569 = vmatmul.bf16.gmra.mxu0 %v2101_v15 }
  0x9e   :  { %658 = vmatmul.bf16.gmra.mxu1 %v2103_v17 }
  0x9f   :  { %747 = vmatmul.bf16.gmra.mxu2 %v2101_v15 }
  0xa0   :  { %836 = vmatmul.bf16.gmra.mxu3 %v2103_v17 }
  0xaa   :  { %v535_v23 = vpop.f32.mrf.mxu0 }
  0xab   :  { %v624_v25 = vpop.f32.mrf.mxu1 }
  0xac   :  { %v625_v35 = vadd.f32 %v624_v25, %v535_v23  ;;  %v2134_v23 = vpack.c.bf16 %v88_v18, %v86_v16 }
  0xad   :  { %574 = vmatmul.bf16.gmra.mxu0 %v2109_v22 }
  0xae   :  { %663 = vmatmul.bf16.gmra.mxu1 %v2111_v24 }
  0xaf   :  { %752 = vmatmul.bf16.gmra.mxu2 %v2109_v22 }
  0xb0   :  { %841 = vmatmul.bf16.gmra.mxu3 %v2111_v24 }
  0xb2   :  { %v713_v36 = vpop.f32.mrf.mxu2  ;;  %v537_v39 = vpop.f32.mrf.mxu0 }
  0xb3   :  { %v802_v38 = vpop.f32.mrf.mxu3  ;;  %v626_v41 = vpop.f32.mrf.mxu1 }
  0xb4   :  { %v803_v40 = vadd.f32 %v802_v38, %v713_v36  ;;  %v627_v0 = vadd.f32 %v626_v41, %v537_v39  ;;  %v1705_v36 = vld [vmem:[#allocation4 + $0x2c] sm:$0xf] }
  0xb5   :  { %v1475_v38 = vor.u32 %v1705_v36, %v1472_v37  ;;  %v1737_v39 = vld [vmem:[#allocation4 + $0x12c] sm:$0xf]  ;;  %v97_v36 = vld [vmem:[#allocation2 + $0x198] sm:$0xff] }
  0xb6   :  { %v1238_v42 = vpack.c.bf16 %v803_v40, %v625_v35  ;;  %v1600_v40 = vld [vmem:[#allocation4 + $0x138] sm:$0xf0] }
  0xb7   :  { %v1603_v44 = vor.u32 %v1737_v39, %v1600_v40  ;;  %1066 = vmatpush.bf16.msrb.mxu2 %v1475_v38 }
  0xb8   :  { %1270 = vst [vmem:[%s2431_s2] sm:$0xff] %v1238_v42 }
  0xb9   :  { %1155 = vmatpush.bf16.msrb.mxu3 %v1603_v44 }
  0xba   :  { %v715_v56 = vpop.f32.mrf.mxu2  ;;  %v540_v62 = vpop.f32.mrf.mxu0 }
  0xbb   :  { %v804_v61 = vpop.f32.mrf.mxu3  ;;  %v629_v4 = vpop.f32.mrf.mxu1 }
  0xbc   :  { %v805_v1 = vadd.f32 %v804_v61, %v715_v56  ;;  %v630_v6 = vadd.f32 %v629_v4, %v540_v62  ;;  %v93_v56 = vld [vmem:[#allocation2 + $0x178] sm:$0xff] }
  0xbd   :  { %579 = vmatmul.bf16.gmra.mxu0 %v2120_v57  ;;  %v1707_v61 = vld [vmem:[#allocation4 + $0x34] sm:$0xf0] }
  0xbe   :  { %v1239_v5 = vpack.c.bf16 %v805_v1, %v627_v0  ;;  %668 = vmatmul.bf16.gmra.mxu1 %v2122_v63  ;;  %v1471_v62 = vor.u32 %v1707_v61, %v1470_v60  ;;  %v1598_v0 = vld [vmem:[#allocation4 + $0x128] sm:$0xf]  ;;  %v1739_v1 = vld [vmem:[#allocation4 + $0x134] sm:$0xf0] }
  0xbf   :  { %757 = vmatmul.bf16.gmra.mxu2 %v2120_v57 }
  0xc0   :  { %1271 = vst [vmem:[%s2431_s2 + $0x8] sm:$0xff] %v1239_v5  ;;  %846 = vmatmul.bf16.gmra.mxu3 %v2122_v63  ;;  %v2148_v5 = vpack.c.bf16 %v92_v54, %v90_v51  ;;  %888 = vmatpush.bf16.msrb.mxu0 %v1471_v62  ;;  %v1733_v51 = vld [vmem:[#allocation4 + $0x10c] sm:$0xf]  ;;  %v1584_v54 = vld [vmem:[#allocation4 + $0x118] sm:$0xf0] }
  0xc1   :  { %v1587_v60 = vor.u32 %v1733_v51, %v1584_v54  ;;  %v103_v51 = vld [vmem:[#allocation2 + $0x1c8] sm:$0xff]  ;;  %v105_v54 = vld [vmem:[#allocation2 + $0x1d8] sm:$0xff] }
  0xc2   :  { %v718_v7 = vpop.f32.mrf.mxu2  ;;  %v542_v11 = vpop.f32.mrf.mxu0 }
  0xc3   :  { %v807_v10 = vpop.f32.mrf.mxu3  ;;  %v631_v13 = vpop.f32.mrf.mxu1  ;;  %1156 = vmatpush.bf16.msrb.mxu3 %v1587_v60 }
  0xc4   :  { %v808_v12 = vadd.f32 %v807_v10, %v718_v7  ;;  %v632_v30 = vadd.f32 %v631_v13, %v542_v11  ;;  %v2150_v11 = vpack.c.bf16 %v93_v56, %v91_v55 }
  0xc6   :  { %v1240_v14 = vpack.c.bf16 %v808_v12, %v630_v6  ;;  %v1599_v6 = vor.u32 %v1739_v1, %v1598_v0 }
  0xc8   :  { %1272 = vst [vmem:[%s2431_s2 + $0x10] sm:$0xff] %v1240_v14  ;;  %977 = vmatpush.bf16.msrb.mxu1 %v1599_v6  ;;  %v98_v6 = vld [vmem:[#allocation2 + $0x1a0] sm:$0xff] }
  0xca   :  { %v720_v21 = vpop.f32.mrf.mxu2  ;;  %v545_v28 = vpop.f32.mrf.mxu0 }
  0xcb   :  { %v809_v25 = vpop.f32.mrf.mxu3  ;;  %v634_v34 = vpop.f32.mrf.mxu1 }
  0xcc   :  { %v810_v31 = vadd.f32 %v809_v25, %v720_v21  ;;  %v635_v41 = vadd.f32 %v634_v34, %v545_v28  ;;  %v96_v34 = vld [vmem:[#allocation2 + $0x190] sm:$0xff] }
  0xcd   :  { %584 = vmatmul.bf16.gmra.mxu0 %v2134_v23 }
  0xce   :  { %v1241_v35 = vpack.c.bf16 %v810_v31, %v632_v30  ;;  %673 = vmatmul.bf16.gmra.mxu1 %v2136_v29  ;;  %v94_v31 = vld [vmem:[#allocation2 + $0x180] sm:$0xff] }
  0xcf   :  { %762 = vmatmul.bf16.gmra.mxu2 %v2134_v23  ;;  %v2162_v38 = vpack.c.bf16 %v96_v34, %v94_v31 }
  0xd0   :  { %1273 = vst [vmem:[%s2431_s2 + $0x18] sm:$0xff] %v1241_v35  ;;  %851 = vmatmul.bf16.gmra.mxu3 %v2136_v29  ;;  %v95_v35 = vld [vmem:[#allocation2 + $0x188] sm:$0xff] }
  0xd2   :  { %v723_v42 = vpop.f32.mrf.mxu2  ;;  %v547_v46 = vpop.f32.mrf.mxu0 }
  0xd3   :  { %v812_v45 = vpop.f32.mrf.mxu3  ;;  %v636_v49 = vpop.f32.mrf.mxu1 }
  0xd4   :  { %v813_v48 = vadd.f32 %v812_v45, %v723_v42  ;;  %v637_v12 = vadd.f32 %v636_v49, %v547_v46  ;;  %v1456_v49 = vld [vmem:[#allocation4 + $0x18] sm:$0xf0] }
  0xd6   :  { %v1242_v50 = vpack.c.bf16 %v813_v48, %v635_v41  ;;  %v2164_v41 = vpack.c.bf16 %v97_v36, %v95_v35  ;;  %v1701_v48 = vld [vmem:[#allocation4 + $0xc] sm:$0xf] }
  0xd8   :  { %1274 = vst [vmem:[%s2431_s2 + $0x20] sm:$0xff] %v1242_v50  ;;  %v1459_v50 = vor.u32 %v1701_v48, %v1456_v49  ;;  %v102_v49 = vld [vmem:[#allocation2 + $0x1c0] sm:$0xff] }
  0xda   :  { %v725_v4 = vpop.f32.mrf.mxu2  ;;  %v550_v10 = vpop.f32.mrf.mxu0  ;;  %1067 = vmatpush.bf16.msrb.mxu2 %v1459_v50  ;;  %v104_v50 = vld [vmem:[#allocation2 + $0x1d0] sm:$0xff] }
  0xdb   :  { %v814_v7 = vpop.f32.mrf.mxu3  ;;  %v639_v14 = vpop.f32.mrf.mxu1 }
  0xdc   :  { %v815_v13 = vadd.f32 %v814_v7, %v725_v4  ;;  %v640_v18 = vadd.f32 %v639_v14, %v550_v10  ;;  %v100_v7 = vld [vmem:[#allocation2 + $0x1b0] sm:$0xff]  ;;  %v99_v10 = vld [vmem:[#allocation2 + $0x1a8] sm:$0xff]  ;;  %v1703_v14 = vld [vmem:[#allocation4 + $0x14] sm:$0xf0] }
  0xdd   :  { %589 = vmatmul.bf16.gmra.mxu0 %v2148_v5 }
  0xde   :  { %v1243_v16 = vpack.c.bf16 %v815_v13, %v637_v12  ;;  %678 = vmatmul.bf16.gmra.mxu1 %v2150_v11  ;;  %v101_v12 = vld [vmem:[#allocation2 + $0x1b8] sm:$0xff]  ;;  %v1454_v13 = vld [vmem:[#allocation4 + $0x8] sm:$0xf] }
  0xdf   :  { %767 = vmatmul.bf16.gmra.mxu2 %v2148_v5  ;;  %v2178_v31 = vpack.c.bf16 %v101_v12, %v99_v10 }
  0xe0   :  { %1275 = vst [vmem:[%s2431_s2 + $0x28] sm:$0xff] %v1243_v16  ;;  %856 = vmatmul.bf16.gmra.mxu3 %v2150_v11  ;;  %v1455_v16 = vor.u32 %v1703_v14, %v1454_v13 }
  0xe2   :  { %v728_v19 = vpop.f32.mrf.mxu2  ;;  %v552_v21 = vpop.f32.mrf.mxu0  ;;  %889 = vmatpush.bf16.msrb.mxu0 %v1455_v16 }
  0xe3   :  { %v817_v20 = vpop.f32.mrf.mxu3  ;;  %v641_v28 = vpop.f32.mrf.mxu1 }
  0xe4   :  { %v818_v25 = vadd.f32 %v817_v20, %v728_v19  ;;  %v642_v42 = vadd.f32 %v641_v28, %v552_v21  ;;  %v1735_v19 = vld [vmem:[#allocation4 + $0x114] sm:$0xf0]  ;;  %v2176_v21 = vpack.c.bf16 %v100_v7, %v98_v6 }
  0xe6   :  { %v1244_v30 = vpack.c.bf16 %v818_v25, %v640_v18  ;;  %v1582_v18 = vld [vmem:[#allocation4 + $0x108] sm:$0xf] }
  0xe7   :  { %v1583_v25 = vor.u32 %v1735_v19, %v1582_v18  ;;  %v106_v19 = vld [vmem:[#allocation2 + $0x1e0] sm:$0xff] }
  0xe8   :  { %1276 = vst [vmem:[%s2431_s2 + $0x30] sm:$0xff] %v1244_v30 }
  0xe9   :  { %978 = vmatpush.bf16.msrb.mxu1 %v1583_v25  ;;  %v107_v25 = vld [vmem:[#allocation2 + $0x1e8] sm:$0xff] }
  0xea   :  { %v730_v37 = vpop.f32.mrf.mxu2  ;;  %v555_v40 = vpop.f32.mrf.mxu0 }
  0xeb   :  { %v819_v39 = vpop.f32.mrf.mxu3  ;;  %v644_v45 = vpop.f32.mrf.mxu1 }
  0xec   :  { %v820_v44 = vadd.f32 %v819_v39, %v730_v37  ;;  %v645_v55 = vadd.f32 %v644_v45, %v555_v40 }
  0xed   :  { %594 = vmatmul.bf16.gmra.mxu0 %v2162_v38 }
  0xee   :  { %v1245_v46 = vpack.c.bf16 %v820_v44, %v642_v42  ;;  %683 = vmatmul.bf16.gmra.mxu1 %v2164_v41 }
  0xef   :  { %772 = vmatmul.bf16.gmra.mxu2 %v2162_v38 }
  0xf0   :  { %1277 = vst [vmem:[%s2431_s2 + $0x38] sm:$0xff] %v1245_v46  ;;  %861 = vmatmul.bf16.gmra.mxu3 %v2164_v41 }
  0xf2   :  { %v733_v56 = vpop.f32.mrf.mxu2  ;;  %v557_v62 = vpop.f32.mrf.mxu0 }
  0xf3   :  { %v822_v61 = vpop.f32.mrf.mxu3  ;;  %v646_v1 = vpop.f32.mrf.mxu1 }
  0xf4   :  { %v823_v0 = vadd.f32 %v822_v61, %v733_v56  ;;  %v647_v34 = vadd.f32 %v646_v1, %v557_v62  ;;  %v2190_v56 = vpack.c.bf16 %v104_v50, %v102_v49  ;;  %v2192_v62 = vpack.c.bf16 %v105_v54, %v103_v51 }
  0xf6   :  { %v1246_v4 = vpack.c.bf16 %v823_v0, %v645_v55 }
  0xf8   :  { %1278 = vst [vmem:[%s2431_s2 + $0x40] sm:$0xff] %v1246_v4 }
  0xfa   :  { %v735_v20 = vpop.f32.mrf.mxu2  ;;  %v560_v30 = vpop.f32.mrf.mxu0 }
  0xfb   :  { %v824_v28 = vpop.f32.mrf.mxu3  ;;  %v649_v36 = vpop.f32.mrf.mxu1 }
  0xfc   :  { %v825_v35 = vadd.f32 %v824_v28, %v735_v20  ;;  %v650_v39 = vadd.f32 %v649_v36, %v560_v30  ;;  %v108_v20 = vld [vmem:[#allocation2 + $0x1f0] sm:$0xff]  ;;  %v109_v28 = vld [vmem:[#allocation2 + $0x1f8] sm:$0xff] }
  0xfd   :  { %599 = vmatmul.bf16.gmra.mxu0 %v2176_v21 }
  0xfe   :  { %v1247_v37 = vpack.c.bf16 %v825_v35, %v647_v34  ;;  %688 = vmatmul.bf16.gmra.mxu1 %v2178_v31  ;;  %v2204_v34 = vpack.c.bf16 %v108_v20, %v106_v19 }
  0xff   :  { %777 = vmatmul.bf16.gmra.mxu2 %v2176_v21 }
 0x100   :  { %1279 = vst [vmem:[%s2431_s2 + $0x48] sm:$0xff] %v1247_v37  ;;  %866 = vmatmul.bf16.gmra.mxu3 %v2178_v31  ;;  %v2206_v37 = vpack.c.bf16 %v109_v28, %v107_v25 }
 0x102   :  { %v738_v40 = vpop.f32.mrf.mxu2  ;;  %v562_v44 = vpop.f32.mrf.mxu0 }
 0x103   :  { %v827_v42 = vpop.f32.mrf.mxu3  ;;  %v651_v46 = vpop.f32.mrf.mxu1 }
 0x104   :  { %v828_v45 = vadd.f32 %v827_v42, %v738_v40  ;;  %v652_v0 = vadd.f32 %v651_v46, %v562_v44 }
 0x106   :  { %v1248_v48 = vpack.c.bf16 %v828_v45, %v650_v39 }
 0x108   :  { %1280 = vst [vmem:[%s2431_s2 + $0x50] sm:$0xff] %v1248_v48 }
 0x10a   :  { %v740_v55 = vpop.f32.mrf.mxu2  ;;  %v565_v61 = vpop.f32.mrf.mxu0 }
 0x10b   :  { %v829_v60 = vpop.f32.mrf.mxu3  ;;  %v654_v4 = vpop.f32.mrf.mxu1 }
 0x10c   :  { %v830_v1 = vadd.f32 %v829_v60, %v740_v55  ;;  %v655_v7 = vadd.f32 %v654_v4, %v565_v61 }
 0x10d   :  { %604 = vmatmul.bf16.gmra.mxu0 %v2190_v56 }
 0x10e   :  { %v1249_v6 = vpack.c.bf16 %v830_v1, %v652_v0  ;;  %693 = vmatmul.bf16.gmra.mxu1 %v2192_v62 }
 0x10f   :  { %782 = vmatmul.bf16.gmra.mxu2 %v2190_v56 }
 0x110   :  { %1281 = vst [vmem:[%s2431_s2 + $0x58] sm:$0xff] %v1249_v6  ;;  %871 = vmatmul.bf16.gmra.mxu3 %v2192_v62 }
 0x112   :  { %v743_v10 = vpop.f32.mrf.mxu2  ;;  %v567_v13 = vpop.f32.mrf.mxu0 }
 0x113   :  { %v832_v12 = vpop.f32.mrf.mxu3  ;;  %v656_v16 = vpop.f32.mrf.mxu1 }
 0x114   :  { %v833_v14 = vadd.f32 %v832_v12, %v743_v10  ;;  %v657_v39 = vadd.f32 %v656_v16, %v567_v13 }
 0x116   :  { %v1250_v18 = vpack.c.bf16 %v833_v14, %v655_v7 }
 0x118   :  { %1282 = vst [vmem:[%s2431_s2 + $0x60] sm:$0xff] %v1250_v18 }
 0x11a   :  { %v745_v30 = vpop.f32.mrf.mxu2  ;;  %v570_v36 = vpop.f32.mrf.mxu0 }
 0x11b   :  { %v834_v35 = vpop.f32.mrf.mxu3  ;;  %v659_v42 = vpop.f32.mrf.mxu1 }
 0x11c   :  { %v835_v40 = vadd.f32 %v834_v35, %v745_v30  ;;  %v660_v45 = vadd.f32 %v659_v42, %v570_v36 }
 0x11d   :  { %609 = vmatmul.bf16.gmra.mxu0 %v2204_v34 }
 0x11e   :  { %v1251_v44 = vpack.c.bf16 %v835_v40, %v657_v39  ;;  %698 = vmatmul.bf16.gmra.mxu1 %v2206_v37 }
 0x11f   :  { %787 = vmatmul.bf16.gmra.mxu2 %v2204_v34 }
 0x120   :  { %1283 = vst [vmem:[%s2431_s2 + $0x68] sm:$0xff] %v1251_v44  ;;  %876 = vmatmul.bf16.gmra.mxu3 %v2206_v37 }
 0x122   :  { %v748_v46 = vpop.f32.mrf.mxu2  ;;  %v572_v49 = vpop.f32.mrf.mxu0 }
 0x123   :  { %v837_v48 = vpop.f32.mrf.mxu3  ;;  %v661_v51 = vpop.f32.mrf.mxu1 }
 0x124   :  { %v838_v50 = vadd.f32 %v837_v48, %v748_v46  ;;  %v662_v0 = vadd.f32 %v661_v51, %v572_v49 }
 0x126   :  { %v1252_v54 = vpack.c.bf16 %v838_v50, %v660_v45 }
 0x128   :  { %1284 = vst [vmem:[%s2431_s2 + $0x70] sm:$0xff] %v1252_v54 }
 0x12a   :  { %v750_v55 = vpop.f32.mrf.mxu2  ;;  %v575_v61 = vpop.f32.mrf.mxu0 }
 0x12b   :  { %v839_v60 = vpop.f32.mrf.mxu3  ;;  %v664_v4 = vpop.f32.mrf.mxu1 }
 0x12c   :  { %v840_v1 = vadd.f32 %v839_v60, %v750_v55  ;;  %v665_v7 = vadd.f32 %v664_v4, %v575_v61 }
 0x12d   :  { %890 = vmatmul.bf16.vlgmr.msrb.gmra.mxu0 %v2045_v43 }
 0x12e   :  { %v1253_v6 = vpack.c.bf16 %v840_v1, %v662_v0  ;;  %979 = vmatmul.bf16.vlgmr.msrb.gmra.mxu1 %v2047_v47 }
 0x12f   :  { %1068 = vmatmul.bf16.vlgmr.msrb.gmra.mxu2 %v2045_v43 }
 0x130   :  { %1285 = vst [vmem:[%s2431_s2 + $0x78] sm:$0xff] %v1253_v6  ;;  %1157 = vmatmul.bf16.vlgmr.msrb.gmra.mxu3 %v2047_v47 }
 0x132   :  { %v753_v10 = vpop.f32.mrf.mxu2  ;;  %v577_v13 = vpop.f32.mrf.mxu0 }
 0x133   :  { %v842_v12 = vpop.f32.mrf.mxu3  ;;  %v666_v16 = vpop.f32.mrf.mxu1 }
 0x134   :  { %v843_v14 = vadd.f32 %v842_v12, %v753_v10  ;;  %v667_v25 = vadd.f32 %v666_v16, %v577_v13 }
 0x136   :  { %v1254_v18 = vpack.c.bf16 %v843_v14, %v665_v7 }
 0x138   :  { %1286 = vst [vmem:[%s2431_s2 + $0x80] sm:$0xff] %v1254_v18 }
 0x13a   :  { %v755_v19 = vpop.f32.mrf.mxu2  ;;  %v580_v43 = vpop.f32.mrf.mxu0 }
 0x13b   :  { %v844_v20 = vpop.f32.mrf.mxu3  ;;  %v669_v30 = vpop.f32.mrf.mxu1 }
 0x13c   :  { %v845_v28 = vadd.f32 %v844_v20, %v755_v19  ;;  %v670_v47 = vadd.f32 %v669_v30, %v580_v43 }
 0x13d   :  { %895 = vmatmul.bf16.gmra.mxu0 %v2053_v2 }
 0x13e   :  { %v1255_v35 = vpack.c.bf16 %v845_v28, %v667_v25  ;;  %984 = vmatmul.bf16.gmra.mxu1 %v2055_v3 }
 0x13f   :  { %1073 = vmatmul.bf16.gmra.mxu2 %v2053_v2 }
 0x140   :  { %1287 = vst [vmem:[%s2431_s2 + $0x88] sm:$0xff] %v1255_v35  ;;  %1162 = vmatmul.bf16.gmra.mxu3 %v2055_v3 }
 0x142   :  { %v758_v36 = vpop.f32.mrf.mxu2  ;;  %v582_v40 = vpop.f32.mrf.mxu0 }
 0x143   :  { %v847_v39 = vpop.f32.mrf.mxu3  ;;  %v671_v44 = vpop.f32.mrf.mxu1 }
 0x144   :  { %v848_v42 = vadd.f32 %v847_v39, %v758_v36  ;;  %v672_v49 = vadd.f32 %v671_v44, %v582_v40 }
 0x146   :  { %v1256_v45 = vpack.c.bf16 %v848_v42, %v670_v47 }
 0x148   :  { %1288 = vst [vmem:[%s2431_s2 + $0x90] sm:$0xff] %v1256_v45 }
 0x14a   :  { %v760_v46 = vpop.f32.mrf.mxu2  ;;  %v585_v2 = vpop.f32.mrf.mxu0 }
 0x14b   :  { %v849_v48 = vpop.f32.mrf.mxu3  ;;  %v674_v51 = vpop.f32.mrf.mxu1 }
 0x14c   :  { %v850_v50 = vadd.f32 %v849_v48, %v760_v46  ;;  %v675_v3 = vadd.f32 %v674_v51, %v585_v2 }
 0x14d   :  { %900 = vmatmul.bf16.gmra.mxu0 %v2061_v8 }
 0x14e   :  { %v1257_v54 = vpack.c.bf16 %v850_v50, %v672_v49  ;;  %989 = vmatmul.bf16.gmra.mxu1 %v2063_v9 }
 0x14f   :  { %1078 = vmatmul.bf16.gmra.mxu2 %v2061_v8 }
 0x150   :  { %1289 = vst [vmem:[%s2431_s2 + $0x98] sm:$0xff] %v1257_v54  ;;  %1167 = vmatmul.bf16.gmra.mxu3 %v2063_v9 }
 0x152   :  { %v763_v55 = vpop.f32.mrf.mxu2  ;;  %v587_v61 = vpop.f32.mrf.mxu0 }
 0x153   :  { %v852_v60 = vpop.f32.mrf.mxu3  ;;  %v676_v1 = vpop.f32.mrf.mxu1 }
 0x154   :  { %v853_v0 = vadd.f32 %v852_v60, %v763_v55  ;;  %v677_v10 = vadd.f32 %v676_v1, %v587_v61 }
 0x156   :  { %v1258_v4 = vpack.c.bf16 %v853_v0, %v675_v3 }
 0x158   :  { %1290 = vst [vmem:[%s2431_s2 + $0xa0] sm:$0xff] %v1258_v4 }
 0x15a   :  { %v765_v6 = vpop.f32.mrf.mxu2  ;;  %v590_v8 = vpop.f32.mrf.mxu0 }
 0x15b   :  { %v854_v7 = vpop.f32.mrf.mxu3  ;;  %v679_v13 = vpop.f32.mrf.mxu1 }
 0x15c   :  { %v855_v12 = vadd.f32 %v854_v7, %v765_v6  ;;  %v680_v9 = vadd.f32 %v679_v13, %v590_v8 }
 0x15d   :  { %905 = vmatmul.bf16.gmra.mxu0 %v2069_v26 }
 0x15e   :  { %v1259_v14 = vpack.c.bf16 %v855_v12, %v677_v10  ;;  %994 = vmatmul.bf16.gmra.mxu1 %v2071_v27 }
 0x15f   :  { %1083 = vmatmul.bf16.gmra.mxu2 %v2069_v26 }
 0x160   :  { %1291 = vst [vmem:[%s2431_s2 + $0xa8] sm:$0xff] %v1259_v14  ;;  %1172 = vmatmul.bf16.gmra.mxu3 %v2071_v27 }
 0x162   :  { %v768_v16 = vpop.f32.mrf.mxu2  ;;  %v592_v19 = vpop.f32.mrf.mxu0 }
 0x163   :  { %v857_v18 = vpop.f32.mrf.mxu3  ;;  %v681_v43 = vpop.f32.mrf.mxu1 }
 0x164   :  { %v858_v20 = vadd.f32 %v857_v18, %v768_v16  ;;  %v682_v35 = vadd.f32 %v681_v43, %v592_v19 }
 0x166   :  { %v1260_v25 = vpack.c.bf16 %v858_v20, %v680_v9 }
 0x168   :  { %1292 = vst [vmem:[%s2431_s2 + $0xb0] sm:$0xff] %v1260_v25 }
 0x16a   :  { %v770_v28 = vpop.f32.mrf.mxu2  ;;  %v595_v26 = vpop.f32.mrf.mxu0 }
 0x16b   :  { %v859_v30 = vpop.f32.mrf.mxu3  ;;  %v684_v36 = vpop.f32.mrf.mxu1 }
 0x16c   :  { %v860_v47 = vadd.f32 %v859_v30, %v770_v28  ;;  %v685_v27 = vadd.f32 %v684_v36, %v595_v26 }
 0x16d   :  { %910 = vmatmul.bf16.gmra.mxu0 %v2077_v32 }
 0x16e   :  { %v1261_v39 = vpack.c.bf16 %v860_v47, %v682_v35  ;;  %999 = vmatmul.bf16.gmra.mxu1 %v2079_v33 }
 0x16f   :  { %1088 = vmatmul.bf16.gmra.mxu2 %v2077_v32 }
 0x170   :  { %1293 = vst [vmem:[%s2431_s2 + $0xb8] sm:$0xff] %v1261_v39  ;;  %1177 = vmatmul.bf16.gmra.mxu3 %v2079_v33 }
 0x172   :  { %v773_v40 = vpop.f32.mrf.mxu2  ;;  %v597_v44 = vpop.f32.mrf.mxu0 }
 0x173   :  { %v862_v42 = vpop.f32.mrf.mxu3  ;;  %v686_v46 = vpop.f32.mrf.mxu1 }
 0x174   :  { %v863_v45 = vadd.f32 %v862_v42, %v773_v40  ;;  %v687_v50 = vadd.f32 %v686_v46, %v597_v44 }
 0x176   :  { %v1262_v48 = vpack.c.bf16 %v863_v45, %v685_v27 }
 0x178   :  { %1294 = vst [vmem:[%s2431_s2 + $0xc0] sm:$0xff] %v1262_v48 }
 0x17a   :  { %v775_v2 = vpop.f32.mrf.mxu2  ;;  %v600_v32 = vpop.f32.mrf.mxu0 }
 0x17b   :  { %v864_v49 = vpop.f32.mrf.mxu3  ;;  %v689_v54 = vpop.f32.mrf.mxu1 }
 0x17c   :  { %v865_v51 = vadd.f32 %v864_v49, %v775_v2  ;;  %v690_v33 = vadd.f32 %v689_v54, %v600_v32 }
 0x17d   :  { %915 = vmatmul.bf16.gmra.mxu0 %v2085_v52 }
 0x17e   :  { %v1263_v3 = vpack.c.bf16 %v865_v51, %v687_v50  ;;  %1004 = vmatmul.bf16.gmra.mxu1 %v2087_v53 }
 0x17f   :  { %1093 = vmatmul.bf16.gmra.mxu2 %v2085_v52 }
 0x180   :  { %1295 = vst [vmem:[%s2431_s2 + $0xc8] sm:$0xff] %v1263_v3  ;;  %1182 = vmatmul.bf16.gmra.mxu3 %v2087_v53 }
 0x182   :  { %v778_v55 = vpop.f32.mrf.mxu2  ;;  %v602_v61 = vpop.f32.mrf.mxu0 }
 0x183   :  { %v867_v60 = vpop.f32.mrf.mxu3  ;;  %v691_v1 = vpop.f32.mrf.mxu1 }
 0x184   :  { %v868_v0 = vadd.f32 %v867_v60, %v778_v55  ;;  %v692_v8 = vadd.f32 %v691_v1, %v602_v61 }
 0x186   :  { %v1264_v4 = vpack.c.bf16 %v868_v0, %v690_v33 }
 0x188   :  { %1296 = vst [vmem:[%s2431_s2 + $0xd0] sm:$0xff] %v1264_v4 }
 0x18a   :  { %v780_v6 = vpop.f32.mrf.mxu2  ;;  %v605_v52 = vpop.f32.mrf.mxu0 }
 0x18b   :  { %v869_v7 = vpop.f32.mrf.mxu3  ;;  %v694_v12 = vpop.f32.mrf.mxu1 }
 0x18c   :  { %v870_v10 = vadd.f32 %v869_v7, %v780_v6  ;;  %v695_v53 = vadd.f32 %v694_v12, %v605_v52 }
 0x18d   :  { %920 = vmatmul.bf16.gmra.mxu0 %v2093_v58 }
 0x18e   :  { %v1265_v13 = vpack.c.bf16 %v870_v10, %v692_v8  ;;  %1009 = vmatmul.bf16.gmra.mxu1 %v2095_v59 }
 0x18f   :  { %1098 = vmatmul.bf16.gmra.mxu2 %v2093_v58 }
 0x190   :  { %1297 = vst [vmem:[%s2431_s2 + $0xd8] sm:$0xff] %v1265_v13  ;;  %1187 = vmatmul.bf16.gmra.mxu3 %v2095_v59 }
 0x192   :  { %v783_v14 = vpop.f32.mrf.mxu2  ;;  %v607_v16 = vpop.f32.mrf.mxu0 }
 0x193   :  { %v872_v9 = vpop.f32.mrf.mxu3  ;;  %v696_v19 = vpop.f32.mrf.mxu1 }
 0x194   :  { %v873_v18 = vadd.f32 %v872_v9, %v783_v14  ;;  %v697_v28 = vadd.f32 %v696_v19, %v607_v16 }
 0x196   :  { %v1266_v20 = vpack.c.bf16 %v873_v18, %v695_v53 }
 0x198   :  { %1298 = vst [vmem:[%s2431_s2 + $0xe0] sm:$0xff] %v1266_v20 }
 0x19a   :  { %v785_v43 = vpop.f32.mrf.mxu2  ;;  %v610_v58 = vpop.f32.mrf.mxu0 }
 0x19b   :  { %v874_v25 = vpop.f32.mrf.mxu3  ;;  %v699_v26 = vpop.f32.mrf.mxu1 }
 0x19c   :  { %v875_v30 = vadd.f32 %v874_v25, %v785_v43  ;;  %v700_v59 = vadd.f32 %v699_v26, %v610_v58 }
 0x19d   :  { %925 = vmatmul.bf16.gmra.mxu0 %v2101_v15 }
 0x19e   :  { %v1267_v35 = vpack.c.bf16 %v875_v30, %v697_v28  ;;  %1014 = vmatmul.bf16.gmra.mxu1 %v2103_v17 }
 0x19f   :  { %1103 = vmatmul.bf16.gmra.mxu2 %v2101_v15 }
 0x1a0   :  { %1299 = vst [vmem:[%s2431_s2 + $0xe8] sm:$0xff] %v1267_v35  ;;  %1192 = vmatmul.bf16.gmra.mxu3 %v2103_v17 }
 0x1a2   :  { %v788_v47 = vpop.f32.mrf.mxu2  ;;  %v612_v39 = vpop.f32.mrf.mxu0 }
 0x1a3   :  { %v877_v36 = vpop.f32.mrf.mxu3  ;;  %v701_v40 = vpop.f32.mrf.mxu1 }
 0x1a4   :  { %v878_v27 = vadd.f32 %v877_v36, %v788_v47  ;;  %v702_v46 = vadd.f32 %v701_v40, %v612_v39 }
 0x1a6   :  { %v1268_v42 = vpack.c.bf16 %v878_v27, %v700_v59 }
 0x1a8   :  { %1300 = vst [vmem:[%s2431_s2 + $0xf0] sm:$0xff] %v1268_v42 }
 0x1aa   :  { %v790_v44 = vpop.f32.mrf.mxu2  ;;  %v891_v15 = vpop.f32.mrf.mxu0 }
 0x1ab   :  { %v879_v45 = vpop.f32.mrf.mxu3  ;;  %v980_v2 = vpop.f32.mrf.mxu1 }
 0x1ac   :  { %v880_v48 = vadd.f32 %v879_v45, %v790_v44  ;;  %v981_v54 = vadd.f32 %v980_v2, %v891_v15 }
 0x1ad   :  { %930 = vmatmul.bf16.gmra.mxu0 %v2109_v22 }
 0x1ae   :  { %v1269_v49 = vpack.c.bf16 %v880_v48, %v702_v46  ;;  %1019 = vmatmul.bf16.gmra.mxu1 %v2111_v24 }
 0x1af   :  { %1108 = vmatmul.bf16.gmra.mxu2 %v2109_v22 }
 0x1b0   :  { %1301 = vst [vmem:[%s2431_s2 + $0xf8] sm:$0xff] %v1269_v49  ;;  %1197 = vmatmul.bf16.gmra.mxu3 %v2111_v24 }
 0x1b2   :  { %v1069_v17 = vpop.f32.mrf.mxu2  ;;  %v893_v50 = vpop.f32.mrf.mxu0 }
 0x1b3   :  { %v1158_v32 = vpop.f32.mrf.mxu3  ;;  %v982_v51 = vpop.f32.mrf.mxu1 }
 0x1b4   :  { %v983_v3 = vadd.f32 %v982_v51, %v893_v50  ;;  %v1159_v61 = vadd.f32 %v1158_v32, %v1069_v17 }
 0x1b6   :  { %v1767_v33 = vpack.c.bf16 %v983_v3, %v981_v54 }
 0x1b8   :  { %1768 = vst [vmem:[%s2432_s3] sm:$0xff] %v1767_v33  }
 0x1ba   :  { %v1071_v55 = vpop.f32.mrf.mxu2  ;;  %v896_v22 = vpop.f32.mrf.mxu0 }
 0x1bb   :  { %v1160_v60 = vpop.f32.mrf.mxu3  ;;  %v985_v1 = vpop.f32.mrf.mxu1 }
 0x1bc   :  { %v1161_v0 = vadd.f32 %v1160_v60, %v1071_v55  ;;  %v986_v8 = vadd.f32 %v985_v1, %v896_v22 }
 0x1bd   :  { %935 = vmatmul.bf16.gmra.mxu0 %v2120_v57 }
 0x1be   :  { %v1847_v4 = vpack.c.bf16 %v1161_v0, %v1159_v61  ;;  %1024 = vmatmul.bf16.gmra.mxu1 %v2122_v63 }
 0x1bf   :  { %1113 = vmatmul.bf16.gmra.mxu2 %v2120_v57 }
 0x1c0   :  { %1848 = vst [vmem:[%s2433_s4] sm:$0xff] %v1847_v4   ;;  %1202 = vmatmul.bf16.gmra.mxu3 %v2122_v63 }
 0x1c2   :  { %v1074_v24 = vpop.f32.mrf.mxu2  ;;  %v898_v7 = vpop.f32.mrf.mxu0 }
 0x1c3   :  { %v1163_v6 = vpop.f32.mrf.mxu3  ;;  %v987_v52 = vpop.f32.mrf.mxu1 }
 0x1c4   :  { %v988_v10 = vadd.f32 %v987_v52, %v898_v7  ;;  %v1164_v14 = vadd.f32 %v1163_v6, %v1074_v24 }
 0x1c6   :  { %v1772_v12 = vpack.c.bf16 %v988_v10, %v986_v8 }
 0x1c8   :  { %1924 = vst [vmem:[%s2432_s3 + $0x8] sm:$0xff] %v1772_v12  }
 0x1ca   :  { %v1076_v13 = vpop.f32.mrf.mxu2  ;;  %v901_v57 = vpop.f32.mrf.mxu0 }
 0x1cb   :  { %v1165_v53 = vpop.f32.mrf.mxu3  ;;  %v990_v16 = vpop.f32.mrf.mxu1 }
 0x1cc   :  { %v1166_v9 = vadd.f32 %v1165_v53, %v1076_v13  ;;  %v991_v25 = vadd.f32 %v990_v16, %v901_v57 }
 0x1cd   :  { %940 = vmatmul.bf16.gmra.mxu0 %v2134_v23 }
 0x1ce   :  { %v1852_v18 = vpack.c.bf16 %v1166_v9, %v1164_v14  ;;  %1029 = vmatmul.bf16.gmra.mxu1 %v2136_v29 }
 0x1cf   :  { %1118 = vmatmul.bf16.gmra.mxu2 %v2134_v23 }
 0x1d0   :  { %1939 = vst [vmem:[%s2433_s4 + $0x8] sm:$0xff] %v1852_v18   ;;  %1207 = vmatmul.bf16.gmra.mxu3 %v2136_v29 }
 0x1d2   :  { %v1079_v63 = vpop.f32.mrf.mxu2  ;;  %v903_v20 = vpop.f32.mrf.mxu0 }
 0x1d3   :  { %v1168_v19 = vpop.f32.mrf.mxu3  ;;  %v992_v43 = vpop.f32.mrf.mxu1 }
 0x1d4   :  { %v993_v58 = vadd.f32 %v992_v43, %v903_v20  ;;  %v1169_v35 = vadd.f32 %v1168_v19, %v1079_v63 }
 0x1d6   :  { %v1777_v28 = vpack.c.bf16 %v993_v58, %v991_v25 }
 0x1d8   :  { %1925 = vst [vmem:[%s2432_s3 + $0x10] sm:$0xff] %v1777_v28  }
 0x1da   :  { %v1081_v30 = vpop.f32.mrf.mxu2  ;;  %v906_v23 = vpop.f32.mrf.mxu0 }
 0x1db   :  { %v1170_v26 = vpop.f32.mrf.mxu3  ;;  %v995_v47 = vpop.f32.mrf.mxu1 }
 0x1dc   :  { %v1171_v59 = vadd.f32 %v1170_v26, %v1081_v30  ;;  %v996_v42 = vadd.f32 %v995_v47, %v906_v23 }
 0x1dd   :  { %945 = vmatmul.bf16.gmra.mxu0 %v2148_v5 }
 0x1de   :  { %v1857_v36 = vpack.c.bf16 %v1171_v59, %v1169_v35  ;;  %1034 = vmatmul.bf16.gmra.mxu1 %v2150_v11 }
 0x1df   :  { %1123 = vmatmul.bf16.gmra.mxu2 %v2148_v5 }
 0x1e0   :  { %1940 = vst [vmem:[%s2433_s4 + $0x10] sm:$0xff] %v1857_v36   ;;  %1212 = vmatmul.bf16.gmra.mxu3 %v2150_v11 }
 0x1e2   :  { %v1084_v29 = vpop.f32.mrf.mxu2  ;;  %v908_v27 = vpop.f32.mrf.mxu0 }
 0x1e3   :  { %v1173_v39 = vpop.f32.mrf.mxu3  ;;  %v997_v40 = vpop.f32.mrf.mxu1 }
 0x1e4   :  { %v998_v44 = vadd.f32 %v997_v40, %v908_v27  ;;  %v1174_v48 = vadd.f32 %v1173_v39, %v1084_v29 }
 0x1e6   :  { %v1782_v45 = vpack.c.bf16 %v998_v44, %v996_v42 }
 0x1e8   :  { %1926 = vst [vmem:[%s2432_s3 + $0x18] sm:$0xff] %v1782_v45  }
 0x1ea   :  { %v1086_v15 = vpop.f32.mrf.mxu2  ;;  %v911_v5 = vpop.f32.mrf.mxu0 }
 0x1eb   :  { %v1175_v46 = vpop.f32.mrf.mxu3  ;;  %v1000_v49 = vpop.f32.mrf.mxu1 }
 0x1ec   :  { %v1176_v2 = vadd.f32 %v1175_v46, %v1086_v15  ;;  %v1001_v54 = vadd.f32 %v1000_v49, %v911_v5 }
 0x1ed   :  { %950 = vmatmul.bf16.gmra.mxu0 %v2162_v38 }
 0x1ee   :  { %v1862_v17 = vpack.c.bf16 %v1176_v2, %v1174_v48  ;;  %1039 = vmatmul.bf16.gmra.mxu1 %v2164_v41 }
 0x1ef   :  { %1128 = vmatmul.bf16.gmra.mxu2 %v2162_v38 }
 0x1f0   :  { %1941 = vst [vmem:[%s2433_s4 + $0x18] sm:$0xff] %v1862_v17   ;;  %1217 = vmatmul.bf16.gmra.mxu3 %v2164_v41 }
 0x1f2   :  { %v1089_v11 = vpop.f32.mrf.mxu2  ;;  %v913_v50 = vpop.f32.mrf.mxu0 }
 0x1f3   :  { %v1178_v32 = vpop.f32.mrf.mxu3  ;;  %v1002_v51 = vpop.f32.mrf.mxu1 }
 0x1f4   :  { %v1003_v3 = vadd.f32 %v1002_v51, %v913_v50  ;;  %v1179_v22 = vadd.f32 %v1178_v32, %v1089_v11 }
 0x1f6   :  { %v1787_v33 = vpack.c.bf16 %v1003_v3, %v1001_v54 }
 0x1f8   :  { %1927 = vst [vmem:[%s2432_s3 + $0x20] sm:$0xff] %v1787_v33  }
 0x1fa   :  { %v1091_v55 = vpop.f32.mrf.mxu2  ;;  %v916_v38 = vpop.f32.mrf.mxu0 }
 0x1fb   :  { %v1180_v60 = vpop.f32.mrf.mxu3  ;;  %v1005_v0 = vpop.f32.mrf.mxu1 }
 0x1fc   :  { %v1181_v61 = vadd.f32 %v1180_v60, %v1091_v55  ;;  %v1006_v7 = vadd.f32 %v1005_v0, %v916_v38 }
 0x1fd   :  { %955 = vmatmul.bf16.gmra.mxu0 %v2176_v21 }
 0x1fe   :  { %v1867_v1 = vpack.c.bf16 %v1181_v61, %v1179_v22  ;;  %1044 = vmatmul.bf16.gmra.mxu1 %v2178_v31 }
 0x1ff   :  { %1133 = vmatmul.bf16.gmra.mxu2 %v2176_v21 }
 0x200   :  { %1942 = vst [vmem:[%s2433_s4 + $0x20] sm:$0xff] %v1867_v1   ;;  %1222 = vmatmul.bf16.gmra.mxu3 %v2178_v31 }
 0x202   :  { %v1094_v41 = vpop.f32.mrf.mxu2  ;;  %v918_v24 = vpop.f32.mrf.mxu0 }
 0x203   :  { %v1183_v4 = vpop.f32.mrf.mxu3  ;;  %v1007_v6 = vpop.f32.mrf.mxu1 }
 0x204   :  { %v1008_v52 = vadd.f32 %v1007_v6, %v918_v24  ;;  %v1184_v13 = vadd.f32 %v1183_v4, %v1094_v41 }
 0x206   :  { %v1792_v8 = vpack.c.bf16 %v1008_v52, %v1006_v7 }
 0x208   :  { %1928 = vst [vmem:[%s2432_s3 + $0x28] sm:$0xff] %v1792_v8  }
 0x20a   :  { %v1096_v10 = vpop.f32.mrf.mxu2  ;;  %v921_v21 = vpop.f32.mrf.mxu0 }
 0x20b   :  { %v1185_v12 = vpop.f32.mrf.mxu3  ;;  %v1010_v57 = vpop.f32.mrf.mxu1 }
 0x20c   :  { %v1186_v53 = vadd.f32 %v1185_v12, %v1096_v10  ;;  %v1011_v63 = vadd.f32 %v1010_v57, %v921_v21 }
 0x20d   :  { %960 = vmatmul.bf16.gmra.mxu0 %v2190_v56 }
 0x20e   :  { %v1872_v14 = vpack.c.bf16 %v1186_v53, %v1184_v13  ;;  %1049 = vmatmul.bf16.gmra.mxu1 %v2192_v62 }
 0x20f   :  { %1138 = vmatmul.bf16.gmra.mxu2 %v2190_v56 }
 0x210   :  { %1943 = vst [vmem:[%s2433_s4 + $0x28] sm:$0xff] %v1872_v14   ;;  %1227 = vmatmul.bf16.gmra.mxu3 %v2192_v62 }
 0x212   :  { %v1099_v31 = vpop.f32.mrf.mxu2  ;;  %v923_v16 = vpop.f32.mrf.mxu0 }
 0x213   :  { %v1188_v9 = vpop.f32.mrf.mxu3  ;;  %v1012_v18 = vpop.f32.mrf.mxu1 }
 0x214   :  { %v1013_v19 = vadd.f32 %v1012_v18, %v923_v16  ;;  %v1189_v58 = vadd.f32 %v1188_v9, %v1099_v31 }
 0x216   :  { %v1797_v20 = vpack.c.bf16 %v1013_v19, %v1011_v63 }
 0x218   :  { %1929 = vst [vmem:[%s2432_s3 + $0x30] sm:$0xff] %v1797_v20  }
 0x21a   :  { %v1101_v43 = vpop.f32.mrf.mxu2  ;;  %v926_v56 = vpop.f32.mrf.mxu0 }
 0x21b   :  { %v1190_v25 = vpop.f32.mrf.mxu3  ;;  %v1015_v30 = vpop.f32.mrf.mxu1 }
 0x21c   :  { %v1191_v28 = vadd.f32 %v1190_v25, %v1101_v43  ;;  %v1016_v47 = vadd.f32 %v1015_v30, %v926_v56 }
 0x21d   :  { %965 = vmatmul.bf16.gmra.mxu0 %v2204_v34 }
 0x21e   :  { %v1877_v26 = vpack.c.bf16 %v1191_v28, %v1189_v58  ;;  %1054 = vmatmul.bf16.gmra.mxu1 %v2206_v37 }
 0x21f   :  { %1143 = vmatmul.bf16.gmra.mxu2 %v2204_v34 }
 0x220   :  { %1944 = vst [vmem:[%s2433_s4 + $0x30] sm:$0xff] %v1877_v26   ;;  %1232 = vmatmul.bf16.gmra.mxu3 %v2206_v37 }
 0x222   :  { %v1104_v62 = vpop.f32.mrf.mxu2  ;;  %v928_v35 = vpop.f32.mrf.mxu0 }
 0x223   :  { %v1193_v23 = vpop.f32.mrf.mxu3  ;;  %v1017_v59 = vpop.f32.mrf.mxu1 }
 0x224   :  { %v1018_v36 = vadd.f32 %v1017_v59, %v928_v35  ;;  %v1194_v40 = vadd.f32 %v1193_v23, %v1104_v62 }
 0x226   :  { %v1802_v29 = vpack.c.bf16 %v1018_v36, %v1016_v47 }
 0x228   :  { %1930 = vst [vmem:[%s2432_s3 + $0x38] sm:$0xff] %v1802_v29  }
 0x22a   :  { %v1106_v39 = vpop.f32.mrf.mxu2  ;;  %v931_v34 = vpop.f32.mrf.mxu0 }
 0x22b   :  { %v1195_v27 = vpop.f32.mrf.mxu3  ;;  %v1020_v44 = vpop.f32.mrf.mxu1 }
 0x22c   :  { %v1196_v42 = vadd.f32 %v1195_v27, %v1106_v39  ;;  %v1021_v48 = vadd.f32 %v1020_v44, %v931_v34 }
 0x22e   :  { %v1882_v45 = vpack.c.bf16 %v1196_v42, %v1194_v40 }
 0x230   :  { %1945 = vst [vmem:[%s2433_s4 + $0x38] sm:$0xff] %v1882_v45  }
 0x232   :  { %v1109_v37 = vpop.f32.mrf.mxu2  ;;  %v933_v46 = vpop.f32.mrf.mxu0 }
 0x233   :  { %v1198_v15 = vpop.f32.mrf.mxu3  ;;  %v1022_v5 = vpop.f32.mrf.mxu1 }
 0x234   :  { %v1023_v2 = vadd.f32 %v1022_v5, %v933_v46  ;;  %v1199_v50 = vadd.f32 %v1198_v15, %v1109_v37 }
 0x236   :  { %v1807_v49 = vpack.c.bf16 %v1023_v2, %v1021_v48 }
 0x238   :  { %1931 = vst [vmem:[%s2432_s3 + $0x40] sm:$0xff] %v1807_v49  }
 0x23a   :  { %v1111_v17 = vpop.f32.mrf.mxu2  ;;  %v936_v32 = vpop.f32.mrf.mxu0 }
 0x23b   :  { %v1200_v11 = vpop.f32.mrf.mxu3  ;;  %v1025_v54 = vpop.f32.mrf.mxu1 }
 0x23c   :  { %v1201_v51 = vadd.f32 %v1200_v11, %v1111_v17  ;;  %v1026_v22 = vadd.f32 %v1025_v54, %v936_v32 }
 0x23e   :  { %v1887_v3 = vpack.c.bf16 %v1201_v51, %v1199_v50 }
 0x240   :  { %1946 = vst [vmem:[%s2433_s4 + $0x40] sm:$0xff] %v1887_v3  }
 0x242   :  { %v1114_v33 = vpop.f32.mrf.mxu2  ;;  %v938_v60 = vpop.f32.mrf.mxu0 }
 0x243   :  { %v1203_v55 = vpop.f32.mrf.mxu3  ;;  %v1027_v38 = vpop.f32.mrf.mxu1 }
 0x244   :  { %v1028_v61 = vadd.f32 %v1027_v38, %v938_v60  ;;  %v1204_v24 = vadd.f32 %v1203_v55, %v1114_v33 }
 0x246   :  { %v1812_v0 = vpack.c.bf16 %v1028_v61, %v1026_v22 }
 0x248   :  { %1932 = vst [vmem:[%s2432_s3 + $0x48] sm:$0xff] %v1812_v0  }
 0x24a   :  { %v1116_v1 = vpop.f32.mrf.mxu2  ;;  %v941_v4 = vpop.f32.mrf.mxu0 }
 0x24b   :  { %v1205_v41 = vpop.f32.mrf.mxu3  ;;  %v1030_v7 = vpop.f32.mrf.mxu1 }
 0x24c   :  { %v1206_v6 = vadd.f32 %v1205_v41, %v1116_v1  ;;  %v1031_v13 = vadd.f32 %v1030_v7, %v941_v4 }
 0x24e   :  { %v1892_v52 = vpack.c.bf16 %v1206_v6, %v1204_v24 }
 0x250   :  { %1947 = vst [vmem:[%s2433_s4 + $0x48] sm:$0xff] %v1892_v52  }
 0x252   :  { %v1119_v8 = vpop.f32.mrf.mxu2  ;;  %v943_v12 = vpop.f32.mrf.mxu0 }
 0x253   :  { %v1208_v10 = vpop.f32.mrf.mxu3  ;;  %v1032_v21 = vpop.f32.mrf.mxu1 }
 0x254   :  { %v1033_v53 = vadd.f32 %v1032_v21, %v943_v12  ;;  %v1209_v16 = vadd.f32 %v1208_v10, %v1119_v8 }
 0x256   :  { %v1817_v57 = vpack.c.bf16 %v1033_v53, %v1031_v13 }
 0x258   :  { %1933 = vst [vmem:[%s2432_s3 + $0x50] sm:$0xff] %v1817_v57  }
 0x25a   :  { %v1121_v14 = vpop.f32.mrf.mxu2  ;;  %v946_v9 = vpop.f32.mrf.mxu0 }
 0x25b   :  { %v1210_v31 = vpop.f32.mrf.mxu3  ;;  %v1035_v63 = vpop.f32.mrf.mxu1 }
 0x25c   :  { %v1211_v18 = vadd.f32 %v1210_v31, %v1121_v14  ;;  %v1036_v58 = vadd.f32 %v1035_v63, %v946_v9 }
 0x25e   :  { %v1897_v19 = vpack.c.bf16 %v1211_v18, %v1209_v16 }
 0x260   :  { %1948 = vst [vmem:[%s2433_s4 + $0x50] sm:$0xff] %v1897_v19  }
 0x262   :  { %v1124_v20 = vpop.f32.mrf.mxu2  ;;  %v948_v25 = vpop.f32.mrf.mxu0 }
 0x263   :  { %v1213_v43 = vpop.f32.mrf.mxu3  ;;  %v1037_v56 = vpop.f32.mrf.mxu1 }
 0x264   :  { %v1038_v28 = vadd.f32 %v1037_v56, %v948_v25  ;;  %v1214_v35 = vadd.f32 %v1213_v43, %v1124_v20 }
 0x266   :  { %v1822_v30 = vpack.c.bf16 %v1038_v28, %v1036_v58 }
 0x268   :  { %1934 = vst [vmem:[%s2432_s3 + $0x58] sm:$0xff] %v1822_v30  }
 0x26a   :  { %v1126_v26 = vpop.f32.mrf.mxu2  ;;  %v951_v23 = vpop.f32.mrf.mxu0 }
 0x26b   :  { %v1215_v62 = vpop.f32.mrf.mxu3  ;;  %v1040_v47 = vpop.f32.mrf.mxu1 }
 0x26c   :  { %v1216_v59 = vadd.f32 %v1215_v62, %v1126_v26  ;;  %v1041_v40 = vadd.f32 %v1040_v47, %v951_v23 }
 0x26e   :  { %v1902_v36 = vpack.c.bf16 %v1216_v59, %v1214_v35 }
 0x270   :  { %1949 = vst [vmem:[%s2433_s4 + $0x58] sm:$0xff] %v1902_v36  }
 0x272   :  { %v1129_v29 = vpop.f32.mrf.mxu2  ;;  %v953_v27 = vpop.f32.mrf.mxu0 }
 0x273   :  { %v1218_v39 = vpop.f32.mrf.mxu3  ;;  %v1042_v34 = vpop.f32.mrf.mxu1 }
 0x274   :  { %v1043_v42 = vadd.f32 %v1042_v34, %v953_v27  ;;  %v1219_v46 = vadd.f32 %v1218_v39, %v1129_v29 }
 0x276   :  { %v1827_v44 = vpack.c.bf16 %v1043_v42, %v1041_v40 }
 0x278   :  { %1935 = vst [vmem:[%s2432_s3 + $0x60] sm:$0xff] %v1827_v44  }
 0x27a   :  { %v1131_v45 = vpop.f32.mrf.mxu2  ;;  %v956_v15 = vpop.f32.mrf.mxu0 }
 0x27b   :  { %v1220_v37 = vpop.f32.mrf.mxu3  ;;  %v1045_v48 = vpop.f32.mrf.mxu1 }
 0x27c   :  { %v1221_v5 = vadd.f32 %v1220_v37, %v1131_v45  ;;  %v1046_v50 = vadd.f32 %v1045_v48, %v956_v15 }
 0x27e   :  { %v1907_v2 = vpack.c.bf16 %v1221_v5, %v1219_v46 }
 0x280   :  { %1950 = vst [vmem:[%s2433_s4 + $0x60] sm:$0xff] %v1907_v2  }
 0x282   :  { %v1134_v49 = vpop.f32.mrf.mxu2  ;;  %v958_v11 = vpop.f32.mrf.mxu0 }
 0x283   :  { %v1223_v17 = vpop.f32.mrf.mxu3  ;;  %v1047_v32 = vpop.f32.mrf.mxu1 }
 0x284   :  { %v1048_v51 = vadd.f32 %v1047_v32, %v958_v11  ;;  %v1224_v60 = vadd.f32 %v1223_v17, %v1134_v49 }
 0x286   :  { %v1832_v54 = vpack.c.bf16 %v1048_v51, %v1046_v50 }
 0x288   :  { %1936 = vst [vmem:[%s2432_s3 + $0x68] sm:$0xff] %v1832_v54  }
 0x28a   :  { %v1136_v3 = vpop.f32.mrf.mxu2  ;;  %v961_v55 = vpop.f32.mrf.mxu0 }
 0x28b   :  { %v1225_v33 = vpop.f32.mrf.mxu3  ;;  %v1050_v22 = vpop.f32.mrf.mxu1 }
 0x28c   :  { %v1226_v38 = vadd.f32 %v1225_v33, %v1136_v3  ;;  %v1051_v24 = vadd.f32 %v1050_v22, %v961_v55 }
 0x28e   :  { %v1912_v61 = vpack.c.bf16 %v1226_v38, %v1224_v60 }
 0x290   :  { %1951 = vst [vmem:[%s2433_s4 + $0x68] sm:$0xff] %v1912_v61  }
 0x292   :  { %v1139_v0 = vpop.f32.mrf.mxu2  ;;  %v963_v41 = vpop.f32.mrf.mxu0 }
 0x293   :  { %v1228_v1 = vpop.f32.mrf.mxu3  ;;  %v1052_v4 = vpop.f32.mrf.mxu1 }
 0x294   :  { %v1053_v6 = vadd.f32 %v1052_v4, %v963_v41  ;;  %v1229_v12 = vadd.f32 %v1228_v1, %v1139_v0 }
 0x296   :  { %v1837_v7 = vpack.c.bf16 %v1053_v6, %v1051_v24 }
 0x298   :  { %1937 = vst [vmem:[%s2432_s3 + $0x70] sm:$0xff] %v1837_v7  }
 0x29a   :  { %v1141_v52 = vpop.f32.mrf.mxu2  ;;  %v966_v10 = vpop.f32.mrf.mxu0 }
 0x29b   :  { %v1230_v8 = vpop.f32.mrf.mxu3  ;;  %v1055_v13 = vpop.f32.mrf.mxu1 }
 0x29c   :  { %v1231_v21 = vadd.f32 %v1230_v8, %v1141_v52  ;;  %v1056_v16 = vadd.f32 %v1055_v13, %v966_v10 }
 0x29e   :  { %v1917_v53 = vpack.c.bf16 %v1231_v21, %v1229_v12 }
 0x2a0   :  { %1952 = vst [vmem:[%s2433_s4 + $0x70] sm:$0xff] %v1917_v53  }
 0x2a2   :  { %v1144_v57 = vpop.f32.mrf.mxu2  ;;  %v968_v31 = vpop.f32.mrf.mxu0 }
 0x2a3   :  { %v1233_v14 = vpop.f32.mrf.mxu3  ;;  %v1057_v9 = vpop.f32.mrf.mxu1 }
 0x2a4   :  { %v1058_v18 = vadd.f32 %v1057_v9, %v968_v31  ;;  %v1234_v43 = vadd.f32 %v1233_v14, %v1144_v57 }
 0x2a6   :  { %v1842_v63 = vpack.c.bf16 %v1058_v18, %v1056_v16 }
 0x2a8   :  { %1938 = vst [vmem:[%s2432_s3 + $0x78] sm:$0xff] %v1842_v63  }
 0x2aa   :  { %v1146_v19 = vpop.f32.mrf.mxu2 }
 0x2ab   :  { %v1235_v20 = vpop.f32.mrf.mxu3 }
 0x2ac   :  { %v1236_v25 = vadd.f32 %v1235_v20, %v1146_v19 }
 0x2ae   :  { %v1922_v56 = vpack.c.bf16 %v1236_v25, %v1234_v43 }
 0x2b0   :  { %1953 = vst [vmem:[%s2433_s4 + $0x78] sm:$0xff] %v1922_v56  }
 0x2b1   :  { %1442 = vsyncpa [#allocation3], 1 }
 0x2b2   :  { %1443 = vsyncpa [#allocation5], 1 }

// kernel: mha_forward.5
= control target key start
LH: loop header
LB: loop body
LE: loop exit
PB: predicated region body
PF: predicated region fallthrough
CT: control target
= control target key end

     0   :  { %9 = vsyncpa [#allocation3], 0  ;;  %s3034_s0 = inlined_call_operand.vmem [shape: bf16[256,256], index: 0, kind: input, shape index: {}]   ;;  %s3035_s1 = inlined_call_operand.vmem [shape: bf16[256,256], index: 1, kind: input, shape index: {}]   ;;  %s3036_s2 = inlined_call_operand.vmem [shape: f32[1,256], index: 2, kind: input, shape index: {}]   ;;  %s3037_s3 = inlined_call_operand.hbm [shape: f32[256,256], index: 3, kind: input, shape index: {}]   ;;  %s3038_s4 = inlined_call_operand.hbm [shape: f32[256,256], index: 4, kind: output, shape index: {}]  }
   0x1   :  { %10 = vsyncpa [#allocation4], 0  ;;  %s21_s17 = sshll.u32 %s3037_s3, 4  ;;  %s2113_s18 = smov [#allocation2]   ;;  %s22_s17 = int_to_ptr.hbm [resolvable:$true] %s21_s17 }
   0x2   :  { %s23_s19 = sshll.u32 %s2113_s18, 4  ;;  %s2114_s20 = smov 256   ;;  %s24_s19 = int_to_ptr.vmem [resolvable:$true] %s23_s19 }
   0x3   :  { %s2115_s21 = smov 16  }
   0x4   :  { %29 = dma.hbm_to_vmem [thread:$0]  %s22_s17, 8192, %s24_s19, [#allocation3], %s2114_s20, %s2114_s20, %s2115_s21  }
   0x5   :  { %2109 = dma.done.wait [#allocation3], 8192  }
   0x6   :  { %2110 = vsyncadd [#allocation3], 4294959104  ;;  %v1856_v0 = vld [vmem:[%s3035_s1 + $0x70] sm:$0xf]  ;;  %v1973_v1 = vld [vmem:[%s3035_s1 + $0x74] sm:$0xf0] }
   0x7   :  { %v1920_v2 = vld [vmem:[%s3035_s1 + $0xf0] sm:$0xf]  ;;  %v1857_v3 = vor.u32 %v1973_v1, %v1856_v0  ;;  %v1989_v4 = vld [vmem:[%s3035_s1 + $0xf4] sm:$0xf0]  ;;  %v1972_v5 = vld [vmem:[%s3035_s1 + $0x74] sm:$0xf] }
   0x8   :  { %v1858_v6 = vld [vmem:[%s3035_s1 + $0x78] sm:$0xf0]  ;;  %v1921_v7 = vor.u32 %v1989_v4, %v1920_v2  ;;  %v1988_v9 = vld [vmem:[%s3035_s1 + $0xf4] sm:$0xf]  ;;  %v1848_v11 = vld [vmem:[%s3035_s1 + $0x60] sm:$0xf] }
   0x9   :  { %v1861_v8 = vor.u32 %v1972_v5, %v1858_v6  ;;  %v1922_v10 = vld [vmem:[%s3035_s1 + $0xf8] sm:$0xf0]  ;;  %418 = vmatpush.bf16.msra.mxu0 %v1857_v3  ;;  %v1971_v13 = vld [vmem:[%s3035_s1 + $0x64] sm:$0xf0]  ;;  %v1912_v14 = vld [vmem:[%s3035_s1 + $0xe0] sm:$0xf] }
   0xa   :  { %v1925_v12 = vor.u32 %v1988_v9, %v1922_v10  ;;  %v1987_v15 = vld [vmem:[%s3035_s1 + $0xe4] sm:$0xf0]  ;;  %507 = vmatpush.bf16.msra.mxu1 %v1921_v7  ;;  %v1849_v16 = vor.u32 %v1971_v13, %v1848_v11  ;;  %v1970_v18 = vld [vmem:[%s3035_s1 + $0x64] sm:$0xf]  ;;  %v1850_v19 = vld [vmem:[%s3035_s1 + $0x68] sm:$0xf0] }
   0xb   :  { %596 = vmatpush.bf16.msra.mxu2 %v1861_v8  ;;  %v1913_v17 = vor.u32 %v1987_v15, %v1912_v14  ;;  %v1986_v20 = vld [vmem:[%s3035_s1 + $0xe4] sm:$0xf]  ;;  %v1853_v21 = vor.u32 %v1970_v18, %v1850_v19  ;;  %v1914_v22 = vld [vmem:[%s3035_s1 + $0xe8] sm:$0xf0]  ;;  %v1840_v23 = vld [vmem:[%s3035_s1 + $0x50] sm:$0xf] }
   0xc   :  { %685 = vmatpush.bf16.msra.mxu3 %v1925_v12  ;;  %v1969_v24 = vld [vmem:[%s3035_s1 + $0x54] sm:$0xf0]  ;;  %v1917_v25 = vor.u32 %v1986_v20, %v1914_v22  ;;  %v1904_v26 = vld [vmem:[%s3035_s1 + $0xd0] sm:$0xf]  ;;  %v1968_v28 = vld [vmem:[%s3035_s1 + $0x54] sm:$0xf] }
   0xd   :  { %v1985_v27 = vld [vmem:[%s3035_s1 + $0xd4] sm:$0xf0]  ;;  %419 = vmatpush.bf16.msra.mxu0 %v1849_v16  ;;  %v1841_v29 = vor.u32 %v1969_v24, %v1840_v23  ;;  %v1842_v30 = vld [vmem:[%s3035_s1 + $0x58] sm:$0xf0]  ;;  %v1984_v31 = vld [vmem:[%s3035_s1 + $0xd4] sm:$0xf] }
   0xe   :  { %v1906_v32 = vld [vmem:[%s3035_s1 + $0xd8] sm:$0xf0]  ;;  %508 = vmatpush.bf16.msra.mxu1 %v1913_v17  ;;  %v1905_v33 = vor.u32 %v1985_v27, %v1904_v26  ;;  %v1845_v34 = vor.u32 %v1968_v28, %v1842_v30  ;;  %v1832_v35 = vld [vmem:[%s3035_s1 + $0x40] sm:$0xf]  ;;  %v1967_v36 = vld [vmem:[%s3035_s1 + $0x44] sm:$0xf0] }
   0xf   :  { %597 = vmatpush.bf16.msra.mxu2 %v1853_v21  ;;  %v1896_v37 = vld [vmem:[%s3035_s1 + $0xc0] sm:$0xf]  ;;  %v1909_v38 = vor.u32 %v1984_v31, %v1906_v32  ;;  %v1983_v39 = vld [vmem:[%s3035_s1 + $0xc4] sm:$0xf0]  ;;  %v1966_v40 = vld [vmem:[%s3035_s1 + $0x44] sm:$0xf]  ;;  %v1833_v44 = vor.u32 %v1967_v36, %v1832_v35 }
  0x10   :  { %686 = vmatpush.bf16.msra.mxu3 %v1917_v25  ;;  %v1834_v41 = vld [vmem:[%s3035_s1 + $0x48] sm:$0xf0]  ;;  %v1982_v42 = vld [vmem:[%s3035_s1 + $0xc4] sm:$0xf]  ;;  %v1897_v45 = vor.u32 %v1983_v39, %v1896_v37  ;;  %v1824_v47 = vld [vmem:[%s3035_s1 + $0x30] sm:$0xf] }
  0x11   :  { %v1898_v43 = vld [vmem:[%s3035_s1 + $0xc8] sm:$0xf0]  ;;  %420 = vmatpush.bf16.msra.mxu0 %v1841_v29  ;;  %v1837_v46 = vor.u32 %v1966_v40, %v1834_v41  ;;  %v1965_v48 = vld [vmem:[%s3035_s1 + $0x34] sm:$0xf0]  ;;  %v1888_v49 = vld [vmem:[%s3035_s1 + $0xb0] sm:$0xf] }
  0x12   :  { %509 = vmatpush.bf16.msra.mxu1 %v1905_v33  ;;  %v1901_v50 = vor.u32 %v1982_v42, %v1898_v43  ;;  %v1981_v51 = vld [vmem:[%s3035_s1 + $0xb4] sm:$0xf0]  ;;  %v1964_v52 = vld [vmem:[%s3035_s1 + $0x34] sm:$0xf]  ;;  %v1826_v53 = vld [vmem:[%s3035_s1 + $0x38] sm:$0xf0]  ;;  %v1825_v56 = vor.u32 %v1965_v48, %v1824_v47 }
  0x13   :  { %598 = vmatpush.bf16.msra.mxu2 %v1845_v34  ;;  %v1980_v54 = vld [vmem:[%s3035_s1 + $0xb4] sm:$0xf]  ;;  %v1890_v55 = vld [vmem:[%s3035_s1 + $0xb8] sm:$0xf0]  ;;  %v1889_v57 = vor.u32 %v1981_v51, %v1888_v49  ;;  %v1829_v58 = vor.u32 %v1964_v52, %v1826_v53  ;;  %v1816_v59 = vld [vmem:[%s3035_s1 + $0x20] sm:$0xf] }
  0x14   :  { %687 = vmatpush.bf16.msra.mxu3 %v1909_v38  ;;  %v1963_v60 = vld [vmem:[%s3035_s1 + $0x24] sm:$0xf0]  ;;  %v1880_v61 = vld [vmem:[%s3035_s1 + $0xa0] sm:$0xf]  ;;  %v1893_v62 = vor.u32 %v1980_v54, %v1890_v55  ;;  %v1962_v0 = vld [vmem:[%s3035_s1 + $0x24] sm:$0xf] }
  0x15   :  { %421 = vmatpush.bf16.msra.mxu0 %v1833_v44  ;;  %v1979_v63 = vld [vmem:[%s3035_s1 + $0xa4] sm:$0xf0]  ;;  %v1818_v1 = vld [vmem:[%s3035_s1 + $0x28] sm:$0xf0]  ;;  %v1978_v2 = vld [vmem:[%s3035_s1 + $0xa4] sm:$0xf]  ;;  %v1817_v4 = vor.u32 %v1963_v60, %v1816_v59 }
  0x16   :  { %510 = vmatpush.bf16.msra.mxu1 %v1897_v45  ;;  %v1882_v3 = vld [vmem:[%s3035_s1 + $0xa8] sm:$0xf0]  ;;  %v1881_v5 = vor.u32 %v1979_v63, %v1880_v61  ;;  %v1821_v6 = vor.u32 %v1962_v0, %v1818_v1  ;;  %v1808_v7 = vld [vmem:[%s3035_s1 + $0x10] sm:$0xf]  ;;  %v1961_v8 = vld [vmem:[%s3035_s1 + $0x14] sm:$0xf0] }
  0x17   :  { %599 = vmatpush.bf16.msra.mxu2 %v1837_v46  ;;  %v1872_v9 = vld [vmem:[%s3035_s1 + $0x90] sm:$0xf]  ;;  %v1885_v10 = vor.u32 %v1978_v2, %v1882_v3  ;;  %v1977_v11 = vld [vmem:[%s3035_s1 + $0x94] sm:$0xf0]  ;;  %v1960_v12 = vld [vmem:[%s3035_s1 + $0x14] sm:$0xf]  ;;  %v1809_v16 = vor.u32 %v1961_v8, %v1808_v7 }
  0x18   :  { %688 = vmatpush.bf16.msra.mxu3 %v1901_v50  ;;  %v1810_v13 = vld [vmem:[%s3035_s1 + $0x18] sm:$0xf0]  ;;  %v1976_v14 = vld [vmem:[%s3035_s1 + $0x94] sm:$0xf]  ;;  %v1873_v17 = vor.u32 %v1977_v11, %v1872_v9  ;;  %v1800_v19 = vld [vmem:[%s3035_s1] sm:$0xf] }
  0x19   :  { %422 = vmatpush.bf16.msra.mxu0 %v1825_v56  ;;  %v1874_v15 = vld [vmem:[%s3035_s1 + $0x98] sm:$0xf0]  ;;  %v1813_v18 = vor.u32 %v1960_v12, %v1810_v13  ;;  %v1959_v20 = vld [vmem:[%s3035_s1 + $0x4] sm:$0xf0]  ;;  %v1864_v21 = vld [vmem:[%s3035_s1 + $0x80] sm:$0xf] }
  0x1a   :  { %511 = vmatpush.bf16.msra.mxu1 %v1889_v57  ;;  %v1877_v22 = vor.u32 %v1976_v14, %v1874_v15  ;;  %v1975_v23 = vld [vmem:[%s3035_s1 + $0x84] sm:$0xf0]  ;;  %v1958_v24 = vld [vmem:[%s3035_s1 + $0x4] sm:$0xf]  ;;  %v1802_v25 = vld [vmem:[%s3035_s1 + $0x8] sm:$0xf0]  ;;  %v1801_v28 = vor.u32 %v1959_v20, %v1800_v19 }
  0x1b   :  { %600 = vmatpush.bf16.msra.mxu2 %v1829_v58  ;;  %v1974_v26 = vld [vmem:[%s3035_s1 + $0x84] sm:$0xf]  ;;  %v1866_v27 = vld [vmem:[%s3035_s1 + $0x88] sm:$0xf0]  ;;  %v1672_v29 = vld [vmem:[%s3034_s0] sm:$0xf]  ;;  %v1865_v31 = vor.u32 %v1975_v23, %v1864_v21  ;;  %v1805_v32 = vor.u32 %v1958_v24, %v1802_v25 }
  0x1c   :  { %689 = vmatpush.bf16.msra.mxu3 %v1893_v62  ;;  %v1927_v30 = vld [vmem:[%s3034_s0 + $0x4] sm:$0xf0]  ;;  %v1926_v33 = vld [vmem:[%s3034_s0 + $0x4] sm:$0xf]  ;;  %v1674_v34 = vld [vmem:[%s3034_s0 + $0x8] sm:$0xf0]  ;;  %v1869_v35 = vor.u32 %v1974_v26, %v1866_v27 }
  0x1d   :  { %423 = vmatpush.bf16.msra.mxu0 %v1817_v4  ;;  %v1673_v36 = vor.u32 %v1927_v30, %v1672_v29  ;;  %v1677_v37 = vor.u32 %v1926_v33, %v1674_v34  ;;  %v1680_v38 = vld [vmem:[%s3034_s0 + $0x10] sm:$0xf]  ;;  %v1929_v39 = vld [vmem:[%s3034_s0 + $0x14] sm:$0xf0]  ;;  %v1928_v40 = vld [vmem:[%s3034_s0 + $0x14] sm:$0xf] }
  0x1e   :  { %512 = vmatpush.bf16.msra.mxu1 %v1881_v5  ;;  %v1682_v41 = vld [vmem:[%s3034_s0 + $0x18] sm:$0xf0]  ;;  %v1681_v42 = vor.u32 %v1929_v39, %v1680_v38  ;;  %v1688_v44 = vld [vmem:[%s3034_s0 + $0x20] sm:$0xf]  ;;  %v1931_v45 = vld [vmem:[%s3034_s0 + $0x24] sm:$0xf0] }
  0x1f   :  { %601 = vmatpush.bf16.msra.mxu2 %v1821_v6  ;;  %v1685_v43 = vor.u32 %v1928_v40, %v1682_v41  ;;  %v1930_v46 = vld [vmem:[%s3034_s0 + $0x24] sm:$0xf]  ;;  %v1690_v47 = vld [vmem:[%s3034_s0 + $0x28] sm:$0xf0]  ;;  %v1689_v48 = vor.u32 %v1931_v45, %v1688_v44  ;;  %v1696_v50 = vld [vmem:[%s3034_s0 + $0x30] sm:$0xf] }
  0x20   :  { %690 = vmatpush.bf16.msra.mxu3 %v1885_v10  ;;  %v1693_v49 = vor.u32 %v1930_v46, %v1690_v47  ;;  %v1933_v51 = vld [vmem:[%s3034_s0 + $0x34] sm:$0xf0]  ;;  %v1932_v52 = vld [vmem:[%s3034_s0 + $0x34] sm:$0xf]  ;;  %v1698_v53 = vld [vmem:[%s3034_s0 + $0x38] sm:$0xf0] }
  0x21   :  { %424 = vmatpush.bf16.msra.mxu0 %v1809_v16  ;;  %v1697_v54 = vor.u32 %v1933_v51, %v1696_v50  ;;  %v1701_v55 = vor.u32 %v1932_v52, %v1698_v53  ;;  %v1704_v56 = vld [vmem:[%s3034_s0 + $0x40] sm:$0xf]  ;;  %v1935_v57 = vld [vmem:[%s3034_s0 + $0x44] sm:$0xf0]  ;;  %v1934_v58 = vld [vmem:[%s3034_s0 + $0x44] sm:$0xf] }
  0x22   :  { %513 = vmatpush.bf16.msra.mxu1 %v1873_v17  ;;  %v1706_v59 = vld [vmem:[%s3034_s0 + $0x48] sm:$0xf0]  ;;  %v1705_v60 = vor.u32 %v1935_v57, %v1704_v56  ;;  %v1712_v62 = vld [vmem:[%s3034_s0 + $0x50] sm:$0xf]  ;;  %v1937_v63 = vld [vmem:[%s3034_s0 + $0x54] sm:$0xf0] }
  0x23   :  { %602 = vmatpush.bf16.msra.mxu2 %v1813_v18  ;;  %v1709_v61 = vor.u32 %v1934_v58, %v1706_v59  ;;  %v1936_v0 = vld [vmem:[%s3034_s0 + $0x54] sm:$0xf]  ;;  %v1714_v1 = vld [vmem:[%s3034_s0 + $0x58] sm:$0xf0]  ;;  %v1713_v2 = vor.u32 %v1937_v63, %v1712_v62  ;;  %v1720_v4 = vld [vmem:[%s3034_s0 + $0x60] sm:$0xf] }
  0x24   :  { %691 = vmatpush.bf16.msra.mxu3 %v1877_v22  ;;  %v1717_v3 = vor.u32 %v1936_v0, %v1714_v1  ;;  %v1939_v5 = vld [vmem:[%s3034_s0 + $0x64] sm:$0xf0]  ;;  %v1938_v6 = vld [vmem:[%s3034_s0 + $0x64] sm:$0xf]  ;;  %v1722_v7 = vld [vmem:[%s3034_s0 + $0x68] sm:$0xf0] }
  0x25   :  { %425 = vmatpush.bf16.msra.mxu0 %v1801_v28  ;;  %v1721_v8 = vor.u32 %v1939_v5, %v1720_v4  ;;  %v1725_v9 = vor.u32 %v1938_v6, %v1722_v7  ;;  %v1728_v10 = vld [vmem:[%s3034_s0 + $0x70] sm:$0xf]  ;;  %v1941_v11 = vld [vmem:[%s3034_s0 + $0x74] sm:$0xf0]  ;;  %v1940_v12 = vld [vmem:[%s3034_s0 + $0x74] sm:$0xf] }
  0x26   :  { %514 = vmatpush.bf16.msra.mxu1 %v1865_v31  ;;  %v1730_v13 = vld [vmem:[%s3034_s0 + $0x78] sm:$0xf0]  ;;  %v1729_v14 = vor.u32 %v1941_v11, %v1728_v10  ;;  %v1736_v16 = vld [vmem:[%s3034_s0 + $0x80] sm:$0xf]  ;;  %v1943_v17 = vld [vmem:[%s3034_s0 + $0x84] sm:$0xf0] }
  0x27   :  { %603 = vmatpush.bf16.msra.mxu2 %v1805_v32  ;;  %v1733_v15 = vor.u32 %v1940_v12, %v1730_v13  ;;  %v1942_v18 = vld [vmem:[%s3034_s0 + $0x84] sm:$0xf]  ;;  %v1738_v19 = vld [vmem:[%s3034_s0 + $0x88] sm:$0xf0]  ;;  %v1737_v20 = vor.u32 %v1943_v17, %v1736_v16  ;;  %v1744_v32 = vld [vmem:[%s3034_s0 + $0x90] sm:$0xf] }
  0x28   :  { %692 = vmatpush.bf16.msra.mxu3 %v1869_v35  ;;  %426 = vmatmul.bf16.vlgmr.msra.gmra.mxu0 %v1673_v36  ;;  %v1741_v22 = vor.u32 %v1942_v18, %v1738_v19  ;;  %v1945_v33 = vld [vmem:[%s3034_s0 + $0x94] sm:$0xf0]  ;;  %v1944_v35 = vld [vmem:[%s3034_s0 + $0x94] sm:$0xf]  ;;  %v1752_v56 = vld [vmem:[%s3034_s0 + $0xa0] sm:$0xf] }
  0x29   :  { %515 = vmatmul.bf16.vlgmr.msra.gmra.mxu1 %v1677_v37  ;;  %v1745_v39 = vor.u32 %v1945_v33, %v1744_v32  ;;  %v1947_v57 = vld [vmem:[%s3034_s0 + $0xa4] sm:$0xf0]  ;;  %v1946_v59 = vld [vmem:[%s3034_s0 + $0xa4] sm:$0xf]  ;;  %v1760_v16 = vld [vmem:[%s3034_s0 + $0xb0] sm:$0xf] }
  0x2a   :  { %604 = vmatmul.bf16.vlgmr.msra.gmra.mxu2 %v1673_v36  ;;  %v1746_v36 = vld [vmem:[%s3034_s0 + $0x98] sm:$0xf0]  ;;  %v1753_v63 = vor.u32 %v1947_v57, %v1752_v56  ;;  %v1949_v17 = vld [vmem:[%s3034_s0 + $0xb4] sm:$0xf0]  ;;  %v1948_v19 = vld [vmem:[%s3034_s0 + $0xb4] sm:$0xf] }
  0x2b   :  { %693 = vmatmul.bf16.vlgmr.msra.gmra.mxu3 %v1677_v37  ;;  %s1657_s26 = sshll.u32 %s3038_s4, 4  ;;  %s1658_s26 = int_to_ptr.hbm [resolvable:$true] %s1657_s26 }
  0x38   :  { %431 = vmatmul.bf16.gmra.mxu0 %v1681_v42 }
  0x39   :  { %520 = vmatmul.bf16.gmra.mxu1 %v1685_v43 }
  0x3a   :  { %609 = vmatmul.bf16.gmra.mxu2 %v1681_v42  ;;  %v1749_v42 = vor.u32 %v1944_v35, %v1746_v36 }
  0x3b   :  { %698 = vmatmul.bf16.gmra.mxu3 %v1685_v43 }
  0x48   :  { %436 = vmatmul.bf16.gmra.mxu0 %v1689_v48 }
  0x49   :  { %525 = vmatmul.bf16.gmra.mxu1 %v1693_v49 }
  0x4a   :  { %614 = vmatmul.bf16.gmra.mxu2 %v1689_v48 }
  0x4b   :  { %703 = vmatmul.bf16.gmra.mxu3 %v1693_v49 }
  0x58   :  { %441 = vmatmul.bf16.gmra.mxu0 %v1697_v54 }
  0x59   :  { %530 = vmatmul.bf16.gmra.mxu1 %v1701_v55 }
  0x5a   :  { %619 = vmatmul.bf16.gmra.mxu2 %v1697_v54 }
  0x5b   :  { %708 = vmatmul.bf16.gmra.mxu3 %v1701_v55 }
  0x68   :  { %446 = vmatmul.bf16.gmra.mxu0 %v1705_v60 }
  0x69   :  { %535 = vmatmul.bf16.gmra.mxu1 %v1709_v61 }
  0x6a   :  { %624 = vmatmul.bf16.gmra.mxu2 %v1705_v60  ;;  %v1754_v60 = vld [vmem:[%s3034_s0 + $0xa8] sm:$0xf0] }
  0x6b   :  { %713 = vmatmul.bf16.gmra.mxu3 %v1709_v61 }
  0x78   :  { %451 = vmatmul.bf16.gmra.mxu0 %v1713_v2 }
  0x79   :  { %540 = vmatmul.bf16.gmra.mxu1 %v1717_v3 }
  0x7a   :  { %629 = vmatmul.bf16.gmra.mxu2 %v1713_v2  ;;  %v1757_v2 = vor.u32 %v1946_v59, %v1754_v60 }
  0x7b   :  { %718 = vmatmul.bf16.gmra.mxu3 %v1717_v3 }
  0x88   :  { %456 = vmatmul.bf16.gmra.mxu0 %v1721_v8 }
  0x89   :  { %545 = vmatmul.bf16.gmra.mxu1 %v1725_v9 }
  0x8a   :  { %634 = vmatmul.bf16.gmra.mxu2 %v1721_v8 }
  0x8b   :  { %723 = vmatmul.bf16.gmra.mxu3 %v1725_v9 }
  0x98   :  { %461 = vmatmul.bf16.gmra.mxu0 %v1729_v14 }
  0x99   :  { %550 = vmatmul.bf16.gmra.mxu1 %v1733_v15 }
  0x9a   :  { %639 = vmatmul.bf16.gmra.mxu2 %v1729_v14 }
  0x9b   :  { %728 = vmatmul.bf16.gmra.mxu3 %v1733_v15 }
  0xa5   :  { %v427_v21 = vpop.f32.mrf.mxu0 }
  0xa6   :  { %v516_v23 = vpop.f32.mrf.mxu1 }
  0xa7   :  { %v2449_v24 = vadd.f32 %v516_v23, %v427_v21  ;;  %v1761_v23 = vor.u32 %v1949_v17, %v1760_v16 }
  0xa8   :  { %466 = vmatmul.bf16.gmra.mxu0 %v1737_v20 }
  0xa9   :  { %555 = vmatmul.bf16.gmra.mxu1 %v1741_v22  ;;  %v774_v30 = vmul.f32 %v2449_v24, %v2449_v24 }
  0xaa   :  { %644 = vmatmul.bf16.gmra.mxu2 %v1737_v20  ;;  %v1762_v20 = vld [vmem:[%s3034_s0 + $0xb8] sm:$0xf0] }
  0xab   :  { %733 = vmatmul.bf16.gmra.mxu3 %v1741_v22 }
  0xad   :  { %v605_v25 = vpop.f32.mrf.mxu2  ;;  %v429_v27 = vpop.f32.mrf.mxu0 }
  0xae   :  { %v694_v26 = vpop.f32.mrf.mxu3  ;;  %v518_v29 = vpop.f32.mrf.mxu1 }
  0xaf   :  { %v2451_v28 = vadd.f32 %v694_v26, %v605_v25  ;;  %v2469_v37 = vadd.f32 %v518_v29, %v429_v27  ;;  %v1765_v27 = vor.u32 %v1948_v19, %v1762_v20 }
  0xb1   :  { %v775_v31 = vmul.f32 %v2451_v28, %v2451_v28  ;;  %v776_v45 = vmul.f32 %v2469_v37, %v2469_v37 }
  0xb3   :  { %v838_v34 = vadd.f32 %v775_v31, %v774_v30 }
  0xb5   :  { %839 = vadd.xlane.f32.xlu0 %v838_v34  ;;  %v607_v38 = vpop.f32.mrf.mxu2  ;;  %v432_v41 = vpop.f32.mrf.mxu0 }
  0xb6   :  { %v696_v40 = vpop.f32.mrf.mxu3  ;;  %v521_v44 = vpop.f32.mrf.mxu1 }
  0xb7   :  { %v2471_v43 = vadd.f32 %v696_v40, %v607_v38  ;;  %v2477_v47 = vadd.f32 %v521_v44, %v432_v41  ;;  %v1768_v44 = vld [vmem:[%s3034_s0 + $0xc0] sm:$0xf] }
  0xb8   :  { %471 = vmatmul.bf16.gmra.mxu0 %v1745_v39 }
  0xb9   :  { %v777_v46 = vmul.f32 %v2471_v43, %v2471_v43  ;;  %560 = vmatmul.bf16.gmra.mxu1 %v1749_v42  ;;  %v778_v54 = vmul.f32 %v2477_v47, %v2477_v47 }
  0xba   :  { %649 = vmatmul.bf16.gmra.mxu2 %v1745_v39 }
  0xbb   :  { %738 = vmatmul.bf16.gmra.mxu3 %v1749_v42  ;;  %v841_v48 = vadd.f32 %v777_v46, %v776_v45  ;;  %v1951_v45 = vld [vmem:[%s3034_s0 + $0xc4] sm:$0xf0] }
  0xbd   :  { %842 = vadd.xlane.f32.xlu0 %v841_v48  ;;  %v610_v49 = vpop.f32.mrf.mxu2  ;;  %v434_v51 = vpop.f32.mrf.mxu0  ;;  %v1950_v48 = vld [vmem:[%s3034_s0 + $0xc4] sm:$0xf] }
  0xbe   :  { %v699_v50 = vpop.f32.mrf.mxu3  ;;  %v523_v53 = vpop.f32.mrf.mxu1 }
  0xbf   :  { %v2479_v52 = vadd.f32 %v699_v50, %v610_v49  ;;  %v2497_v61 = vadd.f32 %v523_v53, %v434_v51  ;;  %v1770_v49 = vld [vmem:[%s3034_s0 + $0xc8] sm:$0xf0]  ;;  %v1769_v53 = vor.u32 %v1951_v45, %v1768_v44  ;;  %v1954_v45 = vld [vmem:[%s3034_s0 + $0xe4] sm:$0xf] }
  0xc0   :  { %v1773_v56 = vor.u32 %v1950_v48, %v1770_v49 }
  0xc1   :  { %v779_v55 = vmul.f32 %v2479_v52, %v2479_v52  ;;  %v780_v5 = vmul.f32 %v2497_v61, %v2497_v61 }
  0xc3   :  { %v844_v58 = vadd.f32 %v779_v55, %v778_v54 }
  0xc5   :  { %845 = vadd.xlane.f32.xlu1 %v844_v58  ;;  %v612_v62 = vpop.f32.mrf.mxu2  ;;  %v437_v1 = vpop.f32.mrf.mxu0 }
  0xc6   :  { %v701_v0 = vpop.f32.mrf.mxu3  ;;  %v526_v4 = vpop.f32.mrf.mxu1 }
  0xc7   :  { %v2499_v3 = vadd.f32 %v701_v0, %v612_v62  ;;  %v2505_v7 = vadd.f32 %v526_v4, %v437_v1 }
  0xc8   :  { %476 = vmatmul.bf16.gmra.mxu0 %v1753_v63 }
  0xc9   :  { %v781_v6 = vmul.f32 %v2499_v3, %v2499_v3  ;;  %565 = vmatmul.bf16.gmra.mxu1 %v1757_v2  ;;  %v782_v14 = vmul.f32 %v2505_v7, %v2505_v7 }
  0xca   :  { %654 = vmatmul.bf16.gmra.mxu2 %v1753_v63 }
  0xcb   :  { %743 = vmatmul.bf16.gmra.mxu3 %v1757_v2  ;;  %v847_v8 = vadd.f32 %v781_v6, %v780_v5 }
  0xcd   :  { %848 = vadd.xlane.f32.xlu1 %v847_v8  ;;  %v615_v9 = vpop.f32.mrf.mxu2  ;;  %v439_v11 = vpop.f32.mrf.mxu0 }
  0xce   :  { %v704_v10 = vpop.f32.mrf.mxu3  ;;  %v528_v13 = vpop.f32.mrf.mxu1 }
  0xcf   :  { %v2507_v12 = vadd.f32 %v704_v10, %v615_v9  ;;  %v2525_v21 = vadd.f32 %v528_v13, %v439_v11  ;;  %v1776_v9 = vld [vmem:[%s3034_s0 + $0xd0] sm:$0xf]  ;;  %v1953_v10 = vld [vmem:[%s3034_s0 + $0xd4] sm:$0xf0]  ;;  %v1952_v13 = vld [vmem:[%s3034_s0 + $0xd4] sm:$0xf] }
  0xd0   :  { %v1777_v17 = vor.u32 %v1953_v10, %v1776_v9 }
  0xd1   :  { %v783_v15 = vmul.f32 %v2507_v12, %v2507_v12  ;;  %v784_v31 = vmul.f32 %v2525_v21, %v2525_v21 }
  0xd3   :  { %v850_v18 = vadd.f32 %v783_v15, %v782_v14  ;;  %v1778_v14 = vld [vmem:[%s3034_s0 + $0xd8] sm:$0xf0] }
  0xd4   :  { %v1781_v20 = vor.u32 %v1952_v13, %v1778_v14  ;;  %v1792_v13 = vld [vmem:[%s3034_s0 + $0xf0] sm:$0xf]  ;;  %v1957_v14 = vld [vmem:[%s3034_s0 + $0xf4] sm:$0xf0] }
  0xd5   :  { %851 = vadd.xlane.f32.xlu2 %v850_v18  ;;  %v617_v22 = vpop.f32.mrf.mxu2  ;;  %v442_v26 = vpop.f32.mrf.mxu0 }
  0xd6   :  { %v706_v25 = vpop.f32.mrf.mxu3  ;;  %v531_v30 = vpop.f32.mrf.mxu1 }
  0xd7   :  { %v2527_v29 = vadd.f32 %v706_v25, %v617_v22  ;;  %v2533_v33 = vadd.f32 %v531_v30, %v442_v26 }
  0xd8   :  { %481 = vmatmul.bf16.gmra.mxu0 %v1761_v23 }
  0xd9   :  { %v785_v32 = vmul.f32 %v2527_v29, %v2527_v29  ;;  %570 = vmatmul.bf16.gmra.mxu1 %v1765_v27  ;;  %v786_v39 = vmul.f32 %v2533_v33, %v2533_v33 }
  0xda   :  { %659 = vmatmul.bf16.gmra.mxu2 %v1761_v23 }
  0xdb   :  { %748 = vmatmul.bf16.gmra.mxu3 %v1765_v27  ;;  %v853_v34 = vadd.f32 %v785_v32, %v784_v31 }
  0xdd   :  { %854 = vadd.xlane.f32.xlu2 %v853_v34  ;;  %v620_v35 = vpop.f32.mrf.mxu2  ;;  %v444_v38 = vpop.f32.mrf.mxu0 }
  0xde   :  { %v709_v36 = vpop.f32.mrf.mxu3  ;;  %v533_v41 = vpop.f32.mrf.mxu1 }
  0xdf   :  { %v2537_v40 = vadd.f32 %v709_v36, %v620_v35  ;;  %v2553_v50 = vadd.f32 %v533_v41, %v444_v38  ;;  %v1784_v41 = vld [vmem:[%s3034_s0 + $0xe0] sm:$0xf] }
  0xe1   :  { %v787_v42 = vmul.f32 %v2537_v40, %v2537_v40  ;;  %v788_v59 = vmul.f32 %v2553_v50, %v2553_v50 }
  0xe3   :  { %v856_v46 = vadd.f32 %v787_v42, %v786_v39  ;;  %v1955_v42 = vld [vmem:[%s3034_s0 + $0xe4] sm:$0xf0] }
  0xe5   :  { %857 = vadd.xlane.f32.xlu0 %v856_v46  ;;  %v622_v51 = vpop.f32.mrf.mxu2  ;;  %v447_v55 = vpop.f32.mrf.mxu0  ;;  %v1786_v46 = vld [vmem:[%s3034_s0 + $0xe8] sm:$0xf0] }
  0xe6   :  { %v711_v54 = vpop.f32.mrf.mxu3  ;;  %v536_v58 = vpop.f32.mrf.mxu1 }
  0xe7   :  { %v2555_v57 = vadd.f32 %v711_v54, %v622_v51  ;;  %v2561_v62 = vadd.f32 %v536_v58, %v447_v55  ;;  %v1785_v51 = vor.u32 %v1955_v42, %v1784_v41  ;;  %v1789_v55 = vor.u32 %v1954_v45, %v1786_v46 }
  0xe8   :  { %486 = vmatmul.bf16.gmra.mxu0 %v1769_v53 }
  0xe9   :  { %v789_v60 = vmul.f32 %v2555_v57, %v2555_v57  ;;  %575 = vmatmul.bf16.gmra.mxu1 %v1773_v56  ;;  %v790_v4 = vmul.f32 %v2561_v62, %v2561_v62 }
  0xea   :  { %664 = vmatmul.bf16.gmra.mxu2 %v1769_v53 }
  0xeb   :  { %753 = vmatmul.bf16.gmra.mxu3 %v1773_v56  ;;  %v859_v63 = vadd.f32 %v789_v60, %v788_v59 }
  0xed   :  { %860 = vadd.xlane.f32.xlu1 %v859_v63  ;;  %v625_v0 = vpop.f32.mrf.mxu2  ;;  %v449_v2 = vpop.f32.mrf.mxu0 }
  0xee   :  { %v714_v1 = vpop.f32.mrf.mxu3  ;;  %v538_v6 = vpop.f32.mrf.mxu1 }
  0xef   :  { %v2565_v5 = vadd.f32 %v714_v1, %v625_v0  ;;  %v2581_v15 = vadd.f32 %v538_v6, %v449_v2  ;;  %v2116_v2 = vmov 256.0  }
  0xf0   :  { %1995 = vrcp.f32 %v2116_v2 }
  0xf1   :  { %v791_v8 = vmul.f32 %v2565_v5, %v2565_v5  ;;  %v792_v25 = vmul.f32 %v2581_v15, %v2581_v15 }
  0xf3   :  { %v862_v11 = vadd.f32 %v791_v8, %v790_v4 }
  0xf5   :  { %863 = vadd.xlane.f32.xlu2 %v862_v11  ;;  %v627_v16 = vpop.f32.mrf.mxu2  ;;  %v452_v19 = vpop.f32.mrf.mxu0 }
  0xf6   :  { %v716_v18 = vpop.f32.mrf.mxu3  ;;  %v541_v23 = vpop.f32.mrf.mxu1 }
  0xf7   :  { %v2583_v22 = vadd.f32 %v716_v18, %v627_v16  ;;  %v2589_v27 = vadd.f32 %v541_v23, %v452_v19  ;;  %v1996_v16 = vpop.eup %1995  ;;  %v1956_v18 = vld [vmem:[%s3034_s0 + $0xf4] sm:$0xf]  ;;  %v1794_v19 = vld [vmem:[%s3034_s0 + $0xf8] sm:$0xf0] }
  0xf8   :  { %491 = vmatmul.bf16.gmra.mxu0 %v1777_v17  ;;  %vm939_vm0 = vweird.f32 %v1996_v16 }
  0xf9   :  { %v793_v26 = vmul.f32 %v2583_v22, %v2583_v22  ;;  %580 = vmatmul.bf16.gmra.mxu1 %v1781_v20  ;;  %v794_v35 = vmul.f32 %v2589_v27, %v2589_v27 }
  0xfa   :  { %669 = vmatmul.bf16.gmra.mxu2 %v1777_v17 }
  0xfb   :  { %758 = vmatmul.bf16.gmra.mxu3 %v1781_v20  ;;  %v865_v30 = vadd.f32 %v793_v26, %v792_v25  ;;  %v1793_v25 = vor.u32 %v1957_v14, %v1792_v13 }
  0xfd   :  { %866 = vadd.xlane.f32.xlu0 %v865_v30  ;;  %v630_v31 = vpop.f32.mrf.mxu2  ;;  %v454_v34 = vpop.f32.mrf.mxu0 }
  0xfe   :  { %v719_v32 = vpop.f32.mrf.mxu3  ;;  %v543_v38 = vpop.f32.mrf.mxu1 }
  0xff   :  { %v2593_v36 = vadd.f32 %v719_v32, %v630_v31  ;;  %v2609_v48 = vadd.f32 %v543_v38, %v454_v34  ;;  %v1797_v31 = vor.u32 %v1956_v18, %v1794_v19  ;;  %v935_v32 = vmul.f32 256.0, %v1996_v16 }
 0x101   :  { %v795_v39 = vmul.f32 %v2593_v36, %v2593_v36  ;;  %v796_v59 = vmul.f32 %v2609_v48, %v2609_v48  ;;  %v936_v41 = vsub.f32 1.0, %v935_v32 }
 0x103   :  { %v868_v44 = vadd.f32 %v795_v39, %v794_v35 }
 0x105   :  { %869 = vadd.xlane.f32.xlu1 %v868_v44  ;;  %v632_v49 = vpop.f32.mrf.mxu2  ;;  %v457_v54 = vpop.f32.mrf.mxu0 }
 0x106   :  { %v721_v53 = vpop.f32.mrf.mxu3  ;;  %v546_v58 = vpop.f32.mrf.mxu1 }
 0x107   :  { %v2611_v56 = vadd.f32 %v721_v53, %v632_v49  ;;  %v2617_v63 = vadd.f32 %v546_v58, %v457_v54 }
 0x108   :  { %496 = vmatmul.bf16.gmra.mxu0 %v1785_v51 }
 0x109   :  { %v797_v60 = vmul.f32 %v2611_v56, %v2611_v56  ;;  %585 = vmatmul.bf16.gmra.mxu1 %v1789_v55  ;;  %v798_v8 = vmul.f32 %v2617_v63, %v2617_v63 }
 0x10a   :  { %674 = vmatmul.bf16.gmra.mxu2 %v1785_v51  ;;  %v937_v51 = vmul.f32 %v1996_v16, %v936_v41 }
 0x10b   :  { %763 = vmatmul.bf16.gmra.mxu3 %v1789_v55  ;;  %v871_v0 = vadd.f32 %v797_v60, %v796_v59 }
 0x10c   :  { %v938_v59 = vadd.f32 %v1996_v16, %v937_v51 }
 0x10d   :  { %872 = vadd.xlane.f32.xlu2 %v871_v0  ;;  %v635_v1 = vpop.f32.mrf.mxu2  ;;  %v459_v6 = vpop.f32.mrf.mxu0 }
 0x10e   :  { %v724_v4 = vpop.f32.mrf.mxu3  ;;  %v548_v10 = vpop.f32.mrf.mxu1 }
 0x10f   :  { %v2621_v9 = vadd.f32 %v724_v4, %v635_v1  ;;  %v2637_v20 = vadd.f32 %v548_v10, %v459_v6  ;;  %v2655_v6 = vsel %vm939_vm0, %v1996_v16, %v938_v59 }
 0x111   :  { %v799_v11 = vmul.f32 %v2621_v9, %v2621_v9  ;;  %v800_v38 = vmul.f32 %v2637_v20, %v2637_v20 }
 0x113   :  { %v874_v17 = vadd.f32 %v799_v11, %v798_v8 }
 0x115   :  { %875 = vadd.xlane.f32.xlu0 %v874_v17  ;;  %v637_v23 = vpop.f32.mrf.mxu2  ;;  %v462_v30 = vpop.f32.mrf.mxu0 }
 0x116   :  { %v726_v26 = vpop.f32.mrf.mxu3  ;;  %v551_v35 = vpop.f32.mrf.mxu1 }
 0x117   :  { %v2639_v34 = vadd.f32 %v726_v26, %v637_v23  ;;  %v2645_v42 = vadd.f32 %v551_v35, %v462_v30 }
 0x118   :  { %501 = vmatmul.bf16.gmra.mxu0 %v1793_v25 }
 0x119   :  { %v801_v39 = vmul.f32 %v2639_v34, %v2639_v34  ;;  %590 = vmatmul.bf16.gmra.mxu1 %v1797_v31  ;;  %v802_v53 = vmul.f32 %v2645_v42, %v2645_v42 }
 0x11a   :  { %679 = vmatmul.bf16.gmra.mxu2 %v1793_v25 }
 0x11b   :  { %768 = vmatmul.bf16.gmra.mxu3 %v1797_v31  ;;  %v877_v44 = vadd.f32 %v801_v39, %v800_v38 }
 0x11d   :  { %878 = vadd.xlane.f32.xlu1 %v877_v44  ;;  %v640_v45 = vpop.f32.mrf.mxu2  ;;  %v464_v49 = vpop.f32.mrf.mxu0 }
 0x11e   :  { %v729_v46 = vpop.f32.mrf.mxu3  ;;  %v553_v55 = vpop.f32.mrf.mxu1 }
 0x11f   :  { %v2649_v54 = vadd.f32 %v729_v46, %v640_v45  ;;  %v2653_v0 = vadd.f32 %v553_v55, %v464_v49 }
 0x121   :  { %v803_v58 = vmul.f32 %v2649_v54, %v2649_v54  ;;  %v804_v13 = vmul.f32 %v2653_v0, %v2653_v0 }
 0x123   :  { %v880_v60 = vadd.f32 %v803_v58, %v802_v53 }
 0x125   :  { %881 = vadd.xlane.f32.xlu2 %v880_v60  ;;  %v642_v1 = vpop.f32.mrf.mxu2  ;;  %v467_v4 = vpop.f32.mrf.mxu0 }
 0x126   :  { %v731_v2 = vpop.f32.mrf.mxu3  ;;  %v556_v10 = vpop.f32.mrf.mxu1 }
 0x127   :  { %v2657_v8 = vadd.f32 %v731_v2, %v642_v1  ;;  %v2664_v18 = vadd.f32 %v556_v10, %v467_v4 }
 0x128   :  { %v840_v11 = vpop.xlane.xlu0 %839 }
 0x129   :  { %v805_v14 = vmul.f32 %v2657_v8, %v2657_v8  ;;  %v941_v17 = vmul.f32 %v2655_v6, %v840_v11  ;;  %v806_v30 = vmul.f32 %v2664_v18, %v2664_v18 }
 0x12b   :  { %v973_v19 = vadd.f32 1e-05, %v941_v17  ;;  %v883_v23 = vadd.f32 %v805_v14, %v804_v13  ;;  %v1389_v13 = vld [vmem:[%s3036_s2] sm:$0x3]  ;;  %s2117_s2 = smov [#allocation5]  }
 0x12c   :  { %s1655_s24 = sshll.u32 %s2117_s2, 4  ;;  %s1656_s24 = int_to_ptr.vmem [resolvable:$true] %s1655_s24 }
 0x12d   :  { %1997 = vrsqrt.f32 %v973_v19  ;;  %884 = vadd.xlane.f32.xlu0 %v883_v23  ;;  %v645_v16 = vpop.f32.mrf.mxu2  ;;  %v469_v26 = vpop.f32.mrf.mxu0  ;;  %vm1011_vm2 = vweird.f32 %v973_v19 }
 0x12e   :  { %v734_v25 = vpop.f32.mrf.mxu3  ;;  %v558_v32 = vpop.f32.mrf.mxu1 }
 0x12f   :  { %v2668_v31 = vadd.f32 %v734_v25, %v645_v16  ;;  %v2673_v49 = vadd.f32 %v558_v32, %v469_v26  ;;  %v2689_v32 = vperm.slane %v1389_v13, 0 }
 0x130   :  { %v843_v35 = vpop.xlane.xlu0 %842 }
 0x131   :  { %v807_v38 = vmul.f32 %v2668_v31, %v2668_v31  ;;  %v942_v39 = vmul.f32 %v2655_v6, %v843_v35  ;;  %v808_v4 = vmul.f32 %v2673_v49, %v2673_v49  ;;  %v2691_v35 = vperm.slane %v1389_v13, 1 }
 0x133   :  { %v1998_v41 = vpop.eup %1997  ;;  %v974_v44 = vadd.f32 1e-05, %v942_v39  ;;  %v886_v45 = vadd.f32 %v807_v38, %v806_v30 }
 0x134   :  { %v1006_v46 = vmul.f32 %v1998_v41, %v973_v19  ;;  %vm1012_vm1 = vweird.f32 %v1998_v41 }
 0x135   :  { %1999 = vrsqrt.f32 %v974_v44  ;;  %887 = vadd.xlane.f32.xlu1 %v886_v45  ;;  %v647_v51 = vpop.f32.mrf.mxu2  ;;  %v472_v58 = vpop.f32.mrf.mxu0  ;;  %vm1013_vm3 = vmor %vm1011_vm2, %vm1012_vm1  ;;  %vm1021_vm5 = vweird.f32 %v974_v44 }
 0x136   :  { %v1007_v53 = vmul.f32 %v1998_v41, %v1006_v46  ;;  %v736_v55 = vpop.f32.mrf.mxu3  ;;  %v561_v60 = vpop.f32.mrf.mxu1 }
 0x137   :  { %v2675_v59 = vadd.f32 %v736_v55, %v647_v51  ;;  %v2685_v23 = vadd.f32 %v561_v60, %v472_v58 }
 0x138   :  { %v1008_v1 = vmul.f32 0.5, %v1007_v53  ;;  %v846_v2 = vpop.xlane.xlu1 %845 }
 0x139   :  { %v809_v10 = vmul.f32 %v2675_v59, %v2675_v59  ;;  %v943_v11 = vmul.f32 %v2655_v6, %v846_v2  ;;  %v810_v19 = vmul.f32 %v2685_v23, %v2685_v23  ;;  %v1460_v2 = vld [vmem:[#allocation2 + $0x8] sm:$0xff] }
 0x13a   :  { %v1009_v14 = vsub.f32 1.5, %v1008_v1  ;;  %v1459_v1 = vld [vmem:[#allocation2] sm:$0xff] }
 0x13b   :  { %v2000_v17 = vpop.eup %1999  ;;  %v2687_v16 = vadd.f32 1e-05, %v943_v11  ;;  %v889_v25 = vadd.f32 %v809_v10, %v808_v4 }
 0x13c   :  { %v1010_v26 = vmul.f32 %v1998_v41, %v1009_v14  ;;  %v1016_v30 = vmul.f32 %v2000_v17, %v974_v44  ;;  %vm1022_vm4 = vweird.f32 %v2000_v17 }
 0x13d   :  { %2001 = vrsqrt.f32 %v2687_v16  ;;  %890 = vadd.xlane.f32.xlu2 %v889_v25  ;;  %v650_v38 = vpop.f32.mrf.mxu2  ;;  %v474_v51 = vpop.f32.mrf.mxu0  ;;  %vm1023_vm6 = vmor %vm1021_vm5, %vm1022_vm4  ;;  %vm1031_vm8 = vweird.f32 %v2687_v16 }
 0x13e   :  { %v1014_v39 = vsel %vm1013_vm3, %v1998_v41, %v1010_v26  ;;  %v1017_v45 = vmul.f32 %v2000_v17, %v1016_v30  ;;  %v739_v46 = vpop.f32.mrf.mxu3  ;;  %v563_v60 = vpop.f32.mrf.mxu1 }
 0x13f   :  { %v1325_v53 = vmul.f32 %v1014_v39, %v2449_v24  ;;  %v1326_v55 = vmul.f32 %v1014_v39, %v2451_v28  ;;  %v2698_v58 = vadd.f32 %v739_v46, %v650_v38  ;;  %v2708_v46 = vadd.f32 %v563_v60, %v474_v51  ;;  %v1461_v51 = vld [vmem:[#allocation2 + $0x10] sm:$0xff]  ;;  %v1462_v60 = vld [vmem:[#allocation2 + $0x18] sm:$0xff] }
 0x140   :  { %v1018_v4 = vmul.f32 0.5, %v1017_v45  ;;  %v849_v10 = vpop.xlane.xlu1 %848 }
 0x141   :  { %v1395_v11 = vmul.f32 %v2689_v32, %v1325_v53  ;;  %v1396_v41 = vmul.f32 %v2691_v35, %v1326_v55  ;;  %v811_v13 = vmul.f32 %v2698_v58, %v2698_v58  ;;  %v944_v24 = vmul.f32 %v2655_v6, %v849_v10 }
 0x142   :  { %v1019_v28 = vsub.f32 1.5, %v1018_v4 }
 0x143   :  { %v2002_v14 = vpop.eup %2001  ;;  %v1523_v25 = vadd.f32 %v1459_v1, %v1395_v11  ;;  %v1524_v26 = vadd.f32 %v1460_v2, %v1396_v41  ;;  %v2705_v30 = vadd.f32 1e-05, %v944_v24  ;;  %v892_v38 = vadd.f32 %v811_v13, %v810_v19 }
 0x144   :  { %v1020_v39 = vmul.f32 %v2000_v17, %v1019_v28  ;;  %v1026_v45 = vmul.f32 %v2002_v14, %v2687_v16  ;;  %v812_v13 = vmul.f32 %v2708_v46, %v2708_v46  ;;  %vm1032_vm7 = vweird.f32 %v2002_v14 }
 0x145   :  { %1587 = vst [vmem:[#allocation5] sm:$0xff] %v1523_v25  ;;  %2003 = vrsqrt.f32 %v2705_v30  ;;  %893 = vadd.xlane.f32.xlu0 %v892_v38  ;;  %v652_v53 = vpop.f32.mrf.mxu2  ;;  %v477_v2 = vpop.f32.mrf.mxu0  ;;  %vm1033_vm9 = vmor %vm1031_vm8, %vm1032_vm7  ;;  %vm1041_vm11 = vweird.f32 %v2705_v30 }
 0x146   :  { %1588 = vst [vmem:[#allocation5 + $0x8] sm:$0xff] %v1524_v26  ;;  %v1024_v55 = vsel %vm1023_vm6, %v2000_v17, %v1020_v39  ;;  %v1027_v4 = vmul.f32 %v2002_v14, %v1026_v45  ;;  %v741_v1 = vpop.f32.mrf.mxu3  ;;  %v566_v11 = vpop.f32.mrf.mxu1 }
 0x147   :  { %v1327_v10 = vmul.f32 %v1024_v55, %v2469_v37  ;;  %v1328_v19 = vmul.f32 %v1024_v55, %v2471_v43  ;;  %v2713_v44 = vadd.f32 %v741_v1, %v652_v53  ;;  %v2722_v26 = vadd.f32 %v566_v11, %v477_v2 }
 0x148   :  { %v1028_v41 = vmul.f32 0.5, %v1027_v4  ;;  %v852_v24 = vpop.xlane.xlu2 %851 }
 0x149   :  { %v1397_v28 = vmul.f32 %v2689_v32, %v1327_v10  ;;  %v1398_v17 = vmul.f32 %v2691_v35, %v1328_v19  ;;  %v813_v25 = vmul.f32 %v2713_v44, %v2713_v44  ;;  %v945_v37 = vmul.f32 %v2655_v6, %v852_v24 }
 0x14a   :  { %v1029_v43 = vsub.f32 1.5, %v1028_v41  ;;  %v814_v16 = vmul.f32 %v2722_v26, %v2722_v26 }
 0x14b   :  { %v2004_v38 = vpop.eup %2003  ;;  %v1525_v39 = vadd.f32 %v1461_v51, %v1397_v28  ;;  %v1526_v45 = vadd.f32 %v1462_v60, %v1398_v17  ;;  %v2724_v53 = vadd.f32 1e-05, %v945_v37  ;;  %v895_v55 = vadd.f32 %v813_v25, %v812_v13  ;;  %v1463_v28 = vld [vmem:[#allocation2 + $0x20] sm:$0xff]  ;;  %v1464_v17 = vld [vmem:[#allocation2 + $0x28] sm:$0xff] }
 0x14c   :  { %v1030_v4 = vmul.f32 %v2002_v14, %v1029_v43  ;;  %v1036_v1 = vmul.f32 %v2004_v38, %v2705_v30  ;;  %vm1042_vm10 = vweird.f32 %v2004_v38 }
 0x14d   :  { %1589 = vst [vmem:[#allocation5 + $0x10] sm:$0xff] %v1525_v39  ;;  %2005 = vrsqrt.f32 %v2724_v53  ;;  %896 = vadd.xlane.f32.xlu1 %v895_v55  ;;  %v655_v10 = vpop.f32.mrf.mxu2  ;;  %v479_v51 = vpop.f32.mrf.mxu0  ;;  %vm1043_vm12 = vmor %vm1041_vm11, %vm1042_vm10  ;;  %vm1051_vm14 = vweird.f32 %v2724_v53 }
 0x14e   :  { %1590 = vst [vmem:[#allocation5 + $0x18] sm:$0xff] %v1526_v45  ;;  %v1034_v2 = vsel %vm1033_vm9, %v2002_v14, %v1030_v4  ;;  %v1037_v19 = vmul.f32 %v2004_v38, %v1036_v1  ;;  %v744_v11 = vpop.f32.mrf.mxu3  ;;  %v568_v24 = vpop.f32.mrf.mxu1 }
 0x14f   :  { %v1329_v60 = vmul.f32 %v1034_v2, %v2477_v47  ;;  %v1330_v41 = vmul.f32 %v1034_v2, %v2479_v52  ;;  %v2733_v13 = vadd.f32 %v744_v11, %v655_v10  ;;  %v2744_v11 = vadd.f32 %v568_v24, %v479_v51  ;;  %v1465_v51 = vld [vmem:[#allocation2 + $0x30] sm:$0xff]  ;;  %v1466_v24 = vld [vmem:[#allocation2 + $0x38] sm:$0xff] }
 0x150   :  { %v1038_v25 = vmul.f32 0.5, %v1037_v19  ;;  %v855_v37 = vpop.xlane.xlu2 %854 }
 0x151   :  { %v1399_v43 = vmul.f32 %v2689_v32, %v1329_v60  ;;  %v1400_v14 = vmul.f32 %v2691_v35, %v1330_v41  ;;  %v815_v39 = vmul.f32 %v2733_v13, %v2733_v13  ;;  %v946_v47 = vmul.f32 %v2655_v6, %v855_v37 }
 0x152   :  { %v1039_v52 = vsub.f32 1.5, %v1038_v25 }
 0x153   :  { %v2006_v45 = vpop.eup %2005  ;;  %v1527_v55 = vadd.f32 %v1463_v28, %v1399_v43  ;;  %v1528_v4 = vadd.f32 %v1464_v17, %v1400_v14  ;;  %v2740_v1 = vadd.f32 1e-05, %v946_v47  ;;  %v898_v10 = vadd.f32 %v815_v39, %v814_v16 }
 0x154   :  { %v1040_v2 = vmul.f32 %v2004_v38, %v1039_v52  ;;  %v1046_v19 = vmul.f32 %v2006_v45, %v2724_v53  ;;  %v816_v39 = vmul.f32 %v2744_v11, %v2744_v11  ;;  %vm1052_vm13 = vweird.f32 %v2006_v45 }
 0x155   :  { %1591 = vst [vmem:[#allocation5 + $0x20] sm:$0xff] %v1527_v55  ;;  %2007 = vrsqrt.f32 %v2740_v1  ;;  %899 = vadd.xlane.f32.xlu2 %v898_v10  ;;  %v657_v60 = vpop.f32.mrf.mxu2  ;;  %v482_v25 = vpop.f32.mrf.mxu0  ;;  %vm1053_vm15 = vmor %vm1051_vm14, %vm1052_vm13  ;;  %vm1061_vm1 = vweird.f32 %v2740_v1 }
 0x156   :  { %1592 = vst [vmem:[#allocation5 + $0x28] sm:$0xff] %v1528_v4  ;;  %v1044_v41 = vsel %vm1043_vm12, %v2004_v38, %v1040_v2  ;;  %v1047_v28 = vmul.f32 %v2006_v45, %v1046_v19  ;;  %v746_v17 = vpop.f32.mrf.mxu3  ;;  %v571_v43 = vpop.f32.mrf.mxu1 }
 0x157   :  { %v1331_v16 = vmul.f32 %v1044_v41, %v2497_v61  ;;  %v1332_v37 = vmul.f32 %v1044_v41, %v2499_v3  ;;  %v2749_v30 = vadd.f32 %v746_v17, %v657_v60  ;;  %v2758_v4 = vadd.f32 %v571_v43, %v482_v25 }
 0x158   :  { %v1048_v14 = vmul.f32 0.5, %v1047_v28  ;;  %v858_v47 = vpop.xlane.xlu0 %857 }
 0x159   :  { %v1401_v52 = vmul.f32 %v2689_v32, %v1331_v16  ;;  %v1402_v38 = vmul.f32 %v2691_v35, %v1332_v37  ;;  %v817_v55 = vmul.f32 %v2749_v30, %v2749_v30  ;;  %v947_v61 = vmul.f32 %v2655_v6, %v858_v47 }
 0x15a   :  { %v1049_v3 = vsub.f32 1.5, %v1048_v14  ;;  %v818_v53 = vmul.f32 %v2758_v4, %v2758_v4 }
 0x15b   :  { %v2008_v10 = vpop.eup %2007  ;;  %v1529_v2 = vadd.f32 %v1465_v51, %v1401_v52  ;;  %v1530_v19 = vadd.f32 %v1466_v24, %v1402_v38  ;;  %v2760_v60 = vadd.f32 1e-05, %v947_v61  ;;  %v901_v41 = vadd.f32 %v817_v55, %v816_v39  ;;  %v1467_v52 = vld [vmem:[#allocation2 + $0x40] sm:$0xff]  ;;  %v1468_v38 = vld [vmem:[#allocation2 + $0x48] sm:$0xff] }
 0x15c   :  { %v1050_v28 = vmul.f32 %v2006_v45, %v1049_v3  ;;  %v1056_v17 = vmul.f32 %v2008_v10, %v2740_v1  ;;  %vm1062_vm0 = vweird.f32 %v2008_v10 }
 0x15d   :  { %1593 = vst [vmem:[#allocation5 + $0x30] sm:$0xff] %v1529_v2  ;;  %2009 = vrsqrt.f32 %v2760_v60  ;;  %902 = vadd.xlane.f32.xlu0 %v901_v41  ;;  %v660_v16 = vpop.f32.mrf.mxu2  ;;  %v484_v51 = vpop.f32.mrf.mxu0  ;;  %vm1063_vm2 = vmor %vm1061_vm1, %vm1062_vm0  ;;  %vm1071_vm4 = vweird.f32 %v2760_v60 }
 0x15e   :  { %1594 = vst [vmem:[#allocation5 + $0x38] sm:$0xff] %v1530_v19  ;;  %v1054_v25 = vsel %vm1053_vm15, %v2006_v45, %v1050_v28  ;;  %v1057_v37 = vmul.f32 %v2008_v10, %v1056_v17  ;;  %v749_v43 = vpop.f32.mrf.mxu3  ;;  %v573_v47 = vpop.f32.mrf.mxu1 }
 0x15f   :  { %v1333_v24 = vmul.f32 %v1054_v25, %v2505_v7  ;;  %v1334_v14 = vmul.f32 %v1054_v25, %v2507_v12  ;;  %v2769_v39 = vadd.f32 %v749_v43, %v660_v16  ;;  %v2780_v43 = vadd.f32 %v573_v47, %v484_v51  ;;  %v1469_v51 = vld [vmem:[#allocation2 + $0x50] sm:$0xff]  ;;  %v1470_v47 = vld [vmem:[#allocation2 + $0x58] sm:$0xff] }
 0x160   :  { %v1058_v55 = vmul.f32 0.5, %v1057_v37  ;;  %v861_v61 = vpop.xlane.xlu1 %860 }
 0x161   :  { %v1403_v3 = vmul.f32 %v2689_v32, %v1333_v24  ;;  %v1404_v45 = vmul.f32 %v2691_v35, %v1334_v14  ;;  %v819_v2 = vmul.f32 %v2769_v39, %v2769_v39  ;;  %v948_v7 = vmul.f32 %v2655_v6, %v861_v61 }
 0x162   :  { %v1059_v12 = vsub.f32 1.5, %v1058_v55 }
 0x163   :  { %v2010_v19 = vpop.eup %2009  ;;  %v1531_v41 = vadd.f32 %v1467_v52, %v1403_v3  ;;  %v1532_v28 = vadd.f32 %v1468_v38, %v1404_v45  ;;  %v2776_v17 = vadd.f32 1e-05, %v948_v7  ;;  %v904_v16 = vadd.f32 %v819_v2, %v818_v53 }
 0x164   :  { %v1060_v25 = vmul.f32 %v2008_v10, %v1059_v12  ;;  %v1066_v37 = vmul.f32 %v2010_v19, %v2760_v60  ;;  %v820_v2 = vmul.f32 %v2780_v43, %v2780_v43  ;;  %vm1072_vm3 = vweird.f32 %v2010_v19 }
 0x165   :  { %1595 = vst [vmem:[#allocation5 + $0x40] sm:$0xff] %v1531_v41  ;;  %2011 = vrsqrt.f32 %v2776_v17  ;;  %905 = vadd.xlane.f32.xlu1 %v904_v16  ;;  %v662_v24 = vpop.f32.mrf.mxu2  ;;  %v487_v55 = vpop.f32.mrf.mxu0  ;;  %vm1073_vm5 = vmor %vm1071_vm4, %vm1072_vm3  ;;  %vm1081_vm7 = vweird.f32 %v2776_v17 }
 0x166   :  { %1596 = vst [vmem:[#allocation5 + $0x48] sm:$0xff] %v1532_v28  ;;  %v1064_v14 = vsel %vm1063_vm2, %v2008_v10, %v1060_v25  ;;  %v1067_v52 = vmul.f32 %v2010_v19, %v1066_v37  ;;  %v751_v38 = vpop.f32.mrf.mxu3  ;;  %v576_v3 = vpop.f32.mrf.mxu1 }
 0x167   :  { %v1335_v53 = vmul.f32 %v1064_v14, %v2525_v21  ;;  %v1336_v61 = vmul.f32 %v1064_v14, %v2527_v29  ;;  %v2785_v1 = vadd.f32 %v751_v38, %v662_v24  ;;  %v2794_v28 = vadd.f32 %v576_v3, %v487_v55 }
 0x168   :  { %v1068_v45 = vmul.f32 0.5, %v1067_v52  ;;  %v864_v7 = vpop.xlane.xlu2 %863 }
 0x169   :  { %v1405_v12 = vmul.f32 %v2689_v32, %v1335_v53  ;;  %v1406_v10 = vmul.f32 %v2691_v35, %v1336_v61  ;;  %v821_v41 = vmul.f32 %v2785_v1, %v2785_v1  ;;  %v949_v21 = vmul.f32 %v2655_v6, %v864_v7 }
 0x16a   :  { %v1069_v29 = vsub.f32 1.5, %v1068_v45  ;;  %v822_v60 = vmul.f32 %v2794_v28, %v2794_v28 }
 0x16b   :  { %v2012_v16 = vpop.eup %2011  ;;  %v1533_v25 = vadd.f32 %v1469_v51, %v1405_v12  ;;  %v1534_v37 = vadd.f32 %v1470_v47, %v1406_v10  ;;  %v2796_v24 = vadd.f32 1e-05, %v949_v21  ;;  %v907_v14 = vadd.f32 %v821_v41, %v820_v2  ;;  %v1471_v12 = vld [vmem:[#allocation2 + $0x60] sm:$0xff]  ;;  %v1472_v10 = vld [vmem:[#allocation2 + $0x68] sm:$0xff] }
 0x16c   :  { %v1070_v52 = vmul.f32 %v2010_v19, %v1069_v29  ;;  %v1076_v38 = vmul.f32 %v2012_v16, %v2776_v17  ;;  %vm1082_vm6 = vweird.f32 %v2012_v16 }
 0x16d   :  { %1597 = vst [vmem:[#allocation5 + $0x50] sm:$0xff] %v1533_v25  ;;  %2013 = vrsqrt.f32 %v2796_v24  ;;  %908 = vadd.xlane.f32.xlu2 %v907_v14  ;;  %v665_v53 = vpop.f32.mrf.mxu2  ;;  %v489_v51 = vpop.f32.mrf.mxu0  ;;  %vm1083_vm8 = vmor %vm1081_vm7, %vm1082_vm6  ;;  %vm1091_vm10 = vweird.f32 %v2796_v24 }
 0x16e   :  { %1598 = vst [vmem:[#allocation5 + $0x58] sm:$0xff] %v1534_v37  ;;  %v1074_v55 = vsel %vm1073_vm5, %v2010_v19, %v1070_v52  ;;  %v1077_v61 = vmul.f32 %v2012_v16, %v1076_v38  ;;  %v754_v3 = vpop.f32.mrf.mxu3  ;;  %v578_v7 = vpop.f32.mrf.mxu1 }
 0x16f   :  { %v1337_v47 = vmul.f32 %v1074_v55, %v2533_v33  ;;  %v1338_v45 = vmul.f32 %v1074_v55, %v2537_v40  ;;  %v2805_v2 = vadd.f32 %v754_v3, %v665_v53  ;;  %v2816_v3 = vadd.f32 %v578_v7, %v489_v51  ;;  %v1473_v51 = vld [vmem:[#allocation2 + $0x70] sm:$0xff]  ;;  %v1474_v7 = vld [vmem:[#allocation2 + $0x78] sm:$0xff] }
 0x170   :  { %v1078_v41 = vmul.f32 0.5, %v1077_v61  ;;  %v867_v21 = vpop.xlane.xlu0 %866 }
 0x171   :  { %v1407_v29 = vmul.f32 %v2689_v32, %v1337_v47  ;;  %v1408_v19 = vmul.f32 %v2691_v35, %v1338_v45  ;;  %v823_v25 = vmul.f32 %v2805_v2, %v2805_v2  ;;  %v950_v33 = vmul.f32 %v2655_v6, %v867_v21 }
 0x172   :  { %v1079_v40 = vsub.f32 1.5, %v1078_v41 }
 0x173   :  { %v2014_v37 = vpop.eup %2013  ;;  %v1535_v14 = vadd.f32 %v1471_v12, %v1407_v29  ;;  %v1536_v52 = vadd.f32 %v1472_v10, %v1408_v19  ;;  %v2812_v38 = vadd.f32 1e-05, %v950_v33  ;;  %v910_v53 = vadd.f32 %v823_v25, %v822_v60 }
 0x174   :  { %v1080_v55 = vmul.f32 %v2012_v16, %v1079_v40  ;;  %v1086_v61 = vmul.f32 %v2014_v37, %v2796_v24  ;;  %v824_v25 = vmul.f32 %v2816_v3, %v2816_v3  ;;  %vm1092_vm9 = vweird.f32 %v2014_v37 }
 0x175   :  { %1599 = vst [vmem:[#allocation5 + $0x60] sm:$0xff] %v1535_v14  ;;  %2015 = vrsqrt.f32 %v2812_v38  ;;  %911 = vadd.xlane.f32.xlu0 %v910_v53  ;;  %v667_v47 = vpop.f32.mrf.mxu2  ;;  %v492_v41 = vpop.f32.mrf.mxu0  ;;  %vm1093_vm11 = vmor %vm1091_vm10, %vm1092_vm9  ;;  %vm1101_vm13 = vweird.f32 %v2812_v38 }
 0x176   :  { %1600 = vst [vmem:[#allocation5 + $0x68] sm:$0xff] %v1536_v52  ;;  %v1084_v45 = vsel %vm1083_vm8, %v2012_v16, %v1080_v55  ;;  %v1087_v12 = vmul.f32 %v2014_v37, %v1086_v61  ;;  %v756_v10 = vpop.f32.mrf.mxu3  ;;  %v581_v29 = vpop.f32.mrf.mxu1 }
 0x177   :  { %v1339_v60 = vmul.f32 %v1084_v45, %v2553_v50  ;;  %v1340_v21 = vmul.f32 %v1084_v45, %v2555_v57  ;;  %v2821_v17 = vadd.f32 %v756_v10, %v667_v47  ;;  %v2830_v52 = vadd.f32 %v581_v29, %v492_v41 }
 0x178   :  { %v1088_v19 = vmul.f32 0.5, %v1087_v12  ;;  %v870_v33 = vpop.xlane.xlu1 %869 }
 0x179   :  { %v1409_v40 = vmul.f32 %v2689_v32, %v1339_v60  ;;  %v1410_v16 = vmul.f32 %v2691_v35, %v1340_v21  ;;  %v825_v14 = vmul.f32 %v2821_v17, %v2821_v17  ;;  %v951_v50 = vmul.f32 %v2655_v6, %v870_v33 }
 0x17a   :  { %v1089_v57 = vsub.f32 1.5, %v1088_v19  ;;  %v826_v24 = vmul.f32 %v2830_v52, %v2830_v52 }
 0x17b   :  { %v2016_v53 = vpop.eup %2015  ;;  %v1537_v55 = vadd.f32 %v1473_v51, %v1409_v40  ;;  %v1538_v61 = vadd.f32 %v1474_v7, %v1410_v16  ;;  %v2832_v47 = vadd.f32 1e-05, %v951_v50  ;;  %v913_v45 = vadd.f32 %v825_v14, %v824_v25  ;;  %v1475_v40 = vld [vmem:[#allocation2 + $0x80] sm:$0xff]  ;;  %v1476_v16 = vld [vmem:[#allocation2 + $0x88] sm:$0xff] }
 0x17c   :  { %v1090_v12 = vmul.f32 %v2014_v37, %v1089_v57  ;;  %v1096_v10 = vmul.f32 %v2016_v53, %v2812_v38  ;;  %vm1102_vm12 = vweird.f32 %v2016_v53 }
 0x17d   :  { %1601 = vst [vmem:[#allocation5 + $0x70] sm:$0xff] %v1537_v55  ;;  %2017 = vrsqrt.f32 %v2832_v47  ;;  %914 = vadd.xlane.f32.xlu1 %v913_v45  ;;  %v670_v60 = vpop.f32.mrf.mxu2  ;;  %v494_v51 = vpop.f32.mrf.mxu0  ;;  %vm1103_vm14 = vmor %vm1101_vm13, %vm1102_vm12  ;;  %vm1111_vm0 = vweird.f32 %v2832_v47 }
 0x17e   :  { %1602 = vst [vmem:[#allocation5 + $0x78] sm:$0xff] %v1538_v61  ;;  %v1094_v41 = vsel %vm1093_vm11, %v2014_v37, %v1090_v12  ;;  %v1097_v21 = vmul.f32 %v2016_v53, %v1096_v10  ;;  %v759_v29 = vpop.f32.mrf.mxu3  ;;  %v583_v33 = vpop.f32.mrf.mxu1 }
 0x17f   :  { %v1341_v7 = vmul.f32 %v1094_v41, %v2561_v62  ;;  %v1342_v19 = vmul.f32 %v1094_v41, %v2565_v5  ;;  %v2841_v25 = vadd.f32 %v759_v29, %v670_v60  ;;  %v2852_v29 = vadd.f32 %v583_v33, %v494_v51  ;;  %v1477_v51 = vld [vmem:[#allocation2 + $0x90] sm:$0xff]  ;;  %v1478_v33 = vld [vmem:[#allocation2 + $0x98] sm:$0xff] }
 0x180   :  { %v1098_v14 = vmul.f32 0.5, %v1097_v21  ;;  %v873_v50 = vpop.xlane.xlu2 %872 }
 0x181   :  { %v1411_v57 = vmul.f32 %v2689_v32, %v1341_v7  ;;  %v1412_v37 = vmul.f32 %v2691_v35, %v1342_v19  ;;  %v827_v55 = vmul.f32 %v2841_v25, %v2841_v25  ;;  %v952_v62 = vmul.f32 %v2655_v6, %v873_v50 }
 0x182   :  { %v1099_v5 = vsub.f32 1.5, %v1098_v14 }
 0x183   :  { %v2018_v61 = vpop.eup %2017  ;;  %v1539_v45 = vadd.f32 %v1475_v40, %v1411_v57  ;;  %v1540_v12 = vadd.f32 %v1476_v16, %v1412_v37  ;;  %v2848_v10 = vadd.f32 1e-05, %v952_v62  ;;  %v916_v60 = vadd.f32 %v827_v55, %v826_v24 }
 0x184   :  { %v1100_v41 = vmul.f32 %v2016_v53, %v1099_v5  ;;  %v1106_v21 = vmul.f32 %v2018_v61, %v2832_v47  ;;  %v828_v55 = vmul.f32 %v2852_v29, %v2852_v29  ;;  %vm1112_vm15 = vweird.f32 %v2018_v61 }
 0x185   :  { %1603 = vst [vmem:[#allocation5 + $0x80] sm:$0xff] %v1539_v45  ;;  %2019 = vrsqrt.f32 %v2848_v10  ;;  %917 = vadd.xlane.f32.xlu2 %v916_v60  ;;  %v672_v7 = vpop.f32.mrf.mxu2  ;;  %v497_v14 = vpop.f32.mrf.mxu0  ;;  %vm1113_vm1 = vmor %vm1111_vm0, %vm1112_vm15  ;;  %vm1121_vm3 = vweird.f32 %v2848_v10 }
 0x186   :  { %1604 = vst [vmem:[#allocation5 + $0x88] sm:$0xff] %v1540_v12  ;;  %v1104_v19 = vsel %vm1103_vm14, %v2016_v53, %v1100_v41  ;;  %v1107_v40 = vmul.f32 %v2018_v61, %v1106_v21  ;;  %v761_v16 = vpop.f32.mrf.mxu3  ;;  %v586_v57 = vpop.f32.mrf.mxu1 }
 0x187   :  { %v1343_v24 = vmul.f32 %v1104_v19, %v2581_v15  ;;  %v1344_v50 = vmul.f32 %v1104_v19, %v2583_v22  ;;  %v2857_v38 = vadd.f32 %v761_v16, %v672_v7  ;;  %v2866_v12 = vadd.f32 %v586_v57, %v497_v14 }
 0x188   :  { %v1108_v37 = vmul.f32 0.5, %v1107_v40  ;;  %v876_v62 = vpop.xlane.xlu0 %875 }
 0x189   :  { %v1413_v5 = vmul.f32 %v2689_v32, %v1343_v24  ;;  %v1414_v53 = vmul.f32 %v2691_v35, %v1344_v50  ;;  %v829_v45 = vmul.f32 %v2857_v38, %v2857_v38  ;;  %v953_v15 = vmul.f32 %v2655_v6, %v876_v62 }
 0x18a   :  { %v1109_v22 = vsub.f32 1.5, %v1108_v37  ;;  %v830_v47 = vmul.f32 %v2866_v12, %v2866_v12 }
 0x18b   :  { %v2020_v60 = vpop.eup %2019  ;;  %v1541_v41 = vadd.f32 %v1477_v51, %v1413_v5  ;;  %v1542_v21 = vadd.f32 %v1478_v33, %v1414_v53  ;;  %v2868_v7 = vadd.f32 1e-05, %v953_v15  ;;  %v919_v19 = vadd.f32 %v829_v45, %v828_v55  ;;  %v1479_v5 = vld [vmem:[#allocation2 + $0xa0] sm:$0xff]  ;;  %v1480_v53 = vld [vmem:[#allocation2 + $0xa8] sm:$0xff] }
 0x18c   :  { %v1110_v40 = vmul.f32 %v2018_v61, %v1109_v22  ;;  %v1116_v16 = vmul.f32 %v2020_v60, %v2848_v10  ;;  %vm1122_vm2 = vweird.f32 %v2020_v60 }
 0x18d   :  { %1605 = vst [vmem:[#allocation5 + $0x90] sm:$0xff] %v1541_v41  ;;  %2021 = vrsqrt.f32 %v2868_v7  ;;  %920 = vadd.xlane.f32.xlu0 %v919_v19  ;;  %v675_v24 = vpop.f32.mrf.mxu2  ;;  %v499_v51 = vpop.f32.mrf.mxu0  ;;  %vm1123_vm4 = vmor %vm1121_vm3, %vm1122_vm2  ;;  %vm1131_vm6 = vweird.f32 %v2868_v7 }
 0x18e   :  { %1606 = vst [vmem:[#allocation5 + $0x98] sm:$0xff] %v1542_v21  ;;  %v1114_v14 = vsel %vm1113_vm1, %v2018_v61, %v1110_v40  ;;  %v1117_v50 = vmul.f32 %v2020_v60, %v1116_v16  ;;  %v764_v57 = vpop.f32.mrf.mxu3  ;;  %v588_v62 = vpop.f32.mrf.mxu1 }
 0x18f   :  { %v1345_v33 = vmul.f32 %v1114_v14, %v2589_v27  ;;  %v1346_v37 = vmul.f32 %v1114_v14, %v2593_v36  ;;  %v2877_v55 = vadd.f32 %v764_v57, %v675_v24  ;;  %v2888_v57 = vadd.f32 %v588_v62, %v499_v51  ;;  %v1481_v51 = vld [vmem:[#allocation2 + $0xb0] sm:$0xff]  ;;  %v1482_v62 = vld [vmem:[#allocation2 + $0xb8] sm:$0xff] }
 0x190   :  { %v1118_v45 = vmul.f32 0.5, %v1117_v50  ;;  %v879_v15 = vpop.xlane.xlu1 %878 }
 0x191   :  { %v1415_v22 = vmul.f32 %v2689_v32, %v1345_v33  ;;  %v1416_v61 = vmul.f32 %v2691_v35, %v1346_v37  ;;  %v831_v41 = vmul.f32 %v2877_v55, %v2877_v55  ;;  %v954_v27 = vmul.f32 %v2655_v6, %v879_v15 }
 0x192   :  { %v1119_v36 = vsub.f32 1.5, %v1118_v45 }
 0x193   :  { %v2022_v21 = vpop.eup %2021  ;;  %v1543_v19 = vadd.f32 %v1479_v5, %v1415_v22  ;;  %v1544_v40 = vadd.f32 %v1480_v53, %v1416_v61  ;;  %v2884_v16 = vadd.f32 1e-05, %v954_v27  ;;  %v922_v24 = vadd.f32 %v831_v41, %v830_v47 }
 0x194   :  { %v1120_v14 = vmul.f32 %v2020_v60, %v1119_v36  ;;  %v1126_v50 = vmul.f32 %v2022_v21, %v2868_v7  ;;  %v832_v41 = vmul.f32 %v2888_v57, %v2888_v57  ;;  %vm1132_vm5 = vweird.f32 %v2022_v21 }
 0x195   :  { %1607 = vst [vmem:[#allocation5 + $0xa0] sm:$0xff] %v1543_v19  ;;  %2023 = vrsqrt.f32 %v2884_v16  ;;  %923 = vadd.xlane.f32.xlu1 %v922_v24  ;;  %v677_v33 = vpop.f32.mrf.mxu2  ;;  %v502_v10 = vpop.f32.mrf.mxu0  ;;  %vm1133_vm7 = vmor %vm1131_vm6, %vm1132_vm5  ;;  %vm1141_vm9 = vweird.f32 %v2884_v16 }
 0x196   :  { %1608 = vst [vmem:[#allocation5 + $0xa8] sm:$0xff] %v1544_v40  ;;  %v1124_v37 = vsel %vm1123_vm4, %v2020_v60, %v1120_v14  ;;  %v1127_v5 = vmul.f32 %v2022_v21, %v1126_v50  ;;  %v766_v53 = vpop.f32.mrf.mxu3  ;;  %v591_v22 = vpop.f32.mrf.mxu1 }
 0x197   :  { %v1347_v45 = vmul.f32 %v1124_v37, %v2609_v48  ;;  %v1348_v47 = vmul.f32 %v1124_v37, %v2611_v56  ;;  %v2893_v15 = vadd.f32 %v766_v53, %v677_v33  ;;  %v2902_v40 = vadd.f32 %v591_v22, %v502_v10 }
 0x198   :  { %v1128_v61 = vmul.f32 0.5, %v1127_v5  ;;  %v882_v27 = vpop.xlane.xlu2 %881 }
 0x199   :  { %v1417_v36 = vmul.f32 %v2689_v32, %v1347_v45  ;;  %v1418_v60 = vmul.f32 %v2691_v35, %v1348_v47  ;;  %v833_v48 = vmul.f32 %v2893_v15, %v2893_v15  ;;  %v955_v56 = vmul.f32 %v2655_v6, %v882_v27  ;;  %v1484_v27 = vld [vmem:[#allocation2 + $0xc8] sm:$0xff] }
 0x19a   :  { %v1129_v19 = vsub.f32 1.5, %v1128_v61  ;;  %v834_v61 = vmul.f32 %v2902_v40, %v2902_v40 }
 0x19b   :  { %v2024_v24 = vpop.eup %2023  ;;  %v1545_v14 = vadd.f32 %v1481_v51, %v1417_v36  ;;  %v1546_v50 = vadd.f32 %v1482_v62, %v1418_v60  ;;  %v2904_v33 = vadd.f32 1e-05, %v955_v56  ;;  %v925_v37 = vadd.f32 %v833_v48, %v832_v41  ;;  %v1483_v41 = vld [vmem:[#allocation2 + $0xc0] sm:$0xff] }
 0x19c   :  { %v1130_v5 = vmul.f32 %v2022_v21, %v1129_v19  ;;  %v1136_v53 = vmul.f32 %v2024_v24, %v2884_v16  ;;  %vm1142_vm8 = vweird.f32 %v2024_v24  ;;  %v1485_v16 = vld [vmem:[#allocation2 + $0xd0] sm:$0xff] }
 0x19d   :  { %1609 = vst [vmem:[#allocation5 + $0xb0] sm:$0xff] %v1545_v14  ;;  %2025 = vrsqrt.f32 %v2904_v33  ;;  %926 = vadd.xlane.f32.xlu2 %v925_v37  ;;  %v680_v45 = vpop.f32.mrf.mxu2  ;;  %v504_v19 = vpop.f32.mrf.mxu0  ;;  %vm1143_vm10 = vmor %vm1141_vm9, %vm1142_vm8  ;;  %vm1151_vm12 = vweird.f32 %v2904_v33 }
 0x19e   :  { %1610 = vst [vmem:[#allocation5 + $0xb8] sm:$0xff] %v1546_v50  ;;  %v1134_v47 = vsel %vm1133_vm7, %v2022_v21, %v1130_v5  ;;  %v1137_v10 = vmul.f32 %v2024_v24, %v1136_v53  ;;  %v769_v22 = vpop.f32.mrf.mxu3 }
 0x19f   :  { %v1349_v51 = vmul.f32 %v1134_v47, %v2617_v63  ;;  %v1350_v62 = vmul.f32 %v1134_v47, %v2621_v9  ;;  %v2913_v7 = vadd.f32 %v769_v22, %v680_v45  ;;  %v593_v63 = vpop.f32.mrf.mxu1 }
 0x1a0   :  { %v1138_v36 = vmul.f32 0.5, %v1137_v10  ;;  %v885_v60 = vpop.xlane.xlu0 %884  ;;  %v2924_v22 = vadd.f32 %v593_v63, %v504_v19 }
 0x1a1   :  { %v1419_v48 = vmul.f32 %v2689_v32, %v1349_v51  ;;  %v1420_v56 = vmul.f32 %v2691_v35, %v1350_v62  ;;  %v835_v21 = vmul.f32 %v2913_v7, %v2913_v7  ;;  %v956_v9 = vmul.f32 %v2655_v6, %v885_v60 }
 0x1a2   :  { %v1139_v14 = vsub.f32 1.5, %v1138_v36 }
 0x1a3   :  { %v2026_v50 = vpop.eup %2025  ;;  %v1547_v37 = vadd.f32 %v1483_v41, %v1419_v48  ;;  %v1548_v5 = vadd.f32 %v1484_v27, %v1420_v56  ;;  %v2920_v53 = vadd.f32 1e-05, %v956_v9  ;;  %v928_v45 = vadd.f32 %v835_v21, %v834_v61  ;;  %v1486_v48 = vld [vmem:[#allocation2 + $0xd8] sm:$0xff] }
 0x1a4   :  { %v1140_v47 = vmul.f32 %v2024_v24, %v1139_v14  ;;  %v1146_v10 = vmul.f32 %v2026_v50, %v2904_v33  ;;  %v836_v21 = vmul.f32 %v2924_v22, %v2924_v22  ;;  %vm1152_vm11 = vweird.f32 %v2026_v50 }
 0x1a5   :  { %1611 = vst [vmem:[#allocation5 + $0xc0] sm:$0xff] %v1547_v37  ;;  %2027 = vrsqrt.f32 %v2920_v53  ;;  %929 = vadd.xlane.f32.xlu0 %v928_v45  ;;  %v682_v51 = vpop.f32.mrf.mxu2  ;;  %vm1153_vm13 = vmor %vm1151_vm12, %vm1152_vm11  ;;  %vm1161_vm15 = vweird.f32 %v2920_v53 }
 0x1a6   :  { %1612 = vst [vmem:[#allocation5 + $0xc8] sm:$0xff] %v1548_v5  ;;  %v1144_v62 = vsel %vm1143_vm10, %v2024_v24, %v1140_v47  ;;  %v1147_v41 = vmul.f32 %v2026_v50, %v1146_v10  ;;  %v771_v27 = vpop.f32.mrf.mxu3 }
 0x1a7   :  { %v1351_v36 = vmul.f32 %v1144_v62, %v2637_v20  ;;  %v1352_v61 = vmul.f32 %v1144_v62, %v2639_v34  ;;  %v2929_v60 = vadd.f32 %v771_v27, %v682_v51 }
 0x1a8   :  { %v1148_v56 = vmul.f32 0.5, %v1147_v41  ;;  %v888_v19 = vpop.xlane.xlu1 %887 }
 0x1a9   :  { %v1421_v63 = vmul.f32 %v2689_v32, %v1351_v36  ;;  %v1422_v9 = vmul.f32 %v2691_v35, %v1352_v61  ;;  %v837_v24 = vmul.f32 %v2929_v60, %v2929_v60  ;;  %v957_v20 = vmul.f32 %v2655_v6, %v888_v19  ;;  %v1487_v61 = vld [vmem:[#allocation2 + $0xe0] sm:$0xff] }
 0x1aa   :  { %v1149_v14 = vsub.f32 1.5, %v1148_v56 }
 0x1ab   :  { %v2028_v34 = vpop.eup %2027  ;;  %v1549_v37 = vadd.f32 %v1485_v16, %v1421_v63  ;;  %v1550_v5 = vadd.f32 %v1486_v48, %v1422_v9  ;;  %v989_v45 = vadd.f32 1e-05, %v957_v20  ;;  %v931_v47 = vadd.f32 %v837_v24, %v836_v21  ;;  %v1488_v16 = vld [vmem:[#allocation2 + $0xe8] sm:$0xff] }
 0x1ac   :  { %v1150_v10 = vmul.f32 %v2026_v50, %v1149_v14  ;;  %v1156_v51 = vmul.f32 %v2028_v34, %v2920_v53  ;;  %vm1162_vm14 = vweird.f32 %v2028_v34 }
 0x1ad   :  { %1613 = vst [vmem:[#allocation5 + $0xd0] sm:$0xff] %v1549_v37  ;;  %2029 = vrsqrt.f32 %v989_v45  ;;  %932 = vadd.xlane.f32.xlu1 %v931_v47  ;;  %vm1163_vm0 = vmor %vm1161_vm15, %vm1162_vm14  ;;  %vm1171_vm2 = vweird.f32 %v989_v45 }
 0x1ae   :  { %1614 = vst [vmem:[#allocation5 + $0xd8] sm:$0xff] %v1550_v5  ;;  %v1154_v62 = vsel %vm1153_vm13, %v2026_v50, %v1150_v10  ;;  %v1157_v41 = vmul.f32 %v2028_v34, %v1156_v51  ;;  %v1489_v10 = vld [vmem:[#allocation2 + $0xf0] sm:$0xff]  ;;  %v1490_v51 = vld [vmem:[#allocation2 + $0xf8] sm:$0xff] }
 0x1af   :  { %v1353_v27 = vmul.f32 %v1154_v62, %v2645_v42  ;;  %v1354_v36 = vmul.f32 %v1154_v62, %v2649_v54 }
 0x1b0   :  { %v1158_v48 = vmul.f32 0.5, %v1157_v41  ;;  %v891_v56 = vpop.xlane.xlu2 %890 }
 0x1b1   :  { %v1423_v21 = vmul.f32 %v2689_v32, %v1353_v27  ;;  %v1424_v33 = vmul.f32 %v2691_v35, %v1354_v36  ;;  %v958_v19 = vmul.f32 %v2655_v6, %v891_v56 }
 0x1b2   :  { %v1159_v63 = vsub.f32 1.5, %v1158_v48 }
 0x1b3   :  { %v2030_v9 = vpop.eup %2029  ;;  %v1551_v24 = vadd.f32 %v1487_v61, %v1423_v21  ;;  %v1552_v50 = vadd.f32 %v1488_v16, %v1424_v33  ;;  %v990_v20 = vadd.f32 1e-05, %v958_v19 }
 0x1b4   :  { %v1160_v14 = vmul.f32 %v2028_v34, %v1159_v63  ;;  %v1166_v42 = vmul.f32 %v2030_v9, %v989_v45  ;;  %vm1172_vm1 = vweird.f32 %v2030_v9 }
 0x1b5   :  { %1615 = vst [vmem:[#allocation5 + $0xe0] sm:$0xff] %v1551_v24  ;;  %2031 = vrsqrt.f32 %v990_v20  ;;  %vm1173_vm3 = vmor %vm1171_vm2, %vm1172_vm1  ;;  %v1491_v24 = vld [vmem:[#allocation2 + $0x100] sm:$0xff]  ;;  %vm1181_vm5 = vweird.f32 %v990_v20 }
 0x1b6   :  { %1616 = vst [vmem:[#allocation5 + $0xe8] sm:$0xff] %v1552_v50  ;;  %v1164_v54 = vsel %vm1163_vm0, %v2028_v34, %v1160_v14  ;;  %v1167_v37 = vmul.f32 %v2030_v9, %v1166_v42  ;;  %v1492_v50 = vld [vmem:[#allocation2 + $0x108] sm:$0xff] }
 0x1b7   :  { %v1355_v5 = vmul.f32 %v1164_v54, %v2653_v0  ;;  %v1356_v47 = vmul.f32 %v1164_v54, %v2657_v8 }
 0x1b8   :  { %v1168_v62 = vmul.f32 0.5, %v1167_v37  ;;  %v894_v41 = vpop.xlane.xlu0 %893 }
 0x1b9   :  { %v1425_v27 = vmul.f32 %v2689_v32, %v1355_v5  ;;  %v1426_v36 = vmul.f32 %v2691_v35, %v1356_v47  ;;  %v959_v53 = vmul.f32 %v2655_v6, %v894_v41 }
 0x1ba   :  { %v1169_v61 = vsub.f32 1.5, %v1168_v62 }
 0x1bb   :  { %v2032_v16 = vpop.eup %2031  ;;  %v1553_v48 = vadd.f32 %v1489_v10, %v1425_v27  ;;  %v1554_v34 = vadd.f32 %v1490_v51, %v1426_v36  ;;  %v991_v56 = vadd.f32 1e-05, %v959_v53  ;;  %v1493_v53 = vld [vmem:[#allocation2 + $0x110] sm:$0xff] }
 0x1bc   :  { %v1170_v21 = vmul.f32 %v2030_v9, %v1169_v61  ;;  %v1176_v0 = vmul.f32 %v2032_v16, %v990_v20  ;;  %vm1182_vm4 = vweird.f32 %v2032_v16  ;;  %v1494_v61 = vld [vmem:[#allocation2 + $0x118] sm:$0xff] }
 0x1bd   :  { %1617 = vst [vmem:[#allocation5 + $0xf0] sm:$0xff] %v1553_v48  ;;  %2033 = vrsqrt.f32 %v991_v56  ;;  %vm1183_vm6 = vmor %vm1181_vm5, %vm1182_vm4  ;;  %vm1191_vm8 = vweird.f32 %v991_v56 }
 0x1be   :  { %1618 = vst [vmem:[#allocation5 + $0xf8] sm:$0xff] %v1554_v34  ;;  %v1174_v8 = vsel %vm1173_vm3, %v2030_v9, %v1170_v21  ;;  %v1177_v33 = vmul.f32 %v2032_v16, %v1176_v0 }
 0x1bf   :  { %v1357_v19 = vmul.f32 %v1174_v8, %v2664_v18  ;;  %v1358_v63 = vmul.f32 %v1174_v8, %v2668_v31 }
 0x1c0   :  { %v1178_v14 = vmul.f32 0.5, %v1177_v33  ;;  %v897_v42 = vpop.xlane.xlu1 %896 }
 0x1c1   :  { %v1427_v54 = vmul.f32 %v2689_v32, %v1357_v19  ;;  %v1428_v37 = vmul.f32 %v2691_v35, %v1358_v63  ;;  %v960_v45 = vmul.f32 %v2655_v6, %v897_v42 }
 0x1c2   :  { %v1179_v5 = vsub.f32 1.5, %v1178_v14 }
 0x1c3   :  { %v2034_v47 = vpop.eup %2033  ;;  %v1555_v10 = vadd.f32 %v1491_v24, %v1427_v54  ;;  %v1556_v9 = vadd.f32 %v1492_v50, %v1428_v37  ;;  %v992_v51 = vadd.f32 1e-05, %v960_v45  ;;  %v1495_v54 = vld [vmem:[#allocation2 + $0x120] sm:$0xff]  ;;  %v1496_v37 = vld [vmem:[#allocation2 + $0x128] sm:$0xff] }
 0x1c4   :  { %v1180_v62 = vmul.f32 %v2032_v16, %v1179_v5  ;;  %v1186_v18 = vmul.f32 %v2034_v47, %v991_v56  ;;  %vm1192_vm7 = vweird.f32 %v2034_v47 }
 0x1c5   :  { %1619 = vst [vmem:[#allocation5 + $0x100] sm:$0xff] %v1555_v10  ;;  %2035 = vrsqrt.f32 %v992_v51  ;;  %vm1193_vm9 = vmor %vm1191_vm8, %vm1192_vm7  ;;  %vm1201_vm11 = vweird.f32 %v992_v51 }
 0x1c6   :  { %1620 = vst [vmem:[#allocation5 + $0x108] sm:$0xff] %v1556_v9  ;;  %v1184_v31 = vsel %vm1183_vm6, %v2032_v16, %v1180_v62  ;;  %v1187_v41 = vmul.f32 %v2034_v47, %v1186_v18 }
 0x1c7   :  { %v1359_v27 = vmul.f32 %v1184_v31, %v2673_v49  ;;  %v1360_v36 = vmul.f32 %v1184_v31, %v2675_v59 }
 0x1c8   :  { %v1188_v48 = vmul.f32 0.5, %v1187_v41  ;;  %v900_v34 = vpop.xlane.xlu2 %899 }
 0x1c9   :  { %v1429_v21 = vmul.f32 %v2689_v32, %v1359_v27  ;;  %v1430_v0 = vmul.f32 %v2691_v35, %v1360_v36  ;;  %v961_v20 = vmul.f32 %v2655_v6, %v900_v34  ;;  %v1498_v34 = vld [vmem:[#allocation2 + $0x138] sm:$0xff] }
 0x1ca   :  { %v1189_v8 = vsub.f32 1.5, %v1188_v48  ;;  %v1497_v48 = vld [vmem:[#allocation2 + $0x130] sm:$0xff] }
 0x1cb   :  { %v2036_v33 = vpop.eup %2035  ;;  %v1557_v19 = vadd.f32 %v1493_v53, %v1429_v21  ;;  %v1558_v16 = vadd.f32 %v1494_v61, %v1430_v0  ;;  %v993_v63 = vadd.f32 1e-05, %v961_v20 }
 0x1cc   :  { %v1190_v24 = vmul.f32 %v2034_v47, %v1189_v8  ;;  %v1196_v49 = vmul.f32 %v2036_v33, %v992_v51  ;;  %vm1202_vm10 = vweird.f32 %v2036_v33 }
 0x1cd   :  { %1621 = vst [vmem:[#allocation5 + $0x110] sm:$0xff] %v1557_v19  ;;  %2037 = vrsqrt.f32 %v993_v63  ;;  %vm1203_vm12 = vmor %vm1201_vm11, %vm1202_vm10  ;;  %vm1211_vm14 = vweird.f32 %v993_v63 }
 0x1ce   :  { %1622 = vst [vmem:[#allocation5 + $0x118] sm:$0xff] %v1558_v16  ;;  %v1194_v59 = vsel %vm1193_vm9, %v2034_v47, %v1190_v24  ;;  %v1197_v50 = vmul.f32 %v2036_v33, %v1196_v49 }
 0x1cf   :  { %v1361_v14 = vmul.f32 %v1194_v59, %v2685_v23  ;;  %v1362_v42 = vmul.f32 %v1194_v59, %v2698_v58 }
 0x1d0   :  { %v1198_v45 = vmul.f32 0.5, %v1197_v50  ;;  %v903_v5 = vpop.xlane.xlu0 %902 }
 0x1d1   :  { %v1431_v10 = vmul.f32 %v2689_v32, %v1361_v14  ;;  %v1432_v9 = vmul.f32 %v2691_v35, %v1362_v42  ;;  %v962_v56 = vmul.f32 %v2655_v6, %v903_v5 }
 0x1d2   :  { %v1199_v62 = vsub.f32 1.5, %v1198_v45 }
 0x1d3   :  { %v2038_v18 = vpop.eup %2037  ;;  %v1559_v31 = vadd.f32 %v1495_v54, %v1431_v10  ;;  %v1560_v47 = vadd.f32 %v1496_v37, %v1432_v9  ;;  %v994_v41 = vadd.f32 1e-05, %v962_v56  ;;  %v1499_v54 = vld [vmem:[#allocation2 + $0x140] sm:$0xff]  ;;  %v1500_v37 = vld [vmem:[#allocation2 + $0x148] sm:$0xff] }
 0x1d4   :  { %v1200_v27 = vmul.f32 %v2036_v33, %v1199_v62  ;;  %v1206_v23 = vmul.f32 %v2038_v18, %v993_v63  ;;  %vm1212_vm13 = vweird.f32 %v2038_v18 }
 0x1d5   :  { %1623 = vst [vmem:[#allocation5 + $0x120] sm:$0xff] %v1559_v31  ;;  %2039 = vrsqrt.f32 %v994_v41  ;;  %vm1213_vm15 = vmor %vm1211_vm14, %vm1212_vm13  ;;  %vm1221_vm1 = vweird.f32 %v994_v41 }
 0x1d6   :  { %1624 = vst [vmem:[#allocation5 + $0x128] sm:$0xff] %v1560_v47  ;;  %v1204_v58 = vsel %vm1203_vm12, %v2036_v33, %v1200_v27  ;;  %v1207_v36 = vmul.f32 %v2038_v18, %v1206_v23 }
 0x1d7   :  { %v1363_v53 = vmul.f32 %v1204_v58, %v2708_v46  ;;  %v1364_v61 = vmul.f32 %v1204_v58, %v2713_v44 }
 0x1d8   :  { %v1208_v21 = vmul.f32 0.5, %v1207_v36  ;;  %v906_v0 = vpop.xlane.xlu1 %905 }
 0x1d9   :  { %v1433_v20 = vmul.f32 %v2689_v32, %v1363_v53  ;;  %v1434_v8 = vmul.f32 %v2691_v35, %v1364_v61  ;;  %v963_v51 = vmul.f32 %v2655_v6, %v906_v0  ;;  %v1501_v53 = vld [vmem:[#allocation2 + $0x150] sm:$0xff]  ;;  %v1502_v61 = vld [vmem:[#allocation2 + $0x158] sm:$0xff] }
 0x1da   :  { %v1209_v19 = vsub.f32 1.5, %v1208_v21 }
 0x1db   :  { %v2040_v16 = vpop.eup %2039  ;;  %v1561_v24 = vadd.f32 %v1497_v48, %v1433_v20  ;;  %v1562_v33 = vadd.f32 %v1498_v34, %v1434_v8  ;;  %v995_v49 = vadd.f32 1e-05, %v963_v51 }
 0x1dc   :  { %v1210_v59 = vmul.f32 %v2038_v18, %v1209_v19  ;;  %v1216_v46 = vmul.f32 %v2040_v16, %v994_v41  ;;  %vm1222_vm0 = vweird.f32 %v2040_v16 }
 0x1dd   :  { %1625 = vst [vmem:[#allocation5 + $0x130] sm:$0xff] %v1561_v24  ;;  %2041 = vrsqrt.f32 %v995_v49  ;;  %vm1223_vm2 = vmor %vm1221_vm1, %vm1222_vm0  ;;  %vm1231_vm4 = vweird.f32 %v995_v49 }
 0x1de   :  { %1626 = vst [vmem:[#allocation5 + $0x138] sm:$0xff] %v1562_v33  ;;  %v1214_v44 = vsel %vm1213_vm15, %v2038_v18, %v1210_v59  ;;  %v1217_v50 = vmul.f32 %v2040_v16, %v1216_v46 }
 0x1df   :  { %v1365_v14 = vmul.f32 %v1214_v44, %v2722_v26  ;;  %v1366_v42 = vmul.f32 %v1214_v44, %v2733_v13  ;;  %v1503_v44 = vld [vmem:[#allocation2 + $0x160] sm:$0xff] }
 0x1e0   :  { %v1218_v45 = vmul.f32 0.5, %v1217_v50  ;;  %v909_v5 = vpop.xlane.xlu2 %908  ;;  %v1504_v50 = vld [vmem:[#allocation2 + $0x168] sm:$0xff] }
 0x1e1   :  { %v1435_v10 = vmul.f32 %v2689_v32, %v1365_v14  ;;  %v1436_v9 = vmul.f32 %v2691_v35, %v1366_v42  ;;  %v964_v63 = vmul.f32 %v2655_v6, %v909_v5 }
 0x1e2   :  { %v1219_v56 = vsub.f32 1.5, %v1218_v45 }
 0x1e3   :  { %v2042_v62 = vpop.eup %2041  ;;  %v1563_v31 = vadd.f32 %v1499_v54, %v1435_v10  ;;  %v1564_v18 = vadd.f32 %v1500_v37, %v1436_v9  ;;  %v996_v47 = vadd.f32 1e-05, %v964_v63 }
 0x1e4   :  { %v1220_v27 = vmul.f32 %v2040_v16, %v1219_v56  ;;  %v1226_v26 = vmul.f32 %v2042_v62, %v995_v49  ;;  %vm1232_vm3 = vweird.f32 %v2042_v62 }
 0x1e5   :  { %1627 = vst [vmem:[#allocation5 + $0x140] sm:$0xff] %v1563_v31  ;;  %2043 = vrsqrt.f32 %v996_v47  ;;  %vm1233_vm5 = vmor %vm1231_vm4, %vm1232_vm3  ;;  %vm1241_vm7 = vweird.f32 %v996_v47 }
 0x1e6   :  { %1628 = vst [vmem:[#allocation5 + $0x148] sm:$0xff] %v1564_v18  ;;  %v1224_v13 = vsel %vm1223_vm2, %v2040_v16, %v1220_v27  ;;  %v1227_v23 = vmul.f32 %v2042_v62, %v1226_v26  ;;  %v1505_v27 = vld [vmem:[#allocation2 + $0x170] sm:$0xff]  ;;  %v1506_v26 = vld [vmem:[#allocation2 + $0x178] sm:$0xff] }
 0x1e7   :  { %v1367_v58 = vmul.f32 %v1224_v13, %v2744_v11  ;;  %v1368_v36 = vmul.f32 %v1224_v13, %v2749_v30 }
 0x1e8   :  { %v1228_v48 = vmul.f32 0.5, %v1227_v23  ;;  %v912_v34 = vpop.xlane.xlu0 %911 }
 0x1e9   :  { %v1437_v21 = vmul.f32 %v2689_v32, %v1367_v58  ;;  %v1438_v0 = vmul.f32 %v2691_v35, %v1368_v36  ;;  %v965_v41 = vmul.f32 %v2655_v6, %v912_v34 }
 0x1ea   :  { %v1229_v20 = vsub.f32 1.5, %v1228_v48 }
 0x1eb   :  { %v2044_v8 = vpop.eup %2043  ;;  %v1565_v51 = vadd.f32 %v1501_v53, %v1437_v21  ;;  %v1566_v19 = vadd.f32 %v1502_v61, %v1438_v0  ;;  %v997_v16 = vadd.f32 1e-05, %v965_v41 }
 0x1ec   :  { %v1230_v24 = vmul.f32 %v2042_v62, %v1229_v20  ;;  %v1236_v11 = vmul.f32 %v2044_v8, %v996_v47  ;;  %vm1242_vm6 = vweird.f32 %v2044_v8 }
 0x1ed   :  { %1629 = vst [vmem:[#allocation5 + $0x150] sm:$0xff] %v1565_v51  ;;  %2045 = vrsqrt.f32 %v997_v16  ;;  %vm1243_vm8 = vmor %vm1241_vm7, %vm1242_vm6  ;;  %vm1251_vm10 = vweird.f32 %v997_v16  ;;  %v1507_v51 = vld [vmem:[#allocation2 + $0x180] sm:$0xff] }
 0x1ee   :  { %1630 = vst [vmem:[#allocation5 + $0x158] sm:$0xff] %v1566_v19  ;;  %v1234_v30 = vsel %vm1233_vm5, %v2042_v62, %v1230_v24  ;;  %v1237_v33 = vmul.f32 %v2044_v8, %v1236_v11  ;;  %v1508_v19 = vld [vmem:[#allocation2 + $0x188] sm:$0xff] }
 0x1ef   :  { %v1369_v59 = vmul.f32 %v1234_v30, %v2758_v4  ;;  %v1370_v46 = vmul.f32 %v1234_v30, %v2769_v39 }
 0x1f0   :  { %v1238_v14 = vmul.f32 0.5, %v1237_v33  ;;  %v915_v42 = vpop.xlane.xlu1 %914 }
 0x1f1   :  { %v1439_v54 = vmul.f32 %v2689_v32, %v1369_v59  ;;  %v1440_v37 = vmul.f32 %v2691_v35, %v1370_v46  ;;  %v966_v49 = vmul.f32 %v2655_v6, %v915_v42 }
 0x1f2   :  { %v1239_v45 = vsub.f32 1.5, %v1238_v14 }
 0x1f3   :  { %v2046_v5 = vpop.eup %2045  ;;  %v1567_v10 = vadd.f32 %v1503_v44, %v1439_v54  ;;  %v1568_v9 = vadd.f32 %v1504_v50, %v1440_v37  ;;  %v998_v63 = vadd.f32 1e-05, %v966_v49 }
 0x1f4   :  { %v1240_v56 = vmul.f32 %v2044_v8, %v1239_v45  ;;  %v1246_v4 = vmul.f32 %v2046_v5, %v997_v16  ;;  %vm1252_vm9 = vweird.f32 %v2046_v5  ;;  %v1509_v45 = vld [vmem:[#allocation2 + $0x190] sm:$0xff] }
 0x1f5   :  { %1631 = vst [vmem:[#allocation5 + $0x160] sm:$0xff] %v1567_v10  ;;  %2047 = vrsqrt.f32 %v998_v63  ;;  %vm1253_vm11 = vmor %vm1251_vm10, %vm1252_vm9  ;;  %vm1261_vm13 = vweird.f32 %v998_v63 }
 0x1f6   :  { %1632 = vst [vmem:[#allocation5 + $0x168] sm:$0xff] %v1568_v9  ;;  %v1244_v39 = vsel %vm1243_vm8, %v2044_v8, %v1240_v56  ;;  %v1247_v62 = vmul.f32 %v2046_v5, %v1246_v4 }
 0x1f7   :  { %v1371_v31 = vmul.f32 %v1244_v39, %v2780_v43  ;;  %v1372_v18 = vmul.f32 %v1244_v39, %v2785_v1 }
 0x1f8   :  { %v1248_v13 = vmul.f32 0.5, %v1247_v62  ;;  %v918_v23 = vpop.xlane.xlu2 %917 }
 0x1f9   :  { %v1441_v58 = vmul.f32 %v2689_v32, %v1371_v31  ;;  %v1442_v36 = vmul.f32 %v2691_v35, %v1372_v18  ;;  %v967_v47 = vmul.f32 %v2655_v6, %v918_v23 }
 0x1fa   :  { %v1249_v53 = vsub.f32 1.5, %v1248_v13 }
 0x1fb   :  { %v2048_v61 = vpop.eup %2047  ;;  %v1569_v48 = vadd.f32 %v1505_v27, %v1441_v58  ;;  %v1570_v34 = vadd.f32 %v1506_v26, %v1442_v36  ;;  %v999_v21 = vadd.f32 1e-05, %v967_v47  ;;  %v1511_v36 = vld [vmem:[#allocation2 + $0x1a0] sm:$0xff]  ;;  %v1512_v47 = vld [vmem:[#allocation2 + $0x1a8] sm:$0xff] }
 0x1fc   :  { %v1250_v0 = vmul.f32 %v2046_v5, %v1249_v53  ;;  %v1256_v43 = vmul.f32 %v2048_v61, %v998_v63  ;;  %vm1262_vm12 = vweird.f32 %v2048_v61 }
 0x1fd   :  { %1633 = vst [vmem:[#allocation5 + $0x170] sm:$0xff] %v1569_v48  ;;  %2049 = vrsqrt.f32 %v999_v21  ;;  %vm1263_vm14 = vmor %vm1261_vm13, %vm1262_vm12  ;;  %vm1271_vm0 = vweird.f32 %v999_v21 }
 0x1fe   :  { %1634 = vst [vmem:[#allocation5 + $0x178] sm:$0xff] %v1570_v34  ;;  %v1254_v1 = vsel %vm1253_vm11, %v2046_v5, %v1250_v0  ;;  %v1257_v41 = vmul.f32 %v2048_v61, %v1256_v43  ;;  %v1510_v5 = vld [vmem:[#allocation2 + $0x198] sm:$0xff] }
 0x1ff   :  { %v1373_v20 = vmul.f32 %v1254_v1, %v2794_v28  ;;  %v1374_v8 = vmul.f32 %v1254_v1, %v2805_v2 }
 0x200   :  { %v1258_v24 = vmul.f32 0.5, %v1257_v41  ;;  %v921_v11 = vpop.xlane.xlu0 %920 }
 0x201   :  { %v1443_v30 = vmul.f32 %v2689_v32, %v1373_v20  ;;  %v1444_v33 = vmul.f32 %v2691_v35, %v1374_v8  ;;  %v968_v16 = vmul.f32 %v2655_v6, %v921_v11  ;;  %v1513_v11 = vld [vmem:[#allocation2 + $0x1b0] sm:$0xff] }
 0x202   :  { %v1259_v59 = vsub.f32 1.5, %v1258_v24 }
 0x203   :  { %v2050_v46 = vpop.eup %2049  ;;  %v1571_v44 = vadd.f32 %v1507_v51, %v1443_v30  ;;  %v1572_v50 = vadd.f32 %v1508_v19, %v1444_v33  ;;  %v1000_v14 = vadd.f32 1e-05, %v968_v16  ;;  %v1514_v30 = vld [vmem:[#allocation2 + $0x1b8] sm:$0xff] }
 0x204   :  { %v1260_v42 = vmul.f32 %v2048_v61, %v1259_v59  ;;  %v1266_v28 = vmul.f32 %v2050_v46, %v999_v21  ;;  %vm1272_vm15 = vweird.f32 %v2050_v46 }
 0x205   :  { %1635 = vst [vmem:[#allocation5 + $0x180] sm:$0xff] %v1571_v44  ;;  %2051 = vrsqrt.f32 %v1000_v14  ;;  %vm1273_vm1 = vmor %vm1271_vm0, %vm1272_vm15  ;;  %vm1281_vm3 = vweird.f32 %v1000_v14 }
 0x206   :  { %1636 = vst [vmem:[#allocation5 + $0x188] sm:$0xff] %v1572_v50  ;;  %v1264_v2 = vsel %vm1263_vm14, %v2048_v61, %v1260_v42  ;;  %v1267_v54 = vmul.f32 %v2050_v46, %v1266_v28 }
 0x207   :  { %v1375_v37 = vmul.f32 %v1264_v2, %v2816_v3  ;;  %v1376_v49 = vmul.f32 %v1264_v2, %v2821_v17 }
 0x208   :  { %v1268_v10 = vmul.f32 0.5, %v1267_v54  ;;  %v924_v9 = vpop.xlane.xlu1 %923 }
 0x209   :  { %v1445_v56 = vmul.f32 %v2689_v32, %v1375_v37  ;;  %v1446_v4 = vmul.f32 %v2691_v35, %v1376_v49  ;;  %v969_v63 = vmul.f32 %v2655_v6, %v924_v9 }
 0x20a   :  { %v1269_v39 = vsub.f32 1.5, %v1268_v10  ;;  %v1516_v10 = vld [vmem:[#allocation2 + $0x1c8] sm:$0xff] }
 0x20b   :  { %v2052_v62 = vpop.eup %2051  ;;  %v1573_v31 = vadd.f32 %v1509_v45, %v1445_v56  ;;  %v1574_v18 = vadd.f32 %v1510_v5, %v1446_v4  ;;  %v1001_v27 = vadd.f32 1e-05, %v969_v63  ;;  %v1515_v5 = vld [vmem:[#allocation2 + $0x1c0] sm:$0xff] }
 0x20c   :  { %v1270_v26 = vmul.f32 %v2050_v46, %v1269_v39  ;;  %v1276_v3 = vmul.f32 %v2052_v62, %v1000_v14  ;;  %vm1282_vm2 = vweird.f32 %v2052_v62 }
 0x20d   :  { %1637 = vst [vmem:[#allocation5 + $0x190] sm:$0xff] %v1573_v31  ;;  %2053 = vrsqrt.f32 %v1001_v27  ;;  %vm1283_vm4 = vmor %vm1281_vm3, %vm1282_vm2  ;;  %vm1291_vm6 = vweird.f32 %v1001_v27 }
 0x20e   :  { %1638 = vst [vmem:[#allocation5 + $0x198] sm:$0xff] %v1574_v18  ;;  %v1274_v17 = vsel %vm1273_vm1, %v2050_v46, %v1270_v26  ;;  %v1277_v13 = vmul.f32 %v2052_v62, %v1276_v3 }
 0x20f   :  { %v1377_v23 = vmul.f32 %v1274_v17, %v2830_v52  ;;  %v1378_v58 = vmul.f32 %v1274_v17, %v2841_v25 }
 0x210   :  { %v1278_v53 = vmul.f32 0.5, %v1277_v13  ;;  %v927_v61 = vpop.xlane.xlu2 %926 }
 0x211   :  { %v1447_v48 = vmul.f32 %v2689_v32, %v1377_v23  ;;  %v1448_v34 = vmul.f32 %v2691_v35, %v1378_v58  ;;  %v970_v21 = vmul.f32 %v2655_v6, %v927_v61  ;;  %v1518_v58 = vld [vmem:[#allocation2 + $0x1d8] sm:$0xff] }
 0x212   :  { %v1279_v0 = vsub.f32 1.5, %v1278_v53 }
 0x213   :  { %v2054_v43 = vpop.eup %2053  ;;  %v1575_v1 = vadd.f32 %v1511_v36, %v1447_v48  ;;  %v1576_v41 = vadd.f32 %v1512_v47, %v1448_v34  ;;  %v1002_v20 = vadd.f32 1e-05, %v970_v21 }
 0x214   :  { %v1280_v8 = vmul.f32 %v2052_v62, %v1279_v0  ;;  %v1286_v52 = vmul.f32 %v2054_v43, %v1001_v27  ;;  %vm1292_vm5 = vweird.f32 %v2054_v43 }
 0x215   :  { %1639 = vst [vmem:[#allocation5 + $0x1a0] sm:$0xff] %v1575_v1  ;;  %2055 = vrsqrt.f32 %v1002_v20  ;;  %vm1293_vm7 = vmor %vm1291_vm6, %vm1292_vm5  ;;  %vm1301_vm9 = vweird.f32 %v1002_v20 }
 0x216   :  { %1640 = vst [vmem:[#allocation5 + $0x1a8] sm:$0xff] %v1576_v41  ;;  %v1284_v25 = vsel %vm1283_vm4, %v2052_v62, %v1280_v8  ;;  %v1287_v51 = vmul.f32 %v2054_v43, %v1286_v52  ;;  %v1520_v8 = vld [vmem:[#allocation2 + $0x1e8] sm:$0xff] }
 0x217   :  { %v1379_v19 = vmul.f32 %v1284_v25, %v2852_v29  ;;  %v1380_v24 = vmul.f32 %v1284_v25, %v2857_v38 }
 0x218   :  { %v1288_v33 = vmul.f32 0.5, %v1287_v51  ;;  %v930_v16 = vpop.xlane.xlu0 %929 }
 0x219   :  { %v1449_v59 = vmul.f32 %v2689_v32, %v1379_v19  ;;  %v1450_v46 = vmul.f32 %v2691_v35, %v1380_v24  ;;  %v971_v44 = vmul.f32 %v2655_v6, %v930_v16  ;;  %v1521_v16 = vld [vmem:[#allocation2 + $0x1f0] sm:$0xff] }
 0x21a   :  { %v1289_v50 = vsub.f32 1.5, %v1288_v33 }
 0x21b   :  { %v2056_v14 = vpop.eup %2055  ;;  %v1577_v42 = vadd.f32 %v1513_v11, %v1449_v59  ;;  %v1578_v28 = vadd.f32 %v1514_v30, %v1450_v46  ;;  %v1003_v2 = vadd.f32 1e-05, %v971_v44  ;;  %v1522_v59 = vld [vmem:[#allocation2 + $0x1f8] sm:$0xff] }
 0x21c   :  { %v1290_v54 = vmul.f32 %v2054_v43, %v1289_v50  ;;  %v1296_v29 = vmul.f32 %v2056_v14, %v1002_v20  ;;  %vm1302_vm8 = vweird.f32 %v2056_v14  ;;  %v1519_v20 = vld [vmem:[#allocation2 + $0x1e0] sm:$0xff] }
 0x21d   :  { %1641 = vst [vmem:[#allocation5 + $0x1b0] sm:$0xff] %v1577_v42  ;;  %2057 = vrsqrt.f32 %v1003_v2  ;;  %vm1303_vm10 = vmor %vm1301_vm9, %vm1302_vm8  ;;  %vm1311_vm12 = vweird.f32 %v1003_v2 }
 0x21e   :  { %1642 = vst [vmem:[#allocation5 + $0x1b8] sm:$0xff] %v1578_v28  ;;  %v1294_v38 = vsel %vm1293_vm7, %v2054_v43, %v1290_v54  ;;  %v1297_v37 = vmul.f32 %v2056_v14, %v1296_v29 }
 0x21f   :  { %v1381_v49 = vmul.f32 %v1294_v38, %v2866_v12  ;;  %v1382_v45 = vmul.f32 %v1294_v38, %v2877_v55 }
 0x220   :  { %v1298_v9 = vmul.f32 0.5, %v1297_v37  ;;  %v933_v56 = vpop.xlane.xlu1 %932 }
 0x221   :  { %v1451_v4 = vmul.f32 %v2689_v32, %v1381_v49  ;;  %v1452_v63 = vmul.f32 %v2691_v35, %v1382_v45  ;;  %v972_v39 = vmul.f32 %v2655_v6, %v933_v56  ;;  %v1517_v6 = vld [vmem:[#allocation2 + $0x1d0] sm:$0xff] }
 0x222   :  { %v1299_v62 = vsub.f32 1.5, %v1298_v9 }
 0x223   :  { %v2058_v31 = vpop.eup %2057  ;;  %v1579_v18 = vadd.f32 %v1515_v5, %v1451_v4  ;;  %v1580_v27 = vadd.f32 %v1516_v10, %v1452_v63  ;;  %v1004_v26 = vadd.f32 1e-05, %v972_v39 }
 0x224   :  { %v1300_v3 = vmul.f32 %v2056_v14, %v1299_v62  ;;  %v1306_v12 = vmul.f32 %v2058_v31, %v1003_v2  ;;  %vm1312_vm11 = vweird.f32 %v2058_v31 }
 0x225   :  { %1643 = vst [vmem:[#allocation5 + $0x1c0] sm:$0xff] %v1579_v18  ;;  %2059 = vrsqrt.f32 %v1004_v26  ;;  %vm1313_vm13 = vmor %vm1311_vm12, %vm1312_vm11  ;;  %vm1321_vm15 = vweird.f32 %v1004_v26 }
 0x226   :  { %1644 = vst [vmem:[#allocation5 + $0x1c8] sm:$0xff] %v1580_v27  ;;  %v1304_v55 = vsel %vm1303_vm10, %v2056_v14, %v1300_v3  ;;  %v1307_v17 = vmul.f32 %v2058_v31, %v1306_v12 }
 0x227   :  { %v1383_v13 = vmul.f32 %v1304_v55, %v2888_v57  ;;  %v1384_v23 = vmul.f32 %v1304_v55, %v2893_v15 }
 0x228   :  { %v1308_v36 = vmul.f32 0.5, %v1307_v17 }
 0x229   :  { %v1453_v47 = vmul.f32 %v2689_v32, %v1383_v13  ;;  %v1454_v53 = vmul.f32 %v2691_v35, %v1384_v23 }
 0x22a   :  { %v1309_v61 = vsub.f32 1.5, %v1308_v36 }
 0x22b   :  { %v2060_v48 = vpop.eup %2059  ;;  %v1581_v34 = vadd.f32 %v1517_v6, %v1453_v47  ;;  %v1582_v21 = vadd.f32 %v1518_v58, %v1454_v53 }
 0x22c   :  { %v1310_v0 = vmul.f32 %v2058_v31, %v1309_v61  ;;  %v1316_v43 = vmul.f32 %v2060_v48, %v1004_v26  ;;  %vm1322_vm14 = vweird.f32 %v2060_v48 }
 0x22d   :  { %1645 = vst [vmem:[#allocation5 + $0x1d0] sm:$0xff] %v1581_v34  ;;  %vm1323_vm0 = vmor %vm1321_vm15, %vm1322_vm14 }
 0x22e   :  { %1646 = vst [vmem:[#allocation5 + $0x1d8] sm:$0xff] %v1582_v21  ;;  %v1314_v57 = vsel %vm1313_vm13, %v2058_v31, %v1310_v0  ;;  %v1317_v15 = vmul.f32 %v2060_v48, %v1316_v43 }
 0x22f   :  { %v1385_v1 = vmul.f32 %v1314_v57, %v2902_v40  ;;  %v1386_v41 = vmul.f32 %v1314_v57, %v2913_v7 }
 0x230   :  { %v1318_v52 = vmul.f32 0.5, %v1317_v15 }
 0x231   :  { %v1455_v25 = vmul.f32 %v2689_v32, %v1385_v1  ;;  %v1456_v51 = vmul.f32 %v2691_v35, %v1386_v41 }
 0x232   :  { %v1319_v19 = vsub.f32 1.5, %v1318_v52 }
 0x233   :  { %v1583_v24 = vadd.f32 %v1519_v20, %v1455_v25  ;;  %v1584_v11 = vadd.f32 %v1520_v8, %v1456_v51 }
 0x234   :  { %v1320_v30 = vmul.f32 %v2060_v48, %v1319_v19 }
 0x235   :  { %1647 = vst [vmem:[#allocation5 + $0x1e0] sm:$0xff] %v1583_v24 }
 0x236   :  { %1648 = vst [vmem:[#allocation5 + $0x1e8] sm:$0xff] %v1584_v11  ;;  %v1324_v33 = vsel %vm1323_vm0, %v2060_v48, %v1320_v30 }
 0x237   :  { %v1387_v40 = vmul.f32 %v1324_v33, %v2924_v22  ;;  %v1388_v7 = vmul.f32 %v1324_v33, %v2929_v60 }
 0x239   :  { %v1457_v46 = vmul.f32 %v2689_v32, %v1387_v40  ;;  %v1458_v44 = vmul.f32 %v2691_v35, %v1388_v7 }
 0x23b   :  { %v1585_v50 = vadd.f32 %v1521_v16, %v1457_v46  ;;  %v1586_v14 = vadd.f32 %v1522_v59, %v1458_v44 }
 0x23d   :  { %1649 = vst [vmem:[#allocation5 + $0x1f0] sm:$0xff] %v1585_v50 }
 0x23e   :  { %1650 = vst [vmem:[#allocation5 + $0x1f8] sm:$0xff] %v1586_v14 }
 0x23f   :  { %1663 = dma.vmem_to_hbm [thread:$0]  %s1656_s24, 8192, %s1658_s26, [#allocation4], %s2114_s20, %s2114_s20, %s2115_s21  }
 0x240   :  { %2111 = dma.done.wait [#allocation4], 8192  }
 0x241   :  { %2112 = vsyncadd [#allocation4], 4294959104 }
 0x242   :  { %1668 = vsyncpa [#allocation3], 1 }
 0x243   :  { %1669 = vsyncpa [#allocation4], 1 }

// kernel: mha_forward.4
= control target key start
LH: loop header
LB: loop body
LE: loop exit
PB: predicated region body
PF: predicated region fallthrough
CT: control target
= control target key end

     0   :  { %s4168_s18 = smov 0   ;;  %s6738_s0 = inlined_call_operand.vmem [shape: f32[128,64], index: 0, kind: input, shape index: {}]   ;;  %s6739_s1 = inlined_call_operand.vmem [shape: f32[128,64], index: 1, kind: input, shape index: {}]   ;;  %s6740_s2 = inlined_call_operand.vmem [shape: bf16[2,128,256], index: 2, kind: input, shape index: {}]   ;;  %s6741_s3 = inlined_call_operand.vmem [shape: bf16[2,128,128], index: 3, kind: input, shape index: {}]   ;;  %s6742_s4 = inlined_call_operand.vmem [shape: bf16[2,128,128], index: 4, kind: input, shape index: {}]   ;;  %s6743_s5 = inlined_call_operand.vmem [shape: bf16[2,128,256], index: 5, kind: output, shape index: {}]  }
   0x1 LB: > { %s3338_s19 = sadd.s32 4294967295, %s4133_s18   ;;  %p3342_p0 = scmp.ge.s32.totalorder %s4133_s18, 1  ;;  %s4133_s18 = sphi %s4168_s18, %s15_s18  }
   0x2   : > { %p207_p1 = scmp.lt.s32.totalorder %s4133_s18, 3 }
   0x4   : > { %p208_p2 = pnand %p3342_p0, %p207_p1 }
   0x6   : > { %211 = sbr.rel (%p208_p2) target bundleno = 2144 (0x860), region = 40 }
   0xb   : > { %p245_p3 = scmp.lt.s32.totalorder %s3338_s19, 1  ;;  %s4135_s24 = smov 96   ;;  %vm473_vm0 = vcmask 261120   ;;  %vm746_vm1 = vcmask 523264  }
   0xc   : > { %s4136_s25 = smov 32   ;;  %s4137_s9 = smov 64  }
   0xd   : > { %s7108_s19 = smov (!%p245_p3, %s3338_s19), 1 }
   0xe   : > { %s3418_s20 = sshll.u32 %s7108_s19, 6  ;;  %s3417_s26 = sshll.u32 %s7108_s19, 7 }
   0xf   : > { %s254_s23 = scalar_lea.vmem %s6741_s3, %s3418_s20  ;;  %s4250_s29 = scalar_lea.vmem %s6740_s2, %s3417_s26 }
  0x10   : > { %v3462_v0 = vld [vmem:[%s254_s23 + $0x10] sm:$0xff]   ;;  %v3430_v1 = vld [vmem:[%s254_s23] sm:$0xff]   ;;  %v3463_v9 = vld [vmem:[%s254_s23 + $0x18] sm:$0xff]   ;;  %s5297_s27 = scalar_lea.vmem %s6742_s4, %s3418_s20  ;;  %s6671_s14 = scalar_lea.vmem %s6743_s5, %s3417_s26 }
  0x11   : > { %v3464_v2 = vld [vmem:[%s254_s23 + $0x20] sm:$0xff]   ;;  %v4184_v3 = vunpack.c.l.bf16 %v3462_v0  ;;  %v4186_v4 = vunpack.c.h.bf16 %v3462_v0  ;;  %v4188_v5 = vunpack.c.l.bf16 %v3430_v1  ;;  %v4190_v6 = vunpack.c.h.bf16 %v3430_v1  ;;  %v3461_v10 = vld [vmem:[%s254_s23 + $0x8] sm:$0xff]   ;;  %v3467_v24 = vld [vmem:[%s254_s23 + $0x38] sm:$0xff]  }
  0x12   : > { %v4192_v7 = vunpack.c.l.bf16 %v3464_v2  ;;  %v4194_v8 = vunpack.c.h.bf16 %v3464_v2  ;;  %v3465_v13 = vld [vmem:[%s254_s23 + $0x28] sm:$0xff]   ;;  %v4204_v15 = vunpack.c.l.bf16 %v3463_v9  ;;  %v4206_v16 = vunpack.c.h.bf16 %v3463_v9  ;;  %v3466_v25 = vld [vmem:[%s254_s23 + $0x30] sm:$0xff]   ;;  %v297_v32 = vld [vmem:[%s4250_s29] sm:$0xff] }
  0x13   : > { %6846 = vst [vmem:[#allocation2_spill] sm:$0xff] %v4184_v3  ;;  %v3505_v11 = vpack.i.bf16 %v4186_v4, %v4184_v3  ;;  %v3495_v12 = vpack.i.bf16 %v4190_v6, %v4188_v5  ;;  %v4208_v17 = vunpack.c.l.bf16 %v3461_v10  ;;  %v4210_v18 = vunpack.c.h.bf16 %v3461_v10  ;;  %v298_v33 = vld [vmem:[%s4250_s29 + $0x8] sm:$0xff]  ;;  %v299_v34 = vld [vmem:[%s4250_s29 + $0x10] sm:$0xff]  ;;  %v300_v35 = vld [vmem:[%s4250_s29 + $0x18] sm:$0xff] }
  0x14   : > { %6847 = vst [vmem:[#allocation3_spill] sm:$0xff] %v4186_v4  ;;  %v3515_v14 = vpack.i.bf16 %v4194_v8, %v4192_v7  ;;  %v4213_v19 = vunpack.c.l.bf16 %v3465_v13  ;;  %v4215_v20 = vunpack.c.h.bf16 %v3465_v13  ;;  %v3510_v21 = vpack.i.bf16 %v4206_v16, %v4204_v15  ;;  %v301_v41 = vld [vmem:[%s4250_s29 + $0x20] sm:$0xff]  ;;  %v302_v42 = vld [vmem:[%s4250_s29 + $0x28] sm:$0xff]  ;;  %v303_v44 = vld [vmem:[%s4250_s29 + $0x30] sm:$0xff] }
  0x15   : > { %6848 = vst [vmem:[#allocation4_spill] sm:$0xff] %v4188_v5  ;;  %3506 = vrot.lane.b32.xlu1 %v3505_v11, %s4135_s24  ;;  %3496 = vrot.lane.b32.xlu0 %v3495_v12, %s4135_s24  ;;  %v3500_v22 = vpack.i.bf16 %v4210_v18, %v4208_v17  ;;  %v4225_v26 = vunpack.c.l.bf16 %v3467_v24  ;;  %v4227_v27 = vunpack.c.h.bf16 %v3467_v24  ;;  %v4229_v28 = vunpack.c.l.bf16 %v3466_v25  ;;  %v304_v45 = vld [vmem:[%s4250_s29 + $0x38] sm:$0xff]  ;;  %v305_v46 = vld [vmem:[%s4250_s29 + $0x40] sm:$0xff] }
  0x16   : > { %6849 = vst [vmem:[#allocation5_spill] sm:$0xff] %v4190_v6  ;;  %3516 = vrot.lane.b32.xlu2 %v3515_v14, %s4135_s24  ;;  %v3520_v23 = vpack.i.bf16 %v4215_v20, %v4213_v19  ;;  %v4231_v29 = vunpack.c.h.bf16 %v3466_v25  ;;  %v4258_v36 = vunpack.c.l.bf16 %v297_v32  ;;  %v4260_v37 = vunpack.c.l.bf16 %v298_v33  ;;  %v306_v47 = vld [vmem:[%s4250_s29 + $0x48] sm:$0xff]  ;;  %v307_v56 = vld [vmem:[%s4250_s29 + $0x50] sm:$0xff]  ;;  %v308_v57 = vld [vmem:[%s4250_s29 + $0x58] sm:$0xff] }
  0x17   : > { %6850 = vst [vmem:[#allocation6_spill] sm:$0xff] %v4192_v7  ;;  %v3530_v30 = vpack.i.bf16 %v4227_v27, %v4225_v26  ;;  %v4263_v38 = vunpack.c.l.bf16 %v299_v34  ;;  %v4265_v39 = vunpack.c.l.bf16 %v300_v35  ;;  %v4279_v48 = vunpack.c.l.bf16 %v301_v41  ;;  %v309_v59 = vld [vmem:[%s4250_s29 + $0x60] sm:$0xff]  ;;  %v310_v60 = vld [vmem:[%s4250_s29 + $0x68] sm:$0xff]  ;;  %v311_v61 = vld [vmem:[%s4250_s29 + $0x70] sm:$0xff] }
  0x18   : > { %6851 = vst [vmem:[#allocation7_spill] sm:$0xff] %v4194_v8  ;;  %v3525_v31 = vpack.i.bf16 %v4231_v29, %v4229_v28  ;;  %v3575_v40 = vpack.i.bf16 %v4260_v37, %v4258_v36  ;;  %v4281_v49 = vunpack.c.l.bf16 %v302_v42  ;;  %v4283_v50 = vunpack.c.l.bf16 %v303_v44  ;;  %v312_v62 = vld [vmem:[%s4250_s29 + $0x78] sm:$0xff]  ;;  %v4359_v25 = vld [vmem:[%s6738_s0 + $0x10] sm:$0xff]  ;;  %v4395_v44 = vld [vmem:[%s6738_s0 + $0x28] sm:$0xff] }
  0x19   : > { %6852 = vst [vmem:[#allocation8_spill] sm:$0xff] %v4204_v15  ;;  %v3580_v43 = vpack.i.bf16 %v4265_v39, %v4263_v38  ;;  %v4285_v51 = vunpack.c.l.bf16 %v304_v45  ;;  %v4288_v52 = vunpack.c.l.bf16 %v305_v46  ;;  %v4290_v53 = vunpack.c.l.bf16 %v306_v47  ;;  %v4404_v45 = vld [vmem:[%s6738_s0 + $0x38] sm:$0xff] }
  0x1a   : > { %6853 = vst [vmem:[#allocation9_spill] sm:$0xff] %v4206_v16  ;;  %v3585_v54 = vpack.i.bf16 %v4281_v49, %v4279_v48  ;;  %v4306_v63 = vunpack.c.l.bf16 %v307_v56  ;;  %v4308_v0 = vunpack.c.l.bf16 %v308_v57  ;;  %v4310_v1 = vunpack.c.l.bf16 %v309_v59  ;;  %v4515_v6 = vld [vmem:[%s6738_s0 + $0x78] sm:$0xff] }
  0x1b   : > { %6854 = vst [vmem:[#allocation10_spill] sm:$0xff] %v4208_v17  ;;  %v3590_v55 = vpack.i.bf16 %v4285_v51, %v4283_v50  ;;  %v3595_v58 = vpack.i.bf16 %v4290_v53, %v4288_v52  ;;  %v4312_v2 = vunpack.c.l.bf16 %v310_v60  ;;  %v4315_v9 = vunpack.c.l.bf16 %v311_v61  ;;  %v4435_v61 = vld [vmem:[%s6738_s0 + $0x48] sm:$0xff] }
  0x1c   : > { %6855 = vst [vmem:[#allocation11_spill] sm:$0xff] %v4210_v18  ;;  %v4317_v10 = vunpack.c.l.bf16 %v312_v62  ;;  %v4440_v62 = vld [vmem:[%s6738_s0 + $0x40] sm:$0xff] }
  0x1d   : > { %6856 = vst [vmem:[#allocation12_spill] sm:$0xff] %v4213_v19  ;;  %3511 = vrot.lane.b32.xlu1 %v3510_v21, %s4135_s24  ;;  %3501 = vrot.lane.b32.xlu0 %v3500_v22, %s4135_s24 }
  0x1e   : > { %6857 = vst [vmem:[#allocation13_spill] sm:$0xff] %v4215_v20  ;;  %3521 = vrot.lane.b32.xlu2 %v3520_v23, %s4135_s24  ;;  %v3610_v13 = vpack.i.bf16 %v4317_v10, %v4315_v9 }
  0x1f   : > { %6858 = vst [vmem:[#allocation14_spill] sm:$0xff] %v4225_v26 }
  0x20   : > { %6859 = vst [vmem:[#allocation15_spill] sm:$0xff] %v4227_v27 }
  0x21   : > { %6860 = vst [vmem:[#allocation16_spill] sm:$0xff] %v4229_v28 }
  0x22   : > { %6861 = vst [vmem:[#allocation17_spill] sm:$0xff] %v4231_v29 }
  0x23   : > { %6862 = vst [vmem:[#allocation18_spill] sm:$0xff] %v4258_v36 }
  0x24   : > { %6863 = vst [vmem:[#allocation19_spill] sm:$0xff] %v4260_v37 }
  0x25   : > { %3531 = vrot.lane.b32.xlu1 %v3530_v30, %s4135_s24  ;;  %3526 = vrot.lane.b32.xlu0 %v3525_v31, %s4135_s24  ;;  %6864 = vst [vmem:[#allocation20_spill] sm:$0xff] %v4263_v38 }
  0x26   : > { %3536 = vrot.lane.b32.xlu2 %v3495_v12, %s4136_s25  ;;  %6865 = vst [vmem:[#allocation21_spill] sm:$0xff] %v4265_v39  ;;  %v3605_v12 = vpack.i.bf16 %v4312_v2, %v4310_v1 }
  0x27   : > { %6866 = vst [vmem:[#allocation22_spill] sm:$0xff] %v4279_v48 }
  0x28   : > { %6867 = vst [vmem:[#allocation23_spill] sm:$0xff] %v4281_v49 }
  0x29   : > { %6868 = vst [vmem:[#allocation24_spill] sm:$0xff] %v4283_v50 }
  0x2a   : > { %6869 = vst [vmem:[#allocation25_spill] sm:$0xff] %v4285_v51 }
  0x2b   : > { %6870 = vst [vmem:[#allocation26_spill] sm:$0xff] %v4288_v52 }
  0x2c   : > { %6871 = vst [vmem:[#allocation27_spill] sm:$0xff] %v4290_v53 }
  0x2d   : > { %3546 = vrot.lane.b32.xlu1 %v3505_v11, %s4136_s25  ;;  %3541 = vrot.lane.b32.xlu0 %v3500_v22, %s4136_s25  ;;  %6872 = vst [vmem:[#allocation28_spill] sm:$0xff] %v4306_v63  ;;  %v3600_v11 = vpack.i.bf16 %v4308_v0, %v4306_v63 }
  0x2e   : > { %3551 = vrot.lane.b32.xlu2 %v3510_v21, %s4136_s25  ;;  %6873 = vst [vmem:[#allocation29_spill] sm:$0xff] %v4308_v0  ;;  %v4344_v21 = vld [vmem:[%s6738_s0 + $0x8] sm:$0xff] }
  0x2f   : > { %6874 = vst [vmem:[#allocation30_spill] sm:$0xff] %v4310_v1 }
  0x30   : > { %6875 = vst [vmem:[#allocation31_spill] sm:$0xff] %v4312_v2 }
  0x31   : > { %6876 = vst [vmem:[#allocation32_spill] sm:$0xff] %v4315_v9 }
  0x32   : > { %6877 = vst [vmem:[#allocation33_spill] sm:$0xff] %v4317_v10 }
  0x33   : > { %6879 = vst [vmem:[#allocation35_spill] sm:$0xff] %v4344_v21 }
  0x34   : > { %6883 = vst [vmem:[#allocation39_spill] sm:$0xff] %v4359_v25 }
  0x35   : > { %3561 = vrot.lane.b32.xlu1 %v3520_v23, %s4136_s25  ;;  %3556 = vrot.lane.b32.xlu0 %v3515_v14, %s4136_s25  ;;  %v4339_v14 = vld [vmem:[%s6738_s0] sm:$0xff]  ;;  %6895 = vst [vmem:[#allocation51_spill] sm:$0xff] %v4515_v6 }
  0x36   : > { %3566 = vrot.lane.b32.xlu2 %v3525_v31, %s4136_s25  ;;  %6878 = vst [vmem:[#allocation34_spill] sm:$0xff] %v4339_v14  ;;  %v4373_v31 = vld [vmem:[%s6738_s0 + $0x20] sm:$0xff] }
  0x3d   : > { %3571 = vrot.lane.b32.xlu0 %v3530_v30, %s4136_s25  ;;  %3576 = vrot.lane.b32.xlu1 %v3575_v40, %s4135_s24  ;;  %v4364_v30 = vld [vmem:[%s6738_s0 + $0x18] sm:$0xff] }
  0x3e   : > { %3581 = vrot.lane.b32.xlu2 %v3580_v43, %s4135_s24  ;;  %6884 = vst [vmem:[#allocation40_spill] sm:$0xff] %v4364_v30 }
  0x45   : > { %3586 = vrot.lane.b32.xlu0 %v3585_v54, %s4135_s24  ;;  %3591 = vrot.lane.b32.xlu1 %v3590_v55, %s4135_s24 }
  0x46   : > { %3596 = vrot.lane.b32.xlu2 %v3595_v58, %s4135_s24 }
  0x4d   : > { %3601 = vrot.lane.b32.xlu0 %v3600_v11, %s4135_s24  ;;  %3606 = vrot.lane.b32.xlu1 %v3605_v12, %s4135_s24 }
  0x4e   : > { %3611 = vrot.lane.b32.xlu2 %v3610_v13, %s4135_s24 }
  0x55   : > { %3616 = vrot.lane.b32.xlu0 %v3575_v40, %s4136_s25  ;;  %3621 = vrot.lane.b32.xlu1 %v3580_v43, %s4136_s25  ;;  %v4390_v43 = vld [vmem:[%s6738_s0 + $0x30] sm:$0xff] }
  0x56   : > { %3626 = vrot.lane.b32.xlu2 %v3585_v54, %s4136_s25 }
  0x5d   : > { %3631 = vrot.lane.b32.xlu0 %v3590_v55, %s4136_s25  ;;  %3636 = vrot.lane.b32.xlu1 %v3595_v58, %s4136_s25 }
  0x5e   : > { %3641 = vrot.lane.b32.xlu2 %v3600_v11, %s4136_s25  ;;  %v4449_v11 = vld [vmem:[%s6738_s0 + $0x50] sm:$0xff] }
  0x65   : > { %3646 = vrot.lane.b32.xlu0 %v3605_v12, %s4136_s25  ;;  %3651 = vrot.lane.b32.xlu1 %v3610_v13, %s4136_s25 }
  0x66   : > { %1145 = vrot.lane.b32.xlu2 %v4359_v25, %s4137_s9 }
  0x6d   : > { %1141 = vrot.lane.b32.xlu0 %v4339_v14, %s4137_s9  ;;  %1143 = vrot.lane.b32.xlu1 %v4344_v21, %s4137_s9 }
  0x6e   : > { %1153 = vrot.lane.b32.xlu2 %v4390_v43, %s4137_s9 }
  0x70   : > { %v4350_v22 = vpop.permute.xlu2 %3516 }
  0x71   : > { %6880 = vst [vmem:[#allocation36_spill] sm:$0xff] %v4350_v22 }
  0x75   : > { %1147 = vrot.lane.b32.xlu0 %v4364_v30, %s4137_s9  ;;  %1149 = vrot.lane.b32.xlu1 %v4373_v31, %s4137_s9 }
  0x76   : > { %1159 = vrot.lane.b32.xlu2 %v4435_v61, %s4137_s9 }
  0x78   : > { %v4352_v23 = vpop.permute.xlu2 %3521 }
  0x79   : > { %6881 = vst [vmem:[#allocation37_spill] sm:$0xff] %v4352_v23 }
  0x7d   : > { %1151 = vrot.lane.b32.xlu0 %v4395_v44, %s4137_s9  ;;  %1155 = vrot.lane.b32.xlu1 %v4404_v45, %s4137_s9 }
  0x80   : > { %v4354_v24 = vpop.permute.xlu2 %3536 }
  0x81   : > { %6882 = vst [vmem:[#allocation38_spill] sm:$0xff] %v4354_v24  ;;  %v6745_v32 = vunpack.i.h.bf16 %v4354_v24  ;;  %v6747_v33 = vunpack.i.l.bf16 %v4354_v24 }
  0x85   : > { %1157 = vrot.lane.b32.xlu0 %v4440_v62, %s4137_s9  ;;  %1161 = vrot.lane.b32.xlu1 %v4449_v11, %s4137_s9 }
  0x87   : > { %v4379_v34 = vpop.permute.xlu1 %3506  ;;  %v4381_v35 = vpop.permute.xlu0 %3496 }
  0x88   : > { %6885 = vst [vmem:[#allocation41_spill] sm:$0xff] %v4381_v35  ;;  %v6744_v40 = vunpack.i.h.bf16 %v4381_v35  ;;  %v6746_v41 = vunpack.i.l.bf16 %v4381_v35  ;;  %v4385_v42 = vpop.permute.xlu2 %3551  ;;  %v6896_v21 = vunpack.i.l.bf16 %v4379_v34  ;;  %v6899_v35 = vunpack.i.h.bf16 %v4379_v34 }
  0x89   : > { %v6751_v58 = vunpack.i.h.bf16 %v4385_v42  ;;  %v6749_v59 = vunpack.i.l.bf16 %v4385_v42 }
  0x8a   : > { %v4411_v46 = vsel %vm473_vm0, %v6747_v33, %v6746_v41  ;;  %v4418_v47 = vsel %vm473_vm0, %v6745_v32, %v6744_v40 }
  0x8b   : > { %6886 = vst [vmem:[#allocation42_spill] sm:$0xff] %v4411_v46 }
  0x8c   : > { %6887 = vst [vmem:[#allocation43_spill] sm:$0xff] %v4418_v47 }
  0x8f   : > { %v4422_v54 = vpop.permute.xlu1 %3511  ;;  %v4424_v55 = vpop.permute.xlu0 %3501 }
  0x90   : > { %v6750_v56 = vunpack.i.h.bf16 %v4422_v54  ;;  %v6748_v57 = vunpack.i.l.bf16 %v4422_v54  ;;  %v4430_v60 = vpop.permute.xlu2 %3566  ;;  %v6778_v37 = vunpack.i.h.bf16 %v4424_v55  ;;  %v6776_v39 = vunpack.i.l.bf16 %v4424_v55 }
  0x91   : > { %6888 = vst [vmem:[#allocation44_spill] sm:$0xff] %v4430_v60  ;;  %v3569_v40 = vunpack.i.h.bf16 %v4430_v60 }
  0x92   : > { %v4458_v12 = vsel %vm473_vm0, %v6749_v59, %v6748_v57  ;;  %v4465_v13 = vsel %vm473_vm0, %v6751_v58, %v6750_v56  ;;  %v4476_v57 = vld [vmem:[%s6738_s0 + $0x60] sm:$0xff]  ;;  %v4481_v59 = vld [vmem:[%s6738_s0 + $0x58] sm:$0xff]  ;;  %v4490_v56 = vld [vmem:[%s6738_s0 + $0x68] sm:$0xff] }
  0x93   : > { %6889 = vst [vmem:[#allocation45_spill] sm:$0xff] %v4458_v12  ;;  %1165 = vrot.lane.b32.xlu2 %v4476_v57, %s4137_s9  ;;  %1163 = vrot.lane.b32.xlu0 %v4481_v59, %s4137_s9 }
  0x94   : > { %6890 = vst [vmem:[#allocation46_spill] sm:$0xff] %v4465_v13  ;;  %1167 = vrot.lane.b32.xlu1 %v4490_v56, %s4137_s9 }
  0x97   : > { %v3532_v32 = vpop.permute.xlu1 %3531  ;;  %v4468_v41 = vpop.permute.xlu0 %3526 }
  0x98   : > { %6891 = vst [vmem:[#allocation47_spill] sm:$0xff] %v4468_v41  ;;  %v3529_v33 = vunpack.i.h.bf16 %v4468_v41  ;;  %v4471_v47 = vpop.permute.xlu2 %3581  ;;  %v3534_v2 = vunpack.i.h.bf16 %v3532_v32  ;;  %v3533_v1 = vunpack.i.l.bf16 %v3532_v32  ;;  %v6911_v50 = vunpack.i.l.bf16 %v4468_v41 }
  0x99   : > { %v502_v41 = vmul.f32 %v4229_v28, %v4476_v57 }
  0x9a   : > { %v4493_v58 = vsel %vm473_vm0, %v3569_v40, %v3529_v33 }
  0x9b   : > { %6892 = vst [vmem:[#allocation48_spill] sm:$0xff] %v4493_v58  ;;  %v4510_v58 = vld [vmem:[%s6738_s0 + $0x70] sm:$0xff]  ;;  %1171 = vrot.lane.b32.xlu2 %v4515_v6, %s4137_s9 }
  0x9c   : > { %6894 = vst [vmem:[#allocation50_spill] sm:$0xff] %v4510_v58  ;;  %1169 = vrot.lane.b32.xlu0 %v4510_v58, %s4137_s9  ;;  %v504_v32 = vmul.f32 %v4225_v26, %v4510_v58  ;;  %v487_v26 = vsel %vm473_vm0, %v3529_v33, %v3569_v40 }
  0x9f   : > { %v4497_v46 = vpop.permute.xlu1 %3546  ;;  %v4499_v13 = vpop.permute.xlu0 %3541 }
  0xa0   : > { %v4505_v36 = vpop.permute.xlu2 %3596  ;;  %v6777_v12 = vunpack.i.l.bf16 %v4499_v13  ;;  %v6897_v5 = vunpack.i.l.bf16 %v4497_v46  ;;  %v6900_v24 = vunpack.i.h.bf16 %v4497_v46  ;;  %v6903_v9 = vunpack.i.h.bf16 %v4499_v13 }
  0xa1   : > { %6893 = vst [vmem:[#allocation49_spill] sm:$0xff] %v4505_v36 }
  0xa2   : > { %v4530_v14 = vsel %vm473_vm0, %v6897_v5, %v6896_v21  ;;  %v4537_v10 = vsel %vm473_vm0, %v6900_v24, %v6899_v35  ;;  %v4544_v38 = vsel %vm473_vm0, %v6777_v12, %v6776_v39  ;;  %v4551_v5 = vsel %vm473_vm0, %v6903_v9, %v6778_v37  ;;  %v4601_v37 = vld [vmem:[%s6739_s1 + $0x68] sm:$0xff] }
  0xa3   : > { %6898 = vst [vmem:[#allocation52_spill] sm:$0xff] %v4530_v14  ;;  %v6790_v39 = vunpack.i.l.bf16 %v4350_v22  ;;  %v3523_v12 = vunpack.i.l.bf16 %v4352_v23  ;;  %v519_v40 = vmul.f32 %v487_v26, %v4601_v37  ;;  %v6914_v26 = vunpack.i.l.bf16 %v4385_v42 }
  0xa4   : > { %6901 = vst [vmem:[#allocation53_spill] sm:$0xff] %v4537_v10 }
  0xa5   : > { %6902 = vst [vmem:[#allocation54_spill] sm:$0xff] %v4544_v38 }
  0xa6   : > { %6904 = vst [vmem:[#allocation55_spill] sm:$0xff] %v4551_v5  ;;  %v505_v5 = vmul.f32 %v4227_v27, %v4515_v6 }
  0xa7   : > { %v4553_v21 = vpop.permute.xlu1 %3561  ;;  %v4555_v14 = vpop.permute.xlu0 %3556 }
  0xa8   : > { %6905 = vst [vmem:[#allocation56_spill] sm:$0xff] %v4553_v21  ;;  %v3563_v24 = vunpack.i.l.bf16 %v4553_v21  ;;  %v6791_v35 = vunpack.i.l.bf16 %v4555_v14  ;;  %v4559_v10 = vpop.permute.xlu2 %3611 }
  0xa9   : > { %6906 = vst [vmem:[#allocation57_spill] sm:$0xff] %v4555_v14 }
  0xaa   : > { %6907 = vst [vmem:[#allocation58_spill] sm:$0xff] %v4559_v10  ;;  %v4564_v38 = vsel %vm473_vm0, %v3563_v24, %v3523_v12  ;;  %v4571_v9 = vsel %vm473_vm0, %v6791_v35, %v6790_v39  ;;  %v4585_v39 = vld [vmem:[%s6739_s1 + $0x78] sm:$0xff] }
  0xab   : > { %6908 = vst [vmem:[#allocation59_spill] sm:$0xff] %v4564_v38  ;;  %v4580_v38 = vld [vmem:[%s6739_s1 + $0x70] sm:$0xff] }
  0xac   : > { %6909 = vst [vmem:[#allocation60_spill] sm:$0xff] %v4571_v9  ;;  %v6910_v9 = vunpack.i.l.bf16 %v4430_v60 }
  0xae   : > { %v486_v36 = vsel %vm473_vm0, %v6911_v50, %v6910_v9  ;;  %v503_v50 = vmul.f32 %v4231_v29, %v4490_v56 }
  0xaf   : > { %v3572_v10 = vpop.permute.xlu0 %3571  ;;  %v4575_v53 = vpop.permute.xlu1 %3576 }
  0xb0   : > { %v3574_v52 = vunpack.i.h.bf16 %v3572_v10  ;;  %v3573_v51 = vunpack.i.l.bf16 %v3572_v10  ;;  %v4587_v35 = vpop.permute.xlu2 %3626  ;;  %v4596_v10 = vld [vmem:[%s6739_s1 + $0x60] sm:$0xff] }
  0xb1   : > { %v518_v33 = vmul.f32 %v486_v36, %v4596_v10 }
  0xb2   : > { %v488_v27 = vsel %vm473_vm0, %v3533_v1, %v3573_v51  ;;  %v489_v6 = vsel %vm473_vm0, %v3534_v2, %v3574_v52  ;;  %v4612_v58 = vsel %vm473_vm0, %v3574_v52, %v3534_v2  ;;  %v4615_v18 = vsel %vm473_vm0, %v3573_v51, %v3533_v1 }
  0xb3   : > { %6912 = vst [vmem:[#allocation61_spill] sm:$0xff] %v4612_v58  ;;  %v520_v30 = vmul.f32 %v488_v27, %v4580_v38  ;;  %v521_v60 = vmul.f32 %v489_v6, %v4585_v39  ;;  %v496_v1 = vmul.f32 %v4204_v15, %v4390_v43  ;;  %v497_v51 = vmul.f32 %v4206_v16, %v4404_v45  ;;  %v4652_v15 = vld [vmem:[%s6739_s1 + $0x30] sm:$0xff] }
  0xb4   : > { %6913 = vst [vmem:[#allocation62_spill] sm:$0xff] %v4615_v18 }
  0xb5   : > { %v536_v2 = vadd.f32 %v520_v30, %v504_v32  ;;  %v537_v9 = vadd.f32 %v521_v60, %v505_v5  ;;  %v6915_v30 = vunpack.i.l.bf16 %v4422_v54  ;;  %v6916_v5 = vunpack.i.h.bf16 %v4385_v42  ;;  %v4657_v42 = vld [vmem:[%s6739_s1 + $0x38] sm:$0xff] }
  0xb6   : > { %v6917_v32 = vunpack.i.h.bf16 %v4422_v54 }
  0xb7   : > { %v4631_v28 = vpop.permute.xlu0 %3586  ;;  %v4633_v29 = vpop.permute.xlu1 %3591  ;;  %v545_v36 = vpack.c.bf16 %v537_v9, %v536_v2  ;;  %v480_v60 = vsel %vm473_vm0, %v6915_v30, %v6914_v26  ;;  %v534_v2 = vadd.f32 %v518_v33, %v502_v41  ;;  %v535_v9 = vadd.f32 %v519_v40, %v503_v50  ;;  %v4664_v30 = vld [vmem:[%s6739_s1 + $0x28] sm:$0xff] }
  0xb8   : > { %v481_v52 = vsel %vm473_vm0, %v6917_v32, %v6916_v5  ;;  %v6808_v6 = vunpack.i.h.bf16 %v4631_v28  ;;  %v6809_v27 = vunpack.i.l.bf16 %v4631_v28  ;;  %v484_v26 = vsel %vm473_vm0, %v3523_v12, %v3563_v24  ;;  %6918 = vst [vmem:[#allocation63_spill] sm:$0xff] %v4664_v30  ;;  %v4683_v24 = vld [vmem:[%s6739_s1 + $0x50] sm:$0xff]  ;;  %v4688_v5 = vld [vmem:[%s6739_s1 + $0x58] sm:$0xff] }
  0xb9   : > { %v793_v54 = vsel %vm746_vm1, %v545_v36, 0  ;;  %v694_v41 = vmul.f32 %v4279_v48, %v4373_v31  ;;  %v695_v50 = vmul.f32 %v4281_v49, %v4395_v44  ;;  %v6919_v33 = vunpack.i.h.bf16 %v4587_v35 }
  0xba   : > { %v6920_v36 = vunpack.i.l.bf16 %v4587_v35  ;;  %795 = vmatpush.bf16.xpose.msra.mxu0 %v793_v54  ;;  %1357 = vmatpush.bf16.xpose.msra.mxu2 %v793_v54  ;;  %v6921_v32 = vunpack.i.h.bf16 %v4553_v21  ;;  %v4698_v54 = vld [vmem:[%s6739_s1 + $0x20] sm:$0xff]  ;;  %v513_v16 = vmul.f32 %v481_v52, %v4657_v42  ;;  %v544_v18 = vpack.c.bf16 %v535_v9, %v534_v2 }
  0xbb   : > { %v679_v40 = vsel %vm473_vm0, %v6808_v6, %v6919_v33  ;;  %v6922_v33 = vunpack.i.h.bf16 %v4352_v23  ;;  %6923 = vst [vmem:[#allocation64_spill] sm:$0xff] %v4698_v54  ;;  %v500_v21 = vmul.f32 %v4213_v19, %v4449_v11  ;;  %v6927_v9 = vunpack.i.l.bf16 %v4350_v22 }
  0xbc   : > { %v678_v12 = vsel %vm473_vm0, %v6809_v27, %v6920_v36  ;;  %v4700_v36 = vpop.permute.xlu2 %3641  ;;  %v512_v27 = vmul.f32 %v480_v60, %v4652_v15  ;;  %v711_v49 = vmul.f32 %v679_v40, %v4664_v30 }
  0xbd   : > { %v485_v6 = vsel %vm473_vm0, %v6922_v33, %v6921_v32  ;;  %v710_v48 = vmul.f32 %v678_v12, %v4698_v54  ;;  %v501_v32 = vmul.f32 %v4215_v20, %v4481_v59  ;;  %v516_v33 = vmul.f32 %v484_v26, %v4683_v24 }
  0xbe   : > { %v517_v23 = vmul.f32 %v485_v6, %v4688_v5  ;;  %v4714_v60 = vadd.f32 %v711_v49, %v695_v50  ;;  %v6818_v12 = vunpack.i.h.bf16 %v4700_v36  ;;  %v4724_v20 = vadd.f32 %v512_v27, %v496_v1 }
  0xbf   : > { %v4712_v58 = vadd.f32 %v710_v48, %v694_v41  ;;  %v4720_v40 = vpop.permute.xlu0 %3601  ;;  %v4722_v19 = vpop.permute.xlu1 %3606  ;;  %v4726_v26 = vadd.f32 %v513_v16, %v497_v51  ;;  %v790_v41 = vsel %vm746_vm1, %v544_v18, 0  ;;  %v6926_v50 = vunpack.i.l.bf16 %v4555_v14  ;;  %v4741_v16 = vld [vmem:[%s6739_s1 + $0x40] sm:$0xff] }
  0xc0   : > { %6925 = vst [vmem:[#allocation66_spill] sm:$0xff] %v4714_v60  ;;  %v6819_v49 = vunpack.i.h.bf16 %v4720_v40  ;;  %v6817_v6 = vunpack.i.l.bf16 %v4720_v40  ;;  %v532_v2 = vadd.f32 %v516_v33, %v500_v21  ;;  %v533_v27 = vadd.f32 %v517_v23, %v501_v32 }
  0xc1   : > { %6924 = vst [vmem:[#allocation65_spill] sm:$0xff] %v4712_v58  ;;  %v482_v52 = vsel %vm473_vm0, %v6927_v9, %v6926_v50  ;;  %v700_v51 = vmul.f32 %v4306_v63, %v4449_v11  ;;  %v701_v1 = vmul.f32 %v4308_v0, %v4481_v59  ;;  %v6928_v21 = vunpack.i.l.bf16 %v4700_v36  ;;  %v4760_v11 = vld [vmem:[%s6739_s1 + $0x48] sm:$0xff] }
  0xc2   : > { %v685_v18 = vsel %vm473_vm0, %v6819_v49, %v6818_v12  ;;  %796 = vmatpush.bf16.xpose.msra.mxu0 %v790_v41  ;;  %1358 = vmatpush.bf16.xpose.msra.mxu2 %v790_v41  ;;  %v6929_v59 = vunpack.i.h.bf16 %v4555_v14  ;;  %v6930_v32 = vunpack.i.h.bf16 %v4350_v22  ;;  %v499_v41 = vmul.f32 %v4194_v8, %v4435_v61  ;;  %v6960_v14 = vld [vmem:[#allocation27_spill] sm:$0xff] }
  0xc3   : > { %v684_v23 = vsel %vm473_vm0, %v6817_v6, %v6928_v21  ;;  %v717_v50 = vmul.f32 %v685_v18, %v4688_v5  ;;  %v498_v21 = vmul.f32 %v4192_v7, %v4440_v62  ;;  %v514_v48 = vmul.f32 %v482_v52, %v4741_v16 }
  0xc4   : > { %v483_v33 = vsel %vm473_vm0, %v6930_v32, %v6929_v59  ;;  %v716_v9 = vmul.f32 %v684_v23, %v4683_v24  ;;  %v543_v6 = vpack.c.bf16 %v533_v27, %v532_v2  ;;  %v541_v23 = vpack.c.bf16 %v4726_v26, %v4724_v20 }
  0xc5   : > { %v515_v12 = vmul.f32 %v483_v33, %v4760_v11  ;;  %v4777_v63 = vadd.f32 %v717_v50, %v701_v1  ;;  %v494_v18 = vmul.f32 %v4184_v3, %v4373_v31  ;;  %v495_v59 = vmul.f32 %v4186_v4, %v4395_v44 }
  0xc6   : > { %v4775_v49 = vadd.f32 %v716_v9, %v700_v51  ;;  %v6933_v51 = vunpack.i.l.bf16 %v4497_v46  ;;  %v6934_v1 = vunpack.i.l.bf16 %v4379_v34  ;;  %v6935_v9 = vunpack.i.h.bf16 %v4497_v46  ;;  %v6939_v46 = vld [vmem:[#allocation40_spill] sm:$0xff] }
  0xc7   : > { %6932 = vst [vmem:[#allocation68_spill] sm:$0xff] %v4777_v63  ;;  %v4787_v2 = vpop.permute.xlu0 %3616  ;;  %v4789_v27 = vpop.permute.xlu1 %3621  ;;  %v6936_v50 = vunpack.i.h.bf16 %v4379_v34  ;;  %v6822_v32 = vunpack.i.l.bf16 %v4471_v47  ;;  %v787_v3 = vsel %vm746_vm1, %v543_v6, 0  ;;  %v6937_v26 = vunpack.i.l.bf16 %v4499_v13 }
  0xc8   : > { %6931 = vst [vmem:[#allocation67_spill] sm:$0xff] %v4775_v49  ;;  %v478_v20 = vsel %vm473_vm0, %v6934_v1, %v6933_v51  ;;  %v530_v51 = vadd.f32 %v514_v48, %v498_v21  ;;  %v531_v1 = vadd.f32 %v515_v12, %v499_v41  ;;  %v6938_v44 = vunpack.i.l.bf16 %v4424_v55  ;;  %v4825_v12 = vld [vmem:[%s6739_s1 + $0x10] sm:$0xff]  ;;  %v4835_v21 = vld [vmem:[%s6739_s1 + $0x8] sm:$0xff] }
  0xc9   : > { %v479_v52 = vsel %vm473_vm0, %v6936_v50, %v6935_v9  ;;  %v510_v31 = vmul.f32 %v478_v20, %v4698_v54  ;;  %v4816_v34 = vmul.f32 %v4208_v17, %v4359_v25  ;;  %v6940_v9 = vld [vmem:[#allocation11_spill] sm:$0xff]  ;;  %6941 = vst [vmem:[#allocation69_spill] sm:$0xff] %v4825_v12  ;;  %v6942_v48 = vunpack.i.l.bf16 %v4789_v27 }
  0xca   : > { %797 = vmatpush.bf16.xpose.msra.mxu0 %v787_v3  ;;  %v476_v33 = vsel %vm473_vm0, %v6938_v44, %v6937_v26  ;;  %v4820_v50 = vmul.f32 %v6940_v9, %v6939_v46  ;;  %1359 = vmatpush.bf16.xpose.msra.mxu2 %v787_v3  ;;  %v6943_v41 = vunpack.i.h.bf16 %v4575_v53  ;;  %v6944_v3 = vunpack.i.h.bf16 %v4787_v2  ;;  %v4845_v26 = vld [vmem:[%s6739_s1] sm:$0xff] }
  0xcb   : > { %v1111_v6 = vsel %vm473_vm0, %v6942_v48, %v6822_v32  ;;  %v6945_v44 = vunpack.i.l.bf16 %v4575_v53  ;;  %v6946_v48 = vunpack.i.l.bf16 %v4787_v2  ;;  %v511_v9 = vmul.f32 %v479_v52, %v4664_v30 }
  0xcc   : > { %v1110_v20 = vsel %vm473_vm0, %v6944_v3, %v6943_v41  ;;  %v1207_v17 = vmul.f32 %v1111_v6, %v4825_v12  ;;  %v4859_v41 = vld [vmem:[%s6739_s1 + $0x18] sm:$0xff]  ;;  %v6947_v3 = vunpack.i.h.bf16 %v4499_v13  ;;  %v6948_v7 = vunpack.i.h.bf16 %v4424_v55 }
  0xcd   : > { %v1109_v32 = vsel %vm473_vm0, %v6946_v48, %v6945_v44  ;;  %v1206_v4 = vmul.f32 %v1110_v20, %v4835_v21  ;;  %v6831_v44 = vunpack.i.h.bf16 %v4471_v47  ;;  %v542_v6 = vpack.c.bf16 %v531_v1, %v530_v51 }
  0xce   : > { %v1205_v8 = vmul.f32 %v1109_v32, %v4845_v26  ;;  %v477_v0 = vsel %vm473_vm0, %v6948_v7, %v6947_v3  ;;  %v4869_v20 = vsel %vm746_vm1, %v541_v23, 0  ;;  %v6949_v32 = vld [vmem:[#allocation49_spill] sm:$0xff]  ;;  %v3594_v63 = vunpack.i.h.bf16 %v4633_v29  ;;  %1241 = vrot.lane.b32.xlu2 %v1207_v17, %s4137_s9 }
  0xcf   : > { %v3598_v49 = vunpack.i.l.bf16 %v6949_v32  ;;  %v3593_v13 = vunpack.i.l.bf16 %v4633_v29  ;;  %1239 = vrot.lane.b32.xlu0 %v1206_v4, %s4137_s9  ;;  %v3632_v7 = vpop.permute.xlu0 %3631  ;;  %v4878_v55 = vpop.permute.xlu1 %3636  ;;  %v4880_v51 = vadd.f32 %v510_v31, %v494_v18  ;;  %v4882_v23 = vadd.f32 %v511_v9, %v495_v59 }
  0xd0   : > { %1237 = vrot.lane.b32.xlu1 %v1205_v8, %s4137_s9  ;;  %v4885_v1 = vmul.f32 %v476_v33, %v4825_v12  ;;  %v4888_v3 = vmul.f32 %v477_v0, %v4859_v41  ;;  %v3634_v29 = vunpack.i.h.bf16 %v3632_v7  ;;  %v3633_v48 = vunpack.i.l.bf16 %v3632_v7  ;;  %v6961_v12 = vld [vmem:[#allocation58_spill] sm:$0xff] }
  0xd1   : > { %v3638_v4 = vunpack.i.l.bf16 %v4878_v55  ;;  %v784_v8 = vsel %vm746_vm1, %v542_v6, 0  ;;  %v6950_v52 = vunpack.i.h.bf16 %v4631_v28  ;;  %v6951_v18 = vunpack.i.h.bf16 %v4587_v35 }
  0xd2   : > { %v6952_v31 = vunpack.i.l.bf16 %v4631_v28  ;;  %v6953_v33 = vunpack.i.l.bf16 %v4587_v35  ;;  %v6954_v9 = vunpack.i.h.bf16 %v4789_v27  ;;  %v680_v6 = vsel %vm473_vm0, %v3593_v13, %v3633_v48  ;;  %798 = vmatpush.bf16.xpose.msra.mxu0 %v784_v8  ;;  %1360 = vmatpush.bf16.xpose.msra.mxu2 %v784_v8 }
  0xd3   : > { %v1114_v59 = vsel %vm473_vm0, %v6951_v18, %v6950_v52  ;;  %v681_v17 = vsel %vm473_vm0, %v3594_v63, %v3634_v29  ;;  %v6955_v58 = vunpack.i.h.bf16 %v4878_v55  ;;  %v6956_v52 = vunpack.i.h.bf16 %v6949_v32  ;;  %v6957_v18 = vld [vmem:[#allocation24_spill] sm:$0xff] }
  0xd4   : > { %v1113_v0 = vsel %vm473_vm0, %v6953_v33, %v6952_v31  ;;  %v1112_v7 = vsel %vm473_vm0, %v6954_v9, %v6831_v44  ;;  %v682_v35 = vsel %vm473_vm0, %v3598_v49, %v3638_v4  ;;  %v696_v31 = vmul.f32 %v6957_v18, %v4390_v43  ;;  %v6958_v33 = vld [vmem:[#allocation25_spill] sm:$0xff]  ;;  %v6959_v44 = vld [vmem:[#allocation26_spill] sm:$0xff] }
  0xd5   : > { %v683_v28 = vsel %vm473_vm0, %v6956_v52, %v6955_v58  ;;  %v697_v9 = vmul.f32 %v6958_v33, %v4404_v45  ;;  %v698_v60 = vmul.f32 %v6959_v44, %v4440_v62  ;;  %v699_v22 = vmul.f32 %v6960_v14, %v4435_v61 }
  0xd6   : > { %v1210_v58 = vmul.f32 %v1114_v59, %v4664_v30  ;;  %v1209_v52 = vmul.f32 %v1113_v0, %v4698_v54  ;;  %v1208_v8 = vmul.f32 %v1112_v7, %v4859_v41  ;;  %v712_v25 = vmul.f32 %v680_v6, %v4652_v15 }
  0xd7   : > { %v713_v43 = vmul.f32 %v681_v17, %v4657_v42  ;;  %v714_v45 = vmul.f32 %v682_v35, %v4741_v16  ;;  %v715_v18 = vmul.f32 %v683_v28, %v4760_v11  ;;  %v6839_v61 = vunpack.i.h.bf16 %v4722_v19  ;;  %v4939_v0 = vpop.permute.xlu0 %3646  ;;  %v4941_v17 = vpop.permute.xlu1 %3651 }
  0xd8   : > { %v6838_v46 = vunpack.i.l.bf16 %v4722_v19  ;;  %1247 = vrot.lane.b32.xlu2 %v1210_v58, %s4137_s9  ;;  %1245 = vrot.lane.b32.xlu0 %v1209_v52, %s4137_s9  ;;  %v1117_v59 = vsel %vm473_vm0, %v3638_v4, %v3598_v49  ;;  %v4943_v7 = vadd.f32 %v712_v25, %v696_v31  ;;  %v3649_v58 = vunpack.i.h.bf16 %v4939_v0  ;;  %v6964_v31 = vld [vmem:[#allocation30_spill] sm:$0xff] }
  0xd9   : > { %1243 = vrot.lane.b32.xlu1 %v1208_v8, %s4137_s9  ;;  %v4945_v6 = vadd.f32 %v713_v43, %v697_v9  ;;  %v4947_v28 = vadd.f32 %v714_v45, %v698_v60  ;;  %v4949_v35 = vadd.f32 %v715_v18, %v699_v22  ;;  %v3648_v52 = vunpack.i.l.bf16 %v4939_v0  ;;  %v6965_v43 = vld [vmem:[#allocation31_spill] sm:$0xff]  ;;  %v6966_v0 = vld [vmem:[#allocation50_spill] sm:$0xff]  ;;  %v6967_v60 = vld [vmem:[#allocation32_spill] sm:$0xff] }
  0xda   : > { %v6840_v49 = vunpack.i.h.bf16 %v4941_v17  ;;  %v3653_v4 = vunpack.i.l.bf16 %v4941_v17  ;;  %v1116_v8 = vsel %vm473_vm0, %v3634_v29, %v3594_v63  ;;  %v1115_v62 = vsel %vm473_vm0, %v3633_v48, %v3593_v13  ;;  %799 = vmatpush.bf16.xpose.msra.mxu0 %v4869_v20  ;;  %1361 = vmatpush.bf16.xpose.msra.mxu2 %v4869_v20 }
  0xdb   : > { %v686_v22 = vsel %vm473_vm0, %v6838_v46, %v3648_v52  ;;  %v687_v18 = vsel %vm473_vm0, %v6839_v61, %v3649_v58  ;;  %v6962_v63 = vunpack.i.h.bf16 %v6961_v12  ;;  %v6963_v13 = vunpack.i.l.bf16 %v6961_v12  ;;  %v6968_v46 = vld [vmem:[#allocation51_spill] sm:$0xff]  ;;  %v6969_v61 = vld [vmem:[#allocation33_spill] sm:$0xff] }
  0xdc   : > { %v702_v9 = vmul.f32 %v6964_v31, %v4476_v57  ;;  %v703_v45 = vmul.f32 %v6965_v43, %v4490_v56  ;;  %v704_v25 = vmul.f32 %v6967_v60, %v6966_v0  ;;  %v1211_v30 = vmul.f32 %v1115_v62, %v4652_v15 }
  0xdd   : > { %v689_v48 = vsel %vm473_vm0, %v6962_v63, %v6840_v49  ;;  %v688_v29 = vsel %vm473_vm0, %v6963_v13, %v3653_v4  ;;  %v705_v63 = vmul.f32 %v6969_v61, %v6968_v46  ;;  %v1213_v49 = vmul.f32 %v1117_v59, %v4741_v16 }
  0xde   : > { %v1212_v13 = vmul.f32 %v1116_v8, %v4657_v42  ;;  %v540_v20 = vpack.c.bf16 %v4882_v23, %v4880_v51  ;;  %v718_v57 = vmul.f32 %v686_v22, %v4596_v10  ;;  %v719_v54 = vmul.f32 %v687_v18, %v4601_v37  ;;  %v6970_v22 = vld [vmem:[#allocation38_spill] sm:$0xff] }
  0xdf   : > { %v720_v56 = vmul.f32 %v688_v29, %v4580_v38  ;;  %v721_v0 = vmul.f32 %v689_v48, %v4585_v39  ;;  %v524_v8 = vadd.f32 %v4885_v1, %v4816_v34  ;;  %v6971_v18 = vunpack.i.l.bf16 %v6970_v22  ;;  %v6972_v48 = vld [vmem:[#allocation41_spill] sm:$0xff] }
  0xe0   : > { %1253 = vrot.lane.b32.xlu2 %v1213_v49, %s4137_s9  ;;  %1251 = vrot.lane.b32.xlu0 %v1212_v13, %s4137_s9  ;;  %v4997_v46 = vadd.f32 %v718_v57, %v702_v9  ;;  %v4999_v62 = vadd.f32 %v719_v54, %v703_v45  ;;  %v778_v23 = vsel %vm746_vm1, %v540_v20, 0  ;;  %v525_v49 = vadd.f32 %v4888_v3, %v4820_v50 }
  0xe1   : > { %1249 = vrot.lane.b32.xlu1 %v1211_v30, %s4137_s9  ;;  %v5001_v59 = vadd.f32 %v720_v56, %v704_v25  ;;  %v5003_v51 = vadd.f32 %v721_v0, %v705_v63  ;;  %v6973_v30 = vunpack.i.l.bf16 %v6972_v48  ;;  %v6974_v54 = vunpack.i.h.bf16 %v4720_v40 }
  0xe2   : > { %v6975_v25 = vunpack.i.h.bf16 %v4700_v36  ;;  %v6976_v45 = vunpack.i.l.bf16 %v4720_v40  ;;  %v6977_v63 = vunpack.i.l.bf16 %v4700_v36  ;;  %v744_v50 = vpack.c.bf16 %v4999_v62, %v4997_v46  ;;  %800 = vmatpush.bf16.xpose.msra.mxu0 %v778_v23  ;;  %1362 = vmatpush.bf16.xpose.msra.mxu2 %v778_v23  ;;  %v7036_v62 = vld [vmem:[#allocation45_spill] sm:$0xff] }
  0xe3   : > { %v474_v29 = vsel %vm473_vm0, %v6973_v30, %v6971_v18  ;;  %v745_v1 = vpack.c.bf16 %v5003_v51, %v5001_v59  ;;  %v6978_v3 = vunpack.i.h.bf16 %v6949_v32  ;;  %v6979_v13 = vunpack.i.h.bf16 %v4878_v55  ;;  %v6982_v18 = vld [vmem:[#allocation34_spill] sm:$0xff]  ;;  %v6983_v30 = vld [vmem:[#allocation4_spill] sm:$0xff] }
  0xe4   : > { %v1120_v9 = vsel %vm473_vm0, %v6975_v25, %v6974_v54  ;;  %v1119_v34 = vsel %vm473_vm0, %v6977_v63, %v6976_v45  ;;  %v6980_v57 = vunpack.i.h.bf16 %v6970_v22  ;;  %v6981_v40 = vunpack.i.h.bf16 %v6972_v48  ;;  %v6984_v45 = vld [vmem:[#allocation35_spill] sm:$0xff]  ;;  %v6985_v63 = vld [vmem:[#allocation5_spill] sm:$0xff]  ;;  %v7042_v51 = vld [vmem:[#allocation14_spill] sm:$0xff] }
  0xe5   : > { %v1118_v20 = vsel %vm473_vm0, %v6979_v13, %v6978_v3  ;;  %v1216_v56 = vmul.f32 %v1120_v9, %v4688_v5  ;;  %v1215_v0 = vmul.f32 %v1119_v34, %v4683_v24  ;;  %v490_v54 = vmul.f32 %v6983_v30, %v6982_v18 }
  0xe6   : > { %v475_v36 = vsel %vm473_vm0, %v6981_v40, %v6980_v57  ;;  %v506_v32 = vmul.f32 %v474_v29, %v4845_v26  ;;  %v1214_v55 = vmul.f32 %v1118_v20, %v4760_v11  ;;  %v539_v25 = vpack.c.bf16 %v525_v49, %v524_v8 }
  0xe7   : > { %v491_v22 = vmul.f32 %v6985_v63, %v6984_v45  ;;  %v507_v48 = vmul.f32 %v475_v36, %v4835_v21  ;;  %v6986_v34 = vunpack.i.l.bf16 %v6961_v12  ;;  %v6987_v8 = vunpack.i.h.bf16 %v4722_v19 }
  0xe8   : > { %1259 = vrot.lane.b32.xlu2 %v1216_v56, %s4137_s9  ;;  %1257 = vrot.lane.b32.xlu0 %v1215_v0, %s4137_s9  ;;  %v522_v23 = vadd.f32 %v506_v32, %v490_v54  ;;  %v775_v9 = vsel %vm746_vm1, %v539_v25, 0  ;;  %v6988_v13 = vunpack.i.l.bf16 %v4722_v19  ;;  %v6989_v57 = vunpack.i.l.bf16 %v4787_v2  ;;  %v6993_v32 = vld [vmem:[#allocation18_spill] sm:$0xff] }
  0xe9   : > { %1255 = vrot.lane.b32.xlu1 %v1214_v55, %s4137_s9  ;;  %v1123_v29 = vsel %vm473_vm0, %v3653_v4, %v6986_v34  ;;  %v1122_v49 = vsel %vm473_vm0, %v3649_v58, %v6987_v8  ;;  %v523_v3 = vadd.f32 %v507_v48, %v491_v22  ;;  %v6990_v40 = vunpack.i.l.bf16 %v4575_v53  ;;  %v6997_v34 = vld [vmem:[#allocation44_spill] sm:$0xff] }
  0xea   : > { %801 = vmatpush.bf16.xpose.msra.mxu0 %v775_v9  ;;  %v1121_v20 = vsel %vm473_vm0, %v3648_v52, %v6988_v13  ;;  %1363 = vmatpush.bf16.xpose.msra.mxu2 %v775_v9  ;;  %v6991_v56 = vunpack.i.h.bf16 %v4787_v2  ;;  %v6992_v4 = vunpack.i.h.bf16 %v4575_v53  ;;  %v1219_v58 = vmul.f32 %v1123_v29, %v4580_v38  ;;  %v6994_v53 = vld [vmem:[#allocation19_spill] sm:$0xff] }
  0xeb   : > { %v674_v36 = vsel %vm473_vm0, %v6990_v40, %v6989_v57  ;;  %v1218_v54 = vmul.f32 %v1122_v49, %v4601_v37  ;;  %v1217_v19 = vmul.f32 %v1121_v20, %v4596_v10  ;;  %v538_v52 = vpack.c.bf16 %v523_v3, %v522_v23  ;;  %v6995_v9 = vld [vmem:[#allocation47_spill] sm:$0xff]  ;;  %v7001_v57 = vld [vmem:[#allocation61_spill] sm:$0xff] }
  0xec   : > { %v675_v0 = vsel %vm473_vm0, %v6992_v4, %v6991_v56  ;;  %v690_v2 = vmul.f32 %v6993_v32, %v6982_v18  ;;  %v691_v55 = vmul.f32 %v6994_v53, %v6984_v45  ;;  %v706_v25 = vmul.f32 %v674_v36, %v4845_v26  ;;  %v7004_v4 = vld [vmem:[#allocation56_spill] sm:$0xff] }
  0xed   : > { %v707_v22 = vmul.f32 %v675_v0, %v4835_v21  ;;  %v772_v48 = vsel %vm746_vm1, %v538_v52, 0  ;;  %v6996_v23 = vunpack.i.l.bf16 %v6995_v9  ;;  %v6998_v29 = vunpack.i.l.bf16 %v6997_v34 }
  0xee   : > { %v6999_v49 = vunpack.i.h.bf16 %v6961_v12  ;;  %v7000_v18 = vunpack.i.h.bf16 %v4941_v17  ;;  %v722_v45 = vadd.f32 %v706_v25, %v690_v2  ;;  %v1670_v40 = vmul.f32 %v7001_v57, %v4585_v39  ;;  %v7002_v17 = vld [vmem:[#allocation37_spill] sm:$0xff]  ;;  %v7010_v25 = vld [vmem:[#allocation48_spill] sm:$0xff] }
  0xef   : > { %v1635_v8 = vsel %vm473_vm0, %v6998_v29, %v6996_v23  ;;  %v723_v13 = vadd.f32 %v707_v22, %v691_v55  ;;  %v7003_v56 = vunpack.i.h.bf16 %v7002_v17  ;;  %v7005_v0 = vunpack.i.h.bf16 %v7004_v4  ;;  %v7012_v23 = vld [vmem:[#allocation39_spill] sm:$0xff]  ;;  %v7015_v29 = vld [vmem:[#allocation21_spill] sm:$0xff] }
  0xf0   : > { %1265 = vrot.lane.b32.xlu2 %v1219_v58, %s4137_s9  ;;  %1263 = vrot.lane.b32.xlu0 %v1218_v54, %s4137_s9  ;;  %v1124_v3 = vsel %vm473_vm0, %v7000_v18, %v6999_v49  ;;  %v1667_v20 = vmul.f32 %v1635_v8, %v4596_v10  ;;  %v7006_v58 = vunpack.i.h.bf16 %v4789_v27  ;;  %v7007_v54 = vunpack.i.h.bf16 %v4471_v47  ;;  %v7016_v49 = vld [vmem:[#allocation69_spill] sm:$0xff] }
  0xf1   : > { %1261 = vrot.lane.b32.xlu1 %v1217_v19, %s4137_s9  ;;  %v1220_v36 = vmul.f32 %v1124_v3, %v4585_v39  ;;  %v738_v12 = vpack.c.bf16 %v723_v13, %v722_v45  ;;  %v1634_v10 = vsel %vm473_vm0, %v7005_v0, %v7003_v56  ;;  %v7008_v19 = vunpack.i.l.bf16 %v4789_v27  ;;  %v7013_v27 = vld [vmem:[#allocation20_spill] sm:$0xff]  ;;  %v7019_v45 = vld [vmem:[#allocation57_spill] sm:$0xff]  ;;  %v5141_v56 = vpop.permute.xlu2 %1145 }
  0xf2   : > { %802 = vmatpush.bf16.xpose.msra.mxu0 %v772_v48  ;;  %1364 = vmatpush.bf16.xpose.msra.mxu2 %v772_v48  ;;  %v677_v39 = vsel %vm473_vm0, %v7007_v54, %v7006_v58  ;;  %v7009_v52 = vunpack.i.l.bf16 %v4471_v47  ;;  %v1666_v55 = vmul.f32 %v1634_v10, %v4688_v5  ;;  %v1668_v22 = vmul.f32 %v7010_v25, %v4601_v37  ;;  %v7011_v48 = vld [vmem:[#allocation62_spill] sm:$0xff]  ;;  %v7014_v47 = vld [vmem:[#allocation40_spill] sm:$0xff] }
  0xf3   : > { %v1669_v9 = vmul.f32 %v7011_v48, %v4580_v38  ;;  %v692_v34 = vmul.f32 %v7013_v27, %v7012_v23  ;;  %v693_v8 = vmul.f32 %v7015_v29, %v7014_v47  ;;  %v709_v18 = vmul.f32 %v677_v39, %v4859_v41  ;;  %v7017_v37 = vld [vmem:[#allocation36_spill] sm:$0xff]  ;;  %v7023_v39 = vld [vmem:[#allocation66_spill] sm:$0xff] }
  0xf4   : > { %v676_v2 = vsel %vm473_vm0, %v7009_v52, %v7008_v19  ;;  %v7018_v3 = vunpack.i.h.bf16 %v7017_v37  ;;  %v7020_v38 = vunpack.i.h.bf16 %v7019_v45  ;;  %v7022_v0 = vld [vmem:[#allocation60_spill] sm:$0xff]  ;;  %v7024_v19 = vld [vmem:[#allocation65_spill] sm:$0xff]  ;;  %v7026_v48 = vpack.c.bf16 %v4945_v6, %v4943_v7 }
  0xf5   : > { %v708_v5 = vmul.f32 %v676_v2, %v7016_v49  ;;  %v725_v57 = vadd.f32 %v709_v18, %v693_v8  ;;  %v1663_v10 = vmul.f32 %v7022_v0, %v4741_v16  ;;  %v7025_v52 = vpack.c.bf16 %v7023_v39, %v7024_v19  ;;  %v7031_v39 = vld [vmem:[#allocation67_spill] sm:$0xff] }
  0xf6   : > { %v1632_v13 = vsel %vm473_vm0, %v7020_v38, %v7018_v3  ;;  %v7027_v18 = vpack.c.bf16 %v4949_v35, %v4947_v28  ;;  %v7029_v28 = vld [vmem:[#allocation22_spill] sm:$0xff] }
  0xf8   : > { %1711 = vrot.lane.b32.xlu2 %v1667_v20, %s4137_s9  ;;  %1717 = vrot.lane.b32.xlu0 %v1670_v40, %s4137_s9  ;;  %v724_v20 = vadd.f32 %v708_v5, %v692_v34  ;;  %v1664_v40 = vmul.f32 %v1632_v13, %v4760_v11  ;;  %v5151_v11 = vpop.permute.xlu1 %1143 }
  0xf9   : > { %1267 = vrot.lane.b32.xlu1 %v1220_v36, %s4137_s9  ;;  %3351 = vmatmul.msk.bf16.vlgmr.msra.gmra.mxu0 %vm746_vm1, %v738_v12  ;;  %v5137_v36 = vpop.permute.xlu0 %1141  ;;  %v7021_v12 = vld [vmem:[#allocation59_spill] sm:$0xff]  ;;  %v5153_v54 = vpop.permute.xlu2 %1153  ;;  %v1190_v7 = vmul.f32 %v5151_v11, %v6994_v53  ;;  %v1191_v53 = vmul.f32 %v5141_v56, %v7013_v27 }
  0xfa   : > { %v1665_v17 = vmul.f32 %v7021_v12, %v4683_v24  ;;  %v739_v4 = vpack.c.bf16 %v725_v57, %v724_v20  ;;  %v1189_v6 = vmul.f32 %v5137_v36, %v6993_v32  ;;  %v7028_v57 = vld [vmem:[#allocation23_spill] sm:$0xff] }
 0x100   : > { %1709 = vrot.lane.b32.xlu2 %v1666_v55, %s4137_s9  ;;  %1713 = vrot.lane.b32.xlu0 %v1668_v22, %s4137_s9  ;;  %v5161_v2 = vpop.permute.xlu1 %1149 }
 0x101   : > { %1715 = vrot.lane.b32.xlu1 %v1669_v9, %s4137_s9  ;;  %v5148_v58 = vpop.permute.xlu0 %1147  ;;  %v5163_v55 = vpop.permute.xlu2 %1159  ;;  %v1193_v35 = vmul.f32 %v5161_v2, %v7029_v28  ;;  %v7035_v28 = vld [vmem:[#allocation28_spill] sm:$0xff] }
 0x102   : > { %v1192_v32 = vmul.f32 %v5148_v58, %v7015_v29  ;;  %v7033_v29 = vld [vmem:[#allocation24_spill] sm:$0xff] }
 0x108   : > { %1705 = vrot.lane.b32.xlu2 %v1664_v40, %s4137_s9  ;;  %v5167_v25 = vpop.permute.xlu1 %1155 }
 0x109   : > { %1707 = vrot.lane.b32.xlu1 %v1665_v17, %s4137_s9  ;;  %3352 = vmatmul.msk.bf16.gmra.mxu0 %vm746_vm1, %v739_v4  ;;  %v5155_v24 = vpop.permute.xlu0 %1151  ;;  %v5169_v22 = vpop.permute.xlu2 %1165  ;;  %v1196_v27 = vmul.f32 %v5167_v25, %v6958_v33  ;;  %v1198_v33 = vmul.f32 %v5163_v55, %v6960_v14 }
 0x10a   : > { %v1194_v40 = vmul.f32 %v5155_v24, %v7028_v57  ;;  %v7034_v57 = vld [vmem:[#allocation29_spill] sm:$0xff] }
 0x110   : > { %v5177_v23 = vpop.permute.xlu1 %1161 }
 0x111   : > { %1703 = vrot.lane.b32.xlu1 %v1663_v10, %s4137_s9  ;;  %v5165_v16 = vpop.permute.xlu0 %1157  ;;  %v5179_v34 = vpop.permute.xlu2 %1171  ;;  %v7030_v10 = vld [vmem:[#allocation68_spill] sm:$0xff] }
 0x112   : > { %v7032_v19 = vpack.c.bf16 %v7030_v10, %v7031_v39 }
 0x118   : > { %v5183_v8 = vpop.permute.xlu1 %1167 }
 0x119   : > { %3353 = vmatmul.msk.bf16.gmra.mxu0 %vm746_vm1, %v7025_v52  ;;  %v5175_v9 = vpop.permute.xlu0 %1163  ;;  %v1202_v14 = vmul.f32 %v5183_v8, %v6965_v43 }
 0x121   : > { %v5181_v47 = vpop.permute.xlu0 %1169 }
 0x128   : > { %v1242_v5 = vpop.permute.xlu2 %1241 }
 0x129   : > { %3354 = vmatmul.msk.bf16.gmra.mxu0 %vm746_vm1, %v7026_v48  ;;  %v1287_v52 = vadd.f32 %v1242_v5, %v1191_v53  ;;  %v1197_v53 = vmul.f32 %v5165_v16, %v6959_v44  ;;  %v1201_v44 = vmul.f32 %v5169_v22, %v6964_v31  ;;  %v1204_v31 = vmul.f32 %v5179_v34, %v6969_v61 }
 0x132   : > { %v1248_v38 = vpop.permute.xlu2 %1247 }
 0x133   : > { %v1290_v17 = vadd.f32 %v1248_v38, %v1194_v40  ;;  %v1200_v40 = vmul.f32 %v5175_v9, %v7034_v57 }
 0x139   : > { %3355 = vmatmul.msk.bf16.gmra.mxu0 %vm746_vm1, %v7027_v18 }
 0x141   : > { %v1240_v37 = vpop.permute.xlu0 %1239 }
 0x142   : > { %v1286_v3 = vadd.f32 %v1240_v37, %v1190_v7  ;;  %v1238_v45 = vpop.permute.xlu1 %1237  ;;  %v1254_v7 = vpop.permute.xlu2 %1253  ;;  %v1195_v37 = vmul.f32 %v5153_v54, %v7033_v29  ;;  %v1203_v29 = vmul.f32 %v5181_v47, %v6967_v60  ;;  %v7041_v60 = vld [vmem:[#allocation15_spill] sm:$0xff] }
 0x143   : > { %v1285_v13 = vadd.f32 %v1238_v45, %v1189_v6  ;;  %v1654_v59 = vmul.f32 %v7041_v60, %v5179_v34  ;;  %v7046_v34 = vld [vmem:[#allocation55_spill] sm:$0xff] }
 0x145   : > { %v1301_v20 = vpack.c.bf16 %v1286_v3, %v1285_v13 }
 0x147   : > { %1317 = vrot.lane.b32.xlu0 %v1301_v20, %s4137_s9 }
 0x149   : > { %3356 = vmatmul.msk.bf16.gmra.mxu0 %vm746_vm1, %v7032_v19 }
 0x14a   : > { %v1246_v12 = vpop.permute.xlu0 %1245  ;;  %v1260_v5 = vpop.permute.xlu2 %1259 }
 0x14b   : > { %v1289_v4 = vadd.f32 %v1246_v12, %v1193_v35  ;;  %v1244_v0 = vpop.permute.xlu1 %1243  ;;  %v1199_v35 = vmul.f32 %v5177_v23, %v7035_v28  ;;  %v1296_v12 = vadd.f32 %v1260_v5, %v1200_v40 }
 0x14c   : > { %v1288_v48 = vadd.f32 %v1244_v0, %v1192_v32  ;;  %v1293_v0 = vadd.f32 %v1254_v7, %v1197_v53  ;;  %v7043_v53 = vld [vmem:[#allocation63_spill] sm:$0xff] }
 0x14d   : > { %v1303_v18 = vpack.c.bf16 %v1290_v17, %v1289_v4 }
 0x14e   : > { %v1302_v6 = vpack.c.bf16 %v1288_v48, %v1287_v52 }
 0x14f   : > { %1321 = vrot.lane.b32.xlu1 %v1303_v18, %s4137_s9 }
 0x150   : > { %1319 = vrot.lane.b32.xlu2 %v1302_v6, %s4137_s9  ;;  %v7037_v6 = vld [vmem:[#allocation46_spill] sm:$0xff] }
 0x152   : > { %v1252_v3 = vpop.permute.xlu0 %1251  ;;  %v1266_v43 = vpop.permute.xlu2 %1265 }
 0x153   : > { %v1292_v45 = vadd.f32 %v1252_v3, %v1196_v27  ;;  %v1250_v38 = vpop.permute.xlu1 %1249  ;;  %v1662_v27 = vmul.f32 %v7037_v6, %v4657_v42  ;;  %v7038_v3 = vld [vmem:[#allocation64_spill] sm:$0xff] }
 0x154   : > { %v1291_v13 = vadd.f32 %v1250_v38, %v1195_v37 }
 0x156   : > { %v1304_v20 = vpack.c.bf16 %v1292_v45, %v1291_v13  ;;  %v7039_v45 = vld [vmem:[#allocation52_spill] sm:$0xff] }
 0x157   : > { %v1659_v38 = vmul.f32 %v7039_v45, %v7038_v3 }
 0x158   : > { %1323 = vrot.lane.b32.xlu0 %v1304_v20, %s4137_s9  ;;  %v7040_v20 = vld [vmem:[#allocation42_spill] sm:$0xff] }
 0x159   : > { %3357 = vmatmul.msk.bf16.gmra.mxu0 %vm746_vm1, %v744_v50  ;;  %v1661_v50 = vmul.f32 %v7036_v62, %v4652_v15  ;;  %v1299_v15 = vadd.f32 %v1266_v43, %v1203_v29  ;;  %v1655_v5 = vmul.f32 %v7040_v20, %v4845_v26  ;;  %v7044_v26 = vld [vmem:[#allocation53_spill] sm:$0xff] }
 0x15a   : > { %v1258_v32 = vpop.permute.xlu0 %1257  ;;  %v7053_v43 = vld [vmem:[#allocation13_spill] sm:$0xff] }
 0x15b   : > { %v1295_v17 = vadd.f32 %v1258_v32, %v1199_v35  ;;  %v1256_v4 = vpop.permute.xlu1 %1255  ;;  %v1712_v35 = vpop.permute.xlu2 %1711  ;;  %v1660_v32 = vmul.f32 %v7044_v26, %v7043_v53  ;;  %v3421_v53 = vld [vmem:[%s5297_s27] sm:$0xff] }
 0x15c   : > { %v1294_v10 = vadd.f32 %v1256_v4, %v1198_v33 }
 0x15d   : > { %v1306_v39 = vpack.c.bf16 %v1296_v12, %v1295_v17  ;;  %v7045_v17 = vld [vmem:[#allocation54_spill] sm:$0xff] }
 0x15e   : > { %v1305_v19 = vpack.c.bf16 %v1294_v10, %v1293_v0  ;;  %v1657_v4 = vmul.f32 %v7045_v17, %v7016_v49  ;;  %v1658_v0 = vmul.f32 %v7046_v34, %v4859_v41  ;;  %v7049_v49 = vld [vmem:[#allocation43_spill] sm:$0xff]  ;;  %v7050_v41 = vld [vmem:[#allocation6_spill] sm:$0xff] }
 0x15f   : > { %1327 = vrot.lane.b32.xlu1 %v1306_v39, %s4137_s9  ;;  %v7047_v39 = vld [vmem:[#allocation17_spill] sm:$0xff] }
 0x160   : > { %1325 = vrot.lane.b32.xlu2 %v1305_v19, %s4137_s9  ;;  %v1652_v19 = vmul.f32 %v7047_v39, %v5183_v8 }
 0x162   : > { %v1264_v52 = vpop.permute.xlu0 %1263 }
 0x163   : > { %v1298_v48 = vadd.f32 %v1264_v52, %v1202_v14  ;;  %v1262_v18 = vpop.permute.xlu1 %1261  ;;  %v7048_v14 = vld [vmem:[#allocation16_spill] sm:$0xff] }
 0x164   : > { %v1297_v46 = vadd.f32 %v1262_v18, %v1201_v44  ;;  %v1651_v44 = vmul.f32 %v7048_v14, %v5169_v22  ;;  %v7052_v22 = vld [vmem:[#allocation7_spill] sm:$0xff] }
 0x166   : > { %v1307_v7 = vpack.c.bf16 %v1298_v48, %v1297_v46  ;;  %v1747_v48 = vadd.f32 %v1712_v35, %v1651_v44  ;;  %v1656_v46 = vmul.f32 %v7049_v49, %v4835_v21  ;;  %v3422_v35 = vld [vmem:[%s5297_s27 + $0x8] sm:$0xff] }
 0x167   : > { %1699 = vrot.lane.b32.xlu1 %v1661_v50, %s4137_s9  ;;  %v1647_v50 = vmul.f32 %v7050_v41, %v5165_v16 }
 0x168   : > { %1701 = vrot.lane.b32.xlu2 %v1662_v27, %s4137_s9  ;;  %1329 = vrot.lane.b32.xlu0 %v1307_v7, %s4137_s9  ;;  %v7051_v7 = vld [vmem:[#allocation12_spill] sm:$0xff]  ;;  %v1648_v27 = vmul.f32 %v7052_v22, %v5163_v55 }
 0x169   : > { %3358 = vmatmul.msk.bf16.gmra.mxu0 %vm746_vm1, %v745_v1  ;;  %v1653_v1 = vmul.f32 %v7042_v51, %v5181_v47  ;;  %v1710_v47 = vpop.permute.xlu2 %1709  ;;  %v1649_v8 = vmul.f32 %v7051_v7, %v5177_v23  ;;  %v3425_v51 = vld [vmem:[%s5297_s27 + $0x20] sm:$0xff] }
 0x16a   : > { %v1718_v61 = vpop.permute.xlu0 %1717 }
 0x16b   : > { %v1268_v37 = vpop.permute.xlu1 %1267  ;;  %v1750_v40 = vadd.f32 %v1718_v61, %v1654_v59 }
 0x16c   : > { %v1300_v42 = vadd.f32 %v1268_v37, %v1204_v31  ;;  %v1650_v31 = vmul.f32 %v7053_v43, %v5175_v9  ;;  %v3428_v9 = vld [vmem:[%s5297_s27 + $0x38] sm:$0xff] }
 0x16d   : > { %1012 = vmatpush.bf16.msra.mxu1 %v3428_v9  ;;  %1526 = vmatpush.bf16.msra.mxu3 %v3428_v9 }
 0x16e   : > { %v1308_v13 = vpack.c.bf16 %v1300_v42, %v1299_v15  ;;  %v1746_v37 = vadd.f32 %v1710_v47, %v1650_v31 }
 0x16f   : > { %1695 = vrot.lane.b32.xlu1 %v1659_v38, %s4137_s9  ;;  %v5303_v38 = vld [vmem:[%s4250_s29] sm:$0xff] }
 0x170   : > { %1687 = vrot.lane.b32.xlu0 %v1655_v5, %s4137_s9  ;;  %1331 = vrot.lane.b32.xlu2 %v1308_v13, %s4137_s9  ;;  %v3427_v13 = vld [vmem:[%s5297_s27 + $0x30] sm:$0xff]  ;;  %v3426_v5 = vld [vmem:[%s5297_s27 + $0x28] sm:$0xff] }
 0x171   : > { %v1706_v6 = vpop.permute.xlu2 %1705  ;;  %1013 = vmatpush.bf16.msra.mxu1 %v3427_v13  ;;  %1527 = vmatpush.bf16.msra.mxu3 %v3427_v13 }
 0x172   : > { %v1714_v10 = vpop.permute.xlu0 %1713  ;;  %v1744_v16 = vadd.f32 %v1706_v6, %v1648_v27  ;;  %v7059_v27 = vld [vmem:[#allocation11_spill] sm:$0xff] }
 0x173   : > { %v1716_v57 = vpop.permute.xlu1 %1715  ;;  %v1748_v52 = vadd.f32 %v1714_v10, %v1652_v19  ;;  %v1642_v43 = vmul.f32 %v7059_v27, %v5148_v58  ;;  %v4075_v27 = vld [vmem:[%s4250_s29 + $0x20] sm:$0xff] }
 0x174   : > { %v1749_v28 = vadd.f32 %v1716_v57, %v1653_v1  ;;  %v3424_v1 = vld [vmem:[%s5297_s27 + $0x18] sm:$0xff] }
 0x175   : > { %v1757_v18 = vpack.c.bf16 %v1748_v52, %v1747_v48  ;;  %1014 = vmatpush.bf16.msra.mxu1 %v3426_v5  ;;  %1528 = vmatpush.bf16.msra.mxu3 %v3426_v5  ;;  %v7056_v48 = vld [vmem:[#allocation3_spill] sm:$0xff] }
 0x176   : > { %v1758_v33 = vpack.c.bf16 %v1750_v40, %v1749_v28  ;;  %v5283_v23 = vpop.f32.mrf.mxu0  ;;  %v3423_v40 = vld [vmem:[%s5297_s27 + $0x10] sm:$0xff] }
 0x178   : > { %1697 = vrot.lane.b32.xlu2 %v1660_v32, %s4137_s9  ;;  %2029 = vrot.lane.b32.xlu1 %v1758_v33, %s4137_s9 }
 0x179   : > { %1015 = vmatpush.bf16.msra.mxu1 %v3425_v51  ;;  %1529 = vmatpush.bf16.msra.mxu3 %v3425_v51 }
 0x17b   : > { %v1708_v12 = vpop.permute.xlu1 %1707 }
 0x17c   : > { %v1745_v21 = vadd.f32 %v1708_v12, %v1649_v8 }
 0x17d   : > { %1016 = vmatpush.bf16.msra.mxu1 %v3424_v1  ;;  %1530 = vmatpush.bf16.msra.mxu3 %v3424_v1  ;;  %v1640_v1 = vmul.f32 %v6985_v63, %v5151_v11  ;;  %v4073_v11 = vld [vmem:[%s4250_s29 + $0x10] sm:$0xff] }
 0x17e   : > { %v1756_v15 = vpack.c.bf16 %v1746_v37, %v1745_v21  ;;  %v5287_v3 = vpop.f32.mrf.mxu0 }
 0x180   : > { %1691 = vrot.lane.b32.xlu2 %v1657_v4, %s4137_s9  ;;  %1693 = vrot.lane.b32.xlu1 %v1658_v0, %s4137_s9  ;;  %v7054_v4 = vld [vmem:[#allocation8_spill] sm:$0xff]  ;;  %v7055_v0 = vld [vmem:[#allocation9_spill] sm:$0xff] }
 0x181   : > { %1017 = vmatpush.bf16.msra.mxu1 %v3423_v40  ;;  %1531 = vmatpush.bf16.msra.mxu3 %v3423_v40  ;;  %v1645_v34 = vmul.f32 %v7054_v4, %v5153_v54  ;;  %v1646_v47 = vmul.f32 %v7055_v0, %v5167_v25  ;;  %v7057_v54 = vld [vmem:[#allocation2_spill] sm:$0xff] }
 0x182   : > { %v1643_v49 = vmul.f32 %v7057_v54, %v5161_v2  ;;  %v7058_v2 = vld [vmem:[#allocation10_spill] sm:$0xff] }
 0x183   : > { %v1704_v62 = vpop.permute.xlu1 %1703  ;;  %v1641_v22 = vmul.f32 %v7058_v2, %v5141_v56 }
 0x184   : > { %v1743_v29 = vadd.f32 %v1704_v62, %v1647_v50 }
 0x185   : > { %1018 = vmatpush.bf16.msra.mxu1 %v3422_v35  ;;  %1532 = vmatpush.bf16.msra.mxu3 %v3422_v35 }
 0x186   : > { %v1755_v42 = vpack.c.bf16 %v1744_v16, %v1743_v29  ;;  %v5290_v55 = vpop.f32.mrf.mxu0  ;;  %v1775_v16 = vrot.slane %v5303_v38, 4 }
 0x188   : > { %2027 = vrot.lane.b32.xlu2 %v1757_v18, %s4137_s9  ;;  %1689 = vrot.lane.b32.xlu1 %v1656_v46, %s4137_s9  ;;  %v1644_v18 = vmul.f32 %v7056_v48, %v5155_v24  ;;  %v5362_v56 = vunpack.c.l.bf16 %v1775_v16 }
 0x189   : > { %1019 = vmatpush.bf16.msra.mxu1 %v3421_v53  ;;  %1533 = vmatpush.bf16.msra.mxu3 %v3421_v53 }
 0x18e   : > { %v5300_v45 = vpop.f32.mrf.mxu0 }
 0x190   : > { %2025 = vrot.lane.b32.xlu2 %v1756_v15, %s4137_s9  ;;  %2023 = vrot.lane.b32.xlu1 %v1755_v42, %s4137_s9  ;;  %v4072_v15 = vld [vmem:[%s4250_s29 + $0x8] sm:$0xff] }
 0x191   : > { %v1776_v42 = vrot.slane %v4072_v15, 4 }
 0x193   : > { %v5364_v58 = vunpack.c.l.bf16 %v1776_v42 }
 0x195   : > { %v3655_v5 = vpack.i.bf16 %v5364_v58, %v5362_v56 }
 0x196   : > { %v5309_v61 = vpop.f32.mrf.mxu0 }
 0x19a   : > { %846 = vmax.xlane.f32.xlu0 %v5287_v3 }
 0x19e   : > { %v5317_v57 = vpop.f32.mrf.mxu0 }
 0x1a6   : > { %v5322_v26 = vpop.f32.mrf.mxu0 }
 0x1aa   : > { %v1320_v20 = vpop.permute.xlu2 %1319 }
 0x1ae   : > { %2369 = vrot.lane.b32.xlu0 %v5303_v38, %s4137_s9  ;;  %v5327_v17 = vpop.f32.mrf.mxu0 }
 0x1b6   : > { %v5336_v52 = vpop.f32.mrf.mxu0 }
 0x1b9   : > { %v1318_v60 = vpop.permute.xlu0 %1317 }
 0x1ba   : > { %848 = vmax.xlane.f32.xlu1 %v5290_v55  ;;  %3391 = vmatmul.msk.bf16.vlgmr.msra.gmra.mxu2 %vm746_vm1, %v1318_v60  ;;  %v5313_v59 = vpop.permute.xlu2 %1325 }
 0x1c1   : > { %v1322_v33 = vpop.permute.xlu1 %1321 }
 0x1c2   : > { %v1702_v28 = vpop.permute.xlu2 %1701 }
 0x1c3   : > { %v1742_v39 = vadd.f32 %v1702_v28, %v1646_v47  ;;  %v1639_v28 = vmul.f32 %v6983_v30, %v5137_v36  ;;  %v1777_v30 = vrot.slane %v4073_v11, 4  ;;  %v4074_v36 = vld [vmem:[%s4250_s29 + $0x18] sm:$0xff] }
 0x1c4   : > { %v1778_v4 = vrot.slane %v4074_v36, 4 }
 0x1c6   : > { %v5403_v0 = vunpack.c.l.bf16 %v1778_v4 }
 0x1ca   : > { %3392 = vmatmul.msk.bf16.gmra.mxu2 %vm746_vm1, %v1320_v20  ;;  %v5325_v32 = vpop.permute.xlu2 %1331  ;;  %v1324_v7 = vpop.permute.xlu0 %1323 }
 0x1d1   : > { %v1328_v12 = vpop.permute.xlu1 %1327 }
 0x1d2   : > { %v1698_v19 = vpop.permute.xlu2 %1697 }
 0x1d3   : > { %v1740_v46 = vadd.f32 %v1698_v19, %v1644_v18 }
 0x1d8   : > { %854 = vmax.xlane.f32.xlu0 %v5317_v57 }
 0x1d9   : > { %v1700_v10 = vpop.permute.xlu1 %1699 }
 0x1da   : > { %v1741_v14 = vadd.f32 %v1700_v10, %v1645_v34  ;;  %3393 = vmatmul.msk.bf16.gmra.mxu2 %vm746_vm1, %v1322_v33  ;;  %v1692_v41 = vpop.permute.xlu2 %1691  ;;  %v5401_v34 = vunpack.c.l.bf16 %v1777_v30 }
 0x1db   : > { %v1737_v31 = vadd.f32 %v1692_v41, %v1641_v22 }
 0x1dc   : > { %v1754_v44 = vpack.c.bf16 %v1742_v39, %v1741_v14 }
 0x1de   : > { %2021 = vrot.lane.b32.xlu2 %v1754_v44, %s4137_s9  ;;  %v5415_v44 = vpop.f32.mrf.mxu0 }
 0x1e0   : > { %860 = vmax.xlane.f32.xlu0 %v5336_v52 }
 0x1e1   : > { %v1696_v25 = vpop.permute.xlu1 %1695 }
 0x1e2   : > { %v1739_v62 = vadd.f32 %v1696_v25, %v1643_v49  ;;  %v2028_v24 = vpop.permute.xlu2 %2027 }
 0x1e3   : > { %v5355_v37 = vsel %vm746_vm1, %v2028_v24, 0 }
 0x1e4   : > { %v1753_v50 = vpack.c.bf16 %v1740_v46, %v1739_v62 }
 0x1e6   : > { %2019 = vrot.lane.b32.xlu1 %v1753_v50, %s4137_s9 }
 0x1ea   : > { %v2030_v8 = vpop.permute.xlu1 %2029  ;;  %3394 = vmatmul.msk.bf16.gmra.mxu2 %vm746_vm1, %v1324_v7  ;;  %v2026_v13 = vpop.permute.xlu2 %2025 }
 0x1eb   : > { %v5346_v6 = vsel %vm746_vm1, %v2030_v8, 0  ;;  %v5369_v38 = vsel %vm746_vm1, %v2026_v13, 0  ;;  %v5442_v13 = vpop.f32.mrf.mxu0 }
 0x1ec   : > { %2079 = vmatpush.bf16.xpose.msrb.mxu1 %v5346_v6  ;;  %2657 = vmatpush.bf16.xpose.msrb.mxu0 %v5346_v6 }
 0x1f2   : > { %v1694_v21 = vpop.permute.xlu1 %1693 }
 0x1f3   : > { %v1738_v29 = vadd.f32 %v1694_v21, %v1642_v43  ;;  %v1779_v43 = vrot.slane %v4075_v27, 4 }
 0x1f4   : > { %2080 = vmatpush.bf16.xpose.msrb.mxu1 %v5355_v37  ;;  %2658 = vmatpush.bf16.xpose.msrb.mxu0 %v5355_v37 }
 0x1f5   : > { %v1752_v9 = vpack.c.bf16 %v1738_v29, %v1737_v31  ;;  %v4076_v31 = vld [vmem:[%s4250_s29 + $0x28] sm:$0xff] }
 0x1f6   : > { %v1780_v21 = vrot.slane %v4076_v31, 4 }
 0x1f7   : > { %2017 = vrot.lane.b32.xlu1 %v1752_v9, %s4137_s9 }
 0x1f8   : > { %v5438_v42 = vunpack.c.l.bf16 %v1780_v21 }
 0x1fa   : > { %v1690_v20 = vpop.permute.xlu1 %1689  ;;  %3395 = vmatmul.msk.bf16.gmra.mxu2 %vm746_vm1, %v5313_v59  ;;  %v1330_v59 = vpop.permute.xlu0 %1329 }
 0x1fb   : > { %v1736_v35 = vadd.f32 %v1690_v20, %v1640_v1  ;;  %v5446_v20 = vpop.f32.mrf.mxu0 }
 0x1fc   : > { %2081 = vmatpush.bf16.xpose.msrb.mxu1 %v5369_v38  ;;  %2659 = vmatpush.bf16.xpose.msrb.mxu0 %v5369_v38 }
 0x1ff   : > { %3656 = vrot.lane.b32.xlu1 %v3655_v5, %s4135_s24 }
 0x202   : > { %v2024_v60 = vpop.permute.xlu1 %2023  ;;  %v1688_v40 = vpop.permute.xlu0 %1687 }
 0x203   : > { %v5377_v51 = vsel %vm746_vm1, %v2024_v60, 0  ;;  %v1735_v33 = vadd.f32 %v1688_v40, %v1639_v28 }
 0x204   : > { %2082 = vmatpush.bf16.xpose.msrb.mxu1 %v5377_v51  ;;  %2660 = vmatpush.bf16.xpose.msrb.mxu0 %v5377_v51 }
 0x205   : > { %v1751_v53 = vpack.c.bf16 %v1736_v35, %v1735_v33 }
 0x207   : > { %844 = vmax.xlane.f32.xlu2 %v5283_v23 }
 0x20a   : > { %3396 = vmatmul.msk.bf16.gmra.mxu2 %vm746_vm1, %v1328_v12 }
 0x20d   : > { %v847_v48 = vpop.xlane.xlu0 %846 }
 0x20e   : > { %v877_v18 = vsub.f32 %v5287_v3, %v847_v48 }
 0x210   : > { %v894_v54 = vmul.f32 1.442695, %v877_v18 }
 0x212   : > { %3815 = vpow2.f32 %v894_v54 }
 0x218   : > { %v3816_v24 = vpop.eup %3815 }
 0x21a   : > { %3397 = vmatmul.msk.bf16.gmra.mxu2 %vm746_vm1, %v1330_v59 }
 0x21f   : > { %2371 = vrot.lane.b32.xlu2 %v4072_v15, %s4137_s9  ;;  %v5436_v15 = vunpack.c.l.bf16 %v1779_v43 }
 0x220   : > { %v2370_v62 = vpop.permute.xlu0 %2369 }
 0x221   : > { %v2401_v41 = vrot.slane %v2370_v62, 4  ;;  %v3675_v9 = vpack.i.bf16 %v5438_v42, %v5436_v15 }
 0x223   : > { %v5421_v7 = vunpack.c.l.bf16 %v2401_v41 }
 0x227   : > { %2015 = vrot.lane.b32.xlu2 %v1751_v53, %s4137_s9 }
 0x229   : > { %856 = vmax.xlane.f32.xlu1 %v5322_v26 }
 0x22a   : > { %3398 = vmatmul.msk.bf16.gmra.mxu2 %vm746_vm1, %v5325_v32  ;;  %v3665_v32 = vpack.i.bf16 %v5403_v0, %v5401_v34 }
 0x22d   : > { %v5408_v47 = vpop.xlane.xlu1 %848 }
 0x238   : > { %v2022_v12 = vpop.permute.xlu2 %2021 }
 0x239   : > { %v5394_v63 = vsel %vm746_vm1, %v2022_v12, 0 }
 0x23a   : > { %2083 = vmatpush.bf16.xpose.msrb.mxu1 %v5394_v63  ;;  %2661 = vmatpush.bf16.xpose.msrb.mxu0 %v5394_v63 }
 0x242   : > { %2373 = vrot.lane.b32.xlu1 %v4073_v11, %s4137_s9 }
 0x24a   : > { %3666 = vrot.lane.b32.xlu1 %v3665_v32, %s4135_s24 }
 0x250   : > { %850 = vmax.xlane.f32.xlu2 %v5300_v45 }
 0x258   : > { %v2020_v10 = vpop.permute.xlu1 %2019  ;;  %852 = vmax.xlane.f32.xlu2 %v5309_v61 }
 0x259   : > { %v2062_v39 = vsel %vm746_vm1, %v2020_v10, 0 }
 0x25a   : > { %2084 = vmatpush.bf16.xpose.msrb.mxu1 %v2062_v39  ;;  %2662 = vmatpush.bf16.xpose.msrb.mxu0 %v2062_v39 }
 0x269   : > { %v2018_v19 = vpop.permute.xlu1 %2017 }
 0x26a   : > { %v2059_v14 = vsel %vm746_vm1, %v2018_v19, 0 }
 0x26b   : > { %2085 = vmatpush.bf16.xpose.msrb.mxu1 %v2059_v14  ;;  %2663 = vmatpush.bf16.xpose.msrb.mxu0 %v2059_v14 }
 0x270   : > { %3661 = vrot.lane.b32.xlu2 %v3655_v5, %s4136_s25 }
 0x271   : > { %v5466_v1 = vpop.permute.xlu1 %3656 }
 0x274   : > { %862 = vmax.xlane.f32.xlu1 %v5415_v44 }
 0x278   : > { %2375 = vrot.lane.b32.xlu2 %v4074_v36, %s4137_s9  ;;  %v5475_v36 = vpop.f32.mrf.mxu2 }
 0x27a   : > { %v845_v49 = vpop.xlane.xlu2 %844 }
 0x27b   : > { %v876_v25 = vsub.f32 %v5283_v23, %v845_v49 }
 0x27d   : > { %v892_v46 = vmul.f32 1.442695, %v876_v25  ;;  %v5495_v25 = vld [vmem:[%s4250_s29 + $0x30] sm:$0xff] }
 0x27f   : > { %3817 = vpow2.f32 %v892_v46 }
 0x282   : > { %v2372_v50 = vpop.permute.xlu2 %2371 }
 0x283   : > { %v2402_v8 = vrot.slane %v2372_v50, 4 }
 0x285   : > { %v5423_v2 = vpop.eup %3817  ;;  %v5425_v3 = vunpack.c.l.bf16 %v2402_v8 }
 0x286   : > { %v956_v22 = vpack.c.bf16 %v3816_v24, %v5423_v2 }
 0x287   : > { %v3685_v23 = vpack.i.bf16 %v5425_v3, %v5421_v7 }
 0x288   : > { %1020 = vmatmul.bf16.vlgmr.msra.gmra.mxu1 %v956_v22 }
 0x289   : > { %3686 = vrot.lane.b32.xlu0 %v3685_v23, %s4135_s24 }
 0x28a   : > { %v2016_v29 = vpop.permute.xlu2 %2015 }
 0x28b   : > { %v2056_v16 = vsel %vm746_vm1, %v2016_v29, 0 }
 0x28c   : > { %2086 = vmatpush.bf16.xpose.msrb.mxu1 %v2056_v16  ;;  %2664 = vmatpush.bf16.xpose.msrb.mxu0 %v2056_v16 }
 0x28d   : > { %2377 = vrot.lane.b32.xlu1 %v4075_v27, %s4137_s9 }
 0x294   : > { %3468 = vmatpush.bf16.xpose.msra.mxu1 %v5346_v6  ;;  %v5451_v6 = vpop.f32.mrf.mxu0 }
 0x295   : > { %3676 = vrot.lane.b32.xlu1 %v3675_v9, %s4135_s24 }
 0x29c   : > { %3469 = vmatpush.bf16.xpose.msra.mxu1 %v5355_v37  ;;  %v5454_v5 = vpop.f32.mrf.mxu0 }
 0x2a1   : > { %858 = vmax.xlane.f32.xlu2 %v5327_v17 }
 0x2a4   : > { %3470 = vmatpush.bf16.xpose.msra.mxu1 %v5369_v38  ;;  %v5458_v37 = vpop.f32.mrf.mxu0  ;;  %v878_v38 = vsub.f32 %v5290_v55, %v5408_v47  ;;  %v855_v55 = vpop.xlane.xlu0 %854 }
 0x2a5   : > { %v881_v30 = vsub.f32 %v5317_v57, %v855_v55 }
 0x2a6   : > { %v896_v60 = vmul.f32 1.442695, %v878_v38 }
 0x2a7   : > { %v902_v4 = vmul.f32 1.442695, %v881_v30 }
 0x2a8   : > { %3819 = vpow2.f32 %v896_v60 }
 0x2ac   : > { %3471 = vmatpush.bf16.xpose.msra.mxu1 %v5377_v51  ;;  %v5490_v49 = vpop.f32.mrf.mxu0  ;;  %v861_v43 = vpop.xlane.xlu0 %860 }
 0x2ae   : > { %v3820_v33 = vpop.eup %3819 }
 0x2b3   : > { %866 = vmax.xlane.f32.xlu0 %v5446_v20 }
 0x2b4   : > { %3472 = vmatpush.bf16.xpose.msra.mxu1 %v5394_v63  ;;  %v857_v63 = vpop.xlane.xlu1 %856 }
 0x2b5   : > { %v882_v62 = vsub.f32 %v5322_v26, %v857_v63 }
 0x2b7   : > { %v904_v41 = vmul.f32 1.442695, %v882_v62  ;;  %v5554_v62 = vld [vmem:[%s6739_s1 + $0x8] sm:$0xff] }
 0x2b9   : > { %3671 = vrot.lane.b32.xlu2 %v3665_v32, %s4136_s25 }
 0x2bb   : > { %872 = vmax.xlane.f32.xlu0 %v5458_v37 }
 0x2bc   : > { %3473 = vmatpush.bf16.xpose.msra.mxu1 %v2062_v39  ;;  %v2374_v47 = vpop.permute.xlu1 %2373 }
 0x2bf   : > { %868 = vmax.xlane.f32.xlu1 %v5451_v6 }
 0x2c1   : > { %2379 = vrot.lane.b32.xlu2 %v4076_v31, %s4137_s9 }
 0x2c3   : > { %v851_v51 = vpop.xlane.xlu2 %850  ;;  %926 = vadd.xlane.f32.xlu0 %v3816_v24 }
 0x2c4   : > { %3474 = vmatpush.bf16.xpose.msra.mxu1 %v2059_v14  ;;  %v879_v59 = vsub.f32 %v5300_v45, %v851_v51  ;;  %v5480_v14 = vpop.f32.mrf.mxu2  ;;  %v5499_v46 = vpop.permute.xlu1 %3666 }
 0x2c6   : > { %v898_v40 = vmul.f32 1.442695, %v879_v59 }
 0x2c8   : > { %3821 = vpow2.f32 %v898_v40 }
 0x2cb   : > { %v853_v28 = vpop.xlane.xlu2 %852 }
 0x2cc   : > { %3475 = vmatpush.bf16.xpose.msra.mxu1 %v2056_v16  ;;  %v880_v35 = vsub.f32 %v5309_v61, %v853_v28  ;;  %v2403_v61 = vrot.slane %v2374_v47, 4 }
 0x2ce   : > { %v5469_v53 = vpop.eup %3821  ;;  %v900_v12 = vmul.f32 1.442695, %v880_v35  ;;  %v5478_v39 = vunpack.c.l.bf16 %v2403_v61 }
 0x2cf   : > { %v957_v11 = vpack.c.bf16 %v5469_v53, %v3820_v33 }
 0x2d0   : > { %3823 = vpow2.f32 %v900_v12 }
 0x2d1   : > { %1025 = vmatmul.bf16.gmra.mxu1 %v957_v11  ;;  %3825 = vpow2.f32 %v902_v4  ;;  %v5533_v11 = vpop.f32.mrf.mxu2 }
 0x2d2   : > { %3827 = vpow2.f32 %v904_v41 }
 0x2d3   : > { %v5473_v45 = vpop.permute.xlu2 %3661 }
 0x2d6   : > { %v3824_v32 = vpop.eup %3823 }
 0x2d7   : > { %932 = vadd.xlane.f32.xlu0 %v3824_v32  ;;  %v3826_v57 = vpop.eup %3825 }
 0x2d8   : > { %3691 = vrot.lane.b32.xlu1 %v3685_v23, %s4136_s25  ;;  %v958_v18 = vpack.c.bf16 %v3826_v57, %v3824_v32  ;;  %v5506_v27 = vpop.eup %3827 }
 0x2db   : > { %v2376_v10 = vpop.permute.xlu2 %2375 }
 0x2dc   : > { %v2404_v19 = vrot.slane %v2376_v10, 4 }
 0x2de   : > { %v5482_v48 = vunpack.c.l.bf16 %v2404_v19 }
 0x2df   : > { %1408 = vmax.xlane.f32.xlu0 %v5480_v14 }
 0x2e0   : > { %v5487_v54 = vpack.i.bf16 %v5482_v48, %v5478_v39 }
 0x2e1   : > { %1030 = vmatmul.bf16.gmra.mxu1 %v958_v18 }
 0x2e7   : > { %v863_v22 = vpop.xlane.xlu1 %862 }
 0x2e8   : > { %v885_v21 = vsub.f32 %v5415_v44, %v863_v22 }
 0x2ea   : > { %864 = vmax.xlane.f32.xlu2 %v5442_v13 }
 0x2fb   : > { %v3687_v63 = vpop.permute.xlu0 %3686 }
 0x2fc   : > { %v3689_v4 = vunpack.i.h.bf16 %v3687_v63  ;;  %v3688_v32 = vunpack.i.l.bf16 %v3687_v63 }
 0x2ff   : > { %v2378_v26 = vpop.permute.xlu1 %2377 }
 0x300   : > { %v2405_v16 = vrot.slane %v2378_v26, 4 }
 0x302   : > { %874 = vmax.xlane.f32.xlu1 %v5490_v49  ;;  %3681 = vrot.lane.b32.xlu2 %v3675_v9, %s4136_s25  ;;  %v910_v9 = vmul.f32 1.442695, %v885_v21  ;;  %v5511_v51 = vunpack.c.l.bf16 %v2405_v16 }
 0x307   : > { %v5527_v55 = vpop.permute.xlu1 %3676 }
 0x30a   : > { %928 = vadd.xlane.f32.xlu1 %v3820_v33  ;;  %2381 = vrot.lane.b32.xlu2 %v5495_v25, %s4137_s9  ;;  %v4078_v33 = vld [vmem:[%s4250_s29 + $0x38] sm:$0xff] }
 0x312   : > { %934 = vadd.xlane.f32.xlu1 %v3826_v57  ;;  %v5547_v57 = vld [vmem:[%s6738_s0 + $0x8] sm:$0xff] }
 0x313   : > { %v2578_v18 = vmul.f32 %v5547_v57, %v5425_v3 }
 0x314   : > { %v859_v50 = vpop.xlane.xlu2 %858 }
 0x315   : > { %v883_v8 = vsub.f32 %v5327_v17, %v859_v50  ;;  %v884_v17 = vsub.f32 %v5336_v52, %v861_v43  ;;  %v5560_v50 = vld [vmem:[%s6739_s1] sm:$0xff] }
 0x317   : > { %v906_v24 = vmul.f32 1.442695, %v883_v8  ;;  %v908_v60 = vmul.f32 1.442695, %v884_v17  ;;  %v1781_v8 = vrot.slane %v5495_v25, 4 }
 0x319   : > { %3829 = vpow2.f32 %v906_v24  ;;  %v1782_v24 = vrot.slane %v4078_v33, 4  ;;  %v5566_v21 = vunpack.c.l.bf16 %v1781_v8 }
 0x31a   : > { %1406 = vmax.xlane.f32.xlu1 %v5475_v36  ;;  %3831 = vpow2.f32 %v910_v9 }
 0x31b   : > { %3833 = vpow2.f32 %v908_v60  ;;  %v5568_v26 = vunpack.c.l.bf16 %v1782_v24 }
 0x31c   : > { %v5504_v23 = vpop.permute.xlu2 %3671 }
 0x31d   : > { %v3695_v17 = vpack.i.bf16 %v5568_v26, %v5566_v21 }
 0x31f   : > { %v3830_v31 = vpop.eup %3829 }
 0x320   : > { %938 = vadd.xlane.f32.xlu0 %v3830_v31  ;;  %v959_v29 = vpack.c.bf16 %v3830_v31, %v5506_v27  ;;  %v5519_v28 = vpop.eup %3831  ;;  %v5564_v31 = vpop.f32.mrf.mxu2 }
 0x321   : > { %v3834_v52 = vpop.eup %3833 }
 0x322   : > { %1035 = vmatmul.bf16.gmra.mxu1 %v959_v29  ;;  %v960_v35 = vpack.c.bf16 %v5519_v28, %v3834_v52 }
 0x324   : > { %v2380_v38 = vpop.permute.xlu2 %2379 }
 0x325   : > { %v2406_v59 = vrot.slane %v2380_v38, 4 }
 0x326   : > { %v867_v29 = vpop.xlane.xlu0 %866 }
 0x327   : > { %v5513_v40 = vunpack.c.l.bf16 %v2406_v59  ;;  %v887_v16 = vsub.f32 %v5446_v20, %v867_v29 }
 0x328   : > { %v5575_v25 = vpop.f32.mrf.mxu2 }
 0x329   : > { %v5517_v44 = vpack.i.bf16 %v5513_v40, %v5511_v51  ;;  %v914_v9 = vmul.f32 1.442695, %v887_v16 }
 0x32b   : > { %3835 = vpow2.f32 %v914_v9 }
 0x32e   : > { %v873_v63 = vpop.xlane.xlu0 %872 }
 0x332   : > { %1040 = vmatmul.bf16.gmra.mxu1 %v960_v35  ;;  %v5530_v12 = vpop.xlane.xlu1 %868  ;;  %v3836_v35 = vpop.eup %3835 }
 0x333   : > { %2383 = vrot.lane.b32.xlu1 %v4078_v33, %s4137_s9  ;;  %870 = vmax.xlane.f32.xlu2 %v5454_v5 }
 0x334   : > { %3706 = vrot.lane.b32.xlu0 %v5487_v54, %s4135_s24 }
 0x33b   : > { %924 = vadd.xlane.f32.xlu2 %v5423_v2  ;;  %v5540_v2 = vld [vmem:[%s6738_s0] sm:$0xff] }
 0x343   : > { %930 = vadd.xlane.f32.xlu2 %v5469_v53  ;;  %v2577_v53 = vmul.f32 %v5540_v2, %v5421_v7 }
 0x34a   : > { %v3692_v30 = vpop.permute.xlu1 %3691 }
 0x34b   : > { %v3694_v47 = vunpack.i.h.bf16 %v3692_v30  ;;  %v3693_v61 = vunpack.i.l.bf16 %v3692_v30  ;;  %v5580_v30 = vpop.xlane.xlu0 %926 }
 0x34c   : > { %7060 = vst [vmem:[#allocation49_spill] sm:$0xff] %v5580_v30 }
 0x34d   : > { %v2562_v10 = vsel %vm473_vm0, %v3689_v4, %v3694_v47  ;;  %v2561_v19 = vsel %vm473_vm0, %v3688_v32, %v3693_v61  ;;  %v5587_v32 = vld [vmem:[%s4250_s29 + $0x48] sm:$0xff] }
 0x34e   : > { %v2594_v41 = vmul.f32 %v5554_v62, %v2562_v10  ;;  %v2593_v7 = vmul.f32 %v5560_v50, %v2561_v19 }
 0x350   : > { %v2609_v22 = vadd.f32 %v2593_v7, %v2577_v53  ;;  %v2610_v43 = vadd.f32 %v2594_v41, %v2578_v18  ;;  %v5598_v7 = vpop.f32.mrf.mxu2 }
 0x352   : > { %v2625_v3 = vpack.c.bf16 %v2610_v43, %v2609_v22 }
 0x353   : > { %v5582_v4 = vpop.xlane.xlu0 %932 }
 0x354   : > { %3407 = vmatmul.msk.bf16.vlgmr.msrb.gmra.mxu0 %vm746_vm1, %v2625_v3  ;;  %7061 = vst [vmem:[#allocation25_spill] sm:$0xff] %v5582_v4 }
 0x358   : > { %v5608_v22 = vpop.f32.mrf.mxu2 }
 0x35b   : > { %3696 = vrot.lane.b32.xlu2 %v3695_v17, %s4135_s24  ;;  %v1409_v61 = vpop.xlane.xlu0 %1408 }
 0x35c   : > { %v1439_v10 = vsub.f32 %v5480_v14, %v1409_v61 }
 0x35d   : > { %940 = vadd.xlane.f32.xlu1 %v3834_v52  ;;  %v865_v38 = vpop.xlane.xlu2 %864 }
 0x35e   : > { %v886_v60 = vsub.f32 %v5442_v13, %v865_v38  ;;  %1414 = vmax.xlane.f32.xlu0 %v5575_v25  ;;  %v1456_v19 = vmul.f32 1.442695, %v1439_v10  ;;  %v890_v10 = vsub.f32 %v5458_v37, %v873_v63  ;;  %v3664_v37 = vunpack.i.h.bf16 %v5473_v45 }
 0x35f   : > { %v3663_v63 = vunpack.i.l.bf16 %v5473_v45  ;;  %v1951_v45 = vmul.f32 %v5540_v2, %v5362_v56  ;;  %v3674_v56 = vunpack.i.h.bf16 %v5504_v23 }
 0x360   : > { %v912_v59 = vmul.f32 1.442695, %v886_v60 }
 0x362   : > { %3837 = vpow2.f32 %v912_v59 }
 0x363   : > { %3839 = vpow2.f32 %v1456_v19  ;;  %v920_v19 = vmul.f32 1.442695, %v890_v10 }
 0x365   : > { %1412 = vmax.xlane.f32.xlu1 %v5564_v31  ;;  %v5600_v8 = vpop.permute.xlu2 %3681 }
 0x368   : > { %v3838_v33 = vpop.eup %3837 }
 0x369   : > { %944 = vadd.xlane.f32.xlu0 %v3838_v33  ;;  %v961_v20 = vpack.c.bf16 %v3836_v35, %v3838_v33  ;;  %v5602_v24 = vpop.eup %3839 }
 0x36b   : > { %1045 = vmatmul.bf16.gmra.mxu1 %v961_v20 }
 0x36d   : > { %v2382_v43 = vpop.permute.xlu2 %2381 }
 0x36e   : > { %v2407_v3 = vrot.slane %v2382_v43, 4 }
 0x370   : > { %v5618_v59 = vunpack.c.l.bf16 %v2407_v3 }
 0x375   : > { %v875_v52 = vpop.xlane.xlu1 %874 }
 0x37d   : > { %v5584_v13 = vpop.xlane.xlu1 %928  ;;  %2387 = vrot.lane.b32.xlu0 %v5587_v32, %s4137_s9 }
 0x37e   : > { %7062 = vst [vmem:[#allocation26_spill] sm:$0xff] %v5584_v13  ;;  %3701 = vrot.lane.b32.xlu1 %v3695_v17, %s4136_s25  ;;  %v5614_v17 = vpop.f32.mrf.mxu2 }
 0x384   : > { %936 = vadd.xlane.f32.xlu2 %v5506_v27 }
 0x385   : > { %v5593_v47 = vpop.xlane.xlu1 %934 }
 0x386   : > { %7063 = vst [vmem:[#allocation27_spill] sm:$0xff] %v5593_v47 }
 0x38c   : > { %1410 = vmax.xlane.f32.xlu2 %v5533_v11 }
 0x38d   : > { %v1407_v53 = vpop.xlane.xlu1 %1406 }
 0x38e   : > { %v1438_v18 = vsub.f32 %v5475_v36, %v1407_v53  ;;  %v888_v36 = vsub.f32 %v5451_v6, %v5530_v12  ;;  %v5632_v53 = vpop.f32.mrf.mxu1 }
 0x38f   : > { %7064 = vst [vmem:[#allocation58_spill] sm:$0xff] %v5632_v53 }
 0x390   : > { %v1454_v41 = vmul.f32 1.442695, %v1438_v18  ;;  %v916_v16 = vmul.f32 1.442695, %v888_v36 }
 0x392   : > { %3841 = vpow2.f32 %v1454_v41 }
 0x393   : > { %3843 = vpow2.f32 %v916_v16 }
 0x396   : > { %v5644_v43 = vpop.f32.mrf.mxu1 }
 0x397   : > { %7065 = vst [vmem:[#allocation30_spill] sm:$0xff] %v5644_v43 }
 0x398   : > { %v5604_v27 = vpop.eup %3841 }
 0x399   : > { %v1518_v14 = vpack.c.bf16 %v5602_v24, %v5604_v27  ;;  %v5626_v12 = vpop.eup %3843 }
 0x39b   : > { %1534 = vmatmul.bf16.vlgmr.msra.gmra.mxu3 %v1518_v14  ;;  %v3658_v14 = vunpack.i.l.bf16 %v5466_v1 }
 0x39d   : > { %v1935_v3 = vsel %vm473_vm0, %v3658_v14, %v3663_v63 }
 0x39e   : > { %v1967_v16 = vmul.f32 %v5560_v50, %v1935_v3  ;;  %v3669_v50 = vunpack.i.h.bf16 %v5499_v46  ;;  %v1784_v3 = vrot.slane %v5587_v32, 4 }
 0x3a0   : > { %v1938_v2 = vsel %vm473_vm0, %v3669_v50, %v3674_v56 }
 0x3a4   : > { %3711 = vrot.lane.b32.xlu2 %v5487_v54, %s4136_s25 }
 0x3a5   : > { %v2384_v29 = vpop.permute.xlu1 %2383 }
 0x3a6   : > { %v2408_v9 = vrot.slane %v2384_v29, 4  ;;  %v871_v38 = vpop.xlane.xlu2 %870  ;;  %v4084_v29 = vld [vmem:[%s4250_s29 + $0x40] sm:$0xff] }
 0x3a7   : > { %v889_v60 = vsub.f32 %v5454_v5, %v871_v38  ;;  %1420 = vmax.xlane.f32.xlu0 %v5614_v17  ;;  %v891_v5 = vsub.f32 %v5490_v49, %v875_v52  ;;  %v3659_v52 = vunpack.i.h.bf16 %v5466_v1  ;;  %v5658_v38 = vpop.f32.mrf.mxu1 }
 0x3a8   : > { %v5620_v33 = vunpack.c.l.bf16 %v2408_v9  ;;  %946 = vadd.xlane.f32.xlu1 %v3836_v35  ;;  %v1952_v9 = vmul.f32 %v5547_v57, %v5364_v58  ;;  %7066 = vst [vmem:[#allocation31_spill] sm:$0xff] %v5658_v38  ;;  %v3673_v58 = vunpack.i.l.bf16 %v5504_v23  ;;  %v5686_v23 = vld [vmem:[%s6738_s0 + $0x18] sm:$0xff] }
 0x3a9   : > { %v918_v6 = vmul.f32 1.442695, %v889_v60  ;;  %v922_v35 = vmul.f32 1.442695, %v891_v5  ;;  %v1936_v36 = vsel %vm473_vm0, %v3659_v52, %v3664_v37  ;;  %v5662_v60 = vld [vmem:[%s4250_s29 + $0x58] sm:$0xff]  ;;  %v3668_v5 = vunpack.i.l.bf16 %v5499_v46 }
 0x3aa   : > { %v5624_v54 = vpack.i.bf16 %v5620_v33, %v5618_v59  ;;  %v1968_v1 = vmul.f32 %v5554_v62, %v1936_v36  ;;  %v1954_v10 = vmul.f32 %v5686_v23, %v5403_v0  ;;  %v1783_v36 = vrot.slane %v4084_v29, 4 }
 0x3ab   : > { %3845 = vpow2.f32 %v918_v6  ;;  %v1983_v6 = vadd.f32 %v1967_v16, %v1951_v45  ;;  %v1937_v57 = vsel %vm473_vm0, %v3668_v5, %v3673_v58  ;;  %v5709_v16 = vpop.f32.mrf.mxu2  ;;  %v3679_v45 = vunpack.i.h.bf16 %v5527_v55 }
 0x3ac   : > { %3847 = vpow2.f32 %v922_v35  ;;  %v5693_v35 = vld [vmem:[%s6739_s1 + $0x10] sm:$0xff]  ;;  %v5718_v50 = vunpack.c.l.bf16 %v1783_v36 }
 0x3ad   : > { %3849 = vpow2.f32 %v920_v19  ;;  %v1969_v19 = vmul.f32 %v5693_v35, %v1937_v57  ;;  %v5740_v57 = vld [vmem:[%s6738_s0 + $0x28] sm:$0xff] }
 0x3ae   : > { %v5702_v52 = vpop.xlane.xlu2 %924 }
 0x3af   : > { %7068 = vst [vmem:[#allocation32_spill] sm:$0xff] %v5702_v52  ;;  %v5934_v52 = vld [vmem:[%s6739_s1 + $0x48] sm:$0xff] }
 0x3b0   : > { %1418 = vmax.xlane.f32.xlu1 %v5608_v22 }
 0x3b1   : > { %v3846_v20 = vpop.eup %3845 }
 0x3b2   : > { %950 = vadd.xlane.f32.xlu0 %v3846_v20  ;;  %v962_v61 = vpack.c.bf16 %v3846_v20, %v5626_v12  ;;  %v5634_v18 = vpop.eup %3847  ;;  %v1984_v20 = vadd.f32 %v1968_v1, %v1952_v9  ;;  %v3678_v9 = vunpack.i.l.bf16 %v5527_v55 }
 0x3b3   : > { %v5636_v41 = vpop.eup %3849 }
 0x3b4   : > { %1050 = vmatmul.bf16.gmra.mxu1 %v962_v61  ;;  %v963_v49 = vpack.c.bf16 %v5634_v18, %v5636_v41  ;;  %v1999_v62 = vpack.c.bf16 %v1984_v20, %v1983_v6  ;;  %v5679_v61 = vld [vmem:[%s6738_s0 + $0x10] sm:$0xff]  ;;  %v3684_v6 = vunpack.i.h.bf16 %v5600_v8  ;;  %v3683_v20 = vunpack.i.l.bf16 %v5600_v8  ;;  %v5733_v8 = vld [vmem:[%s6738_s0 + $0x20] sm:$0xff] }
 0x3b5   : > { %v1953_v46 = vmul.f32 %v5679_v61, %v5401_v34 }
 0x3b6   : > { %v1940_v32 = vsel %vm473_vm0, %v3679_v45, %v3684_v6  ;;  %v1939_v5 = vsel %vm473_vm0, %v3678_v9, %v3683_v20 }
 0x3b7   : > { %v1985_v37 = vadd.f32 %v1969_v19, %v1953_v46  ;;  %v1956_v46 = vmul.f32 %v5740_v57, %v5438_v42 }
 0x3c4   : > { %1055 = vmatmul.bf16.gmra.mxu1 %v963_v49  ;;  %v5699_v49 = vld [vmem:[%s6739_s1 + $0x18] sm:$0xff] }
 0x3c5   : > { %v1970_v34 = vmul.f32 %v5699_v49, %v1938_v2  ;;  %v1955_v2 = vmul.f32 %v5733_v8, %v5436_v15 }
 0x3c6   : > { %3726 = vrot.lane.b32.xlu0 %v5517_v44, %s4135_s24 }
 0x3c7   : > { %v1986_v0 = vadd.f32 %v1970_v34, %v1954_v10  ;;  %v5747_v10 = vld [vmem:[%s6739_s1 + $0x20] sm:$0xff]  ;;  %v5753_v34 = vld [vmem:[%s6739_s1 + $0x28] sm:$0xff] }
 0x3c8   : > { %v1971_v19 = vmul.f32 %v5747_v10, %v1939_v5  ;;  %v1972_v15 = vmul.f32 %v5753_v34, %v1940_v32 }
 0x3c9   : > { %2385 = vrot.lane.b32.xlu1 %v4084_v29, %s4137_s9  ;;  %v2000_v1 = vpack.c.bf16 %v1986_v0, %v1985_v37  ;;  %v5720_v29 = vunpack.c.l.bf16 %v1784_v3  ;;  %v5756_v37 = vpop.f32.mrf.mxu2 }
 0x3ca   : > { %v1987_v42 = vadd.f32 %v1971_v19, %v1955_v2  ;;  %v1988_v0 = vadd.f32 %v1972_v15, %v1956_v46  ;;  %v5774_v19 = vld [vmem:[%s6738_s0 + $0x30] sm:$0xff]  ;;  %v5781_v15 = vld [vmem:[%s6738_s0 + $0x38] sm:$0xff] }
 0x3cb   : > { %v5726_v55 = vpack.i.bf16 %v5720_v29, %v5718_v50 }
 0x3cc   : > { %v2001_v45 = vpack.c.bf16 %v1988_v0, %v1987_v42  ;;  %v1958_v42 = vmul.f32 %v5781_v15, %v5568_v26  ;;  %v5788_v0 = vld [vmem:[%s6739_s1 + $0x30] sm:$0xff]  ;;  %v5801_v26 = vpop.xlane.xlu0 %938 }
 0x3cd   : > { %942 = vadd.xlane.f32.xlu2 %v5519_v28  ;;  %v5672_v28 = vpop.f32.mrf.mxu1  ;;  %7075 = vst [vmem:[#allocation35_spill] sm:$0xff] %v5801_v26 }
 0x3ce   : > { %2391 = vrot.lane.b32.xlu0 %v5662_v60, %s4137_s9  ;;  %7067 = vst [vmem:[#allocation50_spill] sm:$0xff] %v5672_v28 }
 0x3d0   : > { %v5704_v14 = vpop.xlane.xlu1 %940 }
 0x3d1   : > { %7069 = vst [vmem:[#allocation51_spill] sm:$0xff] %v5704_v14  ;;  %v5764_v5 = vpop.f32.mrf.mxu2 }
 0x3d4   : > { %3399 = vmatmul.msk.bf16.vlgmr.msrb.gmra.mxu1 %vm746_vm1, %v1999_v62  ;;  %v5716_v62 = vpop.xlane.xlu2 %930 }
 0x3d5   : > { %1416 = vmax.xlane.f32.xlu2 %v5598_v7  ;;  %v5706_v63 = vpop.f32.mrf.mxu1 }
 0x3d6   : > { %7070 = vst [vmem:[#allocation33_spill] sm:$0xff] %v5706_v63  ;;  %v5940_v63 = vld [vmem:[%s6739_s1 + $0x40] sm:$0xff] }
 0x3d8   : > { %v1413_v56 = vpop.xlane.xlu1 %1412 }
 0x3dc   : > { %v3697_v36 = vpop.permute.xlu2 %3696 }
 0x3dd   : > { %v5728_v58 = vpop.f32.mrf.mxu1  ;;  %v3699_v20 = vunpack.i.h.bf16 %v3697_v36  ;;  %v3698_v32 = vunpack.i.l.bf16 %v3697_v36 }
 0x3de   : > { %7071 = vst [vmem:[#allocation38_spill] sm:$0xff] %v5728_v58 }
 0x3e4   : > { %3400 = vmatmul.msk.bf16.gmra.mxu1 %vm746_vm1, %v2000_v1 }
 0x3e5   : > { %v5760_v1 = vpop.f32.mrf.mxu1 }
 0x3e6   : > { %7072 = vst [vmem:[#allocation41_spill] sm:$0xff] %v5760_v1 }
 0x3ed   : > { %3716 = vrot.lane.b32.xlu2 %v5726_v55, %s4135_s24 }
 0x3f0   : > { %v3702_v3 = vpop.permute.xlu1 %3701 }
 0x3f1   : > { %v3704_v9 = vunpack.i.h.bf16 %v3702_v3  ;;  %v3703_v6 = vunpack.i.l.bf16 %v3702_v3  ;;  %v5794_v3 = vld [vmem:[%s6739_s1 + $0x38] sm:$0xff] }
 0x3f3   : > { %952 = vadd.xlane.f32.xlu1 %v5636_v41  ;;  %v1942_v43 = vsel %vm473_vm0, %v3699_v20, %v3704_v9  ;;  %v1941_v2 = vsel %vm473_vm0, %v3698_v32, %v3703_v6  ;;  %v1957_v41 = vmul.f32 %v5774_v19, %v5566_v21  ;;  %v5799_v9 = vpop.f32.mrf.mxu1 }
 0x3f4   : > { %3401 = vmatmul.msk.bf16.gmra.mxu1 %vm746_vm1, %v2001_v45  ;;  %v1973_v36 = vmul.f32 %v5788_v0, %v1941_v2  ;;  %v1974_v21 = vmul.f32 %v5794_v3, %v1942_v43  ;;  %v1441_v45 = vsub.f32 %v5564_v31, %v1413_v56  ;;  %7074 = vst [vmem:[#allocation4_spill] sm:$0xff] %v5799_v9  ;;  %v3707_v43 = vpop.permute.xlu0 %3706 }
 0x3f5   : > { %v3708_v9 = vunpack.i.l.bf16 %v3707_v43 }
 0x3f6   : > { %v1989_v6 = vadd.f32 %v1973_v36, %v1957_v41  ;;  %v1990_v20 = vadd.f32 %v1974_v21, %v1958_v42  ;;  %v1460_v32 = vmul.f32 1.442695, %v1441_v45 }
 0x3f7   : > { %v5768_v46 = vpop.xlane.xlu2 %936 }
 0x3f8   : > { %7073 = vst [vmem:[#allocation34_spill] sm:$0xff] %v5768_v46  ;;  %1426 = vmax.xlane.f32.xlu0 %v5764_v5  ;;  %v2002_v53 = vpack.c.bf16 %v1990_v20, %v1989_v6  ;;  %3851 = vpow2.f32 %v1460_v32  ;;  %v3709_v46 = vunpack.i.h.bf16 %v3707_v43 }
 0x3fb   : > { %1424 = vmax.xlane.f32.xlu1 %v5756_v37  ;;  %v5805_v31 = vpop.f32.mrf.mxu1 }
 0x3fc   : > { %7076 = vst [vmem:[#allocation5_spill] sm:$0xff] %v5805_v31  ;;  %v1415_v6 = vpop.xlane.xlu0 %1414 }
 0x3fe   : > { %v5807_v41 = vpop.eup %3851 }
 0x3ff   : > { %v1411_v1 = vpop.xlane.xlu2 %1410 }
 0x400   : > { %v1440_v2 = vsub.f32 %v5533_v11, %v1411_v1  ;;  %v2579_v11 = vmul.f32 %v5679_v61, %v5478_v39  ;;  %v2580_v1 = vmul.f32 %v5686_v23, %v5482_v48  ;;  %v5829_v48 = vld [vmem:[%s4250_s29 + $0x68] sm:$0xff] }
 0x402   : > { %v1458_v14 = vmul.f32 1.442695, %v1440_v2 }
 0x404   : > { %3853 = vpow2.f32 %v1458_v14  ;;  %3402 = vmatmul.msk.bf16.gmra.mxu1 %vm746_vm1, %v2002_v53  ;;  %v945_v23 = vpop.xlane.xlu0 %944 }
 0x405   : > { %3855 = vrcp.f32 %v945_v23 }
 0x407   : > { %v3712_v56 = vpop.permute.xlu2 %3711 }
 0x408   : > { %v3714_v30 = vunpack.i.h.bf16 %v3712_v56  ;;  %v3713_v26 = vunpack.i.l.bf16 %v3712_v56 }
 0x40a   : > { %v5809_v42 = vpop.eup %3853  ;;  %v2563_v14 = vsel %vm473_vm0, %v3708_v9, %v3713_v26  ;;  %v2564_v53 = vsel %vm473_vm0, %v3709_v46, %v3714_v30  ;;  %v5823_v30 = vpop.f32.mrf.mxu1  ;;  %v4099_v46 = vld [vmem:[%s4250_s29 + $0x50] sm:$0xff] }
 0x40b   : > { %v1519_v36 = vpack.c.bf16 %v5807_v41, %v5809_v42  ;;  %v2595_v21 = vmul.f32 %v5693_v35, %v2563_v14  ;;  %v2596_v45 = vmul.f32 %v5699_v49, %v2564_v53  ;;  %7077 = vst [vmem:[#allocation18_spill] sm:$0xff] %v5823_v30  ;;  %v3856_v26 = vpop.eup %3855 }
 0x40c   : > { %3746 = vrot.lane.b32.xlu0 %v5624_v54, %s4135_s24  ;;  %v5836_v20 = vpop.permute.xlu0 %2387 }
 0x40d   : > { %1539 = vmatmul.bf16.gmra.mxu3 %v1519_v36  ;;  %v2611_v39 = vadd.f32 %v2595_v21, %v2579_v11  ;;  %v2612_v61 = vadd.f32 %v2596_v45, %v2580_v1  ;;  %v5843_v1 = vpop.f32.mrf.mxu2 }
 0x40f   : > { %v2626_v9 = vpack.c.bf16 %v2612_v61, %v2611_v39 }
 0x411   : > { %3408 = vmatmul.msk.bf16.gmra.mxu0 %vm746_vm1, %v2626_v9 }
 0x412   : > { %v1046_v35 = vpop.f32.mrf.mxu1 }
 0x414   : > { %3721 = vrot.lane.b32.xlu1 %v5726_v55, %s4136_s25  ;;  %2395 = vrot.lane.b32.xlu0 %v5829_v48, %s4137_s9  ;;  %v1087_v55 = vmul.f32 %v3856_v26, %v1046_v35  ;;  %v1442_v26 = vsub.f32 %v5575_v25, %v1415_v6  ;;  %v1786_v25 = vrot.slane %v5662_v60, 4 }
 0x415   : > { %v5849_v39 = vpop.f32.mrf.mxu2 }
 0x416   : > { %948 = vadd.xlane.f32.xlu2 %v5626_v12  ;;  %v1103_v43 = vpack.c.bf16 %v1087_v55, %v1087_v55  ;;  %v1462_v55 = vmul.f32 1.442695, %v1442_v26 }
 0x418   : > { %v5839_v14 = vunpack.c.l.b16 %v1103_v43 }
 0x41a   : > { %v1048_v2 = vpop.f32.mrf.mxu1  ;;  %7078 = vst [vmem:[#allocation19_spill] sm:$0xff] %v5839_v14  ;;  %v1421_v53 = vpop.xlane.xlu0 %1420 }
 0x41b   : > { %v947_v49 = vpop.xlane.xlu1 %946 }
 0x41c   : > { %3857 = vrcp.f32 %v947_v49  ;;  %2389 = vrot.lane.b32.xlu1 %v4099_v46, %s4137_s9 }
 0x41d   : > { %v5855_v35 = vpop.f32.mrf.mxu2 }
 0x41e   : > { %1422 = vmax.xlane.f32.xlu2 %v5709_v16 }
 0x422   : > { %v3858_v32 = vpop.eup %3857 }
 0x423   : > { %v1088_v56 = vmul.f32 %v3858_v32, %v1048_v2 }
 0x425   : > { %v1104_v11 = vpack.c.bf16 %v1088_v56, %v1088_v56  ;;  %v951_v21 = vpop.xlane.xlu0 %950 }
 0x426   : > { %3859 = vrcp.f32 %v951_v21 }
 0x427   : > { %v5841_v12 = vunpack.c.l.b16 %v1104_v11  ;;  %3861 = vpow2.f32 %v1462_v55  ;;  %v5874_v55 = vunpack.c.l.bf16 %v1786_v25 }
 0x429   : > { %7079 = vst [vmem:[#allocation47_spill] sm:$0xff] %v5841_v12 }
 0x42c   : > { %v3860_v61 = vpop.eup %3859 }
 0x42d   : > { %v5863_v56 = vpop.eup %3861 }
 0x431   : > { %v5847_v45 = vpop.f32.mrf.mxu1 }
 0x436   : > { %3731 = vrot.lane.b32.xlu2 %v5517_v44, %s4136_s25  ;;  %v1419_v44 = vpop.xlane.xlu1 %1418 }
 0x437   : > { %v1444_v21 = vsub.f32 %v5608_v22, %v1419_v44  ;;  %v2410_v44 = vrot.slane %v5836_v20, 4 }
 0x439   : > { %v1053_v9 = vpop.f32.mrf.mxu1 }
 0x43a   : > { %v5853_v23 = vmul.f32 %v3860_v61, %v1053_v9  ;;  %v1785_v61 = vrot.slane %v4099_v46, 4  ;;  %v1445_v9 = vsub.f32 %v5614_v17, %v1421_v53  ;;  %v4100_v17 = vld [vmem:[%s4250_s29 + $0x60] sm:$0xff] }
 0x43b   : > { %v1787_v53 = vrot.slane %v4100_v17, 4 }
 0x43c   : > { %v5872_v26 = vunpack.c.l.bf16 %v1785_v61  ;;  %v1106_v13 = vpack.c.bf16 %v5853_v23, %v5853_v23 }
 0x43d   : > { %v5887_v61 = vunpack.c.l.bf16 %v1787_v53 }
 0x43e   : > { %1432 = vmax.xlane.f32.xlu0 %v5855_v35  ;;  %v3740_v22 = vpack.i.bf16 %v5874_v55, %v5872_v26  ;;  %v2386_v46 = vpop.permute.xlu1 %2385 }
 0x440   : > { %v5858_v49 = vpop.xlane.xlu2 %942 }
 0x441   : > { %7080 = vst [vmem:[#allocation44_spill] sm:$0xff] %v5858_v49 }
 0x446   : > { %1430 = vmax.xlane.f32.xlu1 %v5849_v39 }
 0x448   : > { %v1417_v32 = vpop.xlane.xlu2 %1416 }
 0x449   : > { %v1443_v2 = vsub.f32 %v5598_v7, %v1417_v32  ;;  %v1466_v7 = vmul.f32 1.442695, %v1444_v21  ;;  %v1468_v32 = vmul.f32 1.442695, %v1445_v9  ;;  %v2409_v21 = vrot.slane %v2386_v46, 4  ;;  %v1056_v46 = vpop.f32.mrf.mxu1 }
 0x44b   : > { %v1464_v43 = vmul.f32 1.442695, %v1443_v2  ;;  %v1788_v2 = vrot.slane %v5829_v48, 4  ;;  %v5899_v48 = vunpack.c.l.bf16 %v2409_v21  ;;  %v3727_v21 = vpop.permute.xlu0 %3726 }
 0x44c   : > { %v3728_v23 = vunpack.i.l.bf16 %v3727_v21 }
 0x44d   : > { %3863 = vpow2.f32 %v1464_v43  ;;  %v5889_v25 = vunpack.c.l.bf16 %v1788_v2 }
 0x44e   : > { %3865 = vpow2.f32 %v1466_v7  ;;  %v5897_v7 = vunpack.c.l.bf16 %v2410_v44 }
 0x44f   : > { %3867 = vpow2.f32 %v1468_v32 }
 0x450   : > { %v5906_v20 = vpack.i.bf16 %v5897_v7, %v5899_v48  ;;  %v3717_v44 = vpop.permute.xlu2 %3716 }
 0x451   : > { %v3718_v36 = vunpack.i.l.bf16 %v3717_v44 }
 0x453   : > { %v5865_v11 = vpop.eup %3863  ;;  %v2392_v49 = vpop.permute.xlu0 %2391 }
 0x454   : > { %v1520_v6 = vpack.c.bf16 %v5865_v11, %v5863_v56  ;;  %v5880_v60 = vpop.eup %3865 }
 0x455   : > { %v5884_v43 = vpop.eup %3867 }
 0x456   : > { %1544 = vmatmul.bf16.gmra.mxu3 %v1520_v6  ;;  %v1521_v6 = vpack.c.bf16 %v5884_v43, %v5880_v60 }
 0x45f   : > { %3741 = vrot.lane.b32.xlu1 %v3740_v22, %s4136_s25  ;;  %954 = vadd.xlane.f32.xlu2 %v5634_v18  ;;  %v5895_v18 = vpack.i.bf16 %v5889_v25, %v5887_v61 }
 0x461   : > { %3756 = vrot.lane.b32.xlu0 %v5895_v18, %s4135_s24 }
 0x466   : > { %v953_v9 = vpop.xlane.xlu1 %952  ;;  %1549 = vmatmul.bf16.gmra.mxu3 %v1521_v6 }
 0x467   : > { %3869 = vrcp.f32 %v953_v9  ;;  %2393 = vrot.lane.b32.xlu1 %v4100_v17, %s4137_s9  ;;  %v5913_v17 = vpop.f32.mrf.mxu2  ;;  %v3719_v9 = vunpack.i.h.bf16 %v3717_v44 }
 0x469   : > { %3771 = vrot.lane.b32.xlu0 %v5906_v20, %s4136_s25 }
 0x46d   : > { %v3870_v32 = vpop.eup %3869 }
 0x46e   : > { %v5908_v53 = vmul.f32 %v3870_v32, %v1056_v46  ;;  %v1425_v2 = vpop.xlane.xlu1 %1424  ;;  %v5918_v32 = vld [vmem:[%s6738_s0 + $0x40] sm:$0xff] }
 0x46f   : > { %v1959_v46 = vmul.f32 %v5918_v32, %v5718_v50 }
 0x477   : > { %3736 = vrot.lane.b32.xlu2 %v3740_v22, %s4135_s24  ;;  %v5925_v22 = vld [vmem:[%s6738_s0 + $0x48] sm:$0xff] }
 0x478   : > { %v1960_v31 = vmul.f32 %v5925_v22, %v5720_v29 }
 0x486   : > { %v3722_v6 = vpop.permute.xlu1 %3721 }
 0x487   : > { %v3724_v14 = vunpack.i.h.bf16 %v3722_v6  ;;  %v3723_v12 = vunpack.i.l.bf16 %v3722_v6 }
 0x489   : > { %v1944_v44 = vsel %vm473_vm0, %v3719_v9, %v3724_v14  ;;  %v1943_v6 = vsel %vm473_vm0, %v3718_v36, %v3723_v12  ;;  %v949_v30 = vpop.xlane.xlu2 %948  ;;  %v2412_v14 = vrot.slane %v2392_v49, 4  ;;  %v1447_v36 = vsub.f32 %v5756_v37, %v1425_v2 }
 0x48a   : > { %v1976_v50 = vmul.f32 %v5934_v52, %v1944_v44  ;;  %v1975_v29 = vmul.f32 %v5940_v63, %v1943_v6  ;;  %3871 = vrcp.f32 %v949_v30  ;;  %v5946_v44 = vpop.f32.mrf.mxu2 }
 0x48b   : > { %v5944_v47 = vunpack.c.l.bf16 %v2412_v14  ;;  %v1472_v6 = vmul.f32 1.442695, %v1447_v36 }
 0x48c   : > { %v1992_v9 = vadd.f32 %v1976_v50, %v1960_v31  ;;  %v1991_v12 = vadd.f32 %v1975_v29, %v1959_v46 }
 0x48d   : > { %3873 = vpow2.f32 %v1472_v6  ;;  %v2582_v6 = vmul.f32 %v5740_v57, %v5513_v40  ;;  %v4106_v40 = vld [vmem:[%s4250_s29 + $0x70] sm:$0xff]  ;;  %v1427_v57 = vpop.xlane.xlu0 %1426 }
 0x48e   : > { %v2390_v58 = vpop.permute.xlu1 %2389  ;;  %v2003_v4 = vpack.c.bf16 %v1992_v9, %v1991_v12  ;;  %v2581_v9 = vmul.f32 %v5733_v8, %v5511_v51  ;;  %v4105_v8 = vld [vmem:[%s4250_s29 + $0x78] sm:$0xff] }
 0x48f   : > { %v2411_v38 = vrot.slane %v2390_v58, 4 }
 0x490   : > { %v3872_v28 = vpop.eup %3871  ;;  %3403 = vmatmul.msk.bf16.gmra.mxu1 %vm746_vm1, %v2003_v4  ;;  %v5960_v4 = vunpack.c.l.b16 %v1106_v13 }
 0x491   : > { %v1089_v30 = vmul.f32 %v3872_v28, %v5847_v45  ;;  %v5952_v31 = vunpack.c.l.bf16 %v2411_v38  ;;  %1436 = vmax.xlane.f32.xlu1 %v5946_v44  ;;  %v1423_v37 = vpop.xlane.xlu2 %1422 }
 0x492   : > { %v1446_v49 = vsub.f32 %v5709_v16, %v1423_v37  ;;  %v3729_v16 = vunpack.i.h.bf16 %v3727_v21 }
 0x493   : > { %v1105_v2 = vpack.c.bf16 %v1089_v30, %v1089_v30  ;;  %v5958_v58 = vpack.i.bf16 %v5944_v47, %v5952_v31  ;;  %v5968_v14 = vpop.eup %3873 }
 0x494   : > { %v1470_v46 = vmul.f32 1.442695, %v1446_v49 }
 0x495   : > { %3786 = vrot.lane.b32.xlu0 %v5958_v58, %s4135_s24  ;;  %v5964_v28 = vunpack.c.l.b16 %v1105_v2 }
 0x496   : > { %3875 = vpow2.f32 %v1470_v46 }
 0x499   : > { %v3732_v45 = vpop.permute.xlu2 %3731 }
 0x49a   : > { %v3734_v50 = vunpack.i.h.bf16 %v3732_v45  ;;  %v3733_v29 = vunpack.i.l.bf16 %v3732_v45  ;;  %v1789_v45 = vrot.slane %v4106_v40, 4 }
 0x49c   : > { %v5970_v13 = vpop.eup %3875  ;;  %v2565_v12 = vsel %vm473_vm0, %v3728_v23, %v3733_v29  ;;  %v2566_v36 = vsel %vm473_vm0, %v3729_v16, %v3734_v50  ;;  %v1790_v16 = vrot.slane %v4105_v8, 4  ;;  %v5997_v50 = vunpack.c.l.bf16 %v1789_v45 }
 0x49d   : > { %v2597_v21 = vmul.f32 %v5747_v10, %v2565_v12  ;;  %v2598_v30 = vmul.f32 %v5753_v34, %v2566_v36  ;;  %v1522_v37 = vpack.c.bf16 %v5968_v14, %v5970_v13  ;;  %v5995_v34 = vpop.permute.xlu0 %3746  ;;  %v1058_v12 = vpop.f32.mrf.mxu1 }
 0x49f   : > { %1554 = vmatmul.bf16.gmra.mxu3 %v1522_v37  ;;  %v2613_v49 = vadd.f32 %v2597_v21, %v2581_v9  ;;  %v2614_v2 = vadd.f32 %v2598_v30, %v2582_v6 }
 0x4a0   : > { %1428 = vmax.xlane.f32.xlu2 %v5843_v1 }
 0x4a1   : > { %v2627_v51 = vpack.c.bf16 %v2614_v2, %v2613_v49 }
 0x4a3   : > { %3409 = vmatmul.msk.bf16.gmra.mxu0 %vm746_vm1, %v2627_v51  ;;  %v1107_v51 = vpack.c.bf16 %v5908_v53, %v5908_v53 }
 0x4aa   : > { %2399 = vrot.lane.b32.xlu1 %v4105_v8, %s4137_s9 }
 0x4b2   : > { %3766 = vrot.lane.b32.xlu1 %v5906_v20, %s4135_s24  ;;  %v5999_v20 = vunpack.c.l.bf16 %v1790_v16  ;;  %v6011_v16 = vld [vmem:[%s6738_s0 + $0x50] sm:$0xff] }
 0x4b8   : > { %3751 = vrot.lane.b32.xlu2 %v5624_v54, %s4136_s25  ;;  %v2396_v54 = vpop.permute.xlu0 %2395 }
 0x4b9   : > { %v5993_v10 = vpop.xlane.xlu1 %1430  ;;  %v2414_v29 = vrot.slane %v2396_v54, 4 }
 0x4bb   : > { %v6004_v30 = vunpack.c.l.bf16 %v2414_v29 }
 0x4bf   : > { %1486 = vadd.xlane.f32.xlu0 %v5604_v27  ;;  %v3780_v27 = vpack.i.bf16 %v5999_v20, %v5997_v50 }
 0x4c0   : > { %2397 = vrot.lane.b32.xlu2 %v4106_v40, %s4137_s9 }
 0x4c1   : > { %3781 = vrot.lane.b32.xlu1 %v3780_v27, %s4136_s25 }
 0x4d1   : > { %v3742_v46 = vpop.permute.xlu1 %3741 }
 0x4d2   : > { %v955_v23 = vpop.xlane.xlu2 %954  ;;  %v3744_v36 = vunpack.i.h.bf16 %v3742_v46  ;;  %v3743_v6 = vunpack.i.l.bf16 %v3742_v46  ;;  %v1961_v46 = vmul.f32 %v6011_v16, %v5872_v26 }
 0x4d3   : > { %3877 = vrcp.f32 %v955_v23  ;;  %v6018_v23 = vld [vmem:[%s6738_s0 + $0x58] sm:$0xff] }
 0x4d4   : > { %v1962_v54 = vmul.f32 %v6018_v23, %v5874_v55 }
 0x4d9   : > { %v3878_v9 = vpop.eup %3877  ;;  %v2394_v21 = vpop.permute.xlu1 %2393 }
 0x4da   : > { %v1092_v37 = vmul.f32 %v3878_v9, %v1058_v12  ;;  %v3737_v49 = vpop.permute.xlu2 %3736  ;;  %v2413_v2 = vrot.slane %v2394_v21, 4  ;;  %v6029_v12 = vld [vmem:[%s6739_s1 + $0x58] sm:$0xff]  ;;  %v6035_v21 = vld [vmem:[%s6739_s1 + $0x50] sm:$0xff] }
 0x4db   : > { %v3739_v8 = vunpack.i.h.bf16 %v3737_v49  ;;  %v3738_v40 = vunpack.i.l.bf16 %v3737_v49 }
 0x4dc   : > { %v1108_v45 = vpack.c.bf16 %v1092_v37, %v1092_v37  ;;  %v6022_v53 = vunpack.c.l.bf16 %v2413_v2 }
 0x4dd   : > { %v1946_v29 = vsel %vm473_vm0, %v3739_v8, %v3744_v36  ;;  %v1945_v9 = vsel %vm473_vm0, %v3738_v40, %v3743_v6  ;;  %v6042_v36 = vunpack.c.l.b16 %v1107_v51  ;;  %v1448_v51 = vsub.f32 %v5764_v5, %v1427_v57 }
 0x4de   : > { %v1978_v26 = vmul.f32 %v6029_v12, %v1946_v29  ;;  %v1977_v55 = vmul.f32 %v6035_v21, %v1945_v9  ;;  %v6040_v37 = vpack.i.bf16 %v6004_v30, %v6022_v53  ;;  %v6044_v6 = vunpack.c.l.b16 %v1108_v45  ;;  %v1433_v45 = vpop.xlane.xlu0 %1432 }
 0x4df   : > { %7081 = vst [vmem:[#allocation61_spill] sm:$0xff] %v6042_v36 }
 0x4e0   : > { %v1994_v49 = vadd.f32 %v1978_v26, %v1962_v54  ;;  %v1993_v2 = vadd.f32 %v1977_v55, %v1961_v46  ;;  %3796 = vrot.lane.b32.xlu1 %v6040_v37, %s4135_s24  ;;  %v1474_v46 = vmul.f32 1.442695, %v1448_v51  ;;  %v2583_v51 = vmul.f32 %v5774_v19, %v5618_v59 }
 0x4e2   : > { %v2004_v40 = vpack.c.bf16 %v1994_v49, %v1993_v2  ;;  %3879 = vpow2.f32 %v1474_v46  ;;  %v3749_v2 = vunpack.i.h.bf16 %v5995_v34  ;;  %v1450_v46 = vsub.f32 %v5849_v39, %v5993_v10 }
 0x4e4   : > { %3404 = vmatmul.msk.bf16.gmra.mxu1 %vm746_vm1, %v2004_v40 }
 0x4e6   : > { %v6059_v55 = vpop.permute.xlu0 %3756 }
 0x4e8   : > { %v6063_v57 = vpop.eup %3879 }
 0x4e9   : > { %1434 = vmax.xlane.f32.xlu2 %v5913_v17 }
 0x4ee   : > { %v3772_v39 = vpop.permute.xlu0 %3771 }
 0x501   : > { %3761 = vrot.lane.b32.xlu2 %v5895_v18, %s4136_s25  ;;  %v3748_v18 = vunpack.i.l.bf16 %v5995_v34 }
 0x504   : > { %v6056_v29 = vpop.xlane.xlu1 %1436 }
 0x509   : > { %3776 = vrot.lane.b32.xlu2 %v3780_v27, %s4135_s24 }
 0x513   : > { %v1429_v54 = vpop.xlane.xlu2 %1428 }
 0x514   : > { %v1449_v9 = vsub.f32 %v5843_v1, %v1429_v54  ;;  %v2584_v1 = vmul.f32 %v5781_v15, %v5620_v33  ;;  %v1478_v15 = vmul.f32 1.442695, %v1450_v46 }
 0x516   : > { %v1476_v26 = vmul.f32 1.442695, %v1449_v9  ;;  %v1451_v9 = vsub.f32 %v5855_v35, %v1433_v45 }
 0x518   : > { %3881 = vpow2.f32 %v1476_v26  ;;  %v1480_v36 = vmul.f32 1.442695, %v1451_v9 }
 0x519   : > { %3883 = vpow2.f32 %v1478_v15 }
 0x51a   : > { %3885 = vpow2.f32 %v1480_v36  ;;  %v2586_v36 = vmul.f32 %v5925_v22, %v5897_v7  ;;  %v4112_v22 = vld [vmem:[%s5297_s27 + $0x30] sm:$0xff] }
 0x51b   : > { %v3752_v49 = vpop.permute.xlu2 %3751 }
 0x51c   : > { %v3754_v27 = vunpack.i.h.bf16 %v3752_v49  ;;  %v3753_v40 = vunpack.i.l.bf16 %v3752_v49  ;;  %v2400_v5 = vpop.permute.xlu1 %2399 }
 0x51d   : > { %v2416_v19 = vrot.slane %v2400_v5, 4 }
 0x51e   : > { %v6067_v8 = vpop.eup %3881  ;;  %v2567_v54 = vsel %vm473_vm0, %v3748_v18, %v3753_v40  ;;  %v2568_v34 = vsel %vm473_vm0, %v3749_v2, %v3754_v27  ;;  %v3773_v27 = vunpack.i.l.bf16 %v3772_v39 }
 0x51f   : > { %v2599_v26 = vmul.f32 %v5788_v0, %v2567_v54  ;;  %v2600_v49 = vmul.f32 %v5794_v3, %v2568_v34  ;;  %v1523_v59 = vpack.c.bf16 %v6067_v8, %v6063_v57  ;;  %v6080_v40 = vunpack.c.l.bf16 %v2416_v19  ;;  %v6093_v34 = vpop.eup %3883 }
 0x520   : > { %v3774_v3 = vunpack.i.h.bf16 %v3772_v39  ;;  %v6095_v9 = vpop.eup %3885 }
 0x521   : > { %1559 = vmatmul.bf16.gmra.mxu3 %v1523_v59  ;;  %v2615_v38 = vadd.f32 %v2599_v26, %v2583_v51  ;;  %v2616_v33 = vadd.f32 %v2600_v49, %v2584_v1  ;;  %v2585_v26 = vmul.f32 %v5918_v32, %v5899_v48  ;;  %v1524_v19 = vpack.c.bf16 %v6095_v9, %v6093_v34 }
 0x523   : > { %v2398_v10 = vpop.permute.xlu2 %2397  ;;  %v2628_v18 = vpack.c.bf16 %v2616_v33, %v2615_v38  ;;  %v6107_v33 = vpop.f32.mrf.mxu0 }
 0x524   : > { %v2415_v2 = vrot.slane %v2398_v10, 4  ;;  %v3767_v35 = vpop.permute.xlu1 %3766 }
 0x525   : > { %v3769_v45 = vunpack.i.h.bf16 %v3767_v35  ;;  %v3768_v0 = vunpack.i.l.bf16 %v3767_v35  ;;  %3410 = vmatmul.msk.bf16.gmra.mxu0 %vm746_vm1, %v2628_v18  ;;  %v3758_v18 = vunpack.i.l.bf16 %v6059_v55 }
 0x526   : > { %v6083_v5 = vunpack.c.l.bf16 %v2415_v2 }
 0x527   : > { %v2570_v38 = vsel %vm473_vm0, %v3769_v45, %v3774_v3  ;;  %v2569_v1 = vsel %vm473_vm0, %v3768_v0, %v3773_v27  ;;  %v6141_v45 = vld [vmem:[%s6738_s0 + $0x60] sm:$0xff] }
 0x528   : > { %v3810_v51 = vpack.i.bf16 %v6080_v40, %v6083_v5  ;;  %v2602_v46 = vmul.f32 %v5934_v52, %v2570_v38  ;;  %v2601_v54 = vmul.f32 %v5940_v63, %v2569_v1  ;;  %v4111_v52 = vld [vmem:[%s5297_s27 + $0x28] sm:$0xff]  ;;  %v1963_v0 = vmul.f32 %v6141_v45, %v5887_v61  ;;  %v6159_v1 = vld [vmem:[%s6739_s1 + $0x60] sm:$0xff] }
 0x52a   : > { %3811 = vrot.lane.b32.xlu1 %v3810_v51, %s4136_s25  ;;  %3801 = vrot.lane.b32.xlu0 %v3810_v51, %s4135_s24  ;;  %v2618_v49 = vadd.f32 %v2602_v46, %v2586_v36  ;;  %v2617_v59 = vadd.f32 %v2601_v54, %v2585_v26  ;;  %v6165_v46 = vld [vmem:[%s6739_s1 + $0x68] sm:$0xff] }
 0x52b   : > { %v6109_v7 = vpop.f32.mrf.mxu0 }
 0x52c   : > { %v2629_v63 = vpack.c.bf16 %v2618_v49, %v2617_v59  ;;  %v4118_v49 = vld [vmem:[%s5297_s27 + $0x10] sm:$0xff] }
 0x531   : > { %1564 = vmatmul.bf16.gmra.mxu3 %v1524_v19 }
 0x532   : > { %1488 = vadd.xlane.f32.xlu2 %v5602_v24  ;;  %2258 = vrot.lane.b32.xlu1 %v4111_v52, %s4137_s9  ;;  %v1453_v24 = vsub.f32 %v5946_v44, %v6056_v29  ;;  %v6131_v44 = vpop.f32.mrf.mxu1  ;;  %v3759_v29 = vunpack.i.h.bf16 %v6059_v55  ;;  %v6148_v55 = vld [vmem:[%s6738_s0 + $0x68] sm:$0xff] }
 0x533   : > { %v6113_v48 = vpop.f32.mrf.mxu0  ;;  %v1964_v3 = vmul.f32 %v6148_v55, %v5889_v25  ;;  %v3782_v59 = vpop.permute.xlu1 %3781 }
 0x534   : > { %v1484_v15 = vmul.f32 1.442695, %v1453_v24 }
 0x535   : > { %3411 = vmatmul.msk.bf16.gmra.mxu0 %vm746_vm1, %v2629_v63 }
 0x536   : > { %3887 = vpow2.f32 %v1484_v15  ;;  %v3784_v15 = vunpack.i.h.bf16 %v3782_v59 }
 0x53b   : > { %v6120_v32 = vpop.f32.mrf.mxu0 }
 0x54a   : > { %3791 = vrot.lane.b32.xlu2 %v5958_v58, %s4136_s25 }
 0x552   : > { %3806 = vrot.lane.b32.xlu2 %v6040_v37, %s4136_s25  ;;  %v6127_v37 = vpop.f32.mrf.mxu0 }
 0x554   : > { %1490 = vadd.xlane.f32.xlu0 %v5809_v42  ;;  %v4113_v42 = vld [vmem:[%s5297_s27 + $0x18] sm:$0xff] }
 0x55a   : > { %2260 = vrot.lane.b32.xlu2 %v4112_v22, %s4137_s9  ;;  %v6172_v19 = vpop.f32.mrf.mxu0 }
 0x55c   : > { %v1435_v39 = vpop.xlane.xlu2 %1434  ;;  %1492 = vadd.xlane.f32.xlu0 %v5807_v41  ;;  %2708 = vmax.xlane.f32.xlu1 %v6109_v7 }
 0x55d   : > { %v1452_v58 = vsub.f32 %v5913_v17, %v1435_v39  ;;  %v6136_v17 = vpop.eup %3887  ;;  %v3783_v39 = vunpack.i.l.bf16 %v3782_v59  ;;  %v6203_v59 = vpop.f32.mrf.mxu1 }
 0x55f   : > { %v1482_v10 = vmul.f32 1.442695, %v1452_v58  ;;  %v4119_v58 = vld [vmem:[%s5297_s27 + $0x38] sm:$0xff] }
 0x561   : > { %3889 = vpow2.f32 %v1482_v10 }
 0x562   : > { %2254 = vrot.lane.b32.xlu2 %v4113_v42, %s4137_s9 }
 0x564   : > { %v3762_v2 = vpop.permute.xlu2 %3761  ;;  %2128 = vmax.xlane.f32.xlu1 %v6131_v44 }
 0x565   : > { %v3764_v41 = vunpack.i.h.bf16 %v3762_v2  ;;  %v3763_v35 = vunpack.i.l.bf16 %v3762_v2 }
 0x567   : > { %v6152_v27 = vpop.eup %3889  ;;  %v1947_v51 = vsel %vm473_vm0, %v3758_v18, %v3763_v35  ;;  %v1948_v38 = vsel %vm473_vm0, %v3759_v29, %v3764_v41  ;;  %v4120_v29 = vld [vmem:[%s5297_s27 + $0x8] sm:$0xff]  ;;  %v4121_v18 = vld [vmem:[%s6738_s0 + $0x70] sm:$0xff]  ;;  %v4122_v41 = vld [vmem:[%s6738_s0 + $0x78] sm:$0xff] }
 0x568   : > { %v1979_v61 = vmul.f32 %v6159_v1, %v1947_v51  ;;  %v1980_v25 = vmul.f32 %v6165_v46, %v1948_v38  ;;  %v1525_v54 = vpack.c.bf16 %v6136_v17, %v6152_v27  ;;  %v1965_v2 = vmul.f32 %v4121_v18, %v5997_v50  ;;  %v4124_v51 = vld [vmem:[%s6739_s1 + $0x70] sm:$0xff]  ;;  %v4126_v50 = vld [vmem:[%s5297_s27] sm:$0xff] }
 0x569   : > { %v1966_v35 = vmul.f32 %v4122_v41, %v5999_v20  ;;  %v3787_v20 = vpop.permute.xlu0 %3786 }
 0x56a   : > { %v1995_v36 = vadd.f32 %v1979_v61, %v1963_v0  ;;  %v1996_v26 = vadd.f32 %v1980_v25, %v1964_v3  ;;  %2252 = vrot.lane.b32.xlu2 %v4118_v49, %s4137_s9  ;;  %1569 = vmatmul.bf16.gmra.mxu3 %v1525_v54  ;;  %v4123_v0 = vld [vmem:[%s6739_s1 + $0x78] sm:$0xff]  ;;  %v4125_v54 = vld [vmem:[%s5297_s27 + $0x20] sm:$0xff] }
 0x56c   : > { %v3777_v52 = vpop.permute.xlu2 %3776  ;;  %2716 = vmax.xlane.f32.xlu1 %v6172_v19  ;;  %v2005_v63 = vpack.c.bf16 %v1996_v26, %v1995_v36  ;;  %v3797_v26 = vpop.permute.xlu1 %3796 }
 0x56d   : > { %v3779_v24 = vunpack.i.h.bf16 %v3777_v52  ;;  %v3778_v22 = vunpack.i.l.bf16 %v3777_v52 }
 0x56e   : > { %3405 = vmatmul.msk.bf16.gmra.mxu1 %vm746_vm1, %v2005_v63 }
 0x56f   : > { %v1950_v10 = vsel %vm473_vm0, %v3779_v24, %v3784_v15  ;;  %v1949_v42 = vsel %vm473_vm0, %v3778_v22, %v3783_v39 }
 0x570   : > { %2262 = vrot.lane.b32.xlu0 %v4119_v58, %s4137_s9  ;;  %v1982_v3 = vmul.f32 %v4123_v0, %v1950_v10  ;;  %v1981_v38 = vmul.f32 %v4124_v51, %v1949_v42  ;;  %v2592_v42 = vmul.f32 %v4122_v41, %v6080_v40  ;;  %v3788_v41 = vunpack.i.l.bf16 %v3787_v20 }
 0x571   : > { %v6201_v49 = vpop.xlane.xlu0 %1486 }
 0x572   : > { %2250 = vrot.lane.b32.xlu2 %v4120_v29, %s4137_s9  ;;  %v1998_v61 = vadd.f32 %v1982_v3, %v1966_v35  ;;  %v1997_v25 = vadd.f32 %v1981_v38, %v1965_v2  ;;  %v2591_v29 = vmul.f32 %v4121_v18, %v6083_v5  ;;  %v6209_v3 = vpop.f32.mrf.mxu1  ;;  %v3789_v18 = vunpack.i.h.bf16 %v3787_v20 }
 0x574   : > { %v2006_v36 = vpack.c.bf16 %v1998_v61, %v1997_v25 }
 0x578   : > { %2256 = vrot.lane.b32.xlu0 %v4125_v54, %s4137_s9 }
 0x57a   : > { %2248 = vrot.lane.b32.xlu2 %v4126_v50, %s4137_s9 }
 0x57e   : > { %3406 = vmatmul.msk.bf16.gmra.mxu1 %vm746_vm1, %v2006_v36 }
 0x59c   : > { %v3802_v52 = vpop.permute.xlu0 %3801  ;;  %v3812_v63 = vpop.permute.xlu1 %3811 }
 0x59d   : > { %v3804_v24 = vunpack.i.h.bf16 %v3802_v52  ;;  %v3803_v22 = vunpack.i.l.bf16 %v3802_v52  ;;  %v3814_v15 = vunpack.i.h.bf16 %v3812_v63  ;;  %v3813_v39 = vunpack.i.l.bf16 %v3812_v63 }
 0x59e   : > { %v2588_v63 = vmul.f32 %v6018_v23, %v5944_v47 }
 0x59f   : > { %v2576_v58 = vsel %vm473_vm0, %v3804_v24, %v3814_v15  ;;  %v2575_v10 = vsel %vm473_vm0, %v3803_v22, %v3813_v39  ;;  %v2587_v24 = vmul.f32 %v6011_v16, %v5952_v31  ;;  %v6236_v31 = vpop.f32.mrf.mxu3 }
 0x5a0   : > { %v2608_v2 = vmul.f32 %v4123_v0, %v2576_v58  ;;  %v2607_v35 = vmul.f32 %v4124_v51, %v2575_v10 }
 0x5a2   : > { %v2624_v38 = vadd.f32 %v2608_v2, %v2592_v42  ;;  %v2623_v61 = vadd.f32 %v2607_v35, %v2591_v29  ;;  %2706 = vmax.xlane.f32.xlu0 %v6107_v33  ;;  %v6212_v25 = vpop.f32.mrf.mxu0  ;;  %v3799_v29 = vunpack.i.h.bf16 %v3797_v26  ;;  %v3798_v2 = vunpack.i.l.bf16 %v3797_v26 }
 0x5a3   : > { %2132 = vmax.xlane.f32.xlu2 %v6209_v3  ;;  %2718 = vmax.xlane.f32.xlu1 %v6212_v25 }
 0x5a4   : > { %v2632_v54 = vpack.c.bf16 %v2624_v38, %v2623_v61  ;;  %v6246_v38 = vpop.f32.mrf.mxu1  ;;  %v2590_v61 = vmul.f32 %v6148_v55, %v6004_v30 }
 0x5a5   : > { %v6216_v50 = vpop.xlane.xlu2 %1488 }
 0x5a6   : > { %3414 = vmatmul.msk.bf16.vlgmr.msra.gmra.mxu1 %vm746_vm1, %v2632_v54  ;;  %v2589_v54 = vmul.f32 %v6141_v45, %v6022_v53 }
 0x5aa   : > { %2710 = vmax.xlane.f32.xlu0 %v6113_v48  ;;  %v6220_v40 = vpop.f32.mrf.mxu0 }
 0x5ab   : > { %2712 = vmax.xlane.f32.xlu2 %v6120_v32 }
 0x5ad   : > { %v3792_v5 = vpop.permute.xlu2 %3791 }
 0x5ae   : > { %v3794_v0 = vunpack.i.h.bf16 %v3792_v5  ;;  %v3793_v51 = vunpack.i.l.bf16 %v3792_v5 }
 0x5b0   : > { %v2571_v36 = vsel %vm473_vm0, %v3788_v41, %v3793_v51  ;;  %v2572_v52 = vsel %vm473_vm0, %v3789_v18, %v3794_v0  ;;  %v6253_v41 = vpop.f32.mrf.mxu3 }
 0x5b1   : > { %v2603_v22 = vmul.f32 %v6035_v21, %v2571_v36  ;;  %v2604_v15 = vmul.f32 %v6029_v12, %v2572_v52 }
 0x5b2   : > { %2130 = vmax.xlane.f32.xlu0 %v6203_v59  ;;  %v6232_v39 = vpop.f32.mrf.mxu0 }
 0x5b3   : > { %v2619_v20 = vadd.f32 %v2603_v22, %v2587_v24  ;;  %v2620_v58 = vadd.f32 %v2604_v15, %v2588_v63  ;;  %2714 = vmax.xlane.f32.xlu2 %v6127_v37 }
 0x5b5   : > { %v3807_v10 = vpop.permute.xlu2 %3806  ;;  %v2630_v42 = vpack.c.bf16 %v2620_v58, %v2619_v20 }
 0x5b6   : > { %v3809_v47 = vunpack.i.h.bf16 %v3807_v10  ;;  %v3808_v23 = vunpack.i.l.bf16 %v3807_v10 }
 0x5b7   : > { %3412 = vmatmul.msk.bf16.gmra.mxu0 %vm746_vm1, %v2630_v42 }
 0x5b8   : > { %v2573_v16 = vsel %vm473_vm0, %v3798_v2, %v3808_v23  ;;  %v2574_v12 = vsel %vm473_vm0, %v3799_v29, %v3809_v47  ;;  %v2259_v2 = vpop.permute.xlu1 %2258 }
 0x5b9   : > { %v2605_v35 = vmul.f32 %v6159_v1, %v2573_v16  ;;  %v2606_v26 = vmul.f32 %v6165_v46, %v2574_v12  ;;  %v6256_v1 = vpop.f32.mrf.mxu1  ;;  %v1540_v46 = vpop.f32.mrf.mxu3 }
 0x5ba   : > { %2720 = vmax.xlane.f32.xlu0 %v6220_v40  ;;  %v6241_v21 = vpop.f32.mrf.mxu0 }
 0x5bb   : > { %2724 = vmax.xlane.f32.xlu2 %v6241_v21  ;;  %v2621_v5 = vadd.f32 %v2605_v35, %v2589_v54  ;;  %v2622_v18 = vadd.f32 %v2606_v26, %v2590_v61 }
 0x5bd   : > { %v2631_v0 = vpack.c.bf16 %v2622_v18, %v2621_v5  ;;  %v2261_v45 = vpop.permute.xlu2 %2260 }
 0x5c1   : > { %v1542_v52 = vpop.f32.mrf.mxu3 }
 0x5c2   : > { %2722 = vmax.xlane.f32.xlu0 %v6232_v39 }
 0x5c5   : > { %v2255_v10 = vpop.permute.xlu2 %2254 }
 0x5c7   : > { %v1491_v51 = vpop.xlane.xlu0 %1490  ;;  %3413 = vmatmul.msk.bf16.gmra.mxu0 %vm746_vm1, %v2631_v0 }
 0x5c8   : > { %3891 = vrcp.f32 %v1491_v51 }
 0x5ca   : > { %2136 = vmax.xlane.f32.xlu0 %v6256_v1 }
 0x5cd   : > { %v2253_v29 = vpop.permute.xlu2 %2252 }
 0x5ce   : > { %v3892_v55 = vpop.eup %3891 }
 0x5cf   : > { %v1493_v30 = vpop.xlane.xlu0 %1492  ;;  %v1593_v53 = vmul.f32 %v3892_v55, %v1540_v46  ;;  %v2709_v12 = vpop.xlane.xlu1 %2708 }
 0x5d0   : > { %3893 = vrcp.f32 %v1493_v30  ;;  %v2739_v35 = vsub.f32 %v6109_v7, %v2709_v12  ;;  %v6293_v12 = vpop.f32.mrf.mxu1 }
 0x5d1   : > { %v1609_v63 = vpack.c.bf16 %v1593_v53, %v1593_v53 }
 0x5d2   : > { %v2756_v26 = vmul.f32 1.442695, %v2739_v35 }
 0x5d3   : > { %v6259_v15 = vunpack.c.l.b16 %v1609_v63 }
 0x5d4   : > { %3895 = vpow2.f32 %v2756_v26 }
 0x5d5   : > { %v2251_v23 = vpop.permute.xlu2 %2250 }
 0x5d6   : > { %v3894_v36 = vpop.eup %3893 }
 0x5d7   : > { %v1594_v24 = vmul.f32 %v3894_v36, %v1542_v52  ;;  %v2129_v51 = vpop.xlane.xlu1 %2128 }
 0x5d9   : > { %v1610_v22 = vpack.c.bf16 %v1594_v24, %v1594_v24 }
 0x5da   : > { %v6269_v30 = vpop.eup %3895 }
 0x5db   : > { %v6261_v20 = vunpack.c.l.b16 %v1610_v22 }
 0x5dd   : > { %v2996_v58 = vpack.c.b16 %v6261_v20, %v6259_v15  ;;  %v2249_v16 = vpop.permute.xlu2 %2248 }
 0x5e2   : > { %v2263_v42 = vpop.permute.xlu0 %2262 }
 0x5e3   : > { %2272 = vmatpush.bf16.msrb.mxu3 %v2263_v42  ;;  %2826 = vmatpush.bf16.msrb.mxu2 %v2263_v42 }
 0x5e7   : > { %2273 = vmatpush.bf16.msrb.mxu3 %v2261_v45  ;;  %2827 = vmatpush.bf16.msrb.mxu2 %v2261_v45 }
 0x5ea   : > { %v2257_v47 = vpop.permute.xlu0 %2256 }
 0x5eb   : > { %2274 = vmatpush.bf16.msrb.mxu3 %v2259_v2  ;;  %2828 = vmatpush.bf16.msrb.mxu2 %v2259_v2 }
 0x5ef   : > { %2275 = vmatpush.bf16.msrb.mxu3 %v2257_v47  ;;  %2829 = vmatpush.bf16.msrb.mxu2 %v2257_v47 }
 0x5f3   : > { %2276 = vmatpush.bf16.msrb.mxu3 %v2255_v10  ;;  %2830 = vmatpush.bf16.msrb.mxu2 %v2255_v10 }
 0x5f7   : > { %2277 = vmatpush.bf16.msrb.mxu3 %v2253_v29  ;;  %2831 = vmatpush.bf16.msrb.mxu2 %v2253_v29 }
 0x5fb   : > { %2278 = vmatpush.bf16.msrb.mxu3 %v2251_v23  ;;  %2832 = vmatpush.bf16.msrb.mxu2 %v2251_v23 }
 0x5ff   : > { %2279 = vmatpush.bf16.msrb.mxu3 %v2249_v16  ;;  %2833 = vmatpush.bf16.msrb.mxu2 %v2249_v16 }
 0x603   : > { %3476 = vmatpush.bf16.msra.mxu3 %v2263_v42 }
 0x607   : > { %3477 = vmatpush.bf16.msra.mxu3 %v2261_v45 }
 0x60b   : > { %3478 = vmatpush.bf16.msra.mxu3 %v2259_v2 }
 0x60f   : > { %3479 = vmatpush.bf16.msra.mxu3 %v2257_v47 }
 0x613   : > { %3480 = vmatpush.bf16.msra.mxu3 %v2255_v10 }
 0x615   : > { %v2707_v61 = vpop.xlane.xlu0 %2706 }
 0x616   : > { %v2738_v54 = vsub.f32 %v6107_v33, %v2707_v61  ;;  %v6267_v5 = vpop.xlane.xlu2 %2132  ;;  %v2160_v33 = vsub.f32 %v6131_v44, %v2129_v51 }
 0x617   : > { %3481 = vmatpush.bf16.msra.mxu3 %v2253_v29  ;;  %v2717_v29 = vpop.xlane.xlu1 %2716 }
 0x618   : > { %v2754_v18 = vmul.f32 1.442695, %v2738_v54  ;;  %v2176_v63 = vmul.f32 1.442695, %v2160_v33 }
 0x61a   : > { %3897 = vpow2.f32 %v2754_v18 }
 0x61b   : > { %3482 = vmatpush.bf16.msra.mxu3 %v2251_v23 }
 0x61d   : > { %v2711_v0 = vpop.xlane.xlu0 %2710 }
 0x61e   : > { %v2713_v46 = vpop.xlane.xlu2 %2712  ;;  %v2740_v55 = vsub.f32 %v6113_v48, %v2711_v0 }
 0x61f   : > { %3483 = vmatpush.bf16.msra.mxu3 %v2249_v16  ;;  %v2741_v53 = vsub.f32 %v6120_v32, %v2713_v46  ;;  %v2743_v16 = vsub.f32 %v6172_v19, %v2717_v29  ;;  %v6303_v19 = vpop.f32.mrf.mxu1  ;;  %v2719_v0 = vpop.xlane.xlu1 %2718 }
 0x620   : > { %v6272_v7 = vpop.eup %3897  ;;  %v2758_v36 = vmul.f32 1.442695, %v2740_v55 }
 0x621   : > { %v2818_v45 = vpack.c.bf16 %v6269_v30, %v6272_v7  ;;  %v2760_v52 = vmul.f32 1.442695, %v2741_v53  ;;  %v2764_v61 = vmul.f32 1.442695, %v2743_v16  ;;  %v2744_v53 = vsub.f32 %v6212_v25, %v2719_v0 }
 0x622   : > { %3899 = vpow2.f32 %v2758_v36 }
 0x623   : > { %2834 = vmatmul.bf16.vlgmr.msrb.gmra.mxu2 %v2818_v45  ;;  %3901 = vpow2.f32 %v2760_v52  ;;  %v2766_v36 = vmul.f32 1.442695, %v2744_v53 }
 0x624   : > { %3903 = vpow2.f32 %v2176_v63 }
 0x625   : > { %v2131_v24 = vpop.xlane.xlu0 %2130 }
 0x626   : > { %v2161_v22 = vsub.f32 %v6203_v59, %v2131_v24  ;;  %v2715_v32 = vpop.xlane.xlu2 %2714 }
 0x627   : > { %v2742_v47 = vsub.f32 %v6127_v37, %v2715_v32  ;;  %v6312_v52 = vpop.f32.mrf.mxu1 }
 0x628   : > { %v2178_v10 = vmul.f32 1.442695, %v2161_v22  ;;  %v6279_v48 = vpop.eup %3899 }
 0x629   : > { %v6281_v42 = vpop.eup %3901  ;;  %v2762_v35 = vmul.f32 1.442695, %v2742_v47 }
 0x62a   : > { %3905 = vpow2.f32 %v2178_v10  ;;  %v6283_v44 = vpop.eup %3903  ;;  %v2819_v23 = vpack.c.bf16 %v6281_v42, %v6279_v48 }
 0x62b   : > { %3907 = vpow2.f32 %v2762_v35 }
 0x62c   : > { %3909 = vpow2.f32 %v2764_v61 }
 0x62d   : > { %v2721_v54 = vpop.xlane.xlu0 %2720 }
 0x62e   : > { %v2745_v46 = vsub.f32 %v6220_v40, %v2721_v54  ;;  %v2725_v24 = vpop.xlane.xlu2 %2724 }
 0x62f   : > { %v6321_v10 = vpop.f32.mrf.mxu1  ;;  %v2747_v47 = vsub.f32 %v6241_v21, %v2725_v24 }
 0x630   : > { %v6285_v2 = vpop.eup %3905  ;;  %v2768_v33 = vmul.f32 1.442695, %v2745_v46 }
 0x631   : > { %v2240_v59 = vpack.c.bf16 %v6285_v2, %v6283_v44  ;;  %v6301_v18 = vpop.eup %3907 }
 0x632   : > { %v3910_v51 = vpop.eup %3909  ;;  %3911 = vpow2.f32 %v2768_v33 }
 0x633   : > { %2280 = vmatmul.bf16.vlgmr.msrb.gmra.mxu3 %v2240_v59  ;;  %2839 = vmatmul.bf16.gmra.mxu2 %v2819_v23  ;;  %v2820_v55 = vpack.c.bf16 %v3910_v51, %v6301_v18  ;;  %3913 = vpow2.f32 %v2766_v36 }
 0x634   : > { %v6295_v26 = vpop.f32.mrf.mxu0 }
 0x635   : > { %2726 = vmax.xlane.f32.xlu2 %v6295_v26  ;;  %v2723_v40 = vpop.xlane.xlu0 %2722 }
 0x636   : > { %v2746_v32 = vsub.f32 %v6232_v39, %v2723_v40 }
 0x637   : > { %v6329_v23 = vpop.f32.mrf.mxu1 }
 0x638   : > { %v3912_v25 = vpop.eup %3911  ;;  %v2770_v59 = vmul.f32 1.442695, %v2746_v32 }
 0x639   : > { %v6319_v22 = vpop.eup %3913 }
 0x63a   : > { %v2821_v29 = vpack.c.bf16 %v3912_v25, %v6319_v22  ;;  %3915 = vpow2.f32 %v2770_v59 }
 0x63c   : > { %v6298_v37 = vpop.f32.mrf.mxu0 }
 0x63d   : > { %2728 = vmax.xlane.f32.xlu1 %v6298_v37 }
 0x63f   : > { %v6337_v35 = vpop.f32.mrf.mxu1 }
 0x640   : > { %v3916_v39 = vpop.eup %3915 }
 0x643   : > { %2844 = vmatmul.bf16.gmra.mxu2 %v2820_v55 }
 0x644   : > { %v6308_v45 = vpop.f32.mrf.mxu0 }
 0x645   : > { %2134 = vmax.xlane.f32.xlu1 %v6246_v38  ;;  %2730 = vmax.xlane.f32.xlu0 %v6308_v45 }
 0x64c   : > { %v6314_v63 = vpop.f32.mrf.mxu0 }
 0x64d   : > { %1496 = vadd.xlane.f32.xlu1 %v5865_v11  ;;  %2140 = vmax.xlane.f32.xlu0 %v6303_v19  ;;  %v2772_v11 = vmul.f32 1.442695, %v2747_v47 }
 0x64e   : > { %2732 = vmax.xlane.f32.xlu2 %v6314_v63 }
 0x64f   : > { %3917 = vpow2.f32 %v2772_v11 }
 0x653   : > { %2849 = vmatmul.bf16.gmra.mxu2 %v2821_v29 }
 0x655   : > { %2138 = vmax.xlane.f32.xlu1 %v6293_v12  ;;  %1498 = vadd.xlane.f32.xlu0 %v5880_v60  ;;  %v6334_v21 = vpop.eup %3917 }
 0x656   : > { %1494 = vadd.xlane.f32.xlu2 %v5863_v56  ;;  %v2822_v16 = vpack.c.bf16 %v6334_v21, %v3916_v39  ;;  %v6342_v56 = vpop.f32.mrf.mxu1 }
 0x65d   : > { %1502 = vadd.xlane.f32.xlu1 %v5970_v13  ;;  %1504 = vadd.xlane.f32.xlu0 %v5968_v14  ;;  %v6364_v13 = vpop.f32.mrf.mxu3 }
 0x65e   : > { %1500 = vadd.xlane.f32.xlu2 %v5884_v43  ;;  %v6347_v60 = vpop.f32.mrf.mxu1 }
 0x663   : > { %2854 = vmatmul.bf16.gmra.mxu2 %v2822_v16 }
 0x665   : > { %2142 = vmax.xlane.f32.xlu1 %v6312_v52  ;;  %2146 = vmax.xlane.f32.xlu0 %v6329_v23 }
 0x666   : > { %1506 = vadd.xlane.f32.xlu2 %v6063_v57  ;;  %v6354_v43 = vpop.f32.mrf.mxu1  ;;  %v6371_v57 = vpop.f32.mrf.mxu3 }
 0x66d   : > { %2144 = vmax.xlane.f32.xlu1 %v6321_v10  ;;  %2148 = vmax.xlane.f32.xlu0 %v6337_v35 }
 0x66e   : > { %2150 = vmax.xlane.f32.xlu2 %v6342_v56  ;;  %v6360_v14 = vpop.f32.mrf.mxu1 }
 0x675   : > { %1508 = vadd.xlane.f32.xlu1 %v6067_v8  ;;  %1510 = vadd.xlane.f32.xlu0 %v6093_v34 }
 0x676   : > { %2152 = vmax.xlane.f32.xlu2 %v6347_v60  ;;  %v6366_v8 = vpop.f32.mrf.mxu1 }
 0x67d   : > { %1514 = vadd.xlane.f32.xlu1 %v6152_v27  ;;  %1516 = vadd.xlane.f32.xlu0 %v6136_v17  ;;  %v6378_v27 = vpop.f32.mrf.mxu3 }
 0x67e   : > { %1512 = vadd.xlane.f32.xlu2 %v6095_v9  ;;  %v6373_v34 = vpop.f32.mrf.mxu1  ;;  %v2162_v9 = vsub.f32 %v6209_v3, %v6267_v5  ;;  %v2137_v3 = vpop.xlane.xlu0 %2136 }
 0x680   : > { %v2180_v17 = vmul.f32 1.442695, %v2162_v9 }
 0x682   : > { %3919 = vpow2.f32 %v2180_v17 }
 0x685   : > { %2786 = vadd.xlane.f32.xlu1 %v6272_v7  ;;  %2788 = vadd.xlane.f32.xlu0 %v6269_v30  ;;  %v6385_v61 = vpop.f32.mrf.mxu3 }
 0x686   : > { %2790 = vadd.xlane.f32.xlu2 %v6279_v48  ;;  %v6380_v30 = vpop.f32.mrf.mxu1 }
 0x68d   : > { %2792 = vadd.xlane.f32.xlu1 %v6281_v42  ;;  %2794 = vadd.xlane.f32.xlu0 %v6301_v18 }
 0x68e   : > { %2796 = vadd.xlane.f32.xlu2 %v3910_v51  ;;  %v6389_v51 = vpop.f32.mrf.mxu3 }
 0x695   : > { %2154 = vmax.xlane.f32.xlu1 %v6354_v43  ;;  %2158 = vmax.xlane.f32.xlu0 %v6366_v8 }
 0x696   : > { %2208 = vadd.xlane.f32.xlu2 %v6283_v44  ;;  %v3920_v44 = vpop.eup %3919 }
 0x69d   : > { %2156 = vmax.xlane.f32.xlu1 %v6360_v14  ;;  %2800 = vadd.xlane.f32.xlu0 %v3912_v25  ;;  %v6396_v25 = vpop.f32.mrf.mxu3 }
 0x69e   : > { %2802 = vadd.xlane.f32.xlu2 %v3916_v39 }
 0x6a5   : > { %2734 = vmax.xlane.f32.xlu1 %v6373_v34  ;;  %2736 = vmax.xlane.f32.xlu0 %v6380_v30 }
 0x6a6   : > { %v2835_v15 = vpop.f32.mrf.mxu2 }
 0x6a8   : > { %v2727_v7 = vpop.xlane.xlu2 %2726 }
 0x6a9   : > { %v2748_v48 = vsub.f32 %v6295_v26, %v2727_v7  ;;  %v2164_v26 = vsub.f32 %v6256_v1, %v2137_v3 }
 0x6ab   : > { %v2774_v42 = vmul.f32 1.442695, %v2748_v48 }
 0x6ad   : > { %3921 = vpow2.f32 %v2774_v42  ;;  %2210 = vadd.xlane.f32.xlu1 %v6285_v2  ;;  %2212 = vadd.xlane.f32.xlu0 %v3920_v44  ;;  %v2184_v2 = vmul.f32 1.442695, %v2164_v26 }
 0x6b0   : > { %v2729_v5 = vpop.xlane.xlu1 %2728 }
 0x6b1   : > { %v2749_v54 = vsub.f32 %v6298_v37, %v2729_v5 }
 0x6b3   : > { %v3922_v18 = vpop.eup %3921  ;;  %v2776_v0 = vmul.f32 1.442695, %v2749_v54 }
 0x6b5   : > { %3923 = vpow2.f32 %v2776_v0  ;;  %2798 = vadd.xlane.f32.xlu1 %v6319_v22  ;;  %2806 = vadd.xlane.f32.xlu0 %v3922_v18 }
 0x6b8   : > { %v2135_v46 = vpop.xlane.xlu1 %2134  ;;  %v2731_v55 = vpop.xlane.xlu0 %2730 }
 0x6b9   : > { %v2163_v53 = vsub.f32 %v6246_v38, %v2135_v46  ;;  %v2750_v40 = vsub.f32 %v6308_v45, %v2731_v55 }
 0x6bb   : > { %v3924_v33 = vpop.eup %3923  ;;  %v2182_v36 = vmul.f32 1.442695, %v2163_v53  ;;  %v2778_v24 = vmul.f32 1.442695, %v2750_v40 }
 0x6bc   : > { %2808 = vadd.xlane.f32.xlu2 %v3924_v33  ;;  %v2823_v37 = vpack.c.bf16 %v3924_v33, %v3922_v18 }
 0x6bd   : > { %3925 = vpow2.f32 %v2182_v36  ;;  %2804 = vadd.xlane.f32.xlu1 %v6334_v21  ;;  %v6400_v21 = vpop.f32.mrf.mxu3 }
 0x6be   : > { %3927 = vpow2.f32 %v2184_v2  ;;  %2859 = vmatmul.bf16.gmra.mxu2 %v2823_v37 }
 0x6bf   : > { %3929 = vpow2.f32 %v2778_v24 }
 0x6c0   : > { %v1497_v1 = vpop.xlane.xlu1 %1496  ;;  %v2141_v22 = vpop.xlane.xlu0 %2140 }
 0x6c1   : > { %v2166_v32 = vsub.f32 %v6303_v19, %v2141_v22  ;;  %v2733_v38 = vpop.xlane.xlu2 %2732 }
 0x6c2   : > { %v2751_v29 = vsub.f32 %v6314_v63, %v2733_v38 }
 0x6c3   : > { %v3926_v47 = vpop.eup %3925  ;;  %v2188_v59 = vmul.f32 1.442695, %v2166_v32 }
 0x6c4   : > { %v3928_v45 = vpop.eup %3927  ;;  %v2780_v11 = vmul.f32 1.442695, %v2751_v29  ;;  %2214 = vadd.xlane.f32.xlu2 %v3926_v47  ;;  %v2241_v39 = vpack.c.bf16 %v3926_v47, %v3920_v44 }
 0x6c5   : > { %3931 = vpow2.f32 %v2188_v59  ;;  %2216 = vadd.xlane.f32.xlu1 %v3928_v45  ;;  %v3930_v7 = vpop.eup %3929  ;;  %v6407_v54 = vpop.f32.mrf.mxu3 }
 0x6c6   : > { %3933 = vpow2.f32 %v2780_v11  ;;  %2285 = vmatmul.bf16.gmra.mxu3 %v2241_v39 }
 0x6c8   : > { %v2139_v16 = vpop.xlane.xlu1 %2138  ;;  %v1499_v9 = vpop.xlane.xlu0 %1498 }
 0x6c9   : > { %v2165_v19 = vsub.f32 %v6293_v12, %v2139_v16  ;;  %v1495_v17 = vpop.xlane.xlu2 %1494 }
 0x6cb   : > { %v3932_v63 = vpop.eup %3931  ;;  %v2186_v48 = vmul.f32 1.442695, %v2165_v19 }
 0x6cc   : > { %v3934_v42 = vpop.eup %3933  ;;  %2220 = vadd.xlane.f32.xlu2 %v3932_v63 }
 0x6cd   : > { %3935 = vpow2.f32 %v2186_v48  ;;  %2812 = vadd.xlane.f32.xlu0 %v3934_v42  ;;  %2810 = vadd.xlane.f32.xlu1 %v3930_v7  ;;  %v2824_v44 = vpack.c.bf16 %v3934_v42, %v3930_v7  ;;  %v6412_v40 = vpop.f32.mrf.mxu3 }
 0x6ce   : > { %3937 = vrcp.f32 %v1495_v17 }
 0x6cf   : > { %2864 = vmatmul.bf16.gmra.mxu2 %v2824_v44  ;;  %3939 = vrcp.f32 %v1497_v1 }
 0x6d0   : > { %v6403_v3 = vpop.xlane.xlu1 %1502  ;;  %v6405_v5 = vpop.xlane.xlu0 %1504 }
 0x6d1   : > { %v1501_v12 = vpop.xlane.xlu2 %1500 }
 0x6d3   : > { %v3936_v18 = vpop.eup %3935 }
 0x6d4   : > { %v2242_v0 = vpack.c.bf16 %v3936_v18, %v3928_v45  ;;  %v3938_v26 = vpop.eup %3937 }
 0x6d5   : > { %2218 = vadd.xlane.f32.xlu0 %v3936_v18  ;;  %v3940_v46 = vpop.eup %3939  ;;  %v1595_v55 = vmul.f32 %v3938_v26, %v6364_v13  ;;  %v6423_v45 = vpop.f32.mrf.mxu3 }
 0x6d6   : > { %2290 = vmatmul.bf16.gmra.mxu3 %v2242_v0  ;;  %v1596_v36 = vmul.f32 %v3940_v46, %v6371_v57  ;;  %v2837_v46 = vpop.f32.mrf.mxu2 }
 0x6d7   : > { %v1611_v1 = vpack.c.bf16 %v1595_v55, %v1595_v55 }
 0x6d8   : > { %v2143_v53 = vpop.xlane.xlu1 %2142  ;;  %v2147_v2 = vpop.xlane.xlu0 %2146  ;;  %v1612_v22 = vpack.c.bf16 %v1596_v36, %v1596_v36 }
 0x6d9   : > { %v2167_v33 = vsub.f32 %v6312_v52, %v2143_v53  ;;  %v6414_v24 = vpop.xlane.xlu2 %1506  ;;  %v2983_v32 = vunpack.c.l.b16 %v1611_v1  ;;  %v2169_v11 = vsub.f32 %v6329_v23, %v2147_v2 }
 0x6da   : > { %v2984_v13 = vunpack.c.l.b16 %v1612_v22 }
 0x6db   : > { %v2190_v37 = vmul.f32 1.442695, %v2167_v33  ;;  %v2194_v20 = vmul.f32 1.442695, %v2169_v11 }
 0x6dc   : > { %v2997_v59 = vpack.c.b16 %v2984_v13, %v2983_v32 }
 0x6dd   : > { %3941 = vpow2.f32 %v2190_v37  ;;  %v1570_v17 = vpop.f32.mrf.mxu3 }
 0x6de   : > { %3943 = vrcp.f32 %v6216_v50 }
 0x6df   : > { %3945 = vrcp.f32 %v6201_v49 }
 0x6e0   : > { %v2145_v38 = vpop.xlane.xlu1 %2144  ;;  %v2149_v29 = vpop.xlane.xlu0 %2148  ;;  %3947 = vrcp.f32 %v1501_v12 }
 0x6e1   : > { %v2168_v52 = vsub.f32 %v6321_v10, %v2145_v38  ;;  %v2151_v39 = vpop.xlane.xlu2 %2150  ;;  %3949 = vrcp.f32 %v1499_v9  ;;  %v2170_v18 = vsub.f32 %v6337_v35, %v2149_v29 }
 0x6e2   : > { %v2171_v55 = vsub.f32 %v6342_v56, %v2151_v39 }
 0x6e3   : > { %v3942_v47 = vpop.eup %3941  ;;  %v2192_v49 = vmul.f32 1.442695, %v2168_v52  ;;  %v2196_v33 = vmul.f32 1.442695, %v2170_v18 }
 0x6e4   : > { %3005 = vrot.lane.b32.xlu2 %v2996_v58, %s4137_s9  ;;  %2222 = vadd.xlane.f32.xlu0 %v3942_v47  ;;  %v2243_v57 = vpack.c.bf16 %v3942_v47, %v3932_v63  ;;  %v3944_v50 = vpop.eup %3943  ;;  %v2198_v32 = vmul.f32 1.442695, %v2171_v55 }
 0x6e5   : > { %v3946_v19 = vpop.eup %3945  ;;  %v1592_v58 = vmul.f32 %v3944_v50, %v6253_v41  ;;  %3951 = vpow2.f32 %v2192_v49  ;;  %v1572_v22 = vpop.f32.mrf.mxu3 }
 0x6e6   : > { %2295 = vmatmul.bf16.gmra.mxu3 %v2243_v57  ;;  %3007 = vrot.lane.b32.xlu1 %v2997_v59, %s4137_s9  ;;  %v1591_v23 = vmul.f32 %v3946_v19, %v6236_v31  ;;  %3953 = vpow2.f32 %v2194_v20  ;;  %v3948_v63 = vpop.eup %3947  ;;  %v6448_v50 = vpop.f32.mrf.mxu2 }
 0x6e7   : > { %v1608_v7 = vpack.c.bf16 %v1592_v58, %v1592_v58  ;;  %v3950_v42 = vpop.eup %3949  ;;  %v1598_v9 = vmul.f32 %v3948_v63, %v6385_v61 }
 0x6e8   : > { %v6427_v16 = vpop.xlane.xlu1 %1508  ;;  %v6429_v10 = vpop.xlane.xlu0 %1510  ;;  %v1607_v44 = vpack.c.bf16 %v1591_v23, %v1591_v23  ;;  %v1597_v2 = vmul.f32 %v3950_v42, %v6378_v27 }
 0x6e9   : > { %v6433_v48 = vpop.xlane.xlu2 %2152  ;;  %v2980_v41 = vunpack.c.l.b16 %v1608_v7  ;;  %v1614_v36 = vpack.c.bf16 %v1598_v9, %v1598_v9 }
 0x6ea   : > { %v2979_v53 = vunpack.c.l.b16 %v1607_v44  ;;  %v1613_v38 = vpack.c.bf16 %v1597_v2, %v1597_v2  ;;  %v2172_v9 = vsub.f32 %v6347_v60, %v6433_v48 }
 0x6eb   : > { %v6436_v12 = vpop.eup %3951  ;;  %v2986_v52 = vunpack.c.l.b16 %v1614_v36 }
 0x6ec   : > { %v6439_v31 = vpop.eup %3953  ;;  %v2995_v37 = vpack.c.b16 %v2980_v41, %v2979_v53  ;;  %v2985_v11 = vunpack.c.l.b16 %v1613_v38 }
 0x6ed   : > { %v2244_v35 = vpack.c.bf16 %v6439_v31, %v6436_v12 }
 0x6ee   : > { %v2998_v20 = vpack.c.b16 %v2986_v52, %v2985_v11 }
 0x6f0   : > { %v1515_v0 = vpop.xlane.xlu1 %1514  ;;  %v1517_v26 = vpop.xlane.xlu0 %1516 }
 0x6f1   : > { %3955 = vrcp.f32 %v1515_v0  ;;  %v1513_v27 = vpop.xlane.xlu2 %1512 }
 0x6f2   : > { %3957 = vrcp.f32 %v1517_v26 }
 0x6f3   : > { %3959 = vpow2.f32 %v2196_v33 }
 0x6f6   : > { %2300 = vmatmul.bf16.gmra.mxu3 %v2244_v35  ;;  %v2200_v35 = vmul.f32 1.442695, %v2172_v9 }
 0x6f7   : > { %v3956_v1 = vpop.eup %3955 }
 0x6f8   : > { %v3958_v61 = vpop.eup %3957  ;;  %v1605_v29 = vmul.f32 %v3956_v1, %v1570_v17  ;;  %v2787_v13 = vpop.xlane.xlu1 %2786  ;;  %3003 = vrot.lane.b32.xlu0 %v2995_v37, %s4137_s9 }
 0x6f9   : > { %v2789_v47 = vpop.xlane.xlu0 %2788  ;;  %v1606_v56 = vmul.f32 %v3958_v61, %v1572_v22  ;;  %3961 = vrcp.f32 %v2787_v13  ;;  %v6452_v19 = vpop.eup %3959 }
 0x6fa   : > { %v1621_v57 = vpack.c.bf16 %v1605_v29, %v1605_v29  ;;  %3963 = vrcp.f32 %v2789_v47  ;;  %v6461_v41 = vpop.xlane.xlu2 %2790 }
 0x6fb   : > { %3965 = vpow2.f32 %v2198_v32  ;;  %v1622_v59 = vpack.c.bf16 %v1606_v56, %v1606_v56 }
 0x6fc   : > { %v6446_v39 = vunpack.c.l.b16 %v1621_v57 }
 0x6fd   : > { %v6450_v49 = vunpack.c.l.b16 %v1622_v59 }
 0x6ff   : > { %v3962_v58 = vpop.eup %3961  ;;  %v3002_v23 = vpack.c.b16 %v6450_v49, %v6446_v39 }
 0x700   : > { %v3964_v17 = vpop.eup %3963  ;;  %v2891_v7 = vmul.f32 %v3962_v58, %v2835_v15  ;;  %v2793_v63 = vpop.xlane.xlu1 %2792  ;;  %3009 = vrot.lane.b32.xlu0 %v2998_v20, %s4137_s9 }
 0x701   : > { %v6457_v42 = vpop.eup %3965  ;;  %v2892_v44 = vmul.f32 %v3964_v17, %v2837_v46  ;;  %3967 = vrcp.f32 %v2793_v63  ;;  %v6459_v0 = vpop.xlane.xlu0 %2794 }
 0x702   : > { %v2907_v18 = vpack.c.bf16 %v2891_v7, %v2891_v7  ;;  %v2245_v15 = vpack.c.bf16 %v6457_v42, %v6452_v19  ;;  %v2842_v46 = vpop.f32.mrf.mxu2  ;;  %3969 = vrcp.f32 %v6403_v3  ;;  %v6477_v22 = vpop.xlane.xlu2 %2796 }
 0x703   : > { %v2908_v26 = vpack.c.bf16 %v2892_v44, %v2892_v44  ;;  %3971 = vpow2.f32 %v2200_v35 }
 0x704   : > { %v6465_v55 = vunpack.c.l.b16 %v2907_v18 }
 0x705   : > { %v6469_v53 = vunpack.c.l.b16 %v2908_v26 }
 0x706   : > { %2305 = vmatmul.bf16.gmra.mxu3 %v2245_v15 }
 0x707   : > { %v3968_v2 = vpop.eup %3967  ;;  %v3091_v33 = vpack.c.b16 %v6469_v53, %v6465_v55 }
 0x708   : > { %v6473_v36 = vmul.f32 %v3968_v2, %v2842_v46  ;;  %v2155_v37 = vpop.xlane.xlu1 %2154  ;;  %v3970_v61 = vpop.eup %3969 }
 0x709   : > { %v2173_v1 = vsub.f32 %v6354_v43, %v2155_v37  ;;  %v2159_v48 = vpop.xlane.xlu0 %2158  ;;  %v6482_v38 = vpop.eup %3971 }
 0x70a   : > { %v2209_v56 = vpop.xlane.xlu2 %2208 }
 0x70b   : > { %v2202_v60 = vmul.f32 1.442695, %v2173_v1 }
 0x70d   : > { %3973 = vpow2.f32 %v2202_v60  ;;  %2224 = vadd.xlane.f32.xlu2 %v6436_v12  ;;  %v2175_v12 = vsub.f32 %v6366_v8, %v2159_v48  ;;  %v2281_v8 = vpop.f32.mrf.mxu3 }
 0x70e   : > { %3975 = vrcp.f32 %v6405_v5 }
 0x70f   : > { %3977 = vrcp.f32 %v1513_v27 }
 0x710   : > { %v2157_v32 = vpop.xlane.xlu1 %2156  ;;  %2226 = vadd.xlane.f32.xlu1 %v6439_v31  ;;  %3979 = vrcp.f32 %v6429_v10  ;;  %v1599_v31 = vmul.f32 %v3970_v61, %v6389_v51 }
 0x711   : > { %v2174_v3 = vsub.f32 %v6360_v14, %v2157_v32  ;;  %v6491_v5 = vpop.xlane.xlu0 %2800  ;;  %v2206_v14 = vmul.f32 1.442695, %v2175_v12  ;;  %3981 = vrcp.f32 %v2209_v56 }
 0x712   : > { %v1615_v10 = vpack.c.bf16 %v1599_v31, %v1599_v31 }
 0x713   : > { %v6484_v43 = vpop.eup %3973  ;;  %v2204_v27 = vmul.f32 1.442695, %v2174_v3 }
 0x714   : > { %v3976_v29 = vpop.eup %3975  ;;  %v2246_v13 = vpack.c.bf16 %v6484_v43, %v6482_v38  ;;  %v2987_v17 = vunpack.c.l.b16 %v1615_v10 }
 0x715   : > { %v1600_v47 = vmul.f32 %v3976_v29, %v6396_v25  ;;  %v3978_v52 = vpop.eup %3977  ;;  %3983 = vpow2.f32 %v2204_v27  ;;  %v2283_v32 = vpop.f32.mrf.mxu3 }
 0x716   : > { %2310 = vmatmul.bf16.gmra.mxu3 %v2246_v13  ;;  %v3980_v59 = vpop.eup %3979  ;;  %v1604_v20 = vmul.f32 %v3978_v52, %v6423_v45  ;;  %3985 = vpow2.f32 %v2206_v14  ;;  %v6502_v45 = vpop.f32.mrf.mxu2 }
 0x717   : > { %v1616_v11 = vpack.c.bf16 %v1600_v47, %v1600_v47  ;;  %v1603_v58 = vmul.f32 %v3980_v59, %v6412_v40  ;;  %v3982_v25 = vpop.eup %3981  ;;  %v7082_v59 = vld [vmem:[#allocation26_spill] sm:$0xff] }
 0x718   : > { %v2735_v57 = vpop.xlane.xlu1 %2734  ;;  %v1620_v7 = vpack.c.bf16 %v1604_v20, %v1604_v20  ;;  %v2337_v35 = vmul.f32 %v3982_v25, %v2281_v8 }
 0x719   : > { %v2988_v51 = vunpack.c.l.b16 %v1616_v11  ;;  %v2737_v63 = vpop.xlane.xlu0 %2736  ;;  %v1619_v26 = vpack.c.bf16 %v1603_v58, %v1603_v58  ;;  %v2752_v9 = vsub.f32 %v6373_v34, %v2735_v57  ;;  %v6509_v34 = vpop.xlane.xlu2 %2802 }
 0x71a   : > { %v2992_v2 = vunpack.c.l.b16 %v1620_v7  ;;  %v2753_v40 = vsub.f32 %v6380_v30, %v2737_v63  ;;  %v2353_v29 = vpack.c.bf16 %v2337_v35, %v2337_v35 }
 0x71b   : > { %v6497_v18 = vpop.eup %3983  ;;  %v2999_v46 = vpack.c.b16 %v2988_v51, %v2987_v17  ;;  %v2991_v1 = vunpack.c.l.b16 %v1619_v26  ;;  %v2782_v60 = vmul.f32 1.442695, %v2752_v9 }
 0x71c   : > { %v6500_v15 = vpop.eup %3985  ;;  %v2784_v61 = vmul.f32 1.442695, %v2753_v40  ;;  %v6516_v31 = vunpack.c.l.b16 %v2353_v29 }
 0x71d   : > { %v2247_v37 = vpack.c.bf16 %v6500_v15, %v6497_v18  ;;  %v3001_v3 = vpack.c.b16 %v2992_v2, %v2991_v1 }
 0x71e   : > { %v6518_v47 = vpop.f32.mrf.mxu2 }
 0x720   : > { %v2211_v44 = vpop.xlane.xlu1 %2210 }
 0x721   : > { %3987 = vrcp.f32 %v2211_v44  ;;  %v7084_v44 = vld [vmem:[#allocation31_spill] sm:$0xff]  ;;  %v2213_v26 = vpop.xlane.xlu0 %2212 }
 0x722   : > { %3989 = vrcp.f32 %v6427_v16 }
 0x723   : > { %3991 = vrcp.f32 %v6414_v24 }
 0x724   : > { %3993 = vpow2.f32 %v2782_v60 }
 0x725   : > { %3011 = vrot.lane.b32.xlu2 %v2999_v46, %s4137_s9  ;;  %3995 = vpow2.f32 %v2784_v61 }
 0x726   : > { %2315 = vmatmul.bf16.gmra.mxu3 %v2247_v37  ;;  %3997 = vrcp.f32 %v5716_v62  ;;  %v6531_v58 = vpop.f32.mrf.mxu2 }
 0x727   : > { %v3988_v48 = vpop.eup %3987  ;;  %3999 = vrcp.f32 %v7082_v59 }
 0x728   : > { %v2338_v30 = vmul.f32 %v3988_v48, %v2283_v32  ;;  %v3990_v16 = vpop.eup %3989  ;;  %4001 = vrcp.f32 %v2213_v26 }
 0x729   : > { %3015 = vrot.lane.b32.xlu1 %v3001_v3, %s4137_s9  ;;  %v3992_v27 = vpop.eup %3991  ;;  %v1602_v57 = vmul.f32 %v3990_v16, %v6407_v54  ;;  %v7083_v54 = vld [vmem:[#allocation50_spill] sm:$0xff]  ;;  %v6540_v60 = vpop.xlane.xlu0 %2806 }
 0x72a   : > { %v2354_v13 = vpack.c.bf16 %v2338_v30, %v2338_v30  ;;  %2228 = vadd.xlane.f32.xlu0 %v6452_v19  ;;  %v3994_v24 = vpop.eup %3993  ;;  %v1601_v19 = vmul.f32 %v3992_v27, %v6400_v21  ;;  %v6535_v21 = vpop.xlane.xlu1 %2798 }
 0x72b   : > { %v6525_v14 = vpop.eup %3995  ;;  %v1618_v10 = vpack.c.bf16 %v1602_v57, %v1602_v57 }
 0x72c   : > { %v6514_v12 = vunpack.c.l.b16 %v2354_v13  ;;  %v2825_v11 = vpack.c.bf16 %v6525_v14, %v3994_v24  ;;  %v1617_v20 = vpack.c.bf16 %v1601_v19, %v1601_v19  ;;  %v3998_v8 = vpop.eup %3997 }
 0x72d   : > { %v2990_v51 = vunpack.c.l.b16 %v1618_v10  ;;  %v4000_v7 = vpop.eup %3999  ;;  %v1080_v25 = vmul.f32 %v3998_v8, %v7083_v54 }
 0x72e   : > { %v3051_v56 = vpack.c.b16 %v6514_v12, %v6516_v31  ;;  %v2989_v63 = vunpack.c.l.b16 %v1617_v20  ;;  %v1079_v62 = vmul.f32 %v4000_v7, %v7084_v44  ;;  %v6538_v35 = vpop.f32.mrf.mxu2  ;;  %v4002_v29 = vpop.eup %4001 }
 0x72f   : > { %v6522_v52 = vpop.xlane.xlu2 %2808  ;;  %v1096_v2 = vpack.c.bf16 %v1080_v25, %v1080_v25 }
 0x730   : > { %v3000_v9 = vpack.c.b16 %v2990_v51, %v2989_v63  ;;  %v1095_v46 = vpack.c.bf16 %v1079_v62, %v1079_v62 }
 0x731   : > { %v2942_v37 = vunpack.c.l.b16 %v1096_v2 }
 0x732   : > { %v2941_v1 = vunpack.c.l.b16 %v1095_v46  ;;  %v2805_v48 = vpop.xlane.xlu1 %2804 }
 0x734   : > { %v2956_v32 = vpack.c.b16 %v2942_v37, %v2941_v1 }
 0x736   : > { %2869 = vmatmul.bf16.vlgmr.msra.gmra.mxu3 %v2825_v11  ;;  %v6545_v16 = vpop.f32.mrf.mxu2 }
 0x737   : > { %v2215_v17 = vpop.xlane.xlu2 %2214 }
 0x738   : > { %4003 = vrcp.f32 %v2215_v17 }
 0x73a   : > { %v2217_v57 = vpop.xlane.xlu1 %2216 }
 0x73b   : > { %4005 = vrcp.f32 %v2217_v57 }
 0x73e   : > { %3013 = vrot.lane.b32.xlu0 %v3000_v9, %s4137_s9  ;;  %v4004_v19 = vpop.eup %4003  ;;  %v2857_v8 = vpop.f32.mrf.mxu2 }
 0x73f   : > { %v2221_v40 = vpop.xlane.xlu2 %2220 }
 0x740   : > { %v6547_v27 = vpop.xlane.xlu0 %2812 }
 0x741   : > { %v4006_v54 = vpop.eup %4005 }
 0x746   : > { %v6559_v44 = vpop.f32.mrf.mxu2 }
 0x747   : > { %v3006_v61 = vpop.permute.xlu2 %3005 }
 0x748   : > { %v6543_v3 = vsel %vm746_vm1, %v2956_v32, %v3006_v61  ;;  %v2219_v17 = vpop.xlane.xlu0 %2218 }
 0x749   : > { %v2286_v30 = vpop.f32.mrf.mxu3  ;;  %4007 = vrcp.f32 %v2219_v17 }
 0x74a   : > { %v2339_v13 = vmul.f32 %v4002_v29, %v2286_v30  ;;  %4009 = vrcp.f32 %v2221_v40  ;;  %v2910_v30 = vpack.c.bf16 %v6473_v36, %v6473_v36 }
 0x74b   : > { %4011 = vrcp.f32 %v6461_v41 }
 0x74c   : > { %v2355_v10 = vpack.c.bf16 %v2339_v13, %v2339_v13  ;;  %4013 = vrcp.f32 %v6459_v0 }
 0x74d   : > { %4015 = vrcp.f32 %v6477_v22 }
 0x74e   : > { %2230 = vadd.xlane.f32.xlu2 %v6457_v42  ;;  %v6551_v51 = vunpack.c.l.b16 %v2355_v10  ;;  %v2862_v46 = vpop.f32.mrf.mxu2 }
 0x751   : > { %v2288_v59 = vpop.f32.mrf.mxu3 }
 0x752   : > { %v2340_v11 = vmul.f32 %v4004_v19, %v2288_v59 }
 0x753   : > { %2232 = vadd.xlane.f32.xlu1 %v6482_v38  ;;  %v4008_v38 = vpop.eup %4007 }
 0x754   : > { %v2356_v20 = vpack.c.bf16 %v2340_v11, %v2340_v11  ;;  %v4010_v40 = vpop.eup %4009 }
 0x755   : > { %v4012_v1 = vpop.eup %4011 }
 0x756   : > { %v6553_v7 = vunpack.c.l.b16 %v2356_v20  ;;  %2236 = vadd.xlane.f32.xlu2 %v6497_v18  ;;  %v4014_v32 = vpop.eup %4013  ;;  %v2893_v22 = vmul.f32 %v4012_v1, %v6448_v50  ;;  %v2865_v13 = vpop.f32.mrf.mxu2  ;;  %v3078_v20 = vunpack.c.l.b16 %v2910_v30 }
 0x757   : > { %v4016_v0 = vpop.eup %4015  ;;  %v2895_v61 = vmul.f32 %v4014_v32, %v6502_v45  ;;  %v2811_v45 = vpop.xlane.xlu1 %2810 }
 0x758   : > { %v3052_v42 = vpack.c.b16 %v6553_v7, %v6551_v51  ;;  %v2896_v29 = vmul.f32 %v4016_v0, %v6518_v47  ;;  %v2909_v59 = vpack.c.bf16 %v2893_v22, %v2893_v22 }
 0x759   : > { %v2291_v25 = vpop.f32.mrf.mxu3  ;;  %v2911_v50 = vpack.c.bf16 %v2895_v61, %v2895_v61 }
 0x75a   : > { %v2341_v63 = vmul.f32 %v4006_v54, %v2291_v25  ;;  %v2912_v10 = vpack.c.bf16 %v2896_v29, %v2896_v29 }
 0x75b   : > { %2238 = vadd.xlane.f32.xlu1 %v6500_v15 }
 0x75c   : > { %v2357_v26 = vpack.c.bf16 %v2341_v63, %v2341_v63  ;;  %v3077_v63 = vunpack.c.l.b16 %v2909_v59 }
 0x75e   : > { %2814 = vadd.xlane.f32.xlu2 %v3994_v24  ;;  %v6565_v2 = vunpack.c.l.b16 %v2357_v26  ;;  %v2223_v24 = vpop.xlane.xlu0 %2222  ;;  %v3092_v49 = vpack.c.b16 %v3078_v20, %v3077_v63 }
 0x75f   : > { %4017 = vrcp.f32 %v2223_v24 }
 0x760   : > { %4019 = vrcp.f32 %v6535_v21 }
 0x761   : > { %v2293_v62 = vpop.f32.mrf.mxu3  ;;  %4021 = vrcp.f32 %v2805_v48 }
 0x762   : > { %v2342_v9 = vmul.f32 %v4008_v38, %v2293_v62  ;;  %4023 = vrcp.f32 %v6491_v5  ;;  %v3080_v38 = vunpack.c.l.b16 %v2912_v10 }
 0x763   : > { %2816 = vadd.xlane.f32.xlu1 %v6525_v14  ;;  %4025 = vrcp.f32 %v6509_v34 }
 0x764   : > { %v2358_v18 = vpack.c.bf16 %v2342_v9, %v2342_v9  ;;  %4027 = vrcp.f32 %v6522_v52 }
 0x765   : > { %4029 = vrcp.f32 %v6540_v60  ;;  %v3079_v60 = vunpack.c.l.b16 %v2911_v50 }
 0x766   : > { %v6567_v15 = vunpack.c.l.b16 %v2358_v18  ;;  %4031 = vrcp.f32 %v6547_v27 }
 0x767   : > { %4033 = vrcp.f32 %v2811_v45 }
 0x768   : > { %v3053_v37 = vpack.c.b16 %v6567_v15, %v6565_v2  ;;  %2234 = vadd.xlane.f32.xlu0 %v6484_v43  ;;  %v4018_v43 = vpop.eup %4017  ;;  %v7101_v15 = vld [vmem:[#allocation41_spill] sm:$0xff] }
 0x769   : > { %v2296_v14 = vpop.f32.mrf.mxu3  ;;  %v4020_v21 = vpop.eup %4019 }
 0x76a   : > { %v2343_v41 = vmul.f32 %v4010_v40, %v2296_v14  ;;  %v4022_v5 = vpop.eup %4021  ;;  %v2897_v36 = vmul.f32 %v4020_v21, %v6531_v58  ;;  %v2867_v40 = vpop.f32.mrf.mxu2  ;;  %v3093_v14 = vpack.c.b16 %v3080_v38, %v3079_v60 }
 0x76b   : > { %v4024_v47 = vpop.eup %4023  ;;  %v2900_v17 = vmul.f32 %v4022_v5, %v2857_v8 }
 0x76c   : > { %v2359_v48 = vpack.c.bf16 %v2343_v41, %v2343_v41  ;;  %v4026_v11 = vpop.eup %4025  ;;  %v2898_v62 = vmul.f32 %v4024_v47, %v6538_v35  ;;  %v2913_v18 = vpack.c.bf16 %v2897_v36, %v2897_v36 }
 0x76d   : > { %v4028_v25 = vpop.eup %4027  ;;  %v2899_v58 = vmul.f32 %v4026_v11, %v6545_v16  ;;  %v2916_v24 = vpack.c.bf16 %v2900_v17, %v2900_v17 }
 0x76e   : > { %v6583_v52 = vunpack.c.l.b16 %v2359_v48  ;;  %v2902_v8 = vmul.f32 %v4028_v25, %v2862_v46  ;;  %v4030_v9 = vpop.eup %4029  ;;  %v2914_v27 = vpack.c.bf16 %v2898_v62, %v2898_v62  ;;  %v3081_v46 = vunpack.c.l.b16 %v2913_v18 }
 0x76f   : > { %v2901_v39 = vmul.f32 %v4030_v9, %v6559_v44  ;;  %v2915_v1 = vpack.c.bf16 %v2899_v58, %v2899_v58  ;;  %v4032_v16 = vpop.eup %4031  ;;  %v3084_v41 = vunpack.c.l.b16 %v2916_v24  ;;  %v7085_v62 = vpack.c.b16 %v5960_v4, %v5964_v28 }
 0x770   : > { %v2918_v35 = vpack.c.bf16 %v2902_v8, %v2902_v8  ;;  %v2904_v44 = vmul.f32 %v4032_v16, %v2867_v40  ;;  %v4034_v0 = vpop.eup %4033  ;;  %v3082_v22 = vunpack.c.l.b16 %v2914_v27  ;;  %v7086_v27 = vld [vmem:[#allocation27_spill] sm:$0xff] }
 0x771   : > { %v2298_v57 = vpop.f32.mrf.mxu3  ;;  %v2917_v32 = vpack.c.bf16 %v2901_v39, %v2901_v39  ;;  %v3083_v61 = vunpack.c.l.b16 %v2915_v1 }
 0x772   : > { %v2344_v19 = vmul.f32 %v4018_v43, %v2298_v57  ;;  %v3086_v29 = vunpack.c.l.b16 %v2918_v35  ;;  %v2903_v43 = vmul.f32 %v4034_v0, %v2865_v13  ;;  %v2920_v55 = vpack.c.bf16 %v2904_v44, %v2904_v44  ;;  %v7087_v35 = vld [vmem:[#allocation25_spill] sm:$0xff] }
 0x773   : > { %v3085_v21 = vunpack.c.l.b16 %v2917_v32  ;;  %v3094_v53 = vpack.c.b16 %v3082_v22, %v3081_v46  ;;  %v7088_v32 = vld [vmem:[#allocation38_spill] sm:$0xff] }
 0x774   : > { %v2360_v34 = vpack.c.bf16 %v2344_v19, %v2344_v19  ;;  %v2919_v5 = vpack.c.bf16 %v2903_v43, %v2903_v43  ;;  %v3088_v59 = vunpack.c.l.b16 %v2920_v55 }
 0x775   : > { %v3096_v19 = vpack.c.b16 %v3086_v29, %v3085_v21  ;;  %v7090_v21 = vld [vmem:[#allocation32_spill] sm:$0xff] }
 0x776   : > { %v6585_v54 = vunpack.c.l.b16 %v2360_v34  ;;  %3017 = vrot.lane.b32.xlu2 %v3002_v23, %s4137_s9  ;;  %v6597_v23 = vpop.permute.xlu1 %3007  ;;  %v3087_v13 = vunpack.c.l.b16 %v2919_v5 }
 0x778   : > { %v3054_v26 = vpack.c.b16 %v6585_v54, %v6583_v52  ;;  %v3097_v47 = vpack.c.b16 %v3088_v59, %v3087_v13 }
 0x779   : > { %v2301_v30 = vpop.f32.mrf.mxu3 }
 0x77c   : > { %3099 = vrot.lane.b32.xlu0 %v3091_v33, %s4137_s9  ;;  %3101 = vrot.lane.b32.xlu1 %v3092_v49, %s4137_s9  ;;  %v3095_v33 = vpack.c.b16 %v3084_v41, %v3083_v61  ;;  %v6629_v49 = vpop.permute.xlu0 %3003 }
 0x77e   : > { %3103 = vrot.lane.b32.xlu2 %v3093_v14, %s4137_s9 }
 0x780   : > { %v2225_v57 = vpop.xlane.xlu2 %2224 }
 0x781   : > { %4035 = vrcp.f32 %v2225_v57  ;;  %v2303_v34 = vpop.f32.mrf.mxu3 }
 0x783   : > { %v2227_v48 = vpop.xlane.xlu1 %2226 }
 0x784   : > { %4037 = vrcp.f32 %v2227_v48  ;;  %3105 = vrot.lane.b32.xlu0 %v3094_v53, %s4137_s9  ;;  %3107 = vrot.lane.b32.xlu1 %v3095_v33, %s4137_s9  ;;  %v6634_v28 = vpop.permute.xlu0 %3009  ;;  %v7091_v33 = vld [vmem:[#allocation49_spill] sm:$0xff] }
 0x785   : > { %4039 = vrcp.f32 %v7086_v27 }
 0x786   : > { %3109 = vrot.lane.b32.xlu2 %v3096_v19, %s4137_s9 }
 0x787   : > { %v4036_v50 = vpop.eup %4035 }
 0x788   : > { %v2345_v10 = vmul.f32 %v4036_v50, %v2301_v30  ;;  %v6627_v24 = vpop.permute.xlu2 %3011  ;;  %v7089_v30 = vld [vmem:[#allocation33_spill] sm:$0xff] }
 0x789   : > { %v6615_v60 = vpop.f32.mrf.mxu3 }
 0x78a   : > { %v4038_v45 = vpop.eup %4037  ;;  %v2361_v11 = vpack.c.bf16 %v2345_v10, %v2345_v10 }
 0x78b   : > { %v2346_v20 = vmul.f32 %v4038_v45, %v2303_v34  ;;  %v4040_v16 = vpop.eup %4039  ;;  %v7092_v45 = vld [vmem:[#allocation35_spill] sm:$0xff] }
 0x78c   : > { %3111 = vrot.lane.b32.xlu0 %v3097_v47, %s4137_s9  ;;  %v6611_v25 = vunpack.c.l.b16 %v2361_v11  ;;  %v1082_v44 = vmul.f32 %v4040_v16, %v7088_v32  ;;  %v7096_v16 = vld [vmem:[#allocation44_spill] sm:$0xff] }
 0x78d   : > { %v2362_v36 = vpack.c.bf16 %v2346_v20, %v2346_v20 }
 0x78e   : > { %v1098_v53 = vpack.c.bf16 %v1082_v44, %v1082_v44 }
 0x78f   : > { %v6609_v17 = vunpack.c.l.b16 %v2362_v36  ;;  %v7093_v36 = vld [vmem:[#allocation61_spill] sm:$0xff] }
 0x790   : > { %v2944_v47 = vunpack.c.l.b16 %v1098_v53 }
 0x791   : > { %v3055_v63 = vpack.c.b16 %v6609_v17, %v6611_v25  ;;  %v2308_v8 = vpop.f32.mrf.mxu3 }
 0x799   : > { %v6623_v9 = vpop.f32.mrf.mxu3 }
 0x79b   : > { %v3016_v38 = vpop.permute.xlu1 %3015 }
 0x79c   : > { %v6621_v58 = vsel %vm746_vm1, %v7085_v62, %v3016_v38  ;;  %v7094_v38 = vpack.c.b16 %v6044_v6, %v7093_v36  ;;  %v7097_v6 = vld [vmem:[#allocation58_spill] sm:$0xff]  ;;  %v7100_v36 = vld [vmem:[#allocation4_spill] sm:$0xff] }
 0x79d   : > { %v2229_v61 = vpop.xlane.xlu0 %2228  ;;  %v3203_v25 = vunpack.c.l.b16 %v6621_v58 }
 0x7a1   : > { %v6625_v18 = vpop.f32.mrf.mxu3 }
 0x7a9   : > { %v2316_v39 = vpop.f32.mrf.mxu3 }
 0x7b1   : > { %v2318_v1 = vpop.f32.mrf.mxu3 }
 0x7b9   : > { %v2870_v43 = vpop.f32.mrf.mxu3 }
 0x7c1   : > { %v2231_v40 = vpop.xlane.xlu2 %2230 }
 0x7c6   : > { %v6631_v14 = vpop.xlane.xlu1 %2232 }
 0x7c9   : > { %v2237_v4 = vpop.xlane.xlu2 %2236 }
 0x7ca   : > { %4041 = vrcp.f32 %v2237_v4 }
 0x7cb   : > { %4043 = vrcp.f32 %v7087_v35 }
 0x7ce   : > { %v2239_v46 = vpop.xlane.xlu1 %2238 }
 0x7cf   : > { %4045 = vrcp.f32 %v2239_v46 }
 0x7d0   : > { %v4042_v41 = vpop.eup %4041 }
 0x7d1   : > { %v2351_v0 = vmul.f32 %v4042_v41, %v2316_v39  ;;  %v2815_v22 = vpop.xlane.xlu2 %2814  ;;  %v4044_v29 = vpop.eup %4043 }
 0x7d2   : > { %4047 = vrcp.f32 %v2815_v22  ;;  %v1081_v57 = vmul.f32 %v4044_v29, %v7089_v30  ;;  %v3014_v22 = vpop.permute.xlu0 %3013 }
 0x7d3   : > { %4049 = vrcp.f32 %v2231_v40  ;;  %v2367_v48 = vpack.c.bf16 %v2351_v0, %v2351_v0  ;;  %v7098_v0 = vld [vmem:[#allocation51_spill] sm:$0xff] }
 0x7d4   : > { %4051 = vrcp.f32 %v7090_v21  ;;  %v1097_v50 = vpack.c.bf16 %v1081_v57, %v1081_v57 }
 0x7d5   : > { %v4046_v55 = vpop.eup %4045  ;;  %4053 = vrcp.f32 %v2229_v61  ;;  %v6648_v39 = vunpack.c.l.b16 %v2367_v48  ;;  %v2872_v61 = vpop.f32.mrf.mxu3 }
 0x7d6   : > { %4055 = vrcp.f32 %v7091_v33  ;;  %v2352_v19 = vmul.f32 %v4046_v55, %v2318_v1  ;;  %v2817_v5 = vpop.xlane.xlu1 %2816  ;;  %v7095_v1 = vld [vmem:[#allocation34_spill] sm:$0xff]  ;;  %v2943_v35 = vunpack.c.l.b16 %v1097_v50 }
 0x7d7   : > { %4057 = vrcp.f32 %v2817_v5  ;;  %v7099_v55 = vld [vmem:[#allocation30_spill] sm:$0xff] }
 0x7d8   : > { %v4048_v59 = vpop.eup %4047  ;;  %v2368_v13 = vpack.c.bf16 %v2352_v19, %v2352_v19  ;;  %4059 = vrcp.f32 %v7092_v45  ;;  %v2957_v29 = vpack.c.b16 %v2944_v47, %v2943_v35 }
 0x7d9   : > { %v4050_v10 = vpop.eup %4049  ;;  %v3018_v34 = vpop.permute.xlu2 %3017  ;;  %v2905_v20 = vmul.f32 %v4048_v59, %v2870_v43  ;;  %4061 = vrcp.f32 %v7095_v1 }
 0x7da   : > { %v4052_v11 = vpop.eup %4051  ;;  %v6646_v62 = vsel %vm746_vm1, %v7094_v38, %v3018_v34  ;;  %v6650_v40 = vunpack.c.l.b16 %v2368_v13  ;;  %4063 = vrcp.f32 %v7096_v16  ;;  %v2348_v46 = vmul.f32 %v4050_v10, %v2308_v8 }
 0x7db   : > { %v4054_v27 = vpop.eup %4053  ;;  %v1077_v44 = vmul.f32 %v4052_v11, %v7097_v6  ;;  %4065 = vrcp.f32 %v7098_v0  ;;  %v2921_v30 = vpack.c.bf16 %v2905_v20, %v2905_v20  ;;  %v3123_v8 = vsel %vm746_vm1, %v2957_v29, %v6597_v23  ;;  %v2235_v16 = vpop.xlane.xlu0 %2234  ;;  %v7103_v6 = vld [vmem:[#allocation5_spill] sm:$0xff] }
 0x7dc   : > { %v4056_v4 = vpop.eup %4055  ;;  %v3058_v41 = vpack.c.b16 %v6650_v40, %v6648_v39  ;;  %v2347_v43 = vmul.f32 %v4054_v27, %v6615_v60  ;;  %v2364_v33 = vpack.c.bf16 %v2348_v46, %v2348_v46  ;;  %v3187_v34 = vunpack.c.l.b16 %v3123_v8 }
 0x7dd   : > { %v4058_v32 = vpop.eup %4057  ;;  %v1078_v53 = vmul.f32 %v4056_v4, %v7099_v55  ;;  %v1093_v5 = vpack.c.bf16 %v1077_v44, %v1077_v44  ;;  %v3089_v10 = vunpack.c.l.b16 %v2921_v30  ;;  %v3189_v11 = vunpack.c.h.b16 %v3123_v8  ;;  %v7102_v4 = vld [vmem:[#allocation18_spill] sm:$0xff]  ;;  %v7105_v30 = vld [vmem:[#allocation19_spill] sm:$0xff] }
 0x7de   : > { %v2906_v57 = vmul.f32 %v4058_v32, %v2872_v61  ;;  %v4060_v21 = vpop.eup %4059  ;;  %v2363_v13 = vpack.c.bf16 %v2347_v43, %v2347_v43  ;;  %v3046_v2 = vunpack.c.l.b16 %v2364_v33  ;;  %v7104_v43 = vld [vmem:[#allocation47_spill] sm:$0xff]  ;;  %4067 = vrcp.f32 %v2235_v16 }
 0x7df   : > { %v4062_v19 = vpop.eup %4061  ;;  %v1084_v38 = vmul.f32 %v4060_v21, %v7100_v36  ;;  %v1094_v27 = vpack.c.bf16 %v1078_v53, %v1078_v53  ;;  %v2939_v0 = vunpack.c.l.b16 %v1093_v5  ;;  %4069 = vrcp.f32 %v6631_v14 }
 0x7e0   : > { %v2922_v48 = vpack.c.bf16 %v2906_v57, %v2906_v57  ;;  %v4064_v50 = vpop.eup %4063  ;;  %v3045_v61 = vunpack.c.l.b16 %v2363_v13  ;;  %v7106_v57 = vpack.c.b16 %v7104_v43, %v7105_v30  ;;  %v3183_v36 = vunpack.c.l.b16 %v6543_v3 }
 0x7e1   : > { %v3104_v59 = vpop.permute.xlu2 %3103  ;;  %v4066_v47 = vpop.eup %4065  ;;  %v1086_v35 = vmul.f32 %v4064_v50, %v7102_v4  ;;  %v2940_v29 = vunpack.c.l.b16 %v1094_v27  ;;  %v1100_v53 = vpack.c.bf16 %v1084_v38, %v1084_v38  ;;  %v3185_v14 = vunpack.c.h.b16 %v6543_v3 }
 0x7e2   : > { %v3090_v45 = vunpack.c.l.b16 %v2922_v48  ;;  %v3147_v60 = vsel %vm746_vm1, %v3053_v37, %v3104_v59  ;;  %v1083_v37 = vmul.f32 %v4062_v19, %v7101_v15  ;;  %v1085_v44 = vmul.f32 %v4066_v47, %v7103_v6 }
 0x7e3   : > { %v3188_v20 = vunpack.c.l.b16 %v3147_v60  ;;  %v3190_v23 = vunpack.c.h.b16 %v3147_v60  ;;  %v3132_v21 = vsel %vm746_vm1, %v7106_v57, %v3014_v22  ;;  %v3056_v55 = vpack.c.b16 %v3046_v2, %v3045_v61 }
 0x7e4   : > { %v3098_v1 = vpack.c.b16 %v3090_v45, %v3089_v10  ;;  %v1099_v8 = vpack.c.bf16 %v1083_v37, %v1083_v37  ;;  %v1102_v33 = vpack.c.bf16 %v1086_v35, %v1086_v35  ;;  %v2955_v19 = vpack.c.b16 %v2940_v29, %v2939_v0 }
 0x7e5   : > { %v3215_v46 = vpack.c.b16 %v3188_v20, %v3187_v34  ;;  %v3216_v32 = vpack.c.b16 %v3190_v23, %v3189_v11  ;;  %v1101_v59 = vpack.c.bf16 %v1085_v44, %v1085_v44  ;;  %v3199_v50 = vunpack.c.l.b16 %v3132_v21  ;;  %v4068_v20 = vpop.eup %4067 }
 0x7e6   : > { %3113 = vrot.lane.b32.xlu1 %v3098_v1, %s4137_s9  ;;  %v3201_v13 = vunpack.c.h.b16 %v3132_v21  ;;  %v3117_v22 = vsel %vm746_vm1, %v2955_v19, %v6629_v49  ;;  %v2945_v60 = vunpack.c.l.b16 %v1099_v8  ;;  %v2948_v47 = vunpack.c.l.b16 %v1102_v33  ;;  %v4070_v4 = vpop.eup %4069 }
 0x7e7   : > { %3247 = vst [vmem:[%s6671_s14 + $0x20] sm:$0xff] %v3215_v46  ;;  %v2946_v23 = vunpack.c.l.b16 %v1100_v53  ;;  %v2947_v38 = vunpack.c.l.b16 %v1101_v59  ;;  %v3179_v2 = vunpack.c.l.b16 %v3117_v22  ;;  %v3181_v15 = vunpack.c.h.b16 %v3117_v22 }
 0x7e8   : > { %3248 = vst [vmem:[%s6671_s14 + $0x28] sm:$0xff] %v3216_v32  ;;  %v2350_v12 = vmul.f32 %v4068_v20, %v6625_v18  ;;  %v2349_v0 = vmul.f32 %v4070_v4, %v6623_v9 }
 0x7e9   : > { %v3110_v48 = vpop.permute.xlu2 %3109  ;;  %v2958_v32 = vpack.c.b16 %v2946_v23, %v2945_v60  ;;  %v2959_v6 = vpack.c.b16 %v2948_v47, %v2947_v38 }
 0x7ea   : > { %v3156_v5 = vsel %vm746_vm1, %v3056_v55, %v3110_v48  ;;  %v2366_v61 = vpack.c.bf16 %v2350_v12, %v2350_v12  ;;  %v2365_v55 = vpack.c.bf16 %v2349_v0, %v2349_v0 }
 0x7eb   : > { %v3200_v10 = vunpack.c.l.b16 %v3156_v5  ;;  %v3202_v45 = vunpack.c.h.b16 %v3156_v5  ;;  %v3126_v7 = vsel %vm746_vm1, %v2958_v32, %v6634_v28 }
 0x7ec   : > { %v3191_v29 = vunpack.c.l.b16 %v3126_v7  ;;  %v3193_v43 = vunpack.c.h.b16 %v3126_v7  ;;  %v3048_v48 = vunpack.c.l.b16 %v2366_v61  ;;  %v3047_v52 = vunpack.c.l.b16 %v2365_v55 }
 0x7ed   : > { %v3221_v34 = vpack.c.b16 %v3200_v10, %v3199_v50  ;;  %v3222_v11 = vpack.c.b16 %v3202_v45, %v3201_v13 }
 0x7ee   : > { %v3100_v27 = vpop.permute.xlu0 %3099  ;;  %v3102_v1 = vpop.permute.xlu1 %3101  ;;  %v3057_v54 = vpack.c.b16 %v3048_v48, %v3047_v52 }
 0x7ef   : > { %3253 = vst [vmem:[%s6671_s14 + $0x50] sm:$0xff] %v3221_v34  ;;  %v3141_v49 = vsel %vm746_vm1, %v3051_v56, %v3100_v27  ;;  %v3144_v37 = vsel %vm746_vm1, %v3052_v42, %v3102_v1  ;;  %v3129_v42 = vsel %vm746_vm1, %v2959_v6, %v6627_v24  ;;  %v3207_v34 = vunpack.c.l.b16 %v6646_v62 }
 0x7f0   : > { %3254 = vst [vmem:[%s6671_s14 + $0x58] sm:$0xff] %v3222_v11  ;;  %v3180_v3 = vunpack.c.l.b16 %v3141_v49  ;;  %v3182_v35 = vunpack.c.h.b16 %v3141_v49  ;;  %v3184_v16 = vunpack.c.l.b16 %v3144_v37  ;;  %v3186_v46 = vunpack.c.h.b16 %v3144_v37 }
 0x7f1   : > { %v3195_v30 = vunpack.c.l.b16 %v3129_v42  ;;  %v3197_v21 = vunpack.c.h.b16 %v3129_v42  ;;  %v3209_v11 = vunpack.c.h.b16 %v6646_v62 }
 0x7f2   : > { %v3211_v31 = vpack.c.b16 %v3180_v3, %v3179_v2  ;;  %v3212_v56 = vpack.c.b16 %v3182_v35, %v3181_v15  ;;  %v3213_v44 = vpack.c.b16 %v3184_v16, %v3183_v36  ;;  %v3214_v51 = vpack.c.b16 %v3186_v46, %v3185_v14 }
 0x7f4   : > { %3243 = vst [vmem:[%s6671_s14] sm:$0xff] %v3211_v31 }
 0x7f5   : > { %3244 = vst [vmem:[%s6671_s14 + $0x8] sm:$0xff] %v3212_v56 }
 0x7f6   : > { %3245 = vst [vmem:[%s6671_s14 + $0x10] sm:$0xff] %v3213_v44  ;;  %v3106_v18 = vpop.permute.xlu0 %3105  ;;  %v3108_v57 = vpop.permute.xlu1 %3107 }
 0x7f7   : > { %3246 = vst [vmem:[%s6671_s14 + $0x18] sm:$0xff] %v3214_v51  ;;  %v3150_v9 = vsel %vm746_vm1, %v3054_v26, %v3106_v18  ;;  %v3153_v24 = vsel %vm746_vm1, %v3055_v63, %v3108_v57  ;;  %v3205_v63 = vunpack.c.h.b16 %v6621_v58 }
 0x7f8   : > { %v3192_v28 = vunpack.c.l.b16 %v3150_v9  ;;  %v3194_v53 = vunpack.c.h.b16 %v3150_v9  ;;  %v3196_v8 = vunpack.c.l.b16 %v3153_v24  ;;  %v3198_v33 = vunpack.c.h.b16 %v3153_v24 }
 0x7fa   : > { %v3217_v19 = vpack.c.b16 %v3192_v28, %v3191_v29  ;;  %v3218_v59 = vpack.c.b16 %v3194_v53, %v3193_v43  ;;  %v3219_v5 = vpack.c.b16 %v3196_v8, %v3195_v30  ;;  %v3220_v50 = vpack.c.b16 %v3198_v33, %v3197_v21 }
 0x7fc   : > { %3249 = vst [vmem:[%s6671_s14 + $0x30] sm:$0xff] %v3217_v19 }
 0x7fd   : > { %3250 = vst [vmem:[%s6671_s14 + $0x38] sm:$0xff] %v3218_v59 }
 0x7fe   : > { %3251 = vst [vmem:[%s6671_s14 + $0x40] sm:$0xff] %v3219_v5  ;;  %v3112_v26 = vpop.permute.xlu0 %3111 }
 0x7ff   : > { %3252 = vst [vmem:[%s6671_s14 + $0x48] sm:$0xff] %v3220_v50  ;;  %v3159_v17 = vsel %vm746_vm1, %v3057_v54, %v3112_v26 }
 0x800   : > { %v3204_v13 = vunpack.c.l.b16 %v3159_v17  ;;  %v3206_v10 = vunpack.c.h.b16 %v3159_v17 }
 0x802   : > { %v3223_v45 = vpack.c.b16 %v3204_v13, %v3203_v25  ;;  %v3224_v22 = vpack.c.b16 %v3206_v10, %v3205_v63 }
 0x804   : > { %3255 = vst [vmem:[%s6671_s14 + $0x60] sm:$0xff] %v3223_v45 }
 0x805   : > { %3256 = vst [vmem:[%s6671_s14 + $0x68] sm:$0xff] %v3224_v22 }
 0x858   : > { %v3114_v60 = vpop.permute.xlu1 %3113 }
 0x859   : > { %v3162_v47 = vsel %vm746_vm1, %v3058_v41, %v3114_v60 }
 0x85a   : > { %v3208_v20 = vunpack.c.l.b16 %v3162_v47  ;;  %v3210_v23 = vunpack.c.h.b16 %v3162_v47 }
 0x85c   : > { %v3225_v58 = vpack.c.b16 %v3208_v20, %v3207_v34  ;;  %v3226_v36 = vpack.c.b16 %v3210_v23, %v3209_v11 }
 0x85e   : > { %3257 = vst [vmem:[%s6671_s14 + $0x70] sm:$0xff] %v3225_v58 }
 0x85f   : > { %3258 = vst [vmem:[%s6671_s14 + $0x78] sm:$0xff] %v3226_v36 }
 0x860 PF: > { %s15_s18 = sadd.s32 1, %s4133_s18  }
 0x861   : > { %p12_p4 = scmp.ge.s32.totalorder %s15_s18, 4  }
 0x863   :  { %14 = sbr.rel (!%p12_p4) target bundleno = 1 (0x1), region = 76 }

</bundles_post_ra>
